<compile_context>
chip_gen: v7x
topology: tpu7x:2x2x1
jax: 0.10.0
libtpu: 0.0.40
codegen_flags: <defaults>
</compile_context>

<pallas_src>
import jax
import jax.numpy as jnp
from jax.experimental import pallas as pl
from jax.experimental.pallas import tpu as pltpu


# ---------------------------------------------------------------------------
# In-kernel helpers
# ---------------------------------------------------------------------------

def _seq_pos(bt, L):
    """Within-sequence position t of every flattened (b, t) row -> [bt*L, 1] int32."""
    return jax.lax.broadcasted_iota(jnp.int32, (bt, L, 1), 1).reshape(bt * L, 1)


def _conv3_wide(xf, w_ref, b_ref, t_pos, L):
    """'same' 3-tap conv as ONE wide matmul + sublane shifts of the output chunks.

    xf:     [bt*L, Cin] f32, rows ordered (b, t) row-major
    w_ref:  [Cin, 3*Cout]; columns [k*Cout:(k+1)*Cout] hold tap k (tap 0 multiplies x[t-1])
    b_ref:  [1, Cout]
    t_pos:  [bt*L, 1] int32 within-sequence position (masks sequence/batch boundaries)
    """
    n, cin = xf.shape
    cout = w_ref.shape[1] // 3
    if cin == 1:
        zw = xf * w_ref[...]                 # degenerate K=1 contraction: VPU broadcast mul
    else:
        zw = jnp.dot(xf, w_ref[...], preferred_element_type=jnp.float32)   # [n, 3*Cout]
    z0 = zw[:, 0 * cout:1 * cout]            # tap for x[t-1]  -> feeds out[t] from row t-1
    z1 = zw[:, 1 * cout:2 * cout]            # tap for x[t]
    z2 = zw[:, 2 * cout:3 * cout]            # tap for x[t+1]  -> feeds out[t] from row t+1
    y = z1 + b_ref[...]
    # out[r] += z0[r-1]  (valid only when t > 0)
    y = y + jnp.where(t_pos > 0, pltpu.roll(z0, shift=1, axis=0), 0.0)
    # out[r] += z2[r+1]  (valid only when t < L-1); shift by n-1 == -1 (mod n)
    y = y + jnp.where(t_pos < L - 1, pltpu.roll(z2, shift=n - 1, axis=0), 0.0)
    return y


def _conv_res_relu(xf, w_ref, b_ref, rw_ref, rb_ref, t_pos, L):
    """[Conv1d | ConvTranspose1d] -> ResidualBlock(conv, relu, add) -> ReLU, fused."""
    y1 = _conv3_wide(xf, w_ref, b_ref, t_pos, L)                           # stage conv
    y2 = jnp.maximum(_conv3_wide(y1, rw_ref, rb_ref, t_pos, L), 0.0) + y1  # residual block
    return jnp.maximum(y2, 0.0)                                            # trailing ReLU


def _encoder_kernel(x_ref,
                    w1, b1, r1w, r1b,
                    w2, b2, r2w, r2b,
                    w3, b3, r3w, r3b,
                    o_ref):
    """Whole encoder (3 fused Conv->ResBlock->ReLU stages) for one batch tile."""
    bt, L, _ = x_ref.shape
    t_pos = _seq_pos(bt, L)
    h = x_ref[...].reshape(bt * L, 1).astype(jnp.float32)
    h = _conv_res_relu(h, w1, b1, r1w, r1b, t_pos, L)      # Conv1d   1 -> 128
    h = _conv_res_relu(h, w2, b2, r2w, r2b, t_pos, L)      # Conv1d 128 ->  64
    h = _conv_res_relu(h, w3, b3, r3w, r3b, t_pos, L)      # Conv1d  64 ->  32
    o_ref[...] = h.reshape(bt, L, h.shape[1]).astype(o_ref.dtype)


def _decoder_kernel(x_ref,
                    w1, b1, r1w, r1b,
                    w2, b2, r2w, r2b,
                    wf, bf,
                    o_ref):
    """Whole decoder (2 fused ConvT->ResBlock->ReLU stages + final ConvT(128->1))."""
    bt, L, c_in = x_ref.shape
    t_pos = _seq_pos(bt, L)
    h = x_ref[...].reshape(bt * L, c_in).astype(jnp.float32)
    h = _conv_res_relu(h, w1, b1, r1w, r1b, t_pos, L)      # ConvT  32 ->  64
    h = _conv_res_relu(h, w2, b2, r2w, r2b, t_pos, L)      # ConvT  64 -> 128
    y = _conv3_wide(h, wf, bf, t_pos, L)                   # ConvT 128 ->   1 (no act)
    # TODO(synk): a lane-dense [bt, L] output block (lane-reduction formulation of the
    # final conv) would avoid the 1-lane masked stores here.
    o_ref[...] = y.reshape(bt, L, 1).astype(o_ref.dtype)


def _lstm_kernel(x_ref, wih_ref, whh_ref, b_ref, o_ref, buf_ref, gx_ref):
    """3-layer LSTM, batch-tiled.  x_ref/o_ref: [bt, L, H]; scratch refs are time-major."""
    bt, L, H = x_ref.shape
    num_layers = wih_ref.shape[0]

    # Batch-major block -> time-major scratch (bt is a small static constant: unrolled copies).
    for b in range(bt):
        buf_ref[:, b, :] = x_ref[b].astype(jnp.float32)

    for layer in range(num_layers):                        # static unroll over layers
        whh = whh_ref[layer]                               # [H, 4H], resident in VMEM
        # Hoisted input projection: ONE big MXU matmul per layer (off the serial path).
        gx_ref[...] = (
            jnp.dot(buf_ref[...].reshape(L * bt, H), wih_ref[layer],
                    preferred_element_type=jnp.float32) + b_ref[layer]
        ).reshape(L, bt, 4 * H)

        def step(t, carry, whh=whh):
            h, c = carry                                   # [bt, H] each
            gates = gx_ref[t] + jnp.dot(h, whh, preferred_element_type=jnp.float32)
            i_g = jax.nn.sigmoid(gates[:, 0 * H:1 * H])    # PyTorch gate order i|f|g|o
            f_g = jax.nn.sigmoid(gates[:, 1 * H:2 * H])
            g_g = jnp.tanh(gates[:, 2 * H:3 * H])
            o_g = jax.nn.sigmoid(gates[:, 3 * H:4 * H])
            c_new = f_g * c + i_g * g_g
            h_new = o_g * jnp.tanh(c_new)
            buf_ref[t] = h_new                             # in place: next layer's input
            return h_new, c_new

        zeros = jnp.zeros((bt, H), jnp.float32)
        jax.lax.fori_loop(0, L, step, (zeros, zeros))
        # TODO(synk): nn.LSTM inter-layer dropout(p=0.5) is training-only; the inference
        # forward pass (dropout == identity) is what is implemented here.

    for b in range(bt):
        o_ref[b] = buf_ref[:, b, :].astype(o_ref.dtype)


# ---------------------------------------------------------------------------
# pallas_call wrappers
# ---------------------------------------------------------------------------

_LSTM_BATCH_TILE = 8      # one full sublane group for the per-step [bt, H] tensors


def _vmem_capacity_bytes():
    try:
        return int(pltpu.get_tpu_info().vmem_capacity_bytes)
    except Exception:
        return 64 * 1024 * 1024          # v7x-safe fallback


def _pick_conv_batch_tile(batch, L):
    """VMEM-budget-aware batch tile for the fused conv kernels (+ vmem limit to request)."""
    cap = _vmem_capacity_bytes()
    vmem_limit = (cap * 3) // 4
    budget = vmem_limit // 2             # headroom for double-buffered I/O blocks + temps
    # Per-batch-row live f32 bytes in the widest fused stage: x(128) + wide conv out(384)
    # + y1(128) + wide residual out(384) + shift/mask temps(~256) channel-equivalents,
    # plus the lane-padded [*, L, 1] input block (~128) and the 32-channel output block.
    per_row = 4 * L * (1280 + 128 + 2 * 32)
    bt = max(1, min(batch, budget // max(per_row, 1)))
    while batch % bt:
        bt -= 1
    if batch // bt == 1 and batch % 2 == 0 and batch > 1:
        bt = batch // 2                  # guarantee >= 2 parallel grid steps (v7x megacore)
    return bt, int(vmem_limit)


def _resident_spec(arr):
    nd = arr.ndim
    return pl.BlockSpec(arr.shape, lambda i, _nd=nd: (0,) * _nd)


def _encode(x3, enc_params, bt, vmem_limit):
    """x3: [Bp, L, 1] -> [Bp, L, 32]; whole encoder in one pallas_call."""
    Bp, L, _ = x3.shape
    weights = [a for stage in enc_params for a in stage]
    c_out = enc_params[-1][2].shape[1] // 3
    conv_ws = [a for (w, _, rw, _) in enc_params for a in (w, rw)]
    flops = 2 * Bp * L * sum(int(a.size) for a in conv_ws)
    bytes_accessed = 4 * (int(x3.size) + Bp * L * c_out + sum(int(a.size) for a in weights))
    return pl.pallas_call(
        _encoder_kernel,
        out_shape=jax.ShapeDtypeStruct((Bp, L, c_out), x3.dtype),
        grid_spec=pltpu.PrefetchScalarGridSpec(
            num_scalar_prefetch=0,
            grid=(Bp // bt,),
            in_specs=[pl.BlockSpec((bt, L, 1), lambda i: (i, 0, 0))]
                     + [_resident_spec(a) for a in weights],
            out_specs=pl.BlockSpec((bt, L, c_out), lambda i: (i, 0, 0)),
        ),
        compiler_params=pltpu.CompilerParams(
            dimension_semantics=("parallel",), vmem_limit_bytes=vmem_limit),
        cost_estimate=pl.CostEstimate(flops=int(flops), transcendentals=0,
                                      bytes_accessed=int(bytes_accessed)),
    )(x3, *weights)


def _decode(x, dec_params, final_params, bt, vmem_limit):
    """x: [Bp, L, 32] -> [Bp, L, 1]; whole decoder (incl. final ConvT) in one pallas_call."""
    Bp, L, c_in = x.shape
    weights = [a for stage in dec_params for a in stage] + list(final_params)
    conv_ws = [a for (w, _, rw, _) in dec_params for a in (w, rw)] + [final_params[0]]
    flops = 2 * Bp * L * sum(int(a.size) for a in conv_ws)
    bytes_accessed = 4 * (int(x.size) + Bp * L + sum(int(a.size) for a in weights))
    return pl.pallas_call(
        _decoder_kernel,
        out_shape=jax.ShapeDtypeStruct((Bp, L, 1), x.dtype),
        grid_spec=pltpu.PrefetchScalarGridSpec(
            num_scalar_prefetch=0,
            grid=(Bp // bt,),
            in_specs=[pl.BlockSpec((bt, L, c_in), lambda i: (i, 0, 0))]
                     + [_resident_spec(a) for a in weights],
            out_specs=pl.BlockSpec((bt, L, 1), lambda i: (i, 0, 0)),
        ),
        compiler_params=pltpu.CompilerParams(
            dimension_semantics=("parallel",), vmem_limit_bytes=vmem_limit),
        cost_estimate=pl.CostEstimate(flops=int(flops), transcendentals=0,
                                      bytes_accessed=int(bytes_accessed)),
    )(x, *weights)


def _lstm(x, lstm_params, vmem_limit):
    """x: [Bp, L, H] -> [Bp, L, H]; 3-layer LSTM, batch-tiled grid (parallel)."""
    Bp, L, H = x.shape
    wih, whh, b = lstm_params
    num_layers = int(wih.shape[0])
    bt = _LSTM_BATCH_TILE
    assert Bp % bt == 0
    flops = num_layers * 4 * Bp * L * H * (4 * H)          # hoisted proj + recurrent matmul
    transcendentals = num_layers * Bp * L * 5 * H
    bytes_accessed = 4 * (2 * Bp * L * H + int(wih.size) + int(whh.size) + int(b.size))
    return pl.pallas_call(
        _lstm_kernel,
        out_shape=jax.ShapeDtypeStruct((Bp, L, H), x.dtype),
        grid_spec=pltpu.PrefetchScalarGridSpec(
            num_scalar_prefetch=0,
            grid=(Bp // bt,),
            in_specs=[pl.BlockSpec((bt, L, H), lambda i: (i, 0, 0)),
                      _resident_spec(wih), _resident_spec(whh), _resident_spec(b)],
            out_specs=pl.BlockSpec((bt, L, H), lambda i: (i, 0, 0)),
            scratch_shapes=[pltpu.VMEM((L, bt, H), jnp.float32),
                            pltpu.VMEM((L, bt, 4 * H), jnp.float32)],
        ),
        compiler_params=pltpu.CompilerParams(
            dimension_semantics=("parallel",), vmem_limit_bytes=vmem_limit),
        cost_estimate=pl.CostEstimate(flops=int(flops), transcendentals=int(transcendentals),
                                      bytes_accessed=int(bytes_accessed)),
    )(x, wih, whh, b)


def residual_conv1d_lstm_autoencoder(x, params):
    """Forward pass of the PyTorch module.  x: [B, L] -> [B, L]."""
    B, L = x.shape
    Bp = ((B + _LSTM_BATCH_TILE - 1) // _LSTM_BATCH_TILE) * _LSTM_BATCH_TILE
    if Bp != B:                                  # pad the batch instead of shrinking tiles
        x = jnp.pad(x, ((0, Bp - B), (0, 0)))
    bt, vmem_limit = _pick_conv_batch_tile(Bp, L)
    h = _encode(x[:, :, None], params["enc"], bt, vmem_limit)          # [Bp, L, 32]
    h = _lstm(h, params["lstm"], vmem_limit)                            # [Bp, L, 32]
    y = _decode(h, params["dec"], params["final"], bt, vmem_limit)      # [Bp, L, 1]
    return y[:B, :, 0]


# ---------------------------------------------------------------------------
# Parameter construction (PyTorch layouts) and conversion to kernel layouts
# ---------------------------------------------------------------------------

def _uniform(key, shape, bound):
    return jax.random.uniform(key, shape, jnp.float32, -bound, bound)


def init_torch_style_params(key):
    """Deterministic parameters in PyTorch's native layouts / init ranges."""
    keys = iter(jax.random.split(key, 40))

    def conv(cout, cin, k=3):        # nn.Conv1d: weight [Cout, Cin, K]
        bound = 1.0 / (cin * k) ** 0.5
        return (_uniform(next(keys), (cout, cin, k), bound),
                _uniform(next(keys), (cout,), bound))

    def convT(cin, cout, k=3):       # nn.ConvTranspose1d: weight [Cin, Cout, K]
        bound = 1.0 / (cout * k) ** 0.5
        return (_uniform(next(keys), (cin, cout, k), bound),
                _uniform(next(keys), (cout,), bound))

    enc = [conv(128, 1) + conv(128, 128),
           conv(64, 128) + conv(64, 64),
           conv(32, 64) + conv(32, 32)]

    H = 32
    lstm = []
    for _ in range(3):
        bound = 1.0 / H ** 0.5
        lstm.append((_uniform(next(keys), (4 * H, H), bound),    # weight_ih_l{k}
                     _uniform(next(keys), (4 * H, H), bound),    # weight_hh_l{k}
                     _uniform(next(keys), (4 * H,), bound),      # bias_ih_l{k}
                     _uniform(next(keys), (4 * H,), bound)))     # bias_hh_l{k}

    dec = [convT(32, 64) + conv(64, 64),
           convT(64, 128) + conv(128, 128)]
    final = convT(128, 1)
    return dict(enc=enc, lstm=lstm, dec=dec, final=final)


def convert_params_for_kernels(tp):
    """PyTorch layouts -> wide [Cin, 3*Cout] conv taps / stacked LSTM mats."""

    def conv_wide(w):        # Conv1d [Cout, Cin, K] -> [Cin, K*Cout]
        co, ci, k = w.shape
        return jnp.transpose(w, (1, 2, 0)).reshape(ci, k * co)

    def convT_wide(w):       # ConvTranspose1d [Cin, Cout, K] -> flipped taps [Cin, K*Cout]
        ci, co, k = w.shape
        return jnp.transpose(jnp.flip(w, axis=-1), (0, 2, 1)).reshape(ci, k * co)

    def bias(b):
        return b.reshape(1, b.shape[0])

    enc = [(conv_wide(w1), bias(b1), conv_wide(w2), bias(b2))
           for (w1, b1, w2, b2) in tp["enc"]]
    dec = [(convT_wide(w1), bias(b1), conv_wide(w2), bias(b2))
           for (w1, b1, w2, b2) in tp["dec"]]
    wih = jnp.stack([w.T for (w, _, _, _) in tp["lstm"]])                   # [3, H, 4H]
    whh = jnp.stack([w.T for (_, w, _, _) in tp["lstm"]])                   # [3, H, 4H]
    b = jnp.stack([(bi + bh)[None, :] for (_, _, bi, bh) in tp["lstm"]])    # [3, 1, 4H]
    wf, bf = tp["final"]
    return dict(enc=enc, lstm=(wih, whh, b), dec=dec, final=(convT_wide(wf), bias(bf)))


# ---------------------------------------------------------------------------
# Pure-JAX reference (XLA convs + scanned LSTM) for a correctness check
# ---------------------------------------------------------------------------

def _conv1d_ref(x_ncl, w, b):
    y = jax.lax.conv_general_dilated(
        x_ncl, w, window_strides=(1,), padding=[(1, 1)],
        dimension_numbers=("NCH", "OIH", "NCH"))
    return y + b[None, :, None]


def _convT1d_ref(x_ncl, w, b):
    # stride=1, padding=1, k=3: ConvTranspose1d == Conv1d with flipped kernel and
    # swapped in/out channel axes.
    return _conv1d_ref(x_ncl, jnp.transpose(jnp.flip(w, axis=-1), (1, 0, 2)), b)


def _lstm_ref(x_blh, lstm_params):
    B, _, H = x_blh.shape
    h_seq = x_blh
    for (wih, whh, bih, bhh) in lstm_params:
        def step(carry, x_t, wih=wih, whh=whh, b=bih + bhh):
            h, c = carry
            gates = x_t @ wih.T + h @ whh.T + b
            i, f, g, o = jnp.split(gates, 4, axis=-1)
            c = jax.nn.sigmoid(f) * c + jax.nn.sigmoid(i) * jnp.tanh(g)
            h = jax.nn.sigmoid(o) * jnp.tanh(c)
            return (h, c), h
        zeros = jnp.zeros((B, H), jnp.float32)
        _, ys = jax.lax.scan(step, (zeros, zeros), jnp.swapaxes(h_seq, 0, 1))
        h_seq = jnp.swapaxes(ys, 0, 1)
    return h_seq


def reference_forward(x_bl, tp):
    x = x_bl[:, None, :]                                  # [B, 1, L]
    for (w1, b1, w2, b2) in tp["enc"]:
        y1 = _conv1d_ref(x, w1, b1)
        x = jnp.maximum(jnp.maximum(_conv1d_ref(y1, w2, b2), 0.0) + y1, 0.0)
    h = _lstm_ref(jnp.transpose(x, (0, 2, 1)), tp["lstm"])
    x = jnp.transpose(h, (0, 2, 1))
    for (w1, b1, w2, b2) in tp["dec"]:
        y1 = _convT1d_ref(x, w1, b1)
        x = jnp.maximum(jnp.maximum(_conv1d_ref(y1, w2, b2), 0.0) + y1, 0.0)
    wf, bf = tp["final"]
    return _convT1d_ref(x, wf, bf)[:, 0, :]


# ---------------------------------------------------------------------------

if __name__ == "__main__":
    batch, seq_len = 4, 16

    key = jax.random.PRNGKey(0)
    k_x, k_p = jax.random.split(key)
    x = jax.random.normal(k_x, (batch, seq_len), jnp.float32)

    torch_params = init_torch_style_params(k_p)
    kernel_params = convert_params_for_kernels(torch_params)

    fwd = jax.jit(lambda xx: residual_conv1d_lstm_autoencoder(xx, kernel_params))
    out = jax.block_until_ready(fwd(x))

    ref = jax.block_until_ready(reference_forward(x, torch_params))
    assert out.shape == (batch, seq_len)
    max_err = float(jnp.max(jnp.abs(out - ref)))
    assert jnp.allclose(out, ref, atol=2e-3, rtol=2e-3), f"max abs err {max_err}"

    print("KERNEL_OK")
</pallas_src>

<mosaic_0001>
module attributes {stable_mosaic.version = 11 : i64} {
  func.func @_lstm_kernel(%arg0: i32, %arg1: memref<8x16x32xf32, #tpu.memory_space<vmem>>, %arg2: memref<3x32x128xf32, #tpu.memory_space<vmem>>, %arg3: memref<3x32x128xf32, #tpu.memory_space<vmem>>, %arg4: memref<3x1x128xf32, #tpu.memory_space<vmem>>, %arg5: memref<8x16x32xf32, #tpu.memory_space<vmem>>, %arg6: memref<16x8x32xf32, #tpu.memory_space<vmem>>, %arg7: memref<16x8x128xf32, #tpu.memory_space<vmem>>) attributes {dimension_semantics = [#tpu.dimension_semantics<parallel>], iteration_bounds = array<i64: 1>, scalar_prefetch = 0 : i64, scratch_operands = 2 : i64, tpu.core_type = #tpu.core_type<tc>, window_params = [{transform_indices = @transform_0, window_bounds = array<i64: 8, 16, 32>}, {pipeline_mode = #tpu.pipeline_mode<synchronous>, transform_indices = @transform_1, window_bounds = array<i64: 3, 32, 128>}, {pipeline_mode = #tpu.pipeline_mode<synchronous>, transform_indices = @transform_2, window_bounds = array<i64: 3, 32, 128>}, {pipeline_mode = #tpu.pipeline_mode<synchronous>, transform_indices = @transform_3, window_bounds = array<i64: 3, 1, 128>}, {transform_indices = @transform_4, window_bounds = array<i64: 8, 16, 32>}]} {
    %c0 = arith.constant 0 : index
    %c0_0 = arith.constant 0 : index
    %c0_1 = arith.constant 0 : index
    %0 = vector.load %arg1[%c0, %c0_0, %c0_1] : memref<8x16x32xf32, #tpu.memory_space<vmem>>, vector<1x16x32xf32>
    %1 = vector.shape_cast %0 : vector<1x16x32xf32> to vector<16x32xf32>
    %c0_2 = arith.constant 0 : index
    %c0_3 = arith.constant 0 : index
    %c0_4 = arith.constant 0 : index
    %2 = vector.load %arg6[%c0_2, %c0_3, %c0_4] : memref<16x8x32xf32, #tpu.memory_space<vmem>>, vector<16x1x32xf32>
    %3 = vector.shape_cast %2 : vector<16x1x32xf32> to vector<16x32xf32>
    %4 = vector.shape_cast %1 : vector<16x32xf32> to vector<16x1x32xf32>
    tpu.vector_store %arg6[%c0_2, %c0_3, %c0_4], %4 {strides = array<i32>} : memref<16x8x32xf32, #tpu.memory_space<vmem>>, vector<16x1x32xf32>,
    %c1 = arith.constant 1 : index
    %c0_5 = arith.constant 0 : index
    %c0_6 = arith.constant 0 : index
    %5 = vector.load %arg1[%c1, %c0_5, %c0_6] : memref<8x16x32xf32, #tpu.memory_space<vmem>>, vector<1x16x32xf32>
    %6 = vector.shape_cast %5 : vector<1x16x32xf32> to vector<16x32xf32>
    %c0_7 = arith.constant 0 : index
    %c1_8 = arith.constant 1 : index
    %c0_9 = arith.constant 0 : index
    %7 = vector.load %arg6[%c0_7, %c1_8, %c0_9] : memref<16x8x32xf32, #tpu.memory_space<vmem>>, vector<16x1x32xf32>
    %8 = vector.shape_cast %7 : vector<16x1x32xf32> to vector<16x32xf32>
    %9 = vector.shape_cast %6 : vector<16x32xf32> to vector<16x1x32xf32>
    tpu.vector_store %arg6[%c0_7, %c1_8, %c0_9], %9 {strides = array<i32>} : memref<16x8x32xf32, #tpu.memory_space<vmem>>, vector<16x1x32xf32>,
    %c2 = arith.constant 2 : index
    %c0_10 = arith.constant 0 : index
    %c0_11 = arith.constant 0 : index
    %10 = vector.load %arg1[%c2, %c0_10, %c0_11] : memref<8x16x32xf32, #tpu.memory_space<vmem>>, vector<1x16x32xf32>
    %11 = vector.shape_cast %10 : vector<1x16x32xf32> to vector<16x32xf32>
    %c0_12 = arith.constant 0 : index
    %c2_13 = arith.constant 2 : index
    %c0_14 = arith.constant 0 : index
    %12 = vector.load %arg6[%c0_12, %c2_13, %c0_14] : memref<16x8x32xf32, #tpu.memory_space<vmem>>, vector<16x1x32xf32>
    %13 = vector.shape_cast %12 : vector<16x1x32xf32> to vector<16x32xf32>
    %14 = vector.shape_cast %11 : vector<16x32xf32> to vector<16x1x32xf32>
    tpu.vector_store %arg6[%c0_12, %c2_13, %c0_14], %14 {strides = array<i32>} : memref<16x8x32xf32, #tpu.memory_space<vmem>>, vector<16x1x32xf32>,
    %c3 = arith.constant 3 : index
    %c0_15 = arith.constant 0 : index
    %c0_16 = arith.constant 0 : index
    %15 = vector.load %arg1[%c3, %c0_15, %c0_16] : memref<8x16x32xf32, #tpu.memory_space<vmem>>, vector<1x16x32xf32>
    %16 = vector.shape_cast %15 : vector<1x16x32xf32> to vector<16x32xf32>
    %c0_17 = arith.constant 0 : index
    %c3_18 = arith.constant 3 : index
    %c0_19 = arith.constant 0 : index
    %17 = vector.load %arg6[%c0_17, %c3_18, %c0_19] : memref<16x8x32xf32, #tpu.memory_space<vmem>>, vector<16x1x32xf32>
    %18 = vector.shape_cast %17 : vector<16x1x32xf32> to vector<16x32xf32>
    %19 = vector.shape_cast %16 : vector<16x32xf32> to vector<16x1x32xf32>
    tpu.vector_store %arg6[%c0_17, %c3_18, %c0_19], %19 {strides = array<i32>} : memref<16x8x32xf32, #tpu.memory_space<vmem>>, vector<16x1x32xf32>,
    %c4 = arith.constant 4 : index
    %c0_20 = arith.constant 0 : index
    %c0_21 = arith.constant 0 : index
    %20 = vector.load %arg1[%c4, %c0_20, %c0_21] : memref<8x16x32xf32, #tpu.memory_space<vmem>>, vector<1x16x32xf32>
    %21 = vector.shape_cast %20 : vector<1x16x32xf32> to vector<16x32xf32>
    %c0_22 = arith.constant 0 : index
    %c4_23 = arith.constant 4 : index
    %c0_24 = arith.constant 0 : index
    %22 = vector.load %arg6[%c0_22, %c4_23, %c0_24] : memref<16x8x32xf32, #tpu.memory_space<vmem>>, vector<16x1x32xf32>
    %23 = vector.shape_cast %22 : vector<16x1x32xf32> to vector<16x32xf32>
    %24 = vector.shape_cast %21 : vector<16x32xf32> to vector<16x1x32xf32>
    tpu.vector_store %arg6[%c0_22, %c4_23, %c0_24], %24 {strides = array<i32>} : memref<16x8x32xf32, #tpu.memory_space<vmem>>, vector<16x1x32xf32>,
    %c5 = arith.constant 5 : index
    %c0_25 = arith.constant 0 : index
    %c0_26 = arith.constant 0 : index
    %25 = vector.load %arg1[%c5, %c0_25, %c0_26] : memref<8x16x32xf32, #tpu.memory_space<vmem>>, vector<1x16x32xf32>
    %26 = vector.shape_cast %25 : vector<1x16x32xf32> to vector<16x32xf32>
    %c0_27 = arith.constant 0 : index
    %c5_28 = arith.constant 5 : index
    %c0_29 = arith.constant 0 : index
    %27 = vector.load %arg6[%c0_27, %c5_28, %c0_29] : memref<16x8x32xf32, #tpu.memory_space<vmem>>, vector<16x1x32xf32>
    %28 = vector.shape_cast %27 : vector<16x1x32xf32> to vector<16x32xf32>
    %29 = vector.shape_cast %26 : vector<16x32xf32> to vector<16x1x32xf32>
    tpu.vector_store %arg6[%c0_27, %c5_28, %c0_29], %29 {strides = array<i32>} : memref<16x8x32xf32, #tpu.memory_space<vmem>>, vector<16x1x32xf32>,
    %c6 = arith.constant 6 : index
    %c0_30 = arith.constant 0 : index
    %c0_31 = arith.constant 0 : index
    %30 = vector.load %arg1[%c6, %c0_30, %c0_31] : memref<8x16x32xf32, #tpu.memory_space<vmem>>, vector<1x16x32xf32>
    %31 = vector.shape_cast %30 : vector<1x16x32xf32> to vector<16x32xf32>
    %c0_32 = arith.constant 0 : index
    %c6_33 = arith.constant 6 : index
    %c0_34 = arith.constant 0 : index
    %32 = vector.load %arg6[%c0_32, %c6_33, %c0_34] : memref<16x8x32xf32, #tpu.memory_space<vmem>>, vector<16x1x32xf32>
    %33 = vector.shape_cast %32 : vector<16x1x32xf32> to vector<16x32xf32>
    %34 = vector.shape_cast %31 : vector<16x32xf32> to vector<16x1x32xf32>
    tpu.vector_store %arg6[%c0_32, %c6_33, %c0_34], %34 {strides = array<i32>} : memref<16x8x32xf32, #tpu.memory_space<vmem>>, vector<16x1x32xf32>,
    %c7 = arith.constant 7 : index
    %c0_35 = arith.constant 0 : index
    %c0_36 = arith.constant 0 : index
    %35 = vector.load %arg1[%c7, %c0_35, %c0_36] : memref<8x16x32xf32, #tpu.memory_space<vmem>>, vector<1x16x32xf32>
    %36 = vector.shape_cast %35 : vector<1x16x32xf32> to vector<16x32xf32>
    %c0_37 = arith.constant 0 : index
    %c7_38 = arith.constant 7 : index
    %c0_39 = arith.constant 0 : index
    %37 = vector.load %arg6[%c0_37, %c7_38, %c0_39] : memref<16x8x32xf32, #tpu.memory_space<vmem>>, vector<16x1x32xf32>
    %38 = vector.shape_cast %37 : vector<16x1x32xf32> to vector<16x32xf32>
    %39 = vector.shape_cast %36 : vector<16x32xf32> to vector<16x1x32xf32>
    tpu.vector_store %arg6[%c0_37, %c7_38, %c0_39], %39 {strides = array<i32>} : memref<16x8x32xf32, #tpu.memory_space<vmem>>, vector<16x1x32xf32>,
    %c0_40 = arith.constant 0 : index
    %c0_41 = arith.constant 0 : index
    %c0_42 = arith.constant 0 : index
    %40 = vector.load %arg3[%c0_40, %c0_41, %c0_42] : memref<3x32x128xf32, #tpu.memory_space<vmem>>, vector<1x32x128xf32>
    %41 = vector.shape_cast %40 : vector<1x32x128xf32> to vector<32x128xf32>
    %c0_43 = arith.constant 0 : index
    %c0_44 = arith.constant 0 : index
    %c0_45 = arith.constant 0 : index
    %42 = vector.load %arg6[%c0_43, %c0_44, %c0_45] : memref<16x8x32xf32, #tpu.memory_space<vmem>>, vector<16x8x32xf32>
    %43 = vector.shape_cast %42 : vector<16x8x32xf32> to vector<128x32xf32>
    %c0_46 = arith.constant 0 : index
    %c0_47 = arith.constant 0 : index
    %c0_48 = arith.constant 0 : index
    %44 = vector.load %arg2[%c0_46, %c0_47, %c0_48] : memref<3x32x128xf32, #tpu.memory_space<vmem>>, vector<1x32x128xf32>
    %45 = vector.shape_cast %44 : vector<1x32x128xf32> to vector<32x128xf32>
    %cst = arith.constant dense<0.000000e+00> : vector<128x128xf32>
    %46 = tpu.matmul %43, %45, %cst {dimension_numbers = #tpu.dot_dimension_numbers<[1], [0], [0], [1], [0, 0, 1, 1], [], []>} : vector<128x32xf32>, vector<32x128xf32>, vector<128x128xf32> -> vector<128x128xf32>
    %c0_49 = arith.constant 0 : index
    %c0_50 = arith.constant 0 : index
    %c0_51 = arith.constant 0 : index
    %47 = vector.load %arg4[%c0_49, %c0_50, %c0_51] : memref<3x1x128xf32, #tpu.memory_space<vmem>>, vector<1x1x128xf32>
    %48 = vector.shape_cast %47 : vector<1x1x128xf32> to vector<1x128xf32>
    %49 = vector.broadcast %48 : vector<1x128xf32> to vector<128x128xf32>
    %50 = arith.addf %46, %49 : vector<128x128xf32>
    %51 = vector.shape_cast %50 : vector<128x128xf32> to vector<16x8x128xf32>
    %c0_52 = arith.constant 0 : index
    %c0_53 = arith.constant 0 : index
    %c0_54 = arith.constant 0 : index
    %52 = vector.load %arg7[%c0_52, %c0_53, %c0_54] : memref<16x8x128xf32, #tpu.memory_space<vmem>>, vector<16x8x128xf32>
    tpu.vector_store %arg7[%c0_52, %c0_53, %c0_54], %51 {strides = array<i32>} : memref<16x8x128xf32, #tpu.memory_space<vmem>>, vector<16x8x128xf32>,
    %cst_55 = arith.constant 0.000000e+00 : f32
    %53 = vector.broadcast %cst_55 : f32 to vector<8x32xf32>
    %c0_i32 = arith.constant 0 : i32
    %c16_i32 = arith.constant 16 : i32
    %54 = arith.addi %c0_i32, %c16_i32 : i32
    %c1_i32 = arith.constant 1 : i32
    %55:2 = scf.for %arg8 = %c0_i32 to %54 step %c1_i32 iter_args(%arg9 = %53, %arg10 = %53) -> (vector<8x32xf32>, vector<8x32xf32>)  : i32 {
      %128 = arith.index_cast %arg8 : i32 to index
      %c0_147 = arith.constant 0 : index
      %c0_148 = arith.constant 0 : index
      %129 = vector.load %arg7[%128, %c0_147, %c0_148] : memref<16x8x128xf32, #tpu.memory_space<vmem>>, vector<1x8x128xf32>
      %130 = vector.shape_cast %129 : vector<1x8x128xf32> to vector<8x128xf32>
      %cst_149 = arith.constant dense<0.000000e+00> : vector<8x128xf32>
      %131 = tpu.matmul %arg9, %41, %cst_149 {dimension_numbers = #tpu.dot_dimension_numbers<[1], [0], [0], [1], [0, 0, 1, 1], [], []>} : vector<8x32xf32>, vector<32x128xf32>, vector<8x128xf32> -> vector<8x128xf32>
      %132 = arith.addf %130, %131 : vector<8x128xf32>
      %133 = vector.extract_strided_slice %132 {offsets = [0, 0], sizes = [8, 32], strides = [1, 1]} : vector<8x128xf32> to vector<8x32xf32>
      %134 = arith.negf %133 : vector<8x32xf32>
      %135 = math.exp %134 : vector<8x32xf32>
      %cst_150 = arith.constant 1.000000e+00 : f32
      %136 = vector.broadcast %cst_150 : f32 to vector<8x32xf32>
      %137 = arith.addf %136, %135 : vector<8x32xf32>
      %138 = arith.divf %136, %137 : vector<8x32xf32>
      %139 = vector.extract_strided_slice %132 {offsets = [0, 32], sizes = [8, 32], strides = [1, 1]} : vector<8x128xf32> to vector<8x32xf32>
      %140 = arith.negf %139 : vector<8x32xf32>
      %141 = math.exp %140 : vector<8x32xf32>
      %cst_151 = arith.constant 1.000000e+00 : f32
      %142 = vector.broadcast %cst_151 : f32 to vector<8x32xf32>
      %143 = arith.addf %142, %141 : vector<8x32xf32>
      %144 = arith.divf %142, %143 : vector<8x32xf32>
      %145 = vector.extract_strided_slice %132 {offsets = [0, 64], sizes = [8, 32], strides = [1, 1]} : vector<8x128xf32> to vector<8x32xf32>
      %146 = math.tanh %145 : vector<8x32xf32>
      %147 = vector.extract_strided_slice %132 {offsets = [0, 96], sizes = [8, 32], strides = [1, 1]} : vector<8x128xf32> to vector<8x32xf32>
      %148 = arith.negf %147 : vector<8x32xf32>
      %149 = math.exp %148 : vector<8x32xf32>
      %cst_152 = arith.constant 1.000000e+00 : f32
      %150 = vector.broadcast %cst_152 : f32 to vector<8x32xf32>
      %151 = arith.addf %150, %149 : vector<8x32xf32>
      %152 = arith.divf %150, %151 : vector<8x32xf32>
      %153 = arith.mulf %144, %arg10 : vector<8x32xf32>
      %154 = arith.mulf %138, %146 : vector<8x32xf32>
      %155 = arith.addf %153, %154 : vector<8x32xf32>
      %156 = math.tanh %155 : vector<8x32xf32>
      %157 = arith.mulf %152, %156 : vector<8x32xf32>
      %158 = arith.index_cast %arg8 : i32 to index
      %c0_153 = arith.constant 0 : index
      %c0_154 = arith.constant 0 : index
      %159 = vector.load %arg6[%158, %c0_153, %c0_154] : memref<16x8x32xf32, #tpu.memory_space<vmem>>, vector<1x8x32xf32>
      %160 = vector.shape_cast %159 : vector<1x8x32xf32> to vector<8x32xf32>
      %161 = vector.shape_cast %157 : vector<8x32xf32> to vector<1x8x32xf32>
      tpu.vector_store %arg6[%158, %c0_153, %c0_154], %161 {strides = array<i32>} : memref<16x8x32xf32, #tpu.memory_space<vmem>>, vector<1x8x32xf32>,
      scf.yield %157, %155 : vector<8x32xf32>, vector<8x32xf32>
    }
    %c16_i32_56 = arith.constant 16 : i32
    %c1_57 = arith.constant 1 : index
    %c0_58 = arith.constant 0 : index
    %c0_59 = arith.constant 0 : index
    %56 = vector.load %arg3[%c1_57, %c0_58, %c0_59] : memref<3x32x128xf32, #tpu.memory_space<vmem>>, vector<1x32x128xf32>
    %57 = vector.shape_cast %56 : vector<1x32x128xf32> to vector<32x128xf32>
    %c0_60 = arith.constant 0 : index
    %c0_61 = arith.constant 0 : index
    %c0_62 = arith.constant 0 : index
    %58 = vector.load %arg6[%c0_60, %c0_61, %c0_62] : memref<16x8x32xf32, #tpu.memory_space<vmem>>, vector<16x8x32xf32>
    %59 = vector.shape_cast %58 : vector<16x8x32xf32> to vector<128x32xf32>
    %c1_63 = arith.constant 1 : index
    %c0_64 = arith.constant 0 : index
    %c0_65 = arith.constant 0 : index
    %60 = vector.load %arg2[%c1_63, %c0_64, %c0_65] : memref<3x32x128xf32, #tpu.memory_space<vmem>>, vector<1x32x128xf32>
    %61 = vector.shape_cast %60 : vector<1x32x128xf32> to vector<32x128xf32>
    %cst_66 = arith.constant dense<0.000000e+00> : vector<128x128xf32>
    %62 = tpu.matmul %59, %61, %cst_66 {dimension_numbers = #tpu.dot_dimension_numbers<[1], [0], [0], [1], [0, 0, 1, 1], [], []>} : vector<128x32xf32>, vector<32x128xf32>, vector<128x128xf32> -> vector<128x128xf32>
    %c1_67 = arith.constant 1 : index
    %c0_68 = arith.constant 0 : index
    %c0_69 = arith.constant 0 : index
    %63 = vector.load %arg4[%c1_67, %c0_68, %c0_69] : memref<3x1x128xf32, #tpu.memory_space<vmem>>, vector<1x1x128xf32>
    %64 = vector.shape_cast %63 : vector<1x1x128xf32> to vector<1x128xf32>
    %65 = vector.broadcast %64 : vector<1x128xf32> to vector<128x128xf32>
    %66 = arith.addf %62, %65 : vector<128x128xf32>
    %67 = vector.shape_cast %66 : vector<128x128xf32> to vector<16x8x128xf32>
    %c0_70 = arith.constant 0 : index
    %c0_71 = arith.constant 0 : index
    %c0_72 = arith.constant 0 : index
    %68 = vector.load %arg7[%c0_70, %c0_71, %c0_72] : memref<16x8x128xf32, #tpu.memory_space<vmem>>, vector<16x8x128xf32>
    tpu.vector_store %arg7[%c0_70, %c0_71, %c0_72], %67 {strides = array<i32>} : memref<16x8x128xf32, #tpu.memory_space<vmem>>, vector<16x8x128xf32>,
    %cst_73 = arith.constant 0.000000e+00 : f32
    %69 = vector.broadcast %cst_73 : f32 to vector<8x32xf32>
    %c0_i32_74 = arith.constant 0 : i32
    %c16_i32_75 = arith.constant 16 : i32
    %70 = arith.addi %c0_i32_74, %c16_i32_75 : i32
    %c1_i32_76 = arith.constant 1 : i32
    %71:2 = scf.for %arg8 = %c0_i32_74 to %70 step %c1_i32_76 iter_args(%arg9 = %69, %arg10 = %69) -> (vector<8x32xf32>, vector<8x32xf32>)  : i32 {
      %128 = arith.index_cast %arg8 : i32 to index
      %c0_147 = arith.constant 0 : index
      %c0_148 = arith.constant 0 : index
      %129 = vector.load %arg7[%128, %c0_147, %c0_148] : memref<16x8x128xf32, #tpu.memory_space<vmem>>, vector<1x8x128xf32>
      %130 = vector.shape_cast %129 : vector<1x8x128xf32> to vector<8x128xf32>
      %cst_149 = arith.constant dense<0.000000e+00> : vector<8x128xf32>
      %131 = tpu.matmul %arg9, %57, %cst_149 {dimension_numbers = #tpu.dot_dimension_numbers<[1], [0], [0], [1], [0, 0, 1, 1], [], []>} : vector<8x32xf32>, vector<32x128xf32>, vector<8x128xf32> -> vector<8x128xf32>
      %132 = arith.addf %130, %131 : vector<8x128xf32>
      %133 = vector.extract_strided_slice %132 {offsets = [0, 0], sizes = [8, 32], strides = [1, 1]} : vector<8x128xf32> to vector<8x32xf32>
      %134 = arith.negf %133 : vector<8x32xf32>
      %135 = math.exp %134 : vector<8x32xf32>
      %cst_150 = arith.constant 1.000000e+00 : f32
      %136 = vector.broadcast %cst_150 : f32 to vector<8x32xf32>
      %137 = arith.addf %136, %135 : vector<8x32xf32>
      %138 = arith.divf %136, %137 : vector<8x32xf32>
      %139 = vector.extract_strided_slice %132 {offsets = [0, 32], sizes = [8, 32], strides = [1, 1]} : vector<8x128xf32> to vector<8x32xf32>
      %140 = arith.negf %139 : vector<8x32xf32>
      %141 = math.exp %140 : vector<8x32xf32>
      %cst_151 = arith.constant 1.000000e+00 : f32
      %142 = vector.broadcast %cst_151 : f32 to vector<8x32xf32>
      %143 = arith.addf %142, %141 : vector<8x32xf32>
      %144 = arith.divf %142, %143 : vector<8x32xf32>
      %145 = vector.extract_strided_slice %132 {offsets = [0, 64], sizes = [8, 32], strides = [1, 1]} : vector<8x128xf32> to vector<8x32xf32>
      %146 = math.tanh %145 : vector<8x32xf32>
      %147 = vector.extract_strided_slice %132 {offsets = [0, 96], sizes = [8, 32], strides = [1, 1]} : vector<8x128xf32> to vector<8x32xf32>
      %148 = arith.negf %147 : vector<8x32xf32>
      %149 = math.exp %148 : vector<8x32xf32>
      %cst_152 = arith.constant 1.000000e+00 : f32
      %150 = vector.broadcast %cst_152 : f32 to vector<8x32xf32>
      %151 = arith.addf %150, %149 : vector<8x32xf32>
      %152 = arith.divf %150, %151 : vector<8x32xf32>
      %153 = arith.mulf %144, %arg10 : vector<8x32xf32>
      %154 = arith.mulf %138, %146 : vector<8x32xf32>
      %155 = arith.addf %153, %154 : vector<8x32xf32>
      %156 = math.tanh %155 : vector<8x32xf32>
      %157 = arith.mulf %152, %156 : vector<8x32xf32>
      %158 = arith.index_cast %arg8 : i32 to index
      %c0_153 = arith.constant 0 : index
      %c0_154 = arith.constant 0 : index
      %159 = vector.load %arg6[%158, %c0_153, %c0_154] : memref<16x8x32xf32, #tpu.memory_space<vmem>>, vector<1x8x32xf32>
      %160 = vector.shape_cast %159 : vector<1x8x32xf32> to vector<8x32xf32>
      %161 = vector.shape_cast %157 : vector<8x32xf32> to vector<1x8x32xf32>
      tpu.vector_store %arg6[%158, %c0_153, %c0_154], %161 {strides = array<i32>} : memref<16x8x32xf32, #tpu.memory_space<vmem>>, vector<1x8x32xf32>,
      scf.yield %157, %155 : vector<8x32xf32>, vector<8x32xf32>
    }
    %c16_i32_77 = arith.constant 16 : i32
    %c2_78 = arith.constant 2 : index
    %c0_79 = arith.constant 0 : index
    %c0_80 = arith.constant 0 : index
    %72 = vector.load %arg3[%c2_78, %c0_79, %c0_80] : memref<3x32x128xf32, #tpu.memory_space<vmem>>, vector<1x32x128xf32>
    %73 = vector.shape_cast %72 : vector<1x32x128xf32> to vector<32x128xf32>
    %c0_81 = arith.constant 0 : index
    %c0_82 = arith.constant 0 : index
    %c0_83 = arith.constant 0 : index
    %74 = vector.load %arg6[%c0_81, %c0_82, %c0_83] : memref<16x8x32xf32, #tpu.memory_space<vmem>>, vector<16x8x32xf32>
    %75 = vector.shape_cast %74 : vector<16x8x32xf32> to vector<128x32xf32>
    %c2_84 = arith.constant 2 : index
    %c0_85 = arith.constant 0 : index
    %c0_86 = arith.constant 0 : index
    %76 = vector.load %arg2[%c2_84, %c0_85, %c0_86] : memref<3x32x128xf32, #tpu.memory_space<vmem>>, vector<1x32x128xf32>
    %77 = vector.shape_cast %76 : vector<1x32x128xf32> to vector<32x128xf32>
    %cst_87 = arith.constant dense<0.000000e+00> : vector<128x128xf32>
    %78 = tpu.matmul %75, %77, %cst_87 {dimension_numbers = #tpu.dot_dimension_numbers<[1], [0], [0], [1], [0, 0, 1, 1], [], []>} : vector<128x32xf32>, vector<32x128xf32>, vector<128x128xf32> -> vector<128x128xf32>
    %c2_88 = arith.constant 2 : index
    %c0_89 = arith.constant 0 : index
    %c0_90 = arith.constant 0 : index
    %79 = vector.load %arg4[%c2_88, %c0_89, %c0_90] : memref<3x1x128xf32, #tpu.memory_space<vmem>>, vector<1x1x128xf32>
    %80 = vector.shape_cast %79 : vector<1x1x128xf32> to vector<1x128xf32>
    %81 = vector.broadcast %80 : vector<1x128xf32> to vector<128x128xf32>
    %82 = arith.addf %78, %81 : vector<128x128xf32>
    %83 = vector.shape_cast %82 : vector<128x128xf32> to vector<16x8x128xf32>
    %c0_91 = arith.constant 0 : index
    %c0_92 = arith.constant 0 : index
    %c0_93 = arith.constant 0 : index
    %84 = vector.load %arg7[%c0_91, %c0_92, %c0_93] : memref<16x8x128xf32, #tpu.memory_space<vmem>>, vector<16x8x128xf32>
    tpu.vector_store %arg7[%c0_91, %c0_92, %c0_93], %83 {strides = array<i32>} : memref<16x8x128xf32, #tpu.memory_space<vmem>>, vector<16x8x128xf32>,
    %cst_94 = arith.constant 0.000000e+00 : f32
    %85 = vector.broadcast %cst_94 : f32 to vector<8x32xf32>
    %c0_i32_95 = arith.constant 0 : i32
    %c16_i32_96 = arith.constant 16 : i32
    %86 = arith.addi %c0_i32_95, %c16_i32_96 : i32
    %c1_i32_97 = arith.constant 1 : i32
    %87:2 = scf.for %arg8 = %c0_i32_95 to %86 step %c1_i32_97 iter_args(%arg9 = %85, %arg10 = %85) -> (vector<8x32xf32>, vector<8x32xf32>)  : i32 {
      %128 = arith.index_cast %arg8 : i32 to index
      %c0_147 = arith.constant 0 : index
      %c0_148 = arith.constant 0 : index
      %129 = vector.load %arg7[%128, %c0_147, %c0_148] : memref<16x8x128xf32, #tpu.memory_space<vmem>>, vector<1x8x128xf32>
      %130 = vector.shape_cast %129 : vector<1x8x128xf32> to vector<8x128xf32>
      %cst_149 = arith.constant dense<0.000000e+00> : vector<8x128xf32>
      %131 = tpu.matmul %arg9, %73, %cst_149 {dimension_numbers = #tpu.dot_dimension_numbers<[1], [0], [0], [1], [0, 0, 1, 1], [], []>} : vector<8x32xf32>, vector<32x128xf32>, vector<8x128xf32> -> vector<8x128xf32>
      %132 = arith.addf %130, %131 : vector<8x128xf32>
      %133 = vector.extract_strided_slice %132 {offsets = [0, 0], sizes = [8, 32], strides = [1, 1]} : vector<8x128xf32> to vector<8x32xf32>
      %134 = arith.negf %133 : vector<8x32xf32>
      %135 = math.exp %134 : vector<8x32xf32>
      %cst_150 = arith.constant 1.000000e+00 : f32
      %136 = vector.broadcast %cst_150 : f32 to vector<8x32xf32>
      %137 = arith.addf %136, %135 : vector<8x32xf32>
      %138 = arith.divf %136, %137 : vector<8x32xf32>
      %139 = vector.extract_strided_slice %132 {offsets = [0, 32], sizes = [8, 32], strides = [1, 1]} : vector<8x128xf32> to vector<8x32xf32>
      %140 = arith.negf %139 : vector<8x32xf32>
      %141 = math.exp %140 : vector<8x32xf32>
      %cst_151 = arith.constant 1.000000e+00 : f32
      %142 = vector.broadcast %cst_151 : f32 to vector<8x32xf32>
      %143 = arith.addf %142, %141 : vector<8x32xf32>
      %144 = arith.divf %142, %143 : vector<8x32xf32>
      %145 = vector.extract_strided_slice %132 {offsets = [0, 64], sizes = [8, 32], strides = [1, 1]} : vector<8x128xf32> to vector<8x32xf32>
      %146 = math.tanh %145 : vector<8x32xf32>
      %147 = vector.extract_strided_slice %132 {offsets = [0, 96], sizes = [8, 32], strides = [1, 1]} : vector<8x128xf32> to vector<8x32xf32>
      %148 = arith.negf %147 : vector<8x32xf32>
      %149 = math.exp %148 : vector<8x32xf32>
      %cst_152 = arith.constant 1.000000e+00 : f32
      %150 = vector.broadcast %cst_152 : f32 to vector<8x32xf32>
      %151 = arith.addf %150, %149 : vector<8x32xf32>
      %152 = arith.divf %150, %151 : vector<8x32xf32>
      %153 = arith.mulf %144, %arg10 : vector<8x32xf32>
      %154 = arith.mulf %138, %146 : vector<8x32xf32>
      %155 = arith.addf %153, %154 : vector<8x32xf32>
      %156 = math.tanh %155 : vector<8x32xf32>
      %157 = arith.mulf %152, %156 : vector<8x32xf32>
      %158 = arith.index_cast %arg8 : i32 to index
      %c0_153 = arith.constant 0 : index
      %c0_154 = arith.constant 0 : index
      %159 = vector.load %arg6[%158, %c0_153, %c0_154] : memref<16x8x32xf32, #tpu.memory_space<vmem>>, vector<1x8x32xf32>
      %160 = vector.shape_cast %159 : vector<1x8x32xf32> to vector<8x32xf32>
      %161 = vector.shape_cast %157 : vector<8x32xf32> to vector<1x8x32xf32>
      tpu.vector_store %arg6[%158, %c0_153, %c0_154], %161 {strides = array<i32>} : memref<16x8x32xf32, #tpu.memory_space<vmem>>, vector<1x8x32xf32>,
      scf.yield %157, %155 : vector<8x32xf32>, vector<8x32xf32>
    }
    %c16_i32_98 = arith.constant 16 : i32
    %c0_99 = arith.constant 0 : index
    %c0_100 = arith.constant 0 : index
    %c0_101 = arith.constant 0 : index
    %88 = vector.load %arg6[%c0_99, %c0_100, %c0_101] : memref<16x8x32xf32, #tpu.memory_space<vmem>>, vector<16x1x32xf32>
    %89 = vector.shape_cast %88 : vector<16x1x32xf32> to vector<16x32xf32>
    %c0_102 = arith.constant 0 : index
    %c0_103 = arith.constant 0 : index
    %c0_104 = arith.constant 0 : index
    %90 = vector.load %arg5[%c0_102, %c0_103, %c0_104] : memref<8x16x32xf32, #tpu.memory_space<vmem>>, vector<1x16x32xf32>
    %91 = vector.shape_cast %90 : vector<1x16x32xf32> to vector<16x32xf32>
    %92 = vector.shape_cast %89 : vector<16x32xf32> to vector<1x16x32xf32>
    tpu.vector_store %arg5[%c0_102, %c0_103, %c0_104], %92 {strides = array<i32>} : memref<8x16x32xf32, #tpu.memory_space<vmem>>, vector<1x16x32xf32>,
    %c0_105 = arith.constant 0 : index
    %c1_106 = arith.constant 1 : index
    %c0_107 = arith.constant 0 : index
    %93 = vector.load %arg6[%c0_105, %c1_106, %c0_107] : memref<16x8x32xf32, #tpu.memory_space<vmem>>, vector<16x1x32xf32>
    %94 = vector.shape_cast %93 : vector<16x1x32xf32> to vector<16x32xf32>
    %c1_108 = arith.constant 1 : index
    %c0_109 = arith.constant 0 : index
    %c0_110 = arith.constant 0 : index
    %95 = vector.load %arg5[%c1_108, %c0_109, %c0_110] : memref<8x16x32xf32, #tpu.memory_space<vmem>>, vector<1x16x32xf32>
    %96 = vector.shape_cast %95 : vector<1x16x32xf32> to vector<16x32xf32>
    %97 = vector.shape_cast %94 : vector<16x32xf32> to vector<1x16x32xf32>
    tpu.vector_store %arg5[%c1_108, %c0_109, %c0_110], %97 {strides = array<i32>} : memref<8x16x32xf32, #tpu.memory_space<vmem>>, vector<1x16x32xf32>,
    %c0_111 = arith.constant 0 : index
    %c2_112 = arith.constant 2 : index
    %c0_113 = arith.constant 0 : index
    %98 = vector.load %arg6[%c0_111, %c2_112, %c0_113] : memref<16x8x32xf32, #tpu.memory_space<vmem>>, vector<16x1x32xf32>
    %99 = vector.shape_cast %98 : vector<16x1x32xf32> to vector<16x32xf32>
    %c2_114 = arith.constant 2 : index
    %c0_115 = arith.constant 0 : index
    %c0_116 = arith.constant 0 : index
    %100 = vector.load %arg5[%c2_114, %c0_115, %c0_116] : memref<8x16x32xf32, #tpu.memory_space<vmem>>, vector<1x16x32xf32>
    %101 = vector.shape_cast %100 : vector<1x16x32xf32> to vector<16x32xf32>
    %102 = vector.shape_cast %99 : vector<16x32xf32> to vector<1x16x32xf32>
    tpu.vector_store %arg5[%c2_114, %c0_115, %c0_116], %102 {strides = array<i32>} : memref<8x16x32xf32, #tpu.memory_space<vmem>>, vector<1x16x32xf32>,
    %c0_117 = arith.constant 0 : index
    %c3_118 = arith.constant 3 : index
    %c0_119 = arith.constant 0 : index
    %103 = vector.load %arg6[%c0_117, %c3_118, %c0_119] : memref<16x8x32xf32, #tpu.memory_space<vmem>>, vector<16x1x32xf32>
    %104 = vector.shape_cast %103 : vector<16x1x32xf32> to vector<16x32xf32>
    %c3_120 = arith.constant 3 : index
    %c0_121 = arith.constant 0 : index
    %c0_122 = arith.constant 0 : index
    %105 = vector.load %arg5[%c3_120, %c0_121, %c0_122] : memref<8x16x32xf32, #tpu.memory_space<vmem>>, vector<1x16x32xf32>
    %106 = vector.shape_cast %105 : vector<1x16x32xf32> to vector<16x32xf32>
    %107 = vector.shape_cast %104 : vector<16x32xf32> to vector<1x16x32xf32>
    tpu.vector_store %arg5[%c3_120, %c0_121, %c0_122], %107 {strides = array<i32>} : memref<8x16x32xf32, #tpu.memory_space<vmem>>, vector<1x16x32xf32>,
    %c0_123 = arith.constant 0 : index
    %c4_124 = arith.constant 4 : index
    %c0_125 = arith.constant 0 : index
    %108 = vector.load %arg6[%c0_123, %c4_124, %c0_125] : memref<16x8x32xf32, #tpu.memory_space<vmem>>, vector<16x1x32xf32>
    %109 = vector.shape_cast %108 : vector<16x1x32xf32> to vector<16x32xf32>
    %c4_126 = arith.constant 4 : index
    %c0_127 = arith.constant 0 : index
    %c0_128 = arith.constant 0 : index
    %110 = vector.load %arg5[%c4_126, %c0_127, %c0_128] : memref<8x16x32xf32, #tpu.memory_space<vmem>>, vector<1x16x32xf32>
    %111 = vector.shape_cast %110 : vector<1x16x32xf32> to vector<16x32xf32>
    %112 = vector.shape_cast %109 : vector<16x32xf32> to vector<1x16x32xf32>
    tpu.vector_store %arg5[%c4_126, %c0_127, %c0_128], %112 {strides = array<i32>} : memref<8x16x32xf32, #tpu.memory_space<vmem>>, vector<1x16x32xf32>,
    %c0_129 = arith.constant 0 : index
    %c5_130 = arith.constant 5 : index
    %c0_131 = arith.constant 0 : index
    %113 = vector.load %arg6[%c0_129, %c5_130, %c0_131] : memref<16x8x32xf32, #tpu.memory_space<vmem>>, vector<16x1x32xf32>
    %114 = vector.shape_cast %113 : vector<16x1x32xf32> to vector<16x32xf32>
    %c5_132 = arith.constant 5 : index
    %c0_133 = arith.constant 0 : index
    %c0_134 = arith.constant 0 : index
    %115 = vector.load %arg5[%c5_132, %c0_133, %c0_134] : memref<8x16x32xf32, #tpu.memory_space<vmem>>, vector<1x16x32xf32>
    %116 = vector.shape_cast %115 : vector<1x16x32xf32> to vector<16x32xf32>
    %117 = vector.shape_cast %114 : vector<16x32xf32> to vector<1x16x32xf32>
    tpu.vector_store %arg5[%c5_132, %c0_133, %c0_134], %117 {strides = array<i32>} : memref<8x16x32xf32, #tpu.memory_space<vmem>>, vector<1x16x32xf32>,
    %c0_135 = arith.constant 0 : index
    %c6_136 = arith.constant 6 : index
    %c0_137 = arith.constant 0 : index
    %118 = vector.load %arg6[%c0_135, %c6_136, %c0_137] : memref<16x8x32xf32, #tpu.memory_space<vmem>>, vector<16x1x32xf32>
    %119 = vector.shape_cast %118 : vector<16x1x32xf32> to vector<16x32xf32>
    %c6_138 = arith.constant 6 : index
    %c0_139 = arith.constant 0 : index
    %c0_140 = arith.constant 0 : index
    %120 = vector.load %arg5[%c6_138, %c0_139, %c0_140] : memref<8x16x32xf32, #tpu.memory_space<vmem>>, vector<1x16x32xf32>
    %121 = vector.shape_cast %120 : vector<1x16x32xf32> to vector<16x32xf32>
    %122 = vector.shape_cast %119 : vector<16x32xf32> to vector<1x16x32xf32>
    tpu.vector_store %arg5[%c6_138, %c0_139, %c0_140], %122 {strides = array<i32>} : memref<8x16x32xf32, #tpu.memory_space<vmem>>, vector<1x16x32xf32>,
    %c0_141 = arith.constant 0 : index
    %c7_142 = arith.constant 7 : index
    %c0_143 = arith.constant 0 : index
    %123 = vector.load %arg6[%c0_141, %c7_142, %c0_143] : memref<16x8x32xf32, #tpu.memory_space<vmem>>, vector<16x1x32xf32>
    %124 = vector.shape_cast %123 : vector<16x1x32xf32> to vector<16x32xf32>
    %c7_144 = arith.constant 7 : index
    %c0_145 = arith.constant 0 : index
    %c0_146 = arith.constant 0 : index
    %125 = vector.load %arg5[%c7_144, %c0_145, %c0_146] : memref<8x16x32xf32, #tpu.memory_space<vmem>>, vector<1x16x32xf32>
    %126 = vector.shape_cast %125 : vector<1x16x32xf32> to vector<16x32xf32>
    %127 = vector.shape_cast %124 : vector<16x32xf32> to vector<1x16x32xf32>
    tpu.vector_store %arg5[%c7_144, %c0_145, %c0_146], %127 {strides = array<i32>} : memref<8x16x32xf32, #tpu.memory_space<vmem>>, vector<1x16x32xf32>,
    return
  }
  func.func @transform_0(%arg0: i32) -> (i32, i32, i32) {
    %c0_i32 = arith.constant 0 : i32
    %c0_i32_0 = arith.constant 0 : i32
    %c0_i32_1 = arith.constant 0 : i32
    return %arg0, %c0_i32, %c0_i32_0 : i32, i32, i32
  }
  func.func @transform_1(%arg0: i32) -> (i32, i32, i32) {
    %c0_i32 = arith.constant 0 : i32
    %c0_i32_0 = arith.constant 0 : i32
    %c0_i32_1 = arith.constant 0 : i32
    %c0_i32_2 = arith.constant 0 : i32
    return %c0_i32, %c0_i32_0, %c0_i32_1 : i32, i32, i32
  }
  func.func @transform_2(%arg0: i32) -> (i32, i32, i32) {
    %c0_i32 = arith.constant 0 : i32
    %c0_i32_0 = arith.constant 0 : i32
    %c0_i32_1 = arith.constant 0 : i32
    %c0_i32_2 = arith.constant 0 : i32
    return %c0_i32, %c0_i32_0, %c0_i32_1 : i32, i32, i32
  }
  func.func @transform_3(%arg0: i32) -> (i32, i32, i32) {
    %c0_i32 = arith.constant 0 : i32
    %c0_i32_0 = arith.constant 0 : i32
    %c0_i32_1 = arith.constant 0 : i32
    %c0_i32_2 = arith.constant 0 : i32
    return %c0_i32, %c0_i32_0, %c0_i32_1 : i32, i32, i32
  }
  func.func @transform_4(%arg0: i32) -> (i32, i32, i32) {
    %c0_i32 = arith.constant 0 : i32
    %c0_i32_0 = arith.constant 0 : i32
    %c0_i32_1 = arith.constant 0 : i32
    return %arg0, %c0_i32, %c0_i32_0 : i32, i32, i32
  }
}

module attributes {stable_mosaic.version = 11 : i64} {
  func.func @_encoder_kernel(%arg0: i32, %arg1: memref<4x16x1xf32, #tpu.memory_space<vmem>>, %arg2: memref<1x384xf32, #tpu.memory_space<vmem>>, %arg3: memref<1x128xf32, #tpu.memory_space<vmem>>, %arg4: memref<128x384xf32, #tpu.memory_space<vmem>>, %arg5: memref<1x128xf32, #tpu.memory_space<vmem>>, %arg6: memref<128x192xf32, #tpu.memory_space<vmem>>, %arg7: memref<1x64xf32, #tpu.memory_space<vmem>>, %arg8: memref<64x192xf32, #tpu.memory_space<vmem>>, %arg9: memref<1x64xf32, #tpu.memory_space<vmem>>, %arg10: memref<64x96xf32, #tpu.memory_space<vmem>>, %arg11: memref<1x32xf32, #tpu.memory_space<vmem>>, %arg12: memref<32x96xf32, #tpu.memory_space<vmem>>, %arg13: memref<1x32xf32, #tpu.memory_space<vmem>>, %arg14: memref<4x16x32xf32, #tpu.memory_space<vmem>>) attributes {dimension_semantics = [#tpu.dimension_semantics<parallel>], iteration_bounds = array<i64: 2>, scalar_prefetch = 0 : i64, scratch_operands = 0 : i64, tpu.core_type = #tpu.core_type<tc>, window_params = [{transform_indices = @transform_0, window_bounds = array<i64: 4, 16, 1>}, {pipeline_mode = #tpu.pipeline_mode<synchronous>, transform_indices = @transform_1, window_bounds = array<i64: 1, 384>}, {pipeline_mode = #tpu.pipeline_mode<synchronous>, transform_indices = @transform_2, window_bounds = array<i64: 1, 128>}, {pipeline_mode = #tpu.pipeline_mode<synchronous>, transform_indices = @transform_3, window_bounds = array<i64: 128, 384>}, {pipeline_mode = #tpu.pipeline_mode<synchronous>, transform_indices = @transform_4, window_bounds = array<i64: 1, 128>}, {pipeline_mode = #tpu.pipeline_mode<synchronous>, transform_indices = @transform_5, window_bounds = array<i64: 128, 192>}, {pipeline_mode = #tpu.pipeline_mode<synchronous>, transform_indices = @transform_6, window_bounds = array<i64: 1, 64>}, {pipeline_mode = #tpu.pipeline_mode<synchronous>, transform_indices = @transform_7, window_bounds = array<i64: 64, 192>}, {pipeline_mode = #tpu.pipeline_mode<synchronous>, transform_indices = @transform_8, window_bounds = array<i64: 1, 64>}, {pipeline_mode = #tpu.pipeline_mode<synchronous>, transform_indices = @transform_9, window_bounds = array<i64: 64, 96>}, {pipeline_mode = #tpu.pipeline_mode<synchronous>, transform_indices = @transform_10, window_bounds = array<i64: 1, 32>}, {pipeline_mode = #tpu.pipeline_mode<synchronous>, transform_indices = @transform_11, window_bounds = array<i64: 32, 96>}, {pipeline_mode = #tpu.pipeline_mode<synchronous>, transform_indices = @transform_12, window_bounds = array<i64: 1, 32>}, {transform_indices = @transform_13, window_bounds = array<i64: 4, 16, 32>}]} {
    %0 = tpu.iota {dimensions = array<i32: 1>} : vector<4x16x1xi32>
    %1 = vector.shape_cast %0 : vector<4x16x1xi32> to vector<64x1xi32>
    %c0 = arith.constant 0 : index
    %c0_0 = arith.constant 0 : index
    %c0_1 = arith.constant 0 : index
    %2 = vector.load %arg1[%c0, %c0_0, %c0_1] : memref<4x16x1xf32, #tpu.memory_space<vmem>>, vector<4x16x1xf32>
    %3 = vector.shape_cast %2 : vector<4x16x1xf32> to vector<64x1xf32>
    %c0_2 = arith.constant 0 : index
    %c0_3 = arith.constant 0 : index
    %4 = vector.load %arg2[%c0_2, %c0_3] : memref<1x384xf32, #tpu.memory_space<vmem>>, vector<1x384xf32>
    %5 = vector.broadcast %3 : vector<64x1xf32> to vector<64x384xf32>
    %6 = vector.broadcast %4 : vector<1x384xf32> to vector<64x384xf32>
    %7 = arith.mulf %5, %6 : vector<64x384xf32>
    %8 = vector.extract_strided_slice %7 {offsets = [0, 0], sizes = [64, 128], strides = [1, 1]} : vector<64x384xf32> to vector<64x128xf32>
    %9 = vector.extract_strided_slice %7 {offsets = [0, 128], sizes = [64, 128], strides = [1, 1]} : vector<64x384xf32> to vector<64x128xf32>
    %10 = vector.extract_strided_slice %7 {offsets = [0, 256], sizes = [64, 128], strides = [1, 1]} : vector<64x384xf32> to vector<64x128xf32>
    %c0_4 = arith.constant 0 : index
    %c0_5 = arith.constant 0 : index
    %11 = vector.load %arg3[%c0_4, %c0_5] : memref<1x128xf32, #tpu.memory_space<vmem>>, vector<1x128xf32>
    %12 = vector.broadcast %11 : vector<1x128xf32> to vector<64x128xf32>
    %13 = arith.addf %9, %12 : vector<64x128xf32>
    %c0_i32 = arith.constant 0 : i32
    %14 = vector.broadcast %c0_i32 : i32 to vector<64x1xi32>
    %15 = arith.cmpi sgt, %1, %14 : vector<64x1xi32>
    %c1_i32 = arith.constant 1 : i32
    %16 = tpu.dynamic_rotate %8 by %c1_i32 dim 0 : vector<64x128xf32>, i32 -> vector<64x128xf32>
    %cst = arith.constant 0.000000e+00 : f32
    %17 = vector.shape_cast %15 : vector<64x1xi1> to vector<64x1xi1>
    %18 = vector.broadcast %17 : vector<64x1xi1> to vector<64x128xi1>
    %19 = vector.broadcast %cst : f32 to vector<64x128xf32>
    %20 = arith.select %18, %16, %19 : vector<64x128xi1>, vector<64x128xf32>
    %21 = arith.addf %13, %20 : vector<64x128xf32>
    %c15_i32 = arith.constant 15 : i32
    %22 = vector.broadcast %c15_i32 : i32 to vector<64x1xi32>
    %23 = arith.cmpi slt, %1, %22 : vector<64x1xi32>
    %c63_i32 = arith.constant 63 : i32
    %24 = tpu.dynamic_rotate %10 by %c63_i32 dim 0 : vector<64x128xf32>, i32 -> vector<64x128xf32>
    %cst_6 = arith.constant 0.000000e+00 : f32
    %25 = vector.shape_cast %23 : vector<64x1xi1> to vector<64x1xi1>
    %26 = vector.broadcast %25 : vector<64x1xi1> to vector<64x128xi1>
    %27 = vector.broadcast %cst_6 : f32 to vector<64x128xf32>
    %28 = arith.select %26, %24, %27 : vector<64x128xi1>, vector<64x128xf32>
    %29 = arith.addf %21, %28 : vector<64x128xf32>
    %c0_7 = arith.constant 0 : index
    %c0_8 = arith.constant 0 : index
    %30 = vector.load %arg4[%c0_7, %c0_8] : memref<128x384xf32, #tpu.memory_space<vmem>>, vector<128x384xf32>
    %cst_9 = arith.constant dense<0.000000e+00> : vector<64x384xf32>
    %31 = tpu.matmul %29, %30, %cst_9 {dimension_numbers = #tpu.dot_dimension_numbers<[1], [0], [0], [1], [0, 0, 1, 1], [], []>} : vector<64x128xf32>, vector<128x384xf32>, vector<64x384xf32> -> vector<64x384xf32>
    %32 = vector.extract_strided_slice %31 {offsets = [0, 0], sizes = [64, 128], strides = [1, 1]} : vector<64x384xf32> to vector<64x128xf32>
    %33 = vector.extract_strided_slice %31 {offsets = [0, 128], sizes = [64, 128], strides = [1, 1]} : vector<64x384xf32> to vector<64x128xf32>
    %34 = vector.extract_strided_slice %31 {offsets = [0, 256], sizes = [64, 128], strides = [1, 1]} : vector<64x384xf32> to vector<64x128xf32>
    %c0_10 = arith.constant 0 : index
    %c0_11 = arith.constant 0 : index
    %35 = vector.load %arg5[%c0_10, %c0_11] : memref<1x128xf32, #tpu.memory_space<vmem>>, vector<1x128xf32>
    %36 = vector.broadcast %35 : vector<1x128xf32> to vector<64x128xf32>
    %37 = arith.addf %33, %36 : vector<64x128xf32>
    %c0_i32_12 = arith.constant 0 : i32
    %38 = vector.broadcast %c0_i32_12 : i32 to vector<64x1xi32>
    %39 = arith.cmpi sgt, %1, %38 : vector<64x1xi32>
    %c1_i32_13 = arith.constant 1 : i32
    %40 = tpu.dynamic_rotate %32 by %c1_i32_13 dim 0 : vector<64x128xf32>, i32 -> vector<64x128xf32>
    %cst_14 = arith.constant 0.000000e+00 : f32
    %41 = vector.shape_cast %39 : vector<64x1xi1> to vector<64x1xi1>
    %42 = vector.broadcast %41 : vector<64x1xi1> to vector<64x128xi1>
    %43 = vector.broadcast %cst_14 : f32 to vector<64x128xf32>
    %44 = arith.select %42, %40, %43 : vector<64x128xi1>, vector<64x128xf32>
    %45 = arith.addf %37, %44 : vector<64x128xf32>
    %c15_i32_15 = arith.constant 15 : i32
    %46 = vector.broadcast %c15_i32_15 : i32 to vector<64x1xi32>
    %47 = arith.cmpi slt, %1, %46 : vector<64x1xi32>
    %c63_i32_16 = arith.constant 63 : i32
    %48 = tpu.dynamic_rotate %34 by %c63_i32_16 dim 0 : vector<64x128xf32>, i32 -> vector<64x128xf32>
    %cst_17 = arith.constant 0.000000e+00 : f32
    %49 = vector.shape_cast %47 : vector<64x1xi1> to vector<64x1xi1>
    %50 = vector.broadcast %49 : vector<64x1xi1> to vector<64x128xi1>
    %51 = vector.broadcast %cst_17 : f32 to vector<64x128xf32>
    %52 = arith.select %50, %48, %51 : vector<64x128xi1>, vector<64x128xf32>
    %53 = arith.addf %45, %52 : vector<64x128xf32>
    %cst_18 = arith.constant 0.000000e+00 : f32
    %54 = vector.broadcast %cst_18 : f32 to vector<64x128xf32>
    %55 = arith.maximumf %53, %54 : vector<64x128xf32>
    %56 = arith.addf %55, %29 : vector<64x128xf32>
    %cst_19 = arith.constant 0.000000e+00 : f32
    %57 = vector.broadcast %cst_19 : f32 to vector<64x128xf32>
    %58 = arith.maximumf %56, %57 : vector<64x128xf32>
    %c0_20 = arith.constant 0 : index
    %c0_21 = arith.constant 0 : index
    %59 = vector.load %arg6[%c0_20, %c0_21] : memref<128x192xf32, #tpu.memory_space<vmem>>, vector<128x192xf32>
    %cst_22 = arith.constant dense<0.000000e+00> : vector<64x192xf32>
    %60 = tpu.matmul %58, %59, %cst_22 {dimension_numbers = #tpu.dot_dimension_numbers<[1], [0], [0], [1], [0, 0, 1, 1], [], []>} : vector<64x128xf32>, vector<128x192xf32>, vector<64x192xf32> -> vector<64x192xf32>
    %61 = vector.extract_strided_slice %60 {offsets = [0, 0], sizes = [64, 64], strides = [1, 1]} : vector<64x192xf32> to vector<64x64xf32>
    %62 = vector.extract_strided_slice %60 {offsets = [0, 64], sizes = [64, 64], strides = [1, 1]} : vector<64x192xf32> to vector<64x64xf32>
    %63 = vector.extract_strided_slice %60 {offsets = [0, 128], sizes = [64, 64], strides = [1, 1]} : vector<64x192xf32> to vector<64x64xf32>
    %c0_23 = arith.constant 0 : index
    %c0_24 = arith.constant 0 : index
    %64 = vector.load %arg7[%c0_23, %c0_24] : memref<1x64xf32, #tpu.memory_space<vmem>>, vector<1x64xf32>
    %65 = vector.broadcast %64 : vector<1x64xf32> to vector<64x64xf32>
    %66 = arith.addf %62, %65 : vector<64x64xf32>
    %c0_i32_25 = arith.constant 0 : i32
    %67 = vector.broadcast %c0_i32_25 : i32 to vector<64x1xi32>
    %68 = arith.cmpi sgt, %1, %67 : vector<64x1xi32>
    %c1_i32_26 = arith.constant 1 : i32
    %69 = tpu.dynamic_rotate %61 by %c1_i32_26 dim 0 : vector<64x64xf32>, i32 -> vector<64x64xf32>
    %cst_27 = arith.constant 0.000000e+00 : f32
    %70 = vector.shape_cast %68 : vector<64x1xi1> to vector<64x1xi1>
    %71 = vector.broadcast %70 : vector<64x1xi1> to vector<64x64xi1>
    %72 = vector.broadcast %cst_27 : f32 to vector<64x64xf32>
    %73 = arith.select %71, %69, %72 : vector<64x64xi1>, vector<64x64xf32>
    %74 = arith.addf %66, %73 : vector<64x64xf32>
    %c15_i32_28 = arith.constant 15 : i32
    %75 = vector.broadcast %c15_i32_28 : i32 to vector<64x1xi32>
    %76 = arith.cmpi slt, %1, %75 : vector<64x1xi32>
    %c63_i32_29 = arith.constant 63 : i32
    %77 = tpu.dynamic_rotate %63 by %c63_i32_29 dim 0 : vector<64x64xf32>, i32 -> vector<64x64xf32>
    %cst_30 = arith.constant 0.000000e+00 : f32
    %78 = vector.shape_cast %76 : vector<64x1xi1> to vector<64x1xi1>
    %79 = vector.broadcast %78 : vector<64x1xi1> to vector<64x64xi1>
    %80 = vector.broadcast %cst_30 : f32 to vector<64x64xf32>
    %81 = arith.select %79, %77, %80 : vector<64x64xi1>, vector<64x64xf32>
    %82 = arith.addf %74, %81 : vector<64x64xf32>
    %c0_31 = arith.constant 0 : index
    %c0_32 = arith.constant 0 : index
    %83 = vector.load %arg8[%c0_31, %c0_32] : memref<64x192xf32, #tpu.memory_space<vmem>>, vector<64x192xf32>
    %cst_33 = arith.constant dense<0.000000e+00> : vector<64x192xf32>
    %84 = tpu.matmul %82, %83, %cst_33 {dimension_numbers = #tpu.dot_dimension_numbers<[1], [0], [0], [1], [0, 0, 1, 1], [], []>} : vector<64x64xf32>, vector<64x192xf32>, vector<64x192xf32> -> vector<64x192xf32>
    %85 = vector.extract_strided_slice %84 {offsets = [0, 0], sizes = [64, 64], strides = [1, 1]} : vector<64x192xf32> to vector<64x64xf32>
    %86 = vector.extract_strided_slice %84 {offsets = [0, 64], sizes = [64, 64], strides = [1, 1]} : vector<64x192xf32> to vector<64x64xf32>
    %87 = vector.extract_strided_slice %84 {offsets = [0, 128], sizes = [64, 64], strides = [1, 1]} : vector<64x192xf32> to vector<64x64xf32>
    %c0_34 = arith.constant 0 : index
    %c0_35 = arith.constant 0 : index
    %88 = vector.load %arg9[%c0_34, %c0_35] : memref<1x64xf32, #tpu.memory_space<vmem>>, vector<1x64xf32>
    %89 = vector.broadcast %88 : vector<1x64xf32> to vector<64x64xf32>
    %90 = arith.addf %86, %89 : vector<64x64xf32>
    %c0_i32_36 = arith.constant 0 : i32
    %91 = vector.broadcast %c0_i32_36 : i32 to vector<64x1xi32>
    %92 = arith.cmpi sgt, %1, %91 : vector<64x1xi32>
    %c1_i32_37 = arith.constant 1 : i32
    %93 = tpu.dynamic_rotate %85 by %c1_i32_37 dim 0 : vector<64x64xf32>, i32 -> vector<64x64xf32>
    %cst_38 = arith.constant 0.000000e+00 : f32
    %94 = vector.shape_cast %92 : vector<64x1xi1> to vector<64x1xi1>
    %95 = vector.broadcast %94 : vector<64x1xi1> to vector<64x64xi1>
    %96 = vector.broadcast %cst_38 : f32 to vector<64x64xf32>
    %97 = arith.select %95, %93, %96 : vector<64x64xi1>, vector<64x64xf32>
    %98 = arith.addf %90, %97 : vector<64x64xf32>
    %c15_i32_39 = arith.constant 15 : i32
    %99 = vector.broadcast %c15_i32_39 : i32 to vector<64x1xi32>
    %100 = arith.cmpi slt, %1, %99 : vector<64x1xi32>
    %c63_i32_40 = arith.constant 63 : i32
    %101 = tpu.dynamic_rotate %87 by %c63_i32_40 dim 0 : vector<64x64xf32>, i32 -> vector<64x64xf32>
    %cst_41 = arith.constant 0.000000e+00 : f32
    %102 = vector.shape_cast %100 : vector<64x1xi1> to vector<64x1xi1>
    %103 = vector.broadcast %102 : vector<64x1xi1> to vector<64x64xi1>
    %104 = vector.broadcast %cst_41 : f32 to vector<64x64xf32>
    %105 = arith.select %103, %101, %104 : vector<64x64xi1>, vector<64x64xf32>
    %106 = arith.addf %98, %105 : vector<64x64xf32>
    %cst_42 = arith.constant 0.000000e+00 : f32
    %107 = vector.broadcast %cst_42 : f32 to vector<64x64xf32>
    %108 = arith.maximumf %106, %107 : vector<64x64xf32>
    %109 = arith.addf %108, %82 : vector<64x64xf32>
    %cst_43 = arith.constant 0.000000e+00 : f32
    %110 = vector.broadcast %cst_43 : f32 to vector<64x64xf32>
    %111 = arith.maximumf %109, %110 : vector<64x64xf32>
    %c0_44 = arith.constant 0 : index
    %c0_45 = arith.constant 0 : index
    %112 = vector.load %arg10[%c0_44, %c0_45] : memref<64x96xf32, #tpu.memory_space<vmem>>, vector<64x96xf32>
    %cst_46 = arith.constant dense<0.000000e+00> : vector<64x96xf32>
    %113 = tpu.matmul %111, %112, %cst_46 {dimension_numbers = #tpu.dot_dimension_numbers<[1], [0], [0], [1], [0, 0, 1, 1], [], []>} : vector<64x64xf32>, vector<64x96xf32>, vector<64x96xf32> -> vector<64x96xf32>
    %114 = vector.extract_strided_slice %113 {offsets = [0, 0], sizes = [64, 32], strides = [1, 1]} : vector<64x96xf32> to vector<64x32xf32>
    %115 = vector.extract_strided_slice %113 {offsets = [0, 32], sizes = [64, 32], strides = [1, 1]} : vector<64x96xf32> to vector<64x32xf32>
    %116 = vector.extract_strided_slice %113 {offsets = [0, 64], sizes = [64, 32], strides = [1, 1]} : vector<64x96xf32> to vector<64x32xf32>
    %c0_47 = arith.constant 0 : index
    %c0_48 = arith.constant 0 : index
    %117 = vector.load %arg11[%c0_47, %c0_48] : memref<1x32xf32, #tpu.memory_space<vmem>>, vector<1x32xf32>
    %118 = vector.broadcast %117 : vector<1x32xf32> to vector<64x32xf32>
    %119 = arith.addf %115, %118 : vector<64x32xf32>
    %c0_i32_49 = arith.constant 0 : i32
    %120 = vector.broadcast %c0_i32_49 : i32 to vector<64x1xi32>
    %121 = arith.cmpi sgt, %1, %120 : vector<64x1xi32>
    %c1_i32_50 = arith.constant 1 : i32
    %122 = tpu.dynamic_rotate %114 by %c1_i32_50 dim 0 : vector<64x32xf32>, i32 -> vector<64x32xf32>
    %cst_51 = arith.constant 0.000000e+00 : f32
    %123 = vector.shape_cast %121 : vector<64x1xi1> to vector<64x1xi1>
    %124 = vector.broadcast %123 : vector<64x1xi1> to vector<64x32xi1>
    %125 = vector.broadcast %cst_51 : f32 to vector<64x32xf32>
    %126 = arith.select %124, %122, %125 : vector<64x32xi1>, vector<64x32xf32>
    %127 = arith.addf %119, %126 : vector<64x32xf32>
    %c15_i32_52 = arith.constant 15 : i32
    %128 = vector.broadcast %c15_i32_52 : i32 to vector<64x1xi32>
    %129 = arith.cmpi slt, %1, %128 : vector<64x1xi32>
    %c63_i32_53 = arith.constant 63 : i32
    %130 = tpu.dynamic_rotate %116 by %c63_i32_53 dim 0 : vector<64x32xf32>, i32 -> vector<64x32xf32>
    %cst_54 = arith.constant 0.000000e+00 : f32
    %131 = vector.shape_cast %129 : vector<64x1xi1> to vector<64x1xi1>
    %132 = vector.broadcast %131 : vector<64x1xi1> to vector<64x32xi1>
    %133 = vector.broadcast %cst_54 : f32 to vector<64x32xf32>
    %134 = arith.select %132, %130, %133 : vector<64x32xi1>, vector<64x32xf32>
    %135 = arith.addf %127, %134 : vector<64x32xf32>
    %c0_55 = arith.constant 0 : index
    %c0_56 = arith.constant 0 : index
    %136 = vector.load %arg12[%c0_55, %c0_56] : memref<32x96xf32, #tpu.memory_space<vmem>>, vector<32x96xf32>
    %cst_57 = arith.constant dense<0.000000e+00> : vector<64x96xf32>
    %137 = tpu.matmul %135, %136, %cst_57 {dimension_numbers = #tpu.dot_dimension_numbers<[1], [0], [0], [1], [0, 0, 1, 1], [], []>} : vector<64x32xf32>, vector<32x96xf32>, vector<64x96xf32> -> vector<64x96xf32>
    %138 = vector.extract_strided_slice %137 {offsets = [0, 0], sizes = [64, 32], strides = [1, 1]} : vector<64x96xf32> to vector<64x32xf32>
    %139 = vector.extract_strided_slice %137 {offsets = [0, 32], sizes = [64, 32], strides = [1, 1]} : vector<64x96xf32> to vector<64x32xf32>
    %140 = vector.extract_strided_slice %137 {offsets = [0, 64], sizes = [64, 32], strides = [1, 1]} : vector<64x96xf32> to vector<64x32xf32>
    %c0_58 = arith.constant 0 : index
    %c0_59 = arith.constant 0 : index
    %141 = vector.load %arg13[%c0_58, %c0_59] : memref<1x32xf32, #tpu.memory_space<vmem>>, vector<1x32xf32>
    %142 = vector.broadcast %141 : vector<1x32xf32> to vector<64x32xf32>
    %143 = arith.addf %139, %142 : vector<64x32xf32>
    %c0_i32_60 = arith.constant 0 : i32
    %144 = vector.broadcast %c0_i32_60 : i32 to vector<64x1xi32>
    %145 = arith.cmpi sgt, %1, %144 : vector<64x1xi32>
    %c1_i32_61 = arith.constant 1 : i32
    %146 = tpu.dynamic_rotate %138 by %c1_i32_61 dim 0 : vector<64x32xf32>, i32 -> vector<64x32xf32>
    %cst_62 = arith.constant 0.000000e+00 : f32
    %147 = vector.shape_cast %145 : vector<64x1xi1> to vector<64x1xi1>
    %148 = vector.broadcast %147 : vector<64x1xi1> to vector<64x32xi1>
    %149 = vector.broadcast %cst_62 : f32 to vector<64x32xf32>
    %150 = arith.select %148, %146, %149 : vector<64x32xi1>, vector<64x32xf32>
    %151 = arith.addf %143, %150 : vector<64x32xf32>
    %c15_i32_63 = arith.constant 15 : i32
    %152 = vector.broadcast %c15_i32_63 : i32 to vector<64x1xi32>
    %153 = arith.cmpi slt, %1, %152 : vector<64x1xi32>
    %c63_i32_64 = arith.constant 63 : i32
    %154 = tpu.dynamic_rotate %140 by %c63_i32_64 dim 0 : vector<64x32xf32>, i32 -> vector<64x32xf32>
    %cst_65 = arith.constant 0.000000e+00 : f32
    %155 = vector.shape_cast %153 : vector<64x1xi1> to vector<64x1xi1>
    %156 = vector.broadcast %155 : vector<64x1xi1> to vector<64x32xi1>
    %157 = vector.broadcast %cst_65 : f32 to vector<64x32xf32>
    %158 = arith.select %156, %154, %157 : vector<64x32xi1>, vector<64x32xf32>
    %159 = arith.addf %151, %158 : vector<64x32xf32>
    %cst_66 = arith.constant 0.000000e+00 : f32
    %160 = vector.broadcast %cst_66 : f32 to vector<64x32xf32>
    %161 = arith.maximumf %159, %160 : vector<64x32xf32>
    %162 = arith.addf %161, %135 : vector<64x32xf32>
    %cst_67 = arith.constant 0.000000e+00 : f32
    %163 = vector.broadcast %cst_67 : f32 to vector<64x32xf32>
    %164 = arith.maximumf %162, %163 : vector<64x32xf32>
    %165 = vector.shape_cast %164 : vector<64x32xf32> to vector<4x16x32xf32>
    %c0_68 = arith.constant 0 : index
    %c0_69 = arith.constant 0 : index
    %c0_70 = arith.constant 0 : index
    %166 = vector.load %arg14[%c0_68, %c0_69, %c0_70] : memref<4x16x32xf32, #tpu.memory_space<vmem>>, vector<4x16x32xf32>
    tpu.vector_store %arg14[%c0_68, %c0_69, %c0_70], %165 {strides = array<i32>} : memref<4x16x32xf32, #tpu.memory_space<vmem>>, vector<4x16x32xf32>,
    return
  }
  func.func @transform_0(%arg0: i32) -> (i32, i32, i32) {
    %c0_i32 = arith.constant 0 : i32
    %c0_i32_0 = arith.constant 0 : i32
    %c0_i32_1 = arith.constant 0 : i32
    return %arg0, %c0_i32, %c0_i32_0 : i32, i32, i32
  }
  func.func @transform_1(%arg0: i32) -> (i32, i32) {
    %c0_i32 = arith.constant 0 : i32
    %c0_i32_0 = arith.constant 0 : i32
    %c0_i32_1 = arith.constant 0 : i32
    return %c0_i32, %c0_i32_0 : i32, i32
  }
  func.func @transform_2(%arg0: i32) -> (i32, i32) {
    %c0_i32 = arith.constant 0 : i32
    %c0_i32_0 = arith.constant 0 : i32
    %c0_i32_1 = arith.constant 0 : i32
    return %c0_i32, %c0_i32_0 : i32, i32
  }
  func.func @transform_3(%arg0: i32) -> (i32, i32) {
    %c0_i32 = arith.constant 0 : i32
    %c0_i32_0 = arith.constant 0 : i32
    %c0_i32_1 = arith.constant 0 : i32
    return %c0_i32, %c0_i32_0 : i32, i32
  }
  func.func @transform_4(%arg0: i32) -> (i32, i32) {
    %c0_i32 = arith.constant 0 : i32
    %c0_i32_0 = arith.constant 0 : i32
    %c0_i32_1 = arith.constant 0 : i32
    return %c0_i32, %c0_i32_0 : i32, i32
  }
  func.func @transform_5(%arg0: i32) -> (i32, i32) {
    %c0_i32 = arith.constant 0 : i32
    %c0_i32_0 = arith.constant 0 : i32
    %c0_i32_1 = arith.constant 0 : i32
    return %c0_i32, %c0_i32_0 : i32, i32
  }
  func.func @transform_6(%arg0: i32) -> (i32, i32) {
    %c0_i32 = arith.constant 0 : i32
    %c0_i32_0 = arith.constant 0 : i32
    %c0_i32_1 = arith.constant 0 : i32
    return %c0_i32, %c0_i32_0 : i32, i32
  }
  func.func @transform_7(%arg0: i32) -> (i32, i32) {
    %c0_i32 = arith.constant 0 : i32
    %c0_i32_0 = arith.constant 0 : i32
    %c0_i32_1 = arith.constant 0 : i32
    return %c0_i32, %c0_i32_0 : i32, i32
  }
  func.func @transform_8(%arg0: i32) -> (i32, i32) {
    %c0_i32 = arith.constant 0 : i32
    %c0_i32_0 = arith.constant 0 : i32
    %c0_i32_1 = arith.constant 0 : i32
    return %c0_i32, %c0_i32_0 : i32, i32
  }
  func.func @transform_9(%arg0: i32) -> (i32, i32) {
    %c0_i32 = arith.constant 0 : i32
    %c0_i32_0 = arith.constant 0 : i32
    %c0_i32_1 = arith.constant 0 : i32
    return %c0_i32, %c0_i32_0 : i32, i32
  }
  func.func @transform_10(%arg0: i32) -> (i32, i32) {
    %c0_i32 = arith.constant 0 : i32
    %c0_i32_0 = arith.constant 0 : i32
    %c0_i32_1 = arith.constant 0 : i32
    return %c0_i32, %c0_i32_0 : i32, i32
  }
  func.func @transform_11(%arg0: i32) -> (i32, i32) {
    %c0_i32 = arith.constant 0 : i32
    %c0_i32_0 = arith.constant 0 : i32
    %c0_i32_1 = arith.constant 0 : i32
    return %c0_i32, %c0_i32_0 : i32, i32
  }
  func.func @transform_12(%arg0: i32) -> (i32, i32) {
    %c0_i32 = arith.constant 0 : i32
    %c0_i32_0 = arith.constant 0 : i32
    %c0_i32_1 = arith.constant 0 : i32
    return %c0_i32, %c0_i32_0 : i32, i32
  }
  func.func @transform_13(%arg0: i32) -> (i32, i32, i32) {
    %c0_i32 = arith.constant 0 : i32
    %c0_i32_0 = arith.constant 0 : i32
    %c0_i32_1 = arith.constant 0 : i32
    return %arg0, %c0_i32, %c0_i32_0 : i32, i32, i32
  }
}

module attributes {stable_mosaic.version = 11 : i64} {
  func.func @_decoder_kernel(%arg0: i32, %arg1: memref<4x16x32xf32, #tpu.memory_space<vmem>>, %arg2: memref<32x192xf32, #tpu.memory_space<vmem>>, %arg3: memref<1x64xf32, #tpu.memory_space<vmem>>, %arg4: memref<64x192xf32, #tpu.memory_space<vmem>>, %arg5: memref<1x64xf32, #tpu.memory_space<vmem>>, %arg6: memref<64x384xf32, #tpu.memory_space<vmem>>, %arg7: memref<1x128xf32, #tpu.memory_space<vmem>>, %arg8: memref<128x384xf32, #tpu.memory_space<vmem>>, %arg9: memref<1x128xf32, #tpu.memory_space<vmem>>, %arg10: memref<128x3xf32, #tpu.memory_space<vmem>>, %arg11: memref<1x1xf32, #tpu.memory_space<vmem>>, %arg12: memref<4x16x1xf32, #tpu.memory_space<vmem>>) attributes {dimension_semantics = [#tpu.dimension_semantics<parallel>], iteration_bounds = array<i64: 2>, scalar_prefetch = 0 : i64, scratch_operands = 0 : i64, tpu.core_type = #tpu.core_type<tc>, window_params = [{transform_indices = @transform_0, window_bounds = array<i64: 4, 16, 32>}, {pipeline_mode = #tpu.pipeline_mode<synchronous>, transform_indices = @transform_1, window_bounds = array<i64: 32, 192>}, {pipeline_mode = #tpu.pipeline_mode<synchronous>, transform_indices = @transform_2, window_bounds = array<i64: 1, 64>}, {pipeline_mode = #tpu.pipeline_mode<synchronous>, transform_indices = @transform_3, window_bounds = array<i64: 64, 192>}, {pipeline_mode = #tpu.pipeline_mode<synchronous>, transform_indices = @transform_4, window_bounds = array<i64: 1, 64>}, {pipeline_mode = #tpu.pipeline_mode<synchronous>, transform_indices = @transform_5, window_bounds = array<i64: 64, 384>}, {pipeline_mode = #tpu.pipeline_mode<synchronous>, transform_indices = @transform_6, window_bounds = array<i64: 1, 128>}, {pipeline_mode = #tpu.pipeline_mode<synchronous>, transform_indices = @transform_7, window_bounds = array<i64: 128, 384>}, {pipeline_mode = #tpu.pipeline_mode<synchronous>, transform_indices = @transform_8, window_bounds = array<i64: 1, 128>}, {pipeline_mode = #tpu.pipeline_mode<synchronous>, transform_indices = @transform_9, window_bounds = array<i64: 128, 3>}, {pipeline_mode = #tpu.pipeline_mode<synchronous>, transform_indices = @transform_10, window_bounds = array<i64: 1, 1>}, {transform_indices = @transform_11, window_bounds = array<i64: 4, 16, 1>}]} {
    %0 = tpu.iota {dimensions = array<i32: 1>} : vector<4x16x1xi32>
    %1 = vector.shape_cast %0 : vector<4x16x1xi32> to vector<64x1xi32>
    %c0 = arith.constant 0 : index
    %c0_0 = arith.constant 0 : index
    %c0_1 = arith.constant 0 : index
    %2 = vector.load %arg1[%c0, %c0_0, %c0_1] : memref<4x16x32xf32, #tpu.memory_space<vmem>>, vector<4x16x32xf32>
    %3 = vector.shape_cast %2 : vector<4x16x32xf32> to vector<64x32xf32>
    %c0_2 = arith.constant 0 : index
    %c0_3 = arith.constant 0 : index
    %4 = vector.load %arg2[%c0_2, %c0_3] : memref<32x192xf32, #tpu.memory_space<vmem>>, vector<32x192xf32>
    %cst = arith.constant dense<0.000000e+00> : vector<64x192xf32>
    %5 = tpu.matmul %3, %4, %cst {dimension_numbers = #tpu.dot_dimension_numbers<[1], [0], [0], [1], [0, 0, 1, 1], [], []>} : vector<64x32xf32>, vector<32x192xf32>, vector<64x192xf32> -> vector<64x192xf32>
    %6 = vector.extract_strided_slice %5 {offsets = [0, 0], sizes = [64, 64], strides = [1, 1]} : vector<64x192xf32> to vector<64x64xf32>
    %7 = vector.extract_strided_slice %5 {offsets = [0, 64], sizes = [64, 64], strides = [1, 1]} : vector<64x192xf32> to vector<64x64xf32>
    %8 = vector.extract_strided_slice %5 {offsets = [0, 128], sizes = [64, 64], strides = [1, 1]} : vector<64x192xf32> to vector<64x64xf32>
    %c0_4 = arith.constant 0 : index
    %c0_5 = arith.constant 0 : index
    %9 = vector.load %arg3[%c0_4, %c0_5] : memref<1x64xf32, #tpu.memory_space<vmem>>, vector<1x64xf32>
    %10 = vector.broadcast %9 : vector<1x64xf32> to vector<64x64xf32>
    %11 = arith.addf %7, %10 : vector<64x64xf32>
    %c0_i32 = arith.constant 0 : i32
    %12 = vector.broadcast %c0_i32 : i32 to vector<64x1xi32>
    %13 = arith.cmpi sgt, %1, %12 : vector<64x1xi32>
    %c1_i32 = arith.constant 1 : i32
    %14 = tpu.dynamic_rotate %6 by %c1_i32 dim 0 : vector<64x64xf32>, i32 -> vector<64x64xf32>
    %cst_6 = arith.constant 0.000000e+00 : f32
    %15 = vector.shape_cast %13 : vector<64x1xi1> to vector<64x1xi1>
    %16 = vector.broadcast %15 : vector<64x1xi1> to vector<64x64xi1>
    %17 = vector.broadcast %cst_6 : f32 to vector<64x64xf32>
    %18 = arith.select %16, %14, %17 : vector<64x64xi1>, vector<64x64xf32>
    %19 = arith.addf %11, %18 : vector<64x64xf32>
    %c15_i32 = arith.constant 15 : i32
    %20 = vector.broadcast %c15_i32 : i32 to vector<64x1xi32>
    %21 = arith.cmpi slt, %1, %20 : vector<64x1xi32>
    %c63_i32 = arith.constant 63 : i32
    %22 = tpu.dynamic_rotate %8 by %c63_i32 dim 0 : vector<64x64xf32>, i32 -> vector<64x64xf32>
    %cst_7 = arith.constant 0.000000e+00 : f32
    %23 = vector.shape_cast %21 : vector<64x1xi1> to vector<64x1xi1>
    %24 = vector.broadcast %23 : vector<64x1xi1> to vector<64x64xi1>
    %25 = vector.broadcast %cst_7 : f32 to vector<64x64xf32>
    %26 = arith.select %24, %22, %25 : vector<64x64xi1>, vector<64x64xf32>
    %27 = arith.addf %19, %26 : vector<64x64xf32>
    %c0_8 = arith.constant 0 : index
    %c0_9 = arith.constant 0 : index
    %28 = vector.load %arg4[%c0_8, %c0_9] : memref<64x192xf32, #tpu.memory_space<vmem>>, vector<64x192xf32>
    %cst_10 = arith.constant dense<0.000000e+00> : vector<64x192xf32>
    %29 = tpu.matmul %27, %28, %cst_10 {dimension_numbers = #tpu.dot_dimension_numbers<[1], [0], [0], [1], [0, 0, 1, 1], [], []>} : vector<64x64xf32>, vector<64x192xf32>, vector<64x192xf32> -> vector<64x192xf32>
    %30 = vector.extract_strided_slice %29 {offsets = [0, 0], sizes = [64, 64], strides = [1, 1]} : vector<64x192xf32> to vector<64x64xf32>
    %31 = vector.extract_strided_slice %29 {offsets = [0, 64], sizes = [64, 64], strides = [1, 1]} : vector<64x192xf32> to vector<64x64xf32>
    %32 = vector.extract_strided_slice %29 {offsets = [0, 128], sizes = [64, 64], strides = [1, 1]} : vector<64x192xf32> to vector<64x64xf32>
    %c0_11 = arith.constant 0 : index
    %c0_12 = arith.constant 0 : index
    %33 = vector.load %arg5[%c0_11, %c0_12] : memref<1x64xf32, #tpu.memory_space<vmem>>, vector<1x64xf32>
    %34 = vector.broadcast %33 : vector<1x64xf32> to vector<64x64xf32>
    %35 = arith.addf %31, %34 : vector<64x64xf32>
    %c0_i32_13 = arith.constant 0 : i32
    %36 = vector.broadcast %c0_i32_13 : i32 to vector<64x1xi32>
    %37 = arith.cmpi sgt, %1, %36 : vector<64x1xi32>
    %c1_i32_14 = arith.constant 1 : i32
    %38 = tpu.dynamic_rotate %30 by %c1_i32_14 dim 0 : vector<64x64xf32>, i32 -> vector<64x64xf32>
    %cst_15 = arith.constant 0.000000e+00 : f32
    %39 = vector.shape_cast %37 : vector<64x1xi1> to vector<64x1xi1>
    %40 = vector.broadcast %39 : vector<64x1xi1> to vector<64x64xi1>
    %41 = vector.broadcast %cst_15 : f32 to vector<64x64xf32>
    %42 = arith.select %40, %38, %41 : vector<64x64xi1>, vector<64x64xf32>
    %43 = arith.addf %35, %42 : vector<64x64xf32>
    %c15_i32_16 = arith.constant 15 : i32
    %44 = vector.broadcast %c15_i32_16 : i32 to vector<64x1xi32>
    %45 = arith.cmpi slt, %1, %44 : vector<64x1xi32>
    %c63_i32_17 = arith.constant 63 : i32
    %46 = tpu.dynamic_rotate %32 by %c63_i32_17 dim 0 : vector<64x64xf32>, i32 -> vector<64x64xf32>
    %cst_18 = arith.constant 0.000000e+00 : f32
    %47 = vector.shape_cast %45 : vector<64x1xi1> to vector<64x1xi1>
    %48 = vector.broadcast %47 : vector<64x1xi1> to vector<64x64xi1>
    %49 = vector.broadcast %cst_18 : f32 to vector<64x64xf32>
    %50 = arith.select %48, %46, %49 : vector<64x64xi1>, vector<64x64xf32>
    %51 = arith.addf %43, %50 : vector<64x64xf32>
    %cst_19 = arith.constant 0.000000e+00 : f32
    %52 = vector.broadcast %cst_19 : f32 to vector<64x64xf32>
    %53 = arith.maximumf %51, %52 : vector<64x64xf32>
    %54 = arith.addf %53, %27 : vector<64x64xf32>
    %cst_20 = arith.constant 0.000000e+00 : f32
    %55 = vector.broadcast %cst_20 : f32 to vector<64x64xf32>
    %56 = arith.maximumf %54, %55 : vector<64x64xf32>
    %c0_21 = arith.constant 0 : index
    %c0_22 = arith.constant 0 : index
    %57 = vector.load %arg6[%c0_21, %c0_22] : memref<64x384xf32, #tpu.memory_space<vmem>>, vector<64x384xf32>
    %cst_23 = arith.constant dense<0.000000e+00> : vector<64x384xf32>
    %58 = tpu.matmul %56, %57, %cst_23 {dimension_numbers = #tpu.dot_dimension_numbers<[1], [0], [0], [1], [0, 0, 1, 1], [], []>} : vector<64x64xf32>, vector<64x384xf32>, vector<64x384xf32> -> vector<64x384xf32>
    %59 = vector.extract_strided_slice %58 {offsets = [0, 0], sizes = [64, 128], strides = [1, 1]} : vector<64x384xf32> to vector<64x128xf32>
    %60 = vector.extract_strided_slice %58 {offsets = [0, 128], sizes = [64, 128], strides = [1, 1]} : vector<64x384xf32> to vector<64x128xf32>
    %61 = vector.extract_strided_slice %58 {offsets = [0, 256], sizes = [64, 128], strides = [1, 1]} : vector<64x384xf32> to vector<64x128xf32>
    %c0_24 = arith.constant 0 : index
    %c0_25 = arith.constant 0 : index
    %62 = vector.load %arg7[%c0_24, %c0_25] : memref<1x128xf32, #tpu.memory_space<vmem>>, vector<1x128xf32>
    %63 = vector.broadcast %62 : vector<1x128xf32> to vector<64x128xf32>
    %64 = arith.addf %60, %63 : vector<64x128xf32>
    %c0_i32_26 = arith.constant 0 : i32
    %65 = vector.broadcast %c0_i32_26 : i32 to vector<64x1xi32>
    %66 = arith.cmpi sgt, %1, %65 : vector<64x1xi32>
    %c1_i32_27 = arith.constant 1 : i32
    %67 = tpu.dynamic_rotate %59 by %c1_i32_27 dim 0 : vector<64x128xf32>, i32 -> vector<64x128xf32>
    %cst_28 = arith.constant 0.000000e+00 : f32
    %68 = vector.shape_cast %66 : vector<64x1xi1> to vector<64x1xi1>
    %69 = vector.broadcast %68 : vector<64x1xi1> to vector<64x128xi1>
    %70 = vector.broadcast %cst_28 : f32 to vector<64x128xf32>
    %71 = arith.select %69, %67, %70 : vector<64x128xi1>, vector<64x128xf32>
    %72 = arith.addf %64, %71 : vector<64x128xf32>
    %c15_i32_29 = arith.constant 15 : i32
    %73 = vector.broadcast %c15_i32_29 : i32 to vector<64x1xi32>
    %74 = arith.cmpi slt, %1, %73 : vector<64x1xi32>
    %c63_i32_30 = arith.constant 63 : i32
    %75 = tpu.dynamic_rotate %61 by %c63_i32_30 dim 0 : vector<64x128xf32>, i32 -> vector<64x128xf32>
    %cst_31 = arith.constant 0.000000e+00 : f32
    %76 = vector.shape_cast %74 : vector<64x1xi1> to vector<64x1xi1>
    %77 = vector.broadcast %76 : vector<64x1xi1> to vector<64x128xi1>
    %78 = vector.broadcast %cst_31 : f32 to vector<64x128xf32>
    %79 = arith.select %77, %75, %78 : vector<64x128xi1>, vector<64x128xf32>
    %80 = arith.addf %72, %79 : vector<64x128xf32>
    %c0_32 = arith.constant 0 : index
    %c0_33 = arith.constant 0 : index
    %81 = vector.load %arg8[%c0_32, %c0_33] : memref<128x384xf32, #tpu.memory_space<vmem>>, vector<128x384xf32>
    %cst_34 = arith.constant dense<0.000000e+00> : vector<64x384xf32>
    %82 = tpu.matmul %80, %81, %cst_34 {dimension_numbers = #tpu.dot_dimension_numbers<[1], [0], [0], [1], [0, 0, 1, 1], [], []>} : vector<64x128xf32>, vector<128x384xf32>, vector<64x384xf32> -> vector<64x384xf32>
    %83 = vector.extract_strided_slice %82 {offsets = [0, 0], sizes = [64, 128], strides = [1, 1]} : vector<64x384xf32> to vector<64x128xf32>
    %84 = vector.extract_strided_slice %82 {offsets = [0, 128], sizes = [64, 128], strides = [1, 1]} : vector<64x384xf32> to vector<64x128xf32>
    %85 = vector.extract_strided_slice %82 {offsets = [0, 256], sizes = [64, 128], strides = [1, 1]} : vector<64x384xf32> to vector<64x128xf32>
    %c0_35 = arith.constant 0 : index
    %c0_36 = arith.constant 0 : index
    %86 = vector.load %arg9[%c0_35, %c0_36] : memref<1x128xf32, #tpu.memory_space<vmem>>, vector<1x128xf32>
    %87 = vector.broadcast %86 : vector<1x128xf32> to vector<64x128xf32>
    %88 = arith.addf %84, %87 : vector<64x128xf32>
    %c0_i32_37 = arith.constant 0 : i32
    %89 = vector.broadcast %c0_i32_37 : i32 to vector<64x1xi32>
    %90 = arith.cmpi sgt, %1, %89 : vector<64x1xi32>
    %c1_i32_38 = arith.constant 1 : i32
    %91 = tpu.dynamic_rotate %83 by %c1_i32_38 dim 0 : vector<64x128xf32>, i32 -> vector<64x128xf32>
    %cst_39 = arith.constant 0.000000e+00 : f32
    %92 = vector.shape_cast %90 : vector<64x1xi1> to vector<64x1xi1>
    %93 = vector.broadcast %92 : vector<64x1xi1> to vector<64x128xi1>
    %94 = vector.broadcast %cst_39 : f32 to vector<64x128xf32>
    %95 = arith.select %93, %91, %94 : vector<64x128xi1>, vector<64x128xf32>
    %96 = arith.addf %88, %95 : vector<64x128xf32>
    %c15_i32_40 = arith.constant 15 : i32
    %97 = vector.broadcast %c15_i32_40 : i32 to vector<64x1xi32>
    %98 = arith.cmpi slt, %1, %97 : vector<64x1xi32>
    %c63_i32_41 = arith.constant 63 : i32
    %99 = tpu.dynamic_rotate %85 by %c63_i32_41 dim 0 : vector<64x128xf32>, i32 -> vector<64x128xf32>
    %cst_42 = arith.constant 0.000000e+00 : f32
    %100 = vector.shape_cast %98 : vector<64x1xi1> to vector<64x1xi1>
    %101 = vector.broadcast %100 : vector<64x1xi1> to vector<64x128xi1>
    %102 = vector.broadcast %cst_42 : f32 to vector<64x128xf32>
    %103 = arith.select %101, %99, %102 : vector<64x128xi1>, vector<64x128xf32>
    %104 = arith.addf %96, %103 : vector<64x128xf32>
    %cst_43 = arith.constant 0.000000e+00 : f32
    %105 = vector.broadcast %cst_43 : f32 to vector<64x128xf32>
    %106 = arith.maximumf %104, %105 : vector<64x128xf32>
    %107 = arith.addf %106, %80 : vector<64x128xf32>
    %cst_44 = arith.constant 0.000000e+00 : f32
    %108 = vector.broadcast %cst_44 : f32 to vector<64x128xf32>
    %109 = arith.maximumf %107, %108 : vector<64x128xf32>
    %c0_45 = arith.constant 0 : index
    %c0_46 = arith.constant 0 : index
    %110 = vector.load %arg10[%c0_45, %c0_46] : memref<128x3xf32, #tpu.memory_space<vmem>>, vector<128x3xf32>
    %cst_47 = arith.constant dense<0.000000e+00> : vector<64x3xf32>
    %111 = tpu.matmul %109, %110, %cst_47 {dimension_numbers = #tpu.dot_dimension_numbers<[1], [0], [0], [1], [0, 0, 1, 1], [], []>} : vector<64x128xf32>, vector<128x3xf32>, vector<64x3xf32> -> vector<64x3xf32>
    %112 = vector.extract_strided_slice %111 {offsets = [0, 0], sizes = [64, 1], strides = [1, 1]} : vector<64x3xf32> to vector<64x1xf32>
    %113 = vector.extract_strided_slice %111 {offsets = [0, 1], sizes = [64, 1], strides = [1, 1]} : vector<64x3xf32> to vector<64x1xf32>
    %114 = vector.extract_strided_slice %111 {offsets = [0, 2], sizes = [64, 1], strides = [1, 1]} : vector<64x3xf32> to vector<64x1xf32>
    %c0_48 = arith.constant 0 : index
    %c0_49 = arith.constant 0 : index
    %115 = vector.load %arg11[%c0_48, %c0_49] : memref<1x1xf32, #tpu.memory_space<vmem>>, vector<1x1xf32>
    %116 = vector.broadcast %115 : vector<1x1xf32> to vector<64x1xf32>
    %117 = arith.addf %113, %116 : vector<64x1xf32>
    %c0_i32_50 = arith.constant 0 : i32
    %118 = vector.broadcast %c0_i32_50 : i32 to vector<64x1xi32>
    %119 = arith.cmpi sgt, %1, %118 : vector<64x1xi32>
    %c1_i32_51 = arith.constant 1 : i32
    %120 = tpu.dynamic_rotate %112 by %c1_i32_51 dim 0 : vector<64x1xf32>, i32 -> vector<64x1xf32>
    %cst_52 = arith.constant 0.000000e+00 : f32
    %121 = vector.broadcast %cst_52 : f32 to vector<64x1xf32>
    %122 = arith.select %119, %120, %121 : vector<64x1xi1>, vector<64x1xf32>
    %123 = arith.addf %117, %122 : vector<64x1xf32>
    %c15_i32_53 = arith.constant 15 : i32
    %124 = vector.broadcast %c15_i32_53 : i32 to vector<64x1xi32>
    %125 = arith.cmpi slt, %1, %124 : vector<64x1xi32>
    %c63_i32_54 = arith.constant 63 : i32
    %126 = tpu.dynamic_rotate %114 by %c63_i32_54 dim 0 : vector<64x1xf32>, i32 -> vector<64x1xf32>
    %cst_55 = arith.constant 0.000000e+00 : f32
    %127 = vector.broadcast %cst_55 : f32 to vector<64x1xf32>
    %128 = arith.select %125, %126, %127 : vector<64x1xi1>, vector<64x1xf32>
    %129 = arith.addf %123, %128 : vector<64x1xf32>
    %130 = vector.shape_cast %129 : vector<64x1xf32> to vector<4x16x1xf32>
    %c0_56 = arith.constant 0 : index
    %c0_57 = arith.constant 0 : index
    %c0_58 = arith.constant 0 : index
    %131 = vector.load %arg12[%c0_56, %c0_57, %c0_58] : memref<4x16x1xf32, #tpu.memory_space<vmem>>, vector<4x16x1xf32>
    tpu.vector_store %arg12[%c0_56, %c0_57, %c0_58], %130 {strides = array<i32>} : memref<4x16x1xf32, #tpu.memory_space<vmem>>, vector<4x16x1xf32>,
    return
  }
  func.func @transform_0(%arg0: i32) -> (i32, i32, i32) {
    %c0_i32 = arith.constant 0 : i32
    %c0_i32_0 = arith.constant 0 : i32
    %c0_i32_1 = arith.constant 0 : i32
    return %arg0, %c0_i32, %c0_i32_0 : i32, i32, i32
  }
  func.func @transform_1(%arg0: i32) -> (i32, i32) {
    %c0_i32 = arith.constant 0 : i32
    %c0_i32_0 = arith.constant 0 : i32
    %c0_i32_1 = arith.constant 0 : i32
    return %c0_i32, %c0_i32_0 : i32, i32
  }
  func.func @transform_2(%arg0: i32) -> (i32, i32) {
    %c0_i32 = arith.constant 0 : i32
    %c0_i32_0 = arith.constant 0 : i32
    %c0_i32_1 = arith.constant 0 : i32
    return %c0_i32, %c0_i32_0 : i32, i32
  }
  func.func @transform_3(%arg0: i32) -> (i32, i32) {
    %c0_i32 = arith.constant 0 : i32
    %c0_i32_0 = arith.constant 0 : i32
    %c0_i32_1 = arith.constant 0 : i32
    return %c0_i32, %c0_i32_0 : i32, i32
  }
  func.func @transform_4(%arg0: i32) -> (i32, i32) {
    %c0_i32 = arith.constant 0 : i32
    %c0_i32_0 = arith.constant 0 : i32
    %c0_i32_1 = arith.constant 0 : i32
    return %c0_i32, %c0_i32_0 : i32, i32
  }
  func.func @transform_5(%arg0: i32) -> (i32, i32) {
    %c0_i32 = arith.constant 0 : i32
    %c0_i32_0 = arith.constant 0 : i32
    %c0_i32_1 = arith.constant 0 : i32
    return %c0_i32, %c0_i32_0 : i32, i32
  }
  func.func @transform_6(%arg0: i32) -> (i32, i32) {
    %c0_i32 = arith.constant 0 : i32
    %c0_i32_0 = arith.constant 0 : i32
    %c0_i32_1 = arith.constant 0 : i32
    return %c0_i32, %c0_i32_0 : i32, i32
  }
  func.func @transform_7(%arg0: i32) -> (i32, i32) {
    %c0_i32 = arith.constant 0 : i32
    %c0_i32_0 = arith.constant 0 : i32
    %c0_i32_1 = arith.constant 0 : i32
    return %c0_i32, %c0_i32_0 : i32, i32
  }
  func.func @transform_8(%arg0: i32) -> (i32, i32) {
    %c0_i32 = arith.constant 0 : i32
    %c0_i32_0 = arith.constant 0 : i32
    %c0_i32_1 = arith.constant 0 : i32
    return %c0_i32, %c0_i32_0 : i32, i32
  }
  func.func @transform_9(%arg0: i32) -> (i32, i32) {
    %c0_i32 = arith.constant 0 : i32
    %c0_i32_0 = arith.constant 0 : i32
    %c0_i32_1 = arith.constant 0 : i32
    return %c0_i32, %c0_i32_0 : i32, i32
  }
  func.func @transform_10(%arg0: i32) -> (i32, i32) {
    %c0_i32 = arith.constant 0 : i32
    %c0_i32_0 = arith.constant 0 : i32
    %c0_i32_1 = arith.constant 0 : i32
    return %c0_i32, %c0_i32_0 : i32, i32
  }
  func.func @transform_11(%arg0: i32) -> (i32, i32, i32) {
    %c0_i32 = arith.constant 0 : i32
    %c0_i32_0 = arith.constant 0 : i32
    %c0_i32_1 = arith.constant 0 : i32
    return %arg0, %c0_i32, %c0_i32_0 : i32, i32, i32
  }
}

</mosaic_0001>

<bundles_post_ra>
// kernel: _lambda_.3
= control target key start
LH: loop header
LB: loop body
LE: loop exit
PB: predicated region body
PF: predicated region fallthrough
CT: control target
= control target key end

     0   :  { %s4334_s0 = inlined_call_operand.vmem [shape: f32[8,16,1], index: 0, kind: input, shape index: {}]   ;;  %s4335_s1 = inlined_call_operand.vmem [shape: f32[1,384], index: 1, kind: input, shape index: {}]   ;;  %s4336_s2 = inlined_call_operand.hbm [shape: f32[1,128], index: 2, kind: input, shape index: {}]   ;;  %s4337_s3 = inlined_call_operand.hbm [shape: f32[128,384], index: 3, kind: input, shape index: {}]   ;;  %s4338_s4 = inlined_call_operand.hbm [shape: f32[1,128], index: 4, kind: input, shape index: {}]   ;;  %s4339_s5 = inlined_call_operand.hbm [shape: f32[128,192], index: 5, kind: input, shape index: {}]   ;;  %s4340_s6 = inlined_call_operand.hbm [shape: f32[1,64], index: 6, kind: input, shape index: {}]   ;;  %s4341_s7 = inlined_call_operand.vmem [shape: f32[64,192], index: 7, kind: input, shape index: {}]   ;;  %s4342_s8 = inlined_call_operand.hbm [shape: f32[1,64], index: 8, kind: input, shape index: {}]   ;;  %s4343_s9 = inlined_call_operand.vmem [shape: f32[64,96], index: 9, kind: input, shape index: {}]   ;;  %s4344_s10 = inlined_call_operand.vmem [shape: f32[1,32], index: 10, kind: input, shape index: {}]   ;;  %s4345_s11 = inlined_call_operand.vmem [shape: f32[32,96], index: 11, kind: input, shape index: {}]   ;;  %s4346_s12 = inlined_call_operand.vmem [shape: f32[1,32], index: 12, kind: input, shape index: {}]   ;;  %s4347_s13 = inlined_call_operand.vmem [shape: f32[8,16,32], index: 13, kind: output, shape index: {}]  }
   0x1   :  { %4352 = sst [smem:[#allocation16_spill]] %s4337_s3 }
   0x2   :  { %4353 = sst [smem:[#allocation17_spill]] %s4346_s12 }
   0x3   :  { %4354 = sst [smem:[#allocation18_spill]] %s4347_s13 }
   0x4   :  { %18 = vsyncpa [#allocation3], 0 }
   0x5   :  { %19 = vsyncpa [#allocation5], 0 }
   0x6   :  { %20 = vsyncpa [#allocation8], 0 }
   0x7   :  { %21 = vsyncpa [#allocation11], 0  ;;  %s3249_s25 = smov 0  }
   0x8 LB: > { %s3164_s26 = smov [#allocation4]   ;;  %s4348_s28 = sadd.s32 4294967295, %s3162_s25   ;;  %s3162_s25 = sphi %s3249_s25, %s27_s25  }
   0x9   : > { %s362_s27 = sshll.u32 %s3164_s26, 4  ;;  %p2553_p0 = scmp.ge.s32.totalorder %s3162_s25, 1  ;;  %s3263_s27 = int_to_ptr.vmem [resolvable:$true] %s362_s27 }
   0xa   : > { %p336_p1 = scmp.lt.s32.totalorder %s3162_s25, 3  ;;  %p3259_p2 = scmp.eq.s32.totalorder %s4348_s28, 0 }
   0xb   : > { %s3165_s14 = smov [#allocation7]   ;;  %s3166_s17 = smov [#allocation2]  }
   0xc   : > { %s4355_s29 = scalar_select %p3259_p2, 1, 0 }
   0xd   : > { %p3265_p3 = pnand %p2553_p0, %p336_p1  ;;  %s386_s15 = sshll.u32 %s3165_s14, 4  ;;  %s3271_s15 = int_to_ptr.vmem [resolvable:$true] %s386_s15 }
   0xe   : > { %s3279_s18 = sshll.u32 %s3166_s17, 4  ;;  %s4358_s3 = sld [smem:[#allocation16_spill]]  ;;  %s353_s18 = int_to_ptr.vmem [resolvable:$true] %s3279_s18 }
   0xf   : > { %s4356_s30 = scalar_select %p3265_p3, 1, 0 }
  0x10   : > { %p2916_p4 = pneg %p3265_p3 }
  0x12   : > { %p3275_p5 = pnand %p3259_p2, %p2916_p4 }
  0x14   : > { %s2972_s21 = scalar_lea.hbm %s4358_s3, 6144  ;;  %p3289_p7 = pneg %p3275_p5 }
  0x15   : > { %p2973_p6 = scmp.ne.s32.totalorder %s4358_s3, %s2972_s21  ;;  %p2979_p10 = scmp.lt.u32.totalorder %s2972_s21, %s4358_s3 }
  0x17   : > { %p2975_p8 = pnand %p3289_p7, %p2973_p6 }
  0x19   : > { %p2976_p9 = pneg %p2975_p8 }
  0x1b   : > { %p2981_p11 = pnand %p2979_p10, %p2976_p9 }
  0x1d   : > { %2984 = shalt.err (!%p2981_p11)
}
  0x1e   : > { %s2985_s17 = scalar_lea.vmem %s3263_s27, 6144  ;;  %p2993_p1 = scmp.lt.s32.totalorder %s3263_s27, %s3263_s27 }
  0x1f   : > { %p2986_p12 = scmp.ne.s32.totalorder %s3263_s27, %s2985_s17  ;;  %p2994_p4 = scmp.lt.s32.totalorder %s2985_s17, %s2985_s17 }
  0x21   : > { %p2988_p13 = pnand %p2986_p12, %p3289_p7  ;;  %p2995_p6 = por %p2994_p4, %p2993_p1 }
  0x23   : > { %p2989_p0 = pneg %p2988_p13 }
  0x25   : > { %p2996_p8 = pnand %p2995_p6, %p2989_p0 }
  0x27   : > { %2999 = shalt.err (!%p2996_p8)
}
  0x28   : > { %s3167_s19 = smov 384   ;;  %s3168_s20 = smov 24  }
  0x29   : > { %2922 = dma.hbm_to_vmem [thread:$0]  (!%p3275_p5), %s4358_s3, 6144, %s3263_s27, [#allocation5], %s3167_s19, %s3167_s19, %s3168_s20  }
  0x2a   : > { %s3000_s14 = scalar_lea.hbm %s4339_s5, 4096 }
  0x2b   : > { %p3001_p9 = scmp.ne.s32.totalorder %s4339_s5, %s3000_s14  ;;  %p3007_p12 = scmp.lt.u32.totalorder %s3000_s14, %s4339_s5 }
  0x2d   : > { %p3003_p10 = pnand %p3001_p9, %p3289_p7 }
  0x2f   : > { %p3004_p11 = pneg %p3003_p10 }
  0x31   : > { %p3009_p13 = pnand %p3007_p12, %p3004_p11 }
  0x33   : > { %3012 = shalt.err (!%p3009_p13)
}
  0x34   : > { %s3013_s27 = scalar_lea.vmem %s3271_s15, 4096  ;;  %p3021_p6 = scmp.lt.s32.totalorder %s3271_s15, %s3271_s15 }
  0x35   : > { %p3014_p0 = scmp.ne.s32.totalorder %s3271_s15, %s3013_s27  ;;  %p3022_p8 = scmp.lt.s32.totalorder %s3013_s27, %s3013_s27 }
  0x37   : > { %p3016_p1 = pnand %p3014_p0, %p3289_p7  ;;  %p3023_p9 = por %p3022_p8, %p3021_p6 }
  0x39   : > { %p3017_p4 = pneg %p3016_p1 }
  0x3b   : > { %p3024_p10 = pnand %p3023_p9, %p3017_p4 }
  0x3d   : > { %3027 = shalt.err (!%p3024_p10)
}
  0x3e   : > { %s3169_s13 = smov 256   ;;  %s3170_s12 = smov 16  }
  0x3f   : > { %2928 = dma.hbm_to_vmem [thread:$0]  (!%p3275_p5), %s4339_s5, 4096, %s3271_s15, [#allocation8], %s3169_s13, %s3169_s13, %s3170_s12  }
  0x40   : > { %s3171_s20 = smov [#allocation6]   ;;  %s3028_s26 = scalar_lea.hbm %s4336_s2, 16 }
  0x41   : > { %s376_s21 = sshll.u32 %s3171_s20, 4  ;;  %p3029_p11 = scmp.ne.s32.totalorder %s4336_s2, %s3028_s26  ;;  %s377_s21 = int_to_ptr.vmem [resolvable:$true] %s376_s21 }
  0x42   : > { %p3035_p0 = scmp.lt.u32.totalorder %s3028_s26, %s4336_s2 }
  0x43   : > { %p3031_p12 = pnand %p3029_p11, %p3289_p7 }
  0x45   : > { %p3032_p13 = pneg %p3031_p12 }
  0x47   : > { %p3037_p1 = pnand %p3035_p0, %p3032_p13 }
  0x49   : > { %3040 = shalt.err (!%p3037_p1)
}
  0x4a   : > { %s3041_s15 = scalar_lea.vmem %s353_s18, 16  ;;  %s3048_s13 = scalar_lea.vmem %s353_s18, 32 }
  0x4b   : > { %p3042_p4 = scmp.ne.s32.totalorder %s353_s18, %s3041_s15  ;;  %p3049_p9 = scmp.lt.s32.totalorder %s353_s18, %s353_s18 }
  0x4c   : > { %p3050_p10 = scmp.lt.s32.totalorder %s3048_s13, %s3041_s15 }
  0x4d   : > { %p3044_p6 = pnand %p3042_p4, %p3289_p7 }
  0x4e   : > { %p3051_p2 = por %p3050_p10, %p3049_p9 }
  0x4f   : > { %p3045_p8 = pneg %p3044_p6 }
  0x51   : > { %p3052_p3 = pnand %p3051_p2, %p3045_p8 }
  0x53   : > { %3055 = shalt.err (!%p3052_p3)
}
  0x54   : > { %2919 = dma.hbm_to_vmem [thread:$0]  (!%p3275_p5), %s4336_s2, 16, %s353_s18, [#allocation3]  }
  0x55   : > { %s3056_s20 = scalar_lea.hbm %s4338_s4, 16 }
  0x56   : > { %p3057_p11 = scmp.ne.s32.totalorder %s4338_s4, %s3056_s20  ;;  %p3063_p3 = scmp.lt.u32.totalorder %s3056_s20, %s4338_s4 }
  0x58   : > { %p3059_p12 = pnand %p3057_p11, %p3289_p7 }
  0x5a   : > { %p3060_p2 = pneg %p3059_p12 }
  0x5c   : > { %p3065_p13 = pnand %p3063_p3, %p3060_p2 }
  0x5e   : > { %3068 = shalt.err (!%p3065_p13)
}
  0x5f   : > { %s3069_s17 = scalar_lea.vmem %s377_s21, 16  ;;  %s3076_s18 = scalar_lea.vmem %s377_s21, 32 }
  0x60   : > { %p3070_p0 = scmp.ne.s32.totalorder %s377_s21, %s3069_s17  ;;  %p3077_p6 = scmp.lt.s32.totalorder %s377_s21, %s377_s21 }
  0x61   : > { %p3078_p8 = scmp.lt.s32.totalorder %s3076_s18, %s3069_s17 }
  0x62   : > { %p3072_p1 = pnand %p3070_p0, %p3289_p7 }
  0x63   : > { %p3079_p9 = por %p3078_p8, %p3077_p6 }
  0x64   : > { %p3073_p4 = pneg %p3072_p1 }
  0x66   : > { %p3080_p10 = pnand %p3079_p9, %p3073_p4 }
  0x68   : > { %3083 = shalt.err (!%p3080_p10)
}
  0x69   : > { %2925 = dma.hbm_to_vmem [thread:$0]  (!%p3275_p5), %s4338_s4, 16, %s377_s21, [#allocation5]  }
  0x6a   : > { %s3172_s13 = smov [#allocation9]   ;;  %s3173_s28 = smov [#allocation10]  }
  0x6b   : > { %s400_s12 = sshll.u32 %s3172_s13, 4  ;;  %s414_s3 = sshll.u32 %s3173_s28, 4  ;;  %s401_s12 = int_to_ptr.vmem [resolvable:$true] %s400_s12  ;;  %s415_s3 = int_to_ptr.vmem [resolvable:$true] %s414_s3 }
  0x6c   : > { %s3084_s22 = scalar_lea.hbm %s4340_s6, 16 }
  0x6d   : > { %p3085_p11 = scmp.ne.s32.totalorder %s4340_s6, %s3084_s22  ;;  %p3091_p3 = scmp.lt.u32.totalorder %s3084_s22, %s4340_s6 }
  0x6f   : > { %p3087_p12 = pnand %p3085_p11, %p3289_p7 }
  0x71   : > { %p3088_p2 = pneg %p3087_p12 }
  0x73   : > { %p3093_p13 = pnand %p3091_p3, %p3088_p2 }
  0x75   : > { %3096 = shalt.err (!%p3093_p13)
}
  0x76   : > { %s3097_s21 = scalar_lea.vmem %s401_s12, 16  ;;  %s3104_s18 = scalar_lea.vmem %s401_s12, 32 }
  0x77   : > { %p3098_p0 = scmp.ne.s32.totalorder %s401_s12, %s3097_s21  ;;  %p3105_p6 = scmp.lt.s32.totalorder %s401_s12, %s401_s12 }
  0x78   : > { %p3106_p8 = scmp.lt.s32.totalorder %s3104_s18, %s3097_s21 }
  0x79   : > { %p3100_p1 = pnand %p3098_p0, %p3289_p7 }
  0x7a   : > { %p3107_p9 = por %p3106_p8, %p3105_p6 }
  0x7b   : > { %p3101_p4 = pneg %p3100_p1 }
  0x7d   : > { %p3108_p10 = pnand %p3107_p9, %p3101_p4 }
  0x7f   : > { %3111 = shalt.err (!%p3108_p10)
}
  0x80   : > { %2931 = dma.hbm_to_vmem [thread:$0]  (!%p3275_p5), %s4340_s6, 16, %s401_s12, [#allocation8]  }
  0x81   : > { %s3112_s19 = scalar_lea.hbm %s4342_s8, 16 }
  0x82   : > { %p3113_p11 = scmp.ne.s32.totalorder %s4342_s8, %s3112_s19  ;;  %p3119_p3 = scmp.lt.u32.totalorder %s3112_s19, %s4342_s8 }
  0x84   : > { %p3115_p12 = pnand %p3113_p11, %p3289_p7 }
  0x86   : > { %p3116_p2 = pneg %p3115_p12 }
  0x88   : > { %p3121_p13 = pnand %p3119_p3, %p3116_p2 }
  0x8a   : > { %3124 = shalt.err (!%p3121_p13)
}
  0x8b   : > { %s3125_s14 = scalar_lea.vmem %s415_s3, 16  ;;  %s3132_s12 = scalar_lea.vmem %s415_s3, 32 }
  0x8c   : > { %p3126_p0 = scmp.ne.s32.totalorder %s415_s3, %s3125_s14  ;;  %p3133_p6 = scmp.lt.s32.totalorder %s415_s3, %s415_s3 }
  0x8d   : > { %p3134_p8 = scmp.lt.s32.totalorder %s3132_s12, %s3125_s14 }
  0x8e   : > { %p3128_p1 = pnand %p3126_p0, %p3289_p7 }
  0x8f   : > { %p3135_p9 = por %p3134_p8, %p3133_p6 }
  0x90   : > { %p3129_p4 = pneg %p3128_p1 }
  0x92   : > { %p3136_p10 = pnand %p3135_p9, %p3129_p4 }
  0x94   : > { %3139 = shalt.err (!%p3136_p10)
}
  0x95   : > { %2934 = dma.hbm_to_vmem [thread:$0]  (!%p3275_p5), %s4342_s8, 16, %s415_s3, [#allocation11]  }
  0x96   : > { %p4360_p11 = scmp.ne.s32.totalorder %s4356_s30, 0 }
  0x97   : > { %p4361_p12 = scmp.ne.s32.totalorder (!%p4360_p11), %s4355_s29, 0 }
  0x98   : > { %449 = sbr.rel (%p4360_p11) target bundleno = 2709 (0xa95), region = 72 }
  0x9f   : > { %3145 = dma.done.wait (%p4361_p12), [#allocation3], 16  }
  0xa0   : > { %3147 = vsyncadd (%p4361_p12), [#allocation3], 4294967280 }
  0xa1   : > { %3149 = dma.done.wait (%p4361_p12), [#allocation5], 6160  }
  0xa2   : > { %3151 = vsyncadd (%p4361_p12), [#allocation5], 4294961136 }
  0xa3   : > { %3153 = dma.done.wait (%p4361_p12), [#allocation8], 4112  }
  0xa4   : > { %3155 = vsyncadd (%p4361_p12), [#allocation8], 4294963184 }
  0xa5   : > { %3157 = dma.done.wait (%p4361_p12), [#allocation11], 16  }
  0xa6   : > { %3159 = vsyncadd (%p4361_p12), [#allocation11], 4294967280  ;;  %s4362_s30 = sadd.s32 4294967295, %s3162_s25   ;;  %v3174_v0 = vmov 0   ;;  %v715_v5 = vld [vmem:[#allocation4 + $0x8] sm:$0xff]  ;;  %v718_v6 = vld [vmem:[#allocation4 + $0x20] sm:$0xff] }
  0xa7   : > { %s2568_s16 = sshll.u32 %s4362_s30, 2  ;;  %2971 = vset.pattern.permute.xlu1 %v3174_v0  ;;  %2970 = vset.pattern.permute.xlu0 %v3174_v0  ;;  %v714_v7 = vld [vmem:[#allocation4] sm:$0xff]  ;;  %v717_v8 = vld [vmem:[#allocation4 + $0x18] sm:$0xff]  ;;  %v2752_v11 = vpack.c.bf16 %v718_v6, %v715_v5  ;;  %v716_v13 = vld [vmem:[#allocation4 + $0x10] sm:$0xff]  ;;  %v3175_v49 = vmov 0.0   ;;  %s3176_s13 = smov 64  }
  0xa8   : > { %p516_p5 = scmp.lt.s32.totalorder %s2568_s16, 7  ;;  %v2754_v12 = vpack.c.bf16 %v717_v8, %v714_v7  ;;  %v719_v14 = vld [vmem:[#allocation4 + $0x28] sm:$0xff]  ;;  %v721_v15 = vld [vmem:[#allocation4 + $0x38] sm:$0xff]  ;;  %v724_v17 = vld [vmem:[#allocation4 + $0x50] sm:$0xff]  ;;  %826 = vmatprep.mubr.f32.mxu0 %v3175_v49  ;;  %vm1413_vm4 = vcmask 523264   ;;  %s3177_s20 = smov 32  }
  0xa9   : > { %v2784_v16 = vpack.c.bf16 %v719_v14, %v716_v13  ;;  %v720_v18 = vld [vmem:[#allocation4 + $0x30] sm:$0xff]  ;;  %v723_v19 = vld [vmem:[#allocation4 + $0x48] sm:$0xff]  ;;  %2753 = vmatprep.subr.bf16.mxu0 %v2752_v11  ;;  %v2756_v20 = vpack.c.bf16 %v724_v17, %v721_v15  ;;  %v722_v21 = vld [vmem:[#allocation4 + $0x40] sm:$0xff]  ;;  %s3178_s3 = smov 96   ;;  %vm2070_vm5 = vcmask 261120   ;;  %s4363_s29 = sld [smem:[#allocation17_spill]] }
  0xaa   : > { %s4366_s16 = smov (!%p516_p5, %s2568_s16), 7  ;;  %v725_v22 = vld [vmem:[#allocation4 + $0x58] sm:$0xff]  ;;  %v727_v23 = vld [vmem:[#allocation4 + $0x68] sm:$0xff]  ;;  %2755 = vmatpush1.bf16.msra.mxu0 %v2754_v12  ;;  %v2758_v24 = vpack.c.bf16 %v723_v19, %v720_v18  ;;  %v730_v26 = vld [vmem:[#allocation4 + $0x80] sm:$0xff]  ;;  %v529_v18 = vlaneseq  ;;  %s4364_s28 = sld [smem:[#allocation18_spill]] }
  0xab   : > { %s2606_s24 = sshll.u32 %s4366_s16, 4  ;;  %2785 = vmatprep.subr.bf16.mxu1 %v2784_v16  ;;  %v2788_v25 = vpack.c.bf16 %v725_v22, %v722_v21  ;;  %v726_v27 = vld [vmem:[#allocation4 + $0x60] sm:$0xff]  ;;  %2757 = vmatprep.subr.bf16.mxu0 %v2756_v20  ;;  %v2760_v28 = vpack.c.bf16 %v730_v26, %v727_v23  ;;  %v729_v29 = vld [vmem:[#allocation4 + $0x78] sm:$0xff]  ;;  %v728_v30 = vld [vmem:[#allocation4 + $0x70] sm:$0xff] }
  0xac   : > { %s3434_s27 = scalar_lea.vmem %s4334_s0, %s2606_s24  ;;  %2787 = vmatpush3.bf16.msra.mxu1 %v2784_v16  ;;  %v731_v31 = vld [vmem:[#allocation4 + $0x88] sm:$0xff]  ;;  %v733_v33 = vld [vmem:[#allocation4 + $0x98] sm:$0xff]  ;;  %v736_v34 = vld [vmem:[#allocation4 + $0xb0] sm:$0xff]  ;;  %v2762_v39 = vpack.c.bf16 %v729_v29, %v726_v27  ;;  %v3445_v19 = vshrl.u32 %v529_v18, 7 }
  0xad   : > { %v533_v1 = vld [vmem:[%s3434_s27 + $0x8] sm:$0xff]  ;;  %v532_v2 = vld [vmem:[%s3434_s27] sm:$0xff]  ;;  %v534_v3 = vld [vmem:[%s3434_s27 + $0x10] sm:$0xff]  ;;  %2789 = vmatprep.subr.bf16.mxu1 %v2788_v25  ;;  %v2792_v36 = vpack.c.bf16 %v731_v31, %v728_v30  ;;  %v2764_v40 = vpack.c.bf16 %v736_v34, %v733_v33 }
  0xae   : > { %548 = vperm.xlu1 %2971, %v533_v1   ;;  %543 = vperm.xlu0 %2970, %v532_v2   ;;  %v539_v4 = vld [vmem:[%s3434_s27 + $0x38] sm:$0xff]  ;;  %v536_v9 = vld [vmem:[%s3434_s27 + $0x20] sm:$0xff]  ;;  %v538_v32 = vld [vmem:[%s3434_s27 + $0x30] sm:$0xff]  ;;  %v584_v20 = vsub.s32 0, %v3445_v19  ;;  %v592_v21 = vsub.s32 2, %v3445_v19  ;;  %v588_v23 = vsub.s32 1, %v3445_v19 }
  0xaf   : > { %v535_v10 = vld [vmem:[%s3434_s27 + $0x18] sm:$0xff]  ;;  %v537_v35 = vld [vmem:[%s3434_s27 + $0x28] sm:$0xff]  ;;  %2759 = vmatpush1.bf16.msra.mxu0 %v2758_v24  ;;  %v540_v22 = vld [vmem:[%s4335_s1] sm:$0x7]  ;;  %vm646_vm0 = vcmp.lt.s32.totalorder %v3445_v19, 1  ;;  %vm685_vm1 = vcmp.lt.s32.totalorder %v3445_v19, 7 }
  0xb0   : > { %v734_v37 = vld [vmem:[#allocation4 + $0xa0] sm:$0xff]  ;;  %v737_v38 = vld [vmem:[#allocation4 + $0xb8] sm:$0xff]  ;;  %2791 = vmatpush3.bf16.msra.mxu1 %v2788_v25  ;;  %2761 = vmatprep.subr.bf16.mxu0 %v2760_v28  ;;  %v732_v41 = vld [vmem:[#allocation4 + $0x90] sm:$0xff]  ;;  %v585_v24 = vrot.slane %v540_v22, %v584_v20  ;;  %v593_v25 = vrot.slane %v540_v22, %v592_v21  ;;  %v589_v26 = vrot.slane %v540_v22, %v588_v23  ;;  %vm636_vm2 = vcmp.gt.s32.totalorder %v3445_v19, 0  ;;  %s527_s19 = scalar_lea.vmem %s4364_s28, %s2606_s24 }
  0xb1   : > { %v735_v42 = vld [vmem:[#allocation4 + $0xa8] sm:$0xff]  ;;  %v2796_v43 = vpack.c.bf16 %v737_v38, %v734_v37  ;;  %v742_v45 = vld [vmem:[#allocation4 + $0xe0] sm:$0xff]  ;;  %2793 = vmatprep.subr.bf16.mxu1 %v2792_v36  ;;  %v740_v46 = vld [vmem:[#allocation4 + $0xd0] sm:$0xff] }
  0xb2   : > { %553 = vperm.xlu1 %2971, %v534_v3   ;;  %578 = vperm.xlu0 %2970, %v539_v4   ;;  %v739_v44 = vld [vmem:[#allocation4 + $0xc8] sm:$0xff]  ;;  %v2766_v48 = vpack.c.bf16 %v735_v42, %v732_v41  ;;  %v738_v51 = vld [vmem:[#allocation4 + $0xc0] sm:$0xff]  ;;  %v741_v52 = vld [vmem:[#allocation4 + $0xd8] sm:$0xff] }
  0xb3   : > { %v743_v47 = vld [vmem:[#allocation4 + $0xe8] sm:$0xff]  ;;  %2763 = vmatpush1.bf16.msra.mxu0 %v2762_v39  ;;  %v2768_v50 = vpack.c.bf16 %v742_v45, %v739_v44  ;;  %v745_v54 = vld [vmem:[#allocation4 + $0xf8] sm:$0xff]  ;;  %v748_v55 = vld [vmem:[#allocation4 + $0x110] sm:$0xff]  ;;  %v2770_v58 = vpack.c.bf16 %v741_v52, %v738_v51 }
  0xb4   : > { %2795 = vmatpush3.bf16.msra.mxu1 %v2792_v36  ;;  %2765 = vmatprep.subr.bf16.mxu0 %v2764_v40  ;;  %v2800_v53 = vpack.c.bf16 %v743_v47, %v740_v46  ;;  %v746_v56 = vld [vmem:[#allocation4 + $0x100] sm:$0xff]  ;;  %v749_v57 = vld [vmem:[#allocation4 + $0x118] sm:$0xff]  ;;  %v2772_v59 = vpack.c.bf16 %v748_v55, %v745_v54  ;;  %v744_v60 = vld [vmem:[#allocation4 + $0xf0] sm:$0xff] }
  0xb5   : > { %2797 = vmatprep.subr.bf16.mxu1 %v2796_v43  ;;  %v747_v61 = vld [vmem:[#allocation4 + $0x108] sm:$0xff]  ;;  %v2804_v62 = vpack.c.bf16 %v749_v57, %v746_v56  ;;  %v754_v0 = vld [vmem:[#allocation4 + $0x140] sm:$0xff]  ;;  %v752_v1 = vld [vmem:[#allocation4 + $0x130] sm:$0xff] }
  0xb6   : > { %563 = vperm.xlu1 %2971, %v536_v9   ;;  %558 = vperm.xlu0 %2970, %v535_v10   ;;  %v751_v63 = vld [vmem:[#allocation4 + $0x128] sm:$0xff]  ;;  %v2774_v3 = vpack.c.bf16 %v747_v61, %v744_v60  ;;  %v750_v5 = vld [vmem:[#allocation4 + $0x120] sm:$0xff]  ;;  %v753_v6 = vld [vmem:[#allocation4 + $0x138] sm:$0xff] }
  0xb7   : > { %2767 = vmatpush1.bf16.msra.mxu0 %v2766_v48  ;;  %v755_v2 = vld [vmem:[#allocation4 + $0x148] sm:$0xff]  ;;  %v2776_v4 = vpack.c.bf16 %v754_v0, %v751_v63  ;;  %v757_v8 = vld [vmem:[#allocation4 + $0x158] sm:$0xff]  ;;  %v760_v9 = vld [vmem:[#allocation4 + $0x170] sm:$0xff]  ;;  %v2778_v12 = vpack.c.bf16 %v753_v6, %v750_v5 }
  0xb8   : > { %2799 = vmatpush3.bf16.msra.mxu1 %v2796_v43  ;;  %2769 = vmatprep.subr.bf16.mxu0 %v2768_v50  ;;  %v2808_v7 = vpack.c.bf16 %v755_v2, %v752_v1  ;;  %v758_v10 = vld [vmem:[#allocation4 + $0x160] sm:$0xff]  ;;  %v761_v11 = vld [vmem:[#allocation4 + $0x178] sm:$0xff]  ;;  %v2780_v13 = vpack.c.bf16 %v760_v9, %v757_v8  ;;  %v756_v14 = vld [vmem:[#allocation4 + $0x150] sm:$0xff] }
  0xb9   : > { %2801 = vmatprep.subr.bf16.mxu1 %v2800_v53  ;;  %v759_v15 = vld [vmem:[#allocation4 + $0x168] sm:$0xff]  ;;  %v2812_v16 = vpack.c.bf16 %v761_v11, %v758_v10  ;;  %v3460_v36 = vld [vmem:[#allocation2] ss:$0 sm:$0xff] }
  0xba   : > { %573 = vperm.xlu1 %2971, %v538_v32   ;;  %568 = vperm.xlu0 %2970, %v537_v35   ;;  %v2782_v17 = vpack.c.bf16 %v759_v15, %v756_v14  ;;  %v3456_v32 = vadd.s32 8, %v3445_v19 }
  0xbb   : > { %2771 = vmatpush1.bf16.msra.mxu0 %v2770_v58 }
  0xbc   : > { %2803 = vmatpush3.bf16.msra.mxu1 %v2800_v53  ;;  %2773 = vmatprep.subr.bf16.mxu0 %v2772_v59  ;;  %vm676_vm3 = vcmp.lt.s32.totalorder %v3456_v32, 15 }
  0xbd   : > { %2805 = vmatprep.subr.bf16.mxu1 %v2804_v62 }
  0xbf   : > { %2775 = vmatpush1.bf16.msra.mxu0 %v2774_v3 }
  0xc0   : > { %2807 = vmatpush3.bf16.msra.mxu1 %v2804_v62  ;;  %2777 = vmatprep.subr.bf16.mxu0 %v2776_v4 }
  0xc1   : > { %2809 = vmatprep.subr.bf16.mxu1 %v2808_v7 }
  0xc3   : > { %2779 = vmatpush1.bf16.msra.mxu0 %v2778_v12 }
  0xc4   : > { %2811 = vmatpush3.bf16.msra.mxu1 %v2808_v7  ;;  %2781 = vmatprep.subr.bf16.mxu0 %v2780_v13 }
  0xc5   : > { %2813 = vmatprep.subr.bf16.mxu1 %v2812_v16 }
  0xc7   : > { %2783 = vmatpush1.bf16.msra.mxu0 %v2782_v17 }
  0xc8   : > { %2815 = vmatpush3.bf16.msra.mxu1 %v2812_v16 }
 0x12d   : > { %v549_v27 = vpop.permute.xlu1 %548  ;;  %v544_v28 = vpop.permute.xlu0 %543 }
 0x12e   : > { %v3453_v29 = vmul.f32 %v585_v24, %v549_v27  ;;  %v602_v30 = vmul.f32 %v593_v25, %v549_v27  ;;  %v597_v31 = vmul.f32 %v585_v24, %v544_v28  ;;  %v601_v33 = vmul.f32 %v589_v26, %v549_v27 }
 0x12f   : > { %v598_v34 = vmul.f32 %v589_v26, %v544_v28  ;;  %v3458_v35 = vmul.f32 %v593_v25, %v544_v28 }
 0x130   : > { %v639_v37 = vrot.slane %v3453_v29, 7  ;;  %v678_v38 = vrot.slane %v602_v30, 1  ;;  %v638_v39 = vrot.slane %v597_v31, 7  ;;  %v629_v47 = vadd.f32 %v3460_v36, %v601_v33 }
 0x131   : > { %v677_v40 = vrot.slane %v3458_v35, 1  ;;  %v554_v41 = vpop.permute.xlu1 %553  ;;  %v579_v42 = vpop.permute.xlu0 %578  ;;  %v628_v48 = vadd.f32 %v3460_v36, %v598_v34  ;;  %v1084_v35 = vld [vmem:[#allocation7 + $0x8] sm:$0xff] }
 0x132   : > { %v603_v43 = vmul.f32 %v585_v24, %v554_v41  ;;  %v604_v44 = vmul.f32 %v589_v26, %v554_v41  ;;  %v605_v45 = vmul.f32 %v593_v25, %v554_v41  ;;  %v3466_v46 = vmul.f32 %v585_v24, %v579_v42 }
 0x133   : > { %v3472_v51 = vmul.f32 %v589_v26, %v579_v42  ;;  %v3474_v52 = vmul.f32 %v593_v25, %v579_v42  ;;  %v692_v58 = vsel %vm685_vm1, %v677_v40, %v678_v38  ;;  %v653_v59 = vsel %vm646_vm0, %v638_v39, %v639_v37 }
 0x134   : > { %v679_v50 = vrot.slane %v605_v45, 1  ;;  %v645_v53 = vrot.slane %v3466_v46, 7  ;;  %v630_v54 = vadd.f32 %v3460_v36, %v604_v44  ;;  %v640_v55 = vrot.slane %v603_v43, 7 }
 0x135   : > { %v564_v56 = vpop.permute.xlu1 %563  ;;  %v559_v57 = vpop.permute.xlu0 %558  ;;  %v668_v7 = vadd.f32 %v653_v59, %v629_v47 }
 0x136   : > { %v609_v60 = vmul.f32 %v585_v24, %v564_v56  ;;  %v610_v61 = vmul.f32 %v589_v26, %v564_v56  ;;  %v611_v62 = vmul.f32 %v593_v25, %v564_v56  ;;  %v606_v63 = vmul.f32 %v585_v24, %v559_v57 }
 0x137   : > { %v607_v0 = vmul.f32 %v589_v26, %v559_v57  ;;  %v608_v1 = vmul.f32 %v593_v25, %v559_v57  ;;  %v654_v2 = vsel %vm646_vm0, %v645_v53, %v638_v39  ;;  %v691_v3 = vsel %vm685_vm1, %v678_v38, %v679_v50 }
 0x138   : > { %v632_v4 = vadd.f32 %v3460_v36, %v610_v61  ;;  %v642_v5 = vrot.slane %v609_v60, 7  ;;  %v681_v6 = vrot.slane %v611_v62, 1  ;;  %v641_v9 = vrot.slane %v606_v63, 7 }
 0x139   : > { %v631_v8 = vadd.f32 %v3460_v36, %v607_v0  ;;  %v574_v10 = vpop.permute.xlu1 %573  ;;  %v569_v11 = vpop.permute.xlu0 %568  ;;  %v659_v12 = vsel %vm636_vm2, %v654_v2, 0.0  ;;  %v699_v13 = vsel %vm676_vm3, %v691_v3, 0.0  ;;  %v680_v14 = vrot.slane %v608_v1, 1  ;;  %v1083_v3 = vld [vmem:[#allocation7] sm:$0xff] }
 0x13a   : > { %v615_v15 = vmul.f32 %v585_v24, %v574_v10  ;;  %v617_v16 = vmul.f32 %v593_v25, %v574_v10  ;;  %v612_v17 = vmul.f32 %v585_v24, %v569_v11  ;;  %v616_v18 = vmul.f32 %v589_v26, %v574_v10 }
 0x13b   : > { %v613_v20 = vmul.f32 %v589_v26, %v569_v11  ;;  %v614_v21 = vmul.f32 %v593_v25, %v569_v11  ;;  %v667_v22 = vadd.f32 %v659_v12, %v628_v48  ;;  %v3496_v29 = vadd.f32 %v699_v13, %v668_v7  ;;  %v1088_v7 = vld [vmem:[#allocation7 + $0x28] sm:$0xff]  ;;  %v1089_v11 = vld [vmem:[#allocation7 + $0x30] sm:$0xff] }
 0x13c   : > { %v644_v23 = vrot.slane %v615_v15, 7  ;;  %v683_v27 = vrot.slane %v617_v16, 1  ;;  %v643_v28 = vrot.slane %v612_v17, 7  ;;  %v652_v34 = vsel %vm646_vm0, %v639_v37, %v640_v55  ;;  %v1092_v13 = vld [vmem:[#allocation7 + $0x48] sm:$0xff]  ;;  %v1091_v15 = vld [vmem:[#allocation7 + $0x40] sm:$0xff]  ;;  %v1093_v17 = vld [vmem:[#allocation7 + $0x50] sm:$0xff] }
 0x13d   : > { %v633_v30 = vadd.f32 %v3460_v36, %v613_v20  ;;  %v682_v31 = vrot.slane %v614_v21, 1  ;;  %v3499_v33 = vadd.f32 %v692_v58, %v667_v22  ;;  %v661_v24 = vsel %vm636_vm2, %v652_v34, 0.0  ;;  %v1096_v20 = vld [vmem:[#allocation7 + $0x68] sm:$0xff]  ;;  %v1098_v21 = vld [vmem:[#allocation7 + $0x78] sm:$0xff]  ;;  %v1095_v22 = vld [vmem:[#allocation7 + $0x60] sm:$0xff] }
 0x13e   : > { %v690_v25 = vsel %vm685_vm1, %v679_v50, %v680_v14  ;;  %v651_v26 = vsel %vm646_vm0, %v640_v55, %v641_v9  ;;  %v689_v38 = vsel %vm685_vm1, %v680_v14, %v681_v6  ;;  %v669_v39 = vadd.f32 %v661_v24, %v630_v54  ;;  %v1094_v14 = vld [vmem:[#allocation7 + $0x58] sm:$0xff]  ;;  %v1099_v34 = vld [vmem:[#allocation7 + $0x80] sm:$0xff] }
 0x13f   : > { %827 = vmatmul.mubr.f32.vlgmr.msra.gmra.mrb[0].mxu0 %v3499_v33  ;;  %2692 = vmatprep.mubr.f32.mxu1 %v3499_v33  ;;  %v670_v41 = vadd.f32 %v651_v26, %v631_v8  ;;  %v701_v37 = vsel %vm676_vm3, %v689_v38, 0.0  ;;  %v650_v42 = vsel %vm646_vm0, %v641_v9, %v642_v5  ;;  %v688_v44 = vsel %vm685_vm1, %v681_v6, %v682_v31  ;;  %v1090_v8 = vld [vmem:[#allocation7 + $0x38] sm:$0xff]  ;;  %v1087_v9 = vld [vmem:[#allocation7 + $0x20] sm:$0xff]  ;;  %v1104_v38 = vld [vmem:[#allocation7 + $0xa8] sm:$0xff] }
 0x140   : > { %2693 = vmatmul.mubr.f32.vlgmr.msra.gmra.mrb[0].mxu1 %v3496_v29  ;;  %832 = vmatprep.mubr.f32.mxu0 %v3175_v49  ;;  %v663_v43 = vsel %vm636_vm2, %v650_v42, 0.0  ;;  %v649_v45 = vsel %vm646_vm0, %v642_v5, %v643_v28  ;;  %v687_v47 = vsel %vm685_vm1, %v682_v31, %v683_v27  ;;  %v684_v48 = vrot.slane %v3474_v52, 1  ;;  %v1085_v5 = vld [vmem:[#allocation7 + $0x10] sm:$0xff]  ;;  %v1102_v31 = vld [vmem:[#allocation7 + $0x98] sm:$0xff] }
 0x141   : > { %v3528_v50 = vadd.f32 %v690_v25, %v669_v39  ;;  %v671_v54 = vadd.f32 %v663_v43, %v632_v4  ;;  %v634_v55 = vadd.f32 %v3460_v36, %v616_v18  ;;  %v3531_v56 = vadd.f32 %v701_v37, %v670_v41  ;;  %v1101_v25 = vld [vmem:[#allocation7 + $0x90] sm:$0xff]  ;;  %v1106_v39 = vld [vmem:[#allocation7 + $0xb8] sm:$0xff]  ;;  %v1103_v41 = vld [vmem:[#allocation7 + $0xa0] sm:$0xff] }
 0x142   : > { %v672_v57 = vadd.f32 %v649_v45, %v633_v30  ;;  %v648_v58 = vsel %vm646_vm0, %v643_v28, %v644_v23  ;;  %v703_v52 = vsel %vm676_vm3, %v687_v47, 0.0  ;;  %v647_v61 = vsel %vm646_vm0, %v644_v23, %v645_v53  ;;  %v1100_v30 = vld [vmem:[#allocation7 + $0x88] sm:$0xff]  ;;  %v1105_v42 = vld [vmem:[#allocation7 + $0xb0] sm:$0xff] }
 0x143   : > { %2695 = vmatprep.mubr.f32.mxu1 %v3528_v50  ;;  %833 = vmatmul.mubr.f32.gmra.mrb[2].mxu0 %v3496_v29  ;;  %v3537_v59 = vadd.f32 %v688_v44, %v671_v54  ;;  %v665_v60 = vsel %vm636_vm2, %v648_v58, 0.0  ;;  %v635_v62 = vadd.f32 %v3460_v36, %v3472_v51  ;;  %v686_v1 = vsel %vm685_vm1, %v683_v27, %v684_v48  ;;  %v1097_v27 = vld [vmem:[#allocation7 + $0x70] sm:$0xff]  ;;  %v1108_v43 = vld [vmem:[#allocation7 + $0xc8] sm:$0xff]  ;;  %v1110_v44 = vld [vmem:[#allocation7 + $0xd8] sm:$0xff] }
 0x144   : > { %2696 = vmatmul.mubr.f32.gmra.mrb[2].mxu1 %v3531_v56  ;;  %838 = vmatprep.mubr.f32.mxu0 %v3175_v49  ;;  %v673_v63 = vadd.f32 %v665_v60, %v634_v55  ;;  %v3552_v0 = vadd.f32 %v703_v52, %v672_v57  ;;  %v693_v46 = vsel %vm685_vm1, %v684_v48, %v677_v40  ;;  %v1086_v40 = vld [vmem:[#allocation7 + $0x18] sm:$0xff]  ;;  %v1107_v48 = vld [vmem:[#allocation7 + $0xc0] sm:$0xff]  ;;  %v1109_v54 = vld [vmem:[#allocation7 + $0xd0] sm:$0xff] }
 0x145   : > { %2698 = vmatprep.mubr.f32.mxu1 %v3537_v59  ;;  %v674_v2 = vadd.f32 %v647_v61, %v635_v62  ;;  %v705_v51 = vsel %vm676_vm3, %v693_v46, 0.0  ;;  %v2816_v4 = vpack.c.bf16 %v1086_v40, %v1084_v35  ;;  %v2818_v6 = vpack.c.bf16 %v1085_v5, %v1083_v3  ;;  %v1112_v55 = vld [vmem:[#allocation7 + $0xe8] sm:$0xff]  ;;  %v1114_v57 = vld [vmem:[#allocation7 + $0xf8] sm:$0xff]  ;;  %v1111_v60 = vld [vmem:[#allocation7 + $0xe0] sm:$0xff] }
 0x146   : > { %v3561_v36 = vadd.f32 %v686_v1, %v673_v63  ;;  %v2820_v10 = vpack.c.bf16 %v1090_v8, %v1088_v7  ;;  %v2822_v12 = vpack.c.bf16 %v1089_v11, %v1087_v9  ;;  %v2824_v16 = vpack.c.bf16 %v1094_v14, %v1092_v13  ;;  %v1113_v61 = vld [vmem:[#allocation7 + $0xf0] sm:$0xff]  ;;  %v2576_v63 = vld [vmem:[#allocation9] ss:$0 sm:$0xff]  ;;  %v3588_v5 = vld [vmem:[#allocation6] ss:$0 sm:$0xff] }
 0x147   : > { %839 = vmatmul.mubr.f32.gmra.mrb[4].mxu0 %v3528_v50  ;;  %v3568_v53 = vadd.f32 %v705_v51, %v674_v2  ;;  %2817 = vmatprep.subr.bf16.mxu0 %v2816_v4  ;;  %v2826_v18 = vpack.c.bf16 %v1093_v17, %v1091_v15  ;;  %v2828_v23 = vpack.c.bf16 %v1098_v21, %v1096_v20 }
 0x148   : > { %2699 = vmatmul.mubr.f32.gmra.mrb[4].mxu1 %v3552_v0  ;;  %844 = vmatprep.mubr.f32.mxu0 %v3175_v49  ;;  %v2830_v28 = vpack.c.bf16 %v1097_v27, %v1095_v22  ;;  %v2832_v24 = vpack.c.bf16 %v1102_v31, %v1100_v30  ;;  %v2834_v26 = vpack.c.bf16 %v1101_v25, %v1099_v34 }
 0x149   : > { %2701 = vmatprep.mubr.f32.mxu1 %v3561_v36  ;;  %2819 = vmatpush1.bf16.msra.mxu0 %v2818_v6  ;;  %v2836_v37 = vpack.c.bf16 %v1106_v39, %v1104_v38  ;;  %v2838_v45 = vpack.c.bf16 %v1105_v42, %v1103_v41  ;;  %v2840_v47 = vpack.c.bf16 %v1110_v44, %v1108_v43 }
 0x14a   : > { %2821 = vmatprep.subr.bf16.mxu0 %v2820_v10  ;;  %v2842_v58 = vpack.c.bf16 %v1109_v54, %v1107_v48  ;;  %v2844_v52 = vpack.c.bf16 %v1114_v57, %v1112_v55  ;;  %v2846_v62 = vpack.c.bf16 %v1113_v61, %v1111_v60  ;;  %1234 = vrot.lane.b32.xlu0 %v2576_v63, %s3176_s13 }
 0x14b   : > { %845 = vmatmul.mubr.f32.gmra.mrb[6].mxu0 %v3531_v56 }
 0x14c   : > { %2702 = vmatmul.mubr.f32.gmra.mrb[6].mxu1 %v3568_v53  ;;  %850 = vmatprep.mubr.f32.mxu0 %v3175_v49 }
 0x14d   : > { %1494 = vmatprep.mubr.f32.mxu1 %v3175_v49  ;;  %2823 = vmatpush1.bf16.msra.mxu0 %v2822_v12 }
 0x14e   : > { %2825 = vmatprep.subr.bf16.mxu0 %v2824_v16 }
 0x14f   : > { %851 = vmatmul.mubr.f32.gmra.mrb[8].mxu0 %v3537_v59 }
 0x150   : > { %856 = vmatprep.mubr.f32.mxu0 %v3175_v49 }
 0x151   : > { %2827 = vmatpush1.bf16.msra.mxu0 %v2826_v18 }
 0x152   : > { %2829 = vmatprep.subr.bf16.mxu0 %v2828_v23 }
 0x153   : > { %857 = vmatmul.mubr.f32.gmra.mrb[10].mxu0 %v3552_v0 }
 0x154   : > { %862 = vmatprep.mubr.f32.mxu0 %v3175_v49 }
 0x155   : > { %2831 = vmatpush1.bf16.msra.mxu0 %v2830_v28 }
 0x156   : > { %2833 = vmatprep.subr.bf16.mxu0 %v2832_v24 }
 0x157   : > { %863 = vmatmul.mubr.f32.gmra.mrb[12].mxu0 %v3561_v36 }
 0x158   : > { %868 = vmatprep.mubr.f32.mxu0 %v3175_v49 }
 0x159   : > { %2835 = vmatpush1.bf16.msra.mxu0 %v2834_v26 }
 0x15a   : > { %2837 = vmatprep.subr.bf16.mxu0 %v2836_v37 }
 0x15b   : > { %869 = vmatmul.mubr.f32.gmra.mrb[14].mxu0 %v3568_v53 }
 0x15c   : > { %1179 = vmatprep.mubr.f32.mxu0 %v3175_v49 }
 0x15d   : > { %2839 = vmatpush1.bf16.msra.mxu0 %v2838_v45 }
 0x15e   : > { %2841 = vmatprep.subr.bf16.mxu0 %v2840_v47 }
 0x161   : > { %2843 = vmatpush1.bf16.msra.mxu0 %v2842_v58 }
 0x162   : > { %2845 = vmatprep.subr.bf16.mxu0 %v2844_v52 }
 0x165   : > { %2847 = vmatpush1.bf16.msra.mxu0 %v2846_v62 }
 0x212   : > { %v3583_v1 = vpop.f32.mrb[0].mxu0 }
 0x213   : > { %v3585_v2 = vpop.f32.mrb[1].mxu0  ;;  %v2694_v46 = vpop.f32.mrb[0].mxu1  ;;  %v995_v4 = vrot.slane %v3583_v1, 7 }
 0x214   : > { %v1028_v51 = vrot.slane %v2694_v46, 1  ;;  %v941_v35 = vpop.f32.mrb[1].mxu1 }
 0x215   : > { %v1027_v40 = vrot.slane %v941_v35, 1 }
 0x216   : > { %v834_v3 = vpop.f32.mrb[2].mxu0 }
 0x217   : > { %v3592_v6 = vsel %vm685_vm1, %v1027_v40, %v1028_v51  ;;  %v996_v7 = vrot.slane %v834_v3, 7  ;;  %v836_v8 = vpop.f32.mrb[3].mxu0  ;;  %v2697_v9 = vpop.f32.mrb[2].mxu1 }
 0x218   : > { %v988_v10 = vadd.f32 %v3588_v5, %v836_v8  ;;  %v1030_v11 = vrot.slane %v2697_v9, 1  ;;  %v951_v12 = vpop.f32.mrb[3].mxu1 }
 0x219   : > { %v1009_v13 = vsel %vm646_vm0, %v995_v4, %v996_v7  ;;  %v1029_v14 = vrot.slane %v951_v12, 1 }
 0x21a   : > { %v1020_v15 = vadd.f32 %v1009_v13, %v988_v10  ;;  %v840_v16 = vpop.f32.mrb[4].mxu0 }
 0x21b   : > { %v1039_v17 = vsel %vm685_vm1, %v1029_v14, %v1030_v11  ;;  %v1040_v18 = vsel %vm685_vm1, %v1028_v51, %v1029_v14  ;;  %v997_v20 = vrot.slane %v840_v16, 7  ;;  %v842_v21 = vpop.f32.mrb[5].mxu0  ;;  %v2700_v22 = vpop.f32.mrb[4].mxu1 }
 0x21c   : > { %v1044_v23 = vsel %vm676_vm3, %v1040_v18, 0.0  ;;  %v989_v27 = vadd.f32 %v3588_v5, %v842_v21  ;;  %v1032_v28 = vrot.slane %v2700_v22, 1  ;;  %v961_v30 = vpop.f32.mrb[5].mxu1 }
 0x21d   : > { %v1008_v31 = vsel %vm646_vm0, %v996_v7, %v997_v20  ;;  %v1031_v34 = vrot.slane %v961_v30, 1  ;;  %v3608_v24 = vadd.f32 %v1044_v23, %v1020_v15 }
 0x21e   : > { %v1013_v25 = vsel %vm636_vm2, %v1008_v31, 0.0  ;;  %v846_v26 = vpop.f32.mrb[6].mxu0 }
 0x21f   : > { %v1021_v38 = vadd.f32 %v1013_v25, %v989_v27  ;;  %v1037_v39 = vsel %vm685_vm1, %v1031_v34, %v1032_v28  ;;  %v1038_v41 = vsel %vm685_vm1, %v1030_v11, %v1031_v34  ;;  %v998_v37 = vrot.slane %v846_v26, 7  ;;  %v848_v42 = vpop.f32.mrb[7].mxu0  ;;  %v2703_v43 = vpop.f32.mrb[6].mxu1 }
 0x220   : > { %v990_v44 = vadd.f32 %v3588_v5, %v848_v42  ;;  %v1034_v45 = vrot.slane %v2703_v43, 1  ;;  %v971_v47 = vpop.f32.mrb[7].mxu1  ;;  %v1046_v60 = vsel %vm676_vm3, %v1038_v41, 0.0  ;;  %v987_v25 = vadd.f32 %v3588_v5, %v3585_v2 }
 0x221   : > { %v1053_v48 = vadd.f32 %v1039_v17, %v1021_v38  ;;  %v1007_v54 = vsel %vm646_vm0, %v997_v20, %v998_v37  ;;  %v1033_v55 = vrot.slane %v971_v47, 1  ;;  %v1060_v1 = vmax.f32 %v3608_v24, 0.0 }
 0x222   : > { %v1022_v57 = vadd.f32 %v1007_v54, %v990_v44  ;;  %v1042_v58 = vsel %vm685_vm1, %v1034_v45, %v1027_v40  ;;  %v852_v52 = vpop.f32.mrb[8].mxu0 }
 0x223   : > { %v1035_v61 = vsel %vm685_vm1, %v1033_v55, %v1034_v45  ;;  %v1036_v62 = vsel %vm685_vm1, %v1032_v28, %v1033_v55  ;;  %v999_v63 = vrot.slane %v852_v52, 7  ;;  %v854_v46 = vpop.f32.mrb[9].mxu0  ;;  %v1050_v43 = vsel %vm676_vm3, %v1042_v58, 0.0 }
 0x224   : > { %v1054_v51 = vadd.f32 %v1046_v60, %v1022_v57  ;;  %v991_v35 = vadd.f32 %v3588_v5, %v854_v46  ;;  %v1048_v16 = vsel %vm676_vm3, %v1036_v62, 0.0  ;;  %v1068_v54 = vadd.f32 %v1060_v1, %v3496_v29 }
 0x225   : > { %v1006_v3 = vsel %vm646_vm0, %v998_v37, %v999_v63 }
 0x226   : > { %v1015_v40 = vsel %vm636_vm2, %v1006_v3, 0.0  ;;  %v858_v7 = vpop.f32.mrb[10].mxu0  ;;  %v1062_v55 = vmax.f32 %v1054_v51, 0.0  ;;  %v1076_v57 = vmax.f32 %v1068_v54, 0.0 }
 0x227   : > { %v1023_v8 = vadd.f32 %v1015_v40, %v991_v35  ;;  %v1000_v9 = vrot.slane %v858_v7, 7  ;;  %v860_v10 = vpop.f32.mrb[11].mxu0 }
 0x228   : > { %v992_v11 = vadd.f32 %v3588_v5, %v860_v10  ;;  %v1070_v24 = vadd.f32 %v1062_v55, %v3531_v56 }
 0x229   : > { %v1055_v12 = vadd.f32 %v1037_v39, %v1023_v8  ;;  %v1005_v13 = vsel %vm646_vm0, %v999_v63, %v1000_v9 }
 0x22a   : > { %v1024_v14 = vadd.f32 %v1005_v13, %v992_v11  ;;  %v864_v15 = vpop.f32.mrb[12].mxu0 }
 0x22b   : > { %v1001_v17 = vrot.slane %v864_v15, 7  ;;  %v866_v18 = vpop.f32.mrb[13].mxu0 }
 0x22c   : > { %v1056_v20 = vadd.f32 %v1048_v16, %v1024_v14  ;;  %v993_v21 = vadd.f32 %v3588_v5, %v866_v18 }
 0x22d   : > { %v1004_v22 = vsel %vm646_vm0, %v1000_v9, %v1001_v17 }
 0x22e   : > { %v1017_v23 = vsel %vm636_vm2, %v1004_v22, 0.0  ;;  %v870_v27 = vpop.f32.mrb[14].mxu0 }
 0x22f   : > { %v1025_v28 = vadd.f32 %v1017_v23, %v993_v21  ;;  %v1002_v30 = vrot.slane %v870_v27, 7  ;;  %v872_v31 = vpop.f32.mrb[15].mxu0 }
 0x230   : > { %v994_v34 = vadd.f32 %v3588_v5, %v872_v31 }
 0x231   : > { %v1057_v26 = vadd.f32 %v1035_v61, %v1025_v28  ;;  %v1010_v38 = vsel %vm646_vm0, %v1002_v30, %v995_v4  ;;  %v1003_v39 = vsel %vm646_vm0, %v1001_v17, %v1002_v30  ;;  %v1061_v4 = vmax.f32 %v1053_v48, 0.0 }
 0x232   : > { %v1011_v41 = vsel %vm636_vm2, %v1010_v38, 0.0  ;;  %v1026_v37 = vadd.f32 %v1003_v39, %v994_v34  ;;  %v1078_v48 = vmax.f32 %v1070_v24, 0.0 }
 0x233   : > { %v1019_v42 = vadd.f32 %v1011_v41, %v987_v25  ;;  %v1069_v52 = vadd.f32 %v1061_v4, %v3528_v50  ;;  %v1065_v60 = vmax.f32 %v1057_v26, 0.0 }
 0x234   : > { %v1058_v44 = vadd.f32 %v1050_v43, %v1026_v37 }
 0x235   : > { %v1051_v2 = vadd.f32 %v3592_v6, %v1019_v42  ;;  %v1063_v6 = vmax.f32 %v1055_v12, 0.0  ;;  %v1077_v58 = vmax.f32 %v1069_v52, 0.0  ;;  %v1073_v56 = vadd.f32 %v1065_v60, %v3561_v36 }
 0x236   : > { %v1066_v62 = vmax.f32 %v1058_v44, 0.0 }
 0x237   : > { %v1059_v5 = vmax.f32 %v1051_v2, 0.0  ;;  %v1071_v29 = vadd.f32 %v1063_v6, %v3537_v59  ;;  %v1081_v46 = vmax.f32 %v1073_v56, 0.0  ;;  %v1373_v56 = vld [vmem:[%s4341_s7] sm:$0xff] }
 0x238   : > { %v1074_v59 = vadd.f32 %v1066_v62, %v3568_v53  ;;  %v1374_v62 = vld [vmem:[%s4341_s7 + $0x8] sm:$0xff] }
 0x239   : > { %v1067_v45 = vadd.f32 %v1059_v5, %v3499_v33  ;;  %v1064_v33 = vmax.f32 %v1056_v20, 0.0  ;;  %v1079_v61 = vmax.f32 %v1071_v29, 0.0 }
 0x23a   : > { %v1082_v51 = vmax.f32 %v1074_v59, 0.0  ;;  %v1375_v59 = vld [vmem:[%s4341_s7 + $0x10] sm:$0xff] }
 0x23b   : > { %v1075_v47 = vmax.f32 %v1067_v45, 0.0  ;;  %v1072_v50 = vadd.f32 %v1064_v33, %v3552_v0 }
 0x23d   : > { %1180 = vmatmul.mubr.f32.vlgmr.msra.gmra.mrb[16].mxu0 %v1075_v47  ;;  %v1080_v63 = vmax.f32 %v1072_v50, 0.0 }
 0x23e   : > { %1185 = vmatprep.mubr.f32.mxu0 %v3175_v49 }
 0x241   : > { %1186 = vmatmul.mubr.f32.gmra.mrb[18].mxu0 %v1076_v57 }
 0x242   : > { %1191 = vmatprep.mubr.f32.mxu0 %v3175_v49 }
 0x245   : > { %1192 = vmatmul.mubr.f32.gmra.mrb[20].mxu0 %v1077_v58 }
 0x246   : > { %1197 = vmatprep.mubr.f32.mxu0 %v3175_v49 }
 0x249   : > { %1198 = vmatmul.mubr.f32.gmra.mrb[22].mxu0 %v1078_v48 }
 0x24a   : > { %1203 = vmatprep.mubr.f32.mxu0 %v3175_v49 }
 0x24d   : > { %1204 = vmatmul.mubr.f32.gmra.mrb[24].mxu0 %v1079_v61 }
 0x24e   : > { %1209 = vmatprep.mubr.f32.mxu0 %v3175_v49 }
 0x251   : > { %1210 = vmatmul.mubr.f32.gmra.mrb[26].mxu0 %v1080_v63  ;;  %v1376_v63 = vld [vmem:[%s4341_s7 + $0x18] sm:$0xff] }
 0x252   : > { %1215 = vmatprep.mubr.f32.mxu0 %v3175_v49 }
 0x255   : > { %1216 = vmatmul.mubr.f32.gmra.mrb[28].mxu0 %v1081_v46  ;;  %v2848_v46 = vpack.c.bf16 %v1376_v63, %v1374_v62 }
 0x256   : > { %1221 = vmatprep.mubr.f32.mxu0 %v3175_v49 }
 0x257   : > { %2849 = vmatprep.subr.bf16.mxu1 %v2848_v46 }
 0x259   : > { %1222 = vmatmul.mubr.f32.gmra.mrb[30].mxu0 %v1082_v51  ;;  %v1378_v51 = vld [vmem:[%s4341_s7 + $0x28] sm:$0xff] }
 0x310   : > { %v3672_v35 = vpop.f32.mrb[16].mxu0 }
 0x311   : > { %v1183_v0 = vpop.f32.mrb[17].mxu0  ;;  %v1245_v40 = vrot.slane %v3672_v35, 7 }
 0x312   : > { %v1309_v8 = vrot.slane %v1183_v0, 1  ;;  %v1380_v0 = vld [vmem:[%s4341_s7 + $0x38] sm:$0xff] }
 0x314   : > { %v3674_v3 = vpop.f32.mrb[18].mxu0 }
 0x315   : > { %v1246_v36 = vrot.slane %v3674_v3, 7  ;;  %v1189_v7 = vpop.f32.mrb[19].mxu0 }
 0x316   : > { %v1310_v9 = vrot.slane %v1189_v7, 1  ;;  %v1377_v7 = vld [vmem:[%s4341_s7 + $0x20] sm:$0xff] }
 0x317   : > { %v1259_v53 = vsel %vm646_vm0, %v1245_v40, %v1246_v36 }
 0x318   : > { %v3680_v10 = vpop.f32.mrb[20].mxu0  ;;  %v1323_v11 = vsel %vm685_vm1, %v1309_v8, %v1310_v9 }
 0x319   : > { %v1247_v12 = vrot.slane %v3680_v10, 7  ;;  %1341 = vrot.lane.b32.xlu0 %v1323_v11, %s3176_s13  ;;  %v1195_v13 = vpop.f32.mrb[21].mxu0 }
 0x31a   : > { %v1311_v14 = vrot.slane %v1195_v13, 1 }
 0x31b   : > { %v1258_v15 = vsel %vm646_vm0, %v1246_v36, %v1247_v12  ;;  %v2852_v36 = vpack.c.bf16 %v1380_v0, %v1378_v51  ;;  %v2585_v0 = vld [vmem:[#allocation10] ss:$0 sm:$0xff] }
 0x31c   : > { %v3688_v16 = vpop.f32.mrb[22].mxu0  ;;  %v1322_v17 = vsel %vm685_vm1, %v1310_v9, %v1311_v14  ;;  %v1263_v61 = vsel %vm636_vm2, %v1258_v15, 0.0  ;;  %v1382_v9 = vld [vmem:[%s4341_s7 + $0x48] sm:$0xff]  ;;  %v1383_v15 = vld [vmem:[%s4341_s7 + $0x50] sm:$0xff] }
 0x31d   : > { %v1248_v18 = vrot.slane %v3688_v16, 7  ;;  %v1201_v20 = vpop.f32.mrb[23].mxu0  ;;  %v1326_v21 = vsel %vm676_vm3, %v1322_v17, 0.0  ;;  %v1386_v17 = vld [vmem:[%s4341_s7 + $0x68] sm:$0xff] }
 0x31e   : > { %v1312_v22 = vrot.slane %v1201_v20, 1  ;;  %1343 = vrot.lane.b32.xlu0 %v1326_v21, %s3176_s13 }
 0x31f   : > { %v1257_v23 = vsel %vm646_vm0, %v1247_v12, %v1248_v18 }
 0x320   : > { %v3698_v27 = vpop.f32.mrb[24].mxu0  ;;  %v1321_v28 = vsel %vm685_vm1, %v1311_v14, %v1312_v22  ;;  %v1381_v14 = vld [vmem:[%s4341_s7 + $0x40] sm:$0xff] }
 0x321   : > { %v1249_v30 = vrot.slane %v3698_v27, 7  ;;  %v1207_v31 = vpop.f32.mrb[25].mxu0  ;;  %v2858_v20 = vpack.c.bf16 %v1383_v15, %v1381_v14 }
 0x322   : > { %v1313_v34 = vrot.slane %v1207_v31, 1  ;;  %1345 = vrot.lane.b32.xlu0 %v1321_v28, %s3176_s13 }
 0x323   : > { %v1256_v25 = vsel %vm646_vm0, %v1248_v18, %v1249_v30  ;;  %v1388_v18 = vld [vmem:[%s4341_s7 + $0x78] sm:$0xff] }
 0x324   : > { %v3706_v26 = vpop.f32.mrb[26].mxu0  ;;  %v1320_v38 = vsel %vm685_vm1, %v1312_v22, %v1313_v34  ;;  %v1265_v50 = vsel %vm636_vm2, %v1256_v25, 0.0  ;;  %v2860_v21 = vpack.c.bf16 %v1388_v18, %v1386_v17  ;;  %v1385_v22 = vld [vmem:[%s4341_s7 + $0x60] sm:$0xff] }
 0x325   : > { %v1250_v39 = vrot.slane %v3706_v26, 7  ;;  %v1213_v41 = vpop.f32.mrb[27].mxu0  ;;  %v1328_v37 = vsel %vm676_vm3, %v1320_v38, 0.0 }
 0x326   : > { %v1314_v42 = vrot.slane %v1213_v41, 1  ;;  %1347 = vrot.lane.b32.xlu0 %v1328_v37, %s3176_s13 }
 0x327   : > { %v1255_v43 = vsel %vm646_vm0, %v1249_v30, %v1250_v39  ;;  %v1235_v30 = vpop.permute.xlu0 %1234 }
 0x328   : > { %v3716_v44 = vpop.f32.mrb[28].mxu0  ;;  %v1319_v2 = vsel %vm685_vm1, %v1313_v34, %v1314_v42  ;;  %v1237_v25 = vadd.f32 %v1235_v30, %v3672_v35  ;;  %v1238_v37 = vadd.f32 %v1235_v30, %v3674_v3  ;;  %v1240_v35 = vadd.f32 %v1235_v30, %v3688_v16 }
 0x329   : > { %v1251_v5 = vrot.slane %v3716_v44, 7  ;;  %v1219_v1 = vpop.f32.mrb[29].mxu0  ;;  %v1242_v16 = vadd.f32 %v1235_v30, %v3706_v26 }
 0x32a   : > { %v1315_v45 = vrot.slane %v1219_v1, 1  ;;  %1349 = vrot.lane.b32.xlu0 %v1319_v2, %s3176_s13  ;;  %v1239_v1 = vadd.f32 %v1235_v30, %v3680_v10 }
 0x32b   : > { %v1254_v4 = vsel %vm646_vm0, %v1250_v39, %v1251_v5 }
 0x32c   : > { %v3724_v47 = vpop.f32.mrb[30].mxu0  ;;  %v1318_v54 = vsel %vm685_vm1, %v1314_v42, %v1315_v45  ;;  %v1267_v11 = vsel %vm636_vm2, %v1254_v4, 0.0 }
 0x32d   : > { %v1252_v55 = vrot.slane %v3724_v47, 7  ;;  %v1225_v57 = vpop.f32.mrb[31].mxu0  ;;  %v1330_v52 = vsel %vm676_vm3, %v1318_v54, 0.0 }
 0x32e   : > { %v1316_v6 = vrot.slane %v1225_v57, 1  ;;  %1351 = vrot.lane.b32.xlu0 %v1330_v52, %s3176_s13 }
 0x32f   : > { %v1260_v58 = vsel %vm646_vm0, %v1252_v55, %v1245_v40  ;;  %v1253_v24 = vsel %vm646_vm0, %v1251_v5, %v1252_v55  ;;  %v2850_v40 = vpack.c.bf16 %v1375_v59, %v1373_v56  ;;  %v1244_v56 = vadd.f32 %v1235_v30, %v3724_v47 }
 0x330   : > { %v1261_v33 = vsel %vm636_vm2, %v1260_v58, 0.0  ;;  %v1317_v48 = vsel %vm685_vm1, %v1315_v45, %v1316_v6  ;;  %v1324_v29 = vsel %vm685_vm1, %v1316_v6, %v1309_v8  ;;  %v1379_v8 = vld [vmem:[%s4341_s7 + $0x30] sm:$0xff]  ;;  %v1241_v6 = vadd.f32 %v1235_v30, %v3698_v27 }
 0x331   : > { %1277 = vrot.lane.b32.xlu1 %v1261_v33, %s3176_s13  ;;  %v1332_v60 = vsel %vm676_vm3, %v1324_v29, 0.0  ;;  %2851 = vmatpush1.bf16.msra.mxu1 %v2850_v40  ;;  %v2854_v12 = vpack.c.bf16 %v1379_v8, %v1377_v7 }
 0x332   : > { %1353 = vrot.lane.b32.xlu0 %v1317_v48, %s3176_s13  ;;  %2853 = vmatprep.subr.bf16.mxu1 %v2852_v36 }
 0x335   : > { %1279 = vrot.lane.b32.xlu1 %v1259_v53, %s3176_s13  ;;  %v1384_v53 = vld [vmem:[%s4341_s7 + $0x58] sm:$0xff]  ;;  %2855 = vmatpush1.bf16.msra.mxu1 %v2854_v12 }
 0x336   : > { %1355 = vrot.lane.b32.xlu0 %v1332_v60, %s3176_s13  ;;  %v2856_v13 = vpack.c.bf16 %v1384_v53, %v1382_v9 }
 0x338   : > { %2857 = vmatprep.subr.bf16.mxu1 %v2856_v13 }
 0x339   : > { %1281 = vrot.lane.b32.xlu1 %v1263_v61, %s3176_s13  ;;  %2859 = vmatpush1.bf16.msra.mxu1 %v2858_v20  ;;  %v1243_v61 = vadd.f32 %v1235_v30, %v3716_v44 }
 0x33a   : > { %2861 = vmatprep.subr.bf16.mxu1 %v2860_v21 }
 0x33d   : > { %1283 = vrot.lane.b32.xlu1 %v1257_v23, %s3176_s13  ;;  %v1387_v23 = vld [vmem:[%s4341_s7 + $0x70] sm:$0xff] }
 0x33e   : > { %v2862_v28 = vpack.c.bf16 %v1387_v23, %v1385_v22 }
 0x340   : > { %2863 = vmatpush1.bf16.msra.mxu1 %v2862_v28 }
 0x341   : > { %1285 = vrot.lane.b32.xlu1 %v1265_v50, %s3176_s13 }
 0x345   : > { %1287 = vrot.lane.b32.xlu1 %v1255_v43, %s3176_s13 }
 0x349   : > { %1289 = vrot.lane.b32.xlu1 %v1267_v11, %s3176_s13 }
 0x34d   : > { %1291 = vrot.lane.b32.xlu1 %v1253_v24, %s3176_s13 }
 0x38b   : > { %v1342_v31 = vpop.permute.xlu0 %1341 }
 0x390   : > { %v1344_v34 = vpop.permute.xlu0 %1343 }
 0x394   : > { %v1346_v38 = vpop.permute.xlu0 %1345 }
 0x398   : > { %v1348_v5 = vpop.permute.xlu0 %1347 }
 0x39c   : > { %v1350_v55 = vpop.permute.xlu0 %1349 }
 0x3a0   : > { %v1352_v33 = vpop.permute.xlu0 %1351 }
 0x3a3   : > { %v1278_v39 = vpop.permute.xlu1 %1277 }
 0x3a4   : > { %v1301_v41 = vadd.f32 %v1278_v39, %v1237_v25  ;;  %v1354_v50 = vpop.permute.xlu0 %1353 }
 0x3a6   : > { %v3810_v42 = vadd.f32 %v1342_v31, %v1301_v41 }
 0x3a7   : > { %v1280_v43 = vpop.permute.xlu1 %1279 }
 0x3a8   : > { %v1302_v2 = vadd.f32 %v1280_v43, %v1238_v37  ;;  %1397 = vrot.lane.b32.xlu1 %v3810_v42, %s3176_s13  ;;  %v1356_v51 = vpop.permute.xlu0 %1355 }
 0x3aa   : > { %v3815_v45 = vadd.f32 %v1344_v34, %v1302_v2 }
 0x3ab   : > { %v1282_v4 = vpop.permute.xlu1 %1281 }
 0x3ac   : > { %v1303_v54 = vadd.f32 %v1282_v4, %v1239_v1  ;;  %1399 = vrot.lane.b32.xlu0 %v3815_v45, %s3176_s13 }
 0x3ae   : > { %v3820_v3 = vadd.f32 %v1346_v38, %v1303_v54 }
 0x3af   : > { %v1284_v57 = vpop.permute.xlu1 %1283 }
 0x3b0   : > { %v1304_v52 = vadd.f32 %v1284_v57, %v1240_v35  ;;  %1401 = vrot.lane.b32.xlu1 %v3820_v3, %s3176_s13 }
 0x3b2   : > { %v3825_v10 = vadd.f32 %v1348_v5, %v1304_v52 }
 0x3b3   : > { %v1286_v58 = vpop.permute.xlu1 %1285 }
 0x3b4   : > { %v1305_v24 = vadd.f32 %v1286_v58, %v1241_v6  ;;  %1403 = vrot.lane.b32.xlu0 %v3825_v10, %s3176_s13 }
 0x3b6   : > { %v3830_v48 = vadd.f32 %v1350_v55, %v1305_v24 }
 0x3b7   : > { %v1288_v29 = vpop.permute.xlu1 %1287 }
 0x3b8   : > { %v1306_v60 = vadd.f32 %v1288_v29, %v1242_v16  ;;  %1405 = vrot.lane.b32.xlu1 %v3830_v48, %s3176_s13 }
 0x3ba   : > { %v3835_v27 = vadd.f32 %v1352_v33, %v1306_v60 }
 0x3bb   : > { %v1290_v62 = vpop.permute.xlu1 %1289 }
 0x3bc   : > { %v1307_v63 = vadd.f32 %v1290_v62, %v1243_v61  ;;  %1407 = vrot.lane.b32.xlu0 %v3835_v27, %s3176_s13 }
 0x3be   : > { %v3840_v26 = vadd.f32 %v1354_v50, %v1307_v63 }
 0x3bf   : > { %v1292_v46 = vpop.permute.xlu1 %1291 }
 0x3c0   : > { %v1308_v59 = vadd.f32 %v1292_v46, %v1244_v56  ;;  %1409 = vrot.lane.b32.xlu1 %v3840_v26, %s3176_s13 }
 0x3c2   : > { %v3844_v44 = vadd.f32 %v1356_v51, %v1308_v59 }
 0x3c4   : > { %1411 = vrot.lane.b32.xlu0 %v3844_v44, %s3176_s13  ;;  %1549 = vrot.lane.b32.xlu1 %v2585_v0, %s3176_s13 }
 0x41a   : > { %v1398_v40 = vpop.permute.xlu1 %1397 }
 0x41b   : > { %2577 = vmatmul.mubr.msk.f32.vlgmr.msra.gmra.mrb[8].mxu1 %vm1413_vm4, %v1398_v40 }
 0x41c   : > { %1500 = vmatprep.mubr.f32.mxu1 %v3175_v49 }
 0x41e   : > { %v1400_v47 = vpop.permute.xlu0 %1399 }
 0x41f   : > { %2578 = vmatmul.mubr.msk.f32.gmra.mrb[10].mxu1 %vm1413_vm4, %v1400_v47 }
 0x420   : > { %1506 = vmatprep.mubr.f32.mxu1 %v3175_v49 }
 0x422   : > { %v1402_v36 = vpop.permute.xlu1 %1401 }
 0x423   : > { %2579 = vmatmul.mubr.msk.f32.gmra.mrb[12].mxu1 %vm1413_vm4, %v1402_v36 }
 0x424   : > { %1512 = vmatprep.mubr.f32.mxu1 %v3175_v49 }
 0x426   : > { %v1404_v7 = vpop.permute.xlu0 %1403 }
 0x427   : > { %2580 = vmatmul.mubr.msk.f32.gmra.mrb[14].mxu1 %vm1413_vm4, %v1404_v7 }
 0x428   : > { %1518 = vmatprep.mubr.f32.mxu1 %v3175_v49 }
 0x42a   : > { %v1406_v8 = vpop.permute.xlu1 %1405 }
 0x42b   : > { %2581 = vmatmul.mubr.msk.f32.gmra.mrb[16].mxu1 %vm1413_vm4, %v1406_v8 }
 0x42c   : > { %1524 = vmatprep.mubr.f32.mxu1 %v3175_v49 }
 0x42e   : > { %v1408_v9 = vpop.permute.xlu0 %1407 }
 0x42f   : > { %2582 = vmatmul.mubr.msk.f32.gmra.mrb[18].mxu1 %vm1413_vm4, %v1408_v9 }
 0x430   : > { %1530 = vmatprep.mubr.f32.mxu1 %v3175_v49 }
 0x432   : > { %v1410_v53 = vpop.permute.xlu1 %1409 }
 0x433   : > { %2583 = vmatmul.mubr.msk.f32.gmra.mrb[20].mxu1 %vm1413_vm4, %v1410_v53 }
 0x434   : > { %1536 = vmatprep.mubr.f32.mxu1 %v3175_v49 }
 0x436   : > { %v1412_v11 = vpop.permute.xlu0 %1411 }
 0x437   : > { %2584 = vmatmul.mubr.msk.f32.gmra.mrb[22].mxu1 %vm1413_vm4, %v1412_v11 }
 0x4ee   : > { %v3864_v12 = vpop.f32.mrb[8].mxu1 }
 0x4ef   : > { %v1498_v13 = vpop.f32.mrb[9].mxu1  ;;  %v1560_v15 = vrot.slane %v3864_v12, 7 }
 0x4f0   : > { %v1624_v20 = vrot.slane %v1498_v13, 1 }
 0x4f2   : > { %v3866_v14 = vpop.f32.mrb[10].mxu1 }
 0x4f3   : > { %v1561_v17 = vrot.slane %v3866_v14, 7  ;;  %v1504_v18 = vpop.f32.mrb[11].mxu1 }
 0x4f4   : > { %v1625_v21 = vrot.slane %v1504_v18, 1  ;;  %v1713_v18 = vld [vmem:[%s4343_s9 + $0x8] sm:$0xff] }
 0x4f5   : > { %v1574_v22 = vsel %vm646_vm0, %v1560_v15, %v1561_v17 }
 0x4f6   : > { %1594 = vrot.lane.b32.xlu1 %v1574_v22, %s3176_s13  ;;  %v3873_v49 = vpop.f32.mrb[12].mxu1  ;;  %v1638_v23 = vsel %vm685_vm1, %v1624_v20, %v1625_v21  ;;  %v1715_v22 = vld [vmem:[%s4343_s9 + $0x18] sm:$0xff] }
 0x4f7   : > { %v1562_v28 = vrot.slane %v3873_v49, 7  ;;  %1656 = vrot.lane.b32.xlu0 %v1638_v23, %s3176_s13  ;;  %v1510_v30 = vpop.f32.mrb[13].mxu1 }
 0x4f8   : > { %v1626_v31 = vrot.slane %v1510_v30, 1  ;;  %v1716_v30 = vld [vmem:[%s4343_s9 + $0x20] sm:$0xff] }
 0x4f9   : > { %v1573_v34 = vsel %vm646_vm0, %v1561_v17, %v1562_v28  ;;  %v1712_v17 = vld [vmem:[%s4343_s9] sm:$0xff] }
 0x4fa   : > { %v3881_v25 = vpop.f32.mrb[14].mxu1  ;;  %v1578_v38 = vsel %vm636_vm2, %v1573_v34, 0.0  ;;  %v1637_v39 = vsel %vm685_vm1, %v1625_v21, %v1626_v31  ;;  %v2864_v21 = vpack.c.bf16 %v1713_v18, %v1712_v17 }
 0x4fb   : > { %v1563_v41 = vrot.slane %v3881_v25, 7  ;;  %1596 = vrot.lane.b32.xlu0 %v1578_v38, %s3176_s13  ;;  %v1516_v37 = vpop.f32.mrb[15].mxu1  ;;  %v1641_v43 = vsel %vm676_vm3, %v1637_v39, 0.0 }
 0x4fc   : > { %v1627_v2 = vrot.slane %v1516_v37, 1  ;;  %1658 = vrot.lane.b32.xlu1 %v1641_v43, %s3176_s13  ;;  %2865 = vmatprep.subr.bf16.mxu1 %v2864_v21 }
 0x4fd   : > { %v1572_v5 = vsel %vm646_vm0, %v1562_v28, %v1563_v41  ;;  %2867 = vmatpush3.bf16.msra.mxu1 %v2864_v21  ;;  %v3964_v28 = vpop.permute.xlu1 %1549 }
 0x4fe   : > { %v3894_v1 = vpop.f32.mrb[16].mxu1  ;;  %v1636_v4 = vsel %vm685_vm1, %v1626_v31, %v1627_v2  ;;  %v1717_v31 = vld [vmem:[%s4343_s9 + $0x28] sm:$0xff]  ;;  %v1553_v39 = vadd.f32 %v3964_v28, %v3866_v14  ;;  %v1555_v14 = vadd.f32 %v3964_v28, %v3881_v25 }
 0x4ff   : > { %v1564_v54 = vrot.slane %v3894_v1, 7  ;;  %1660 = vrot.lane.b32.xlu0 %v1636_v4, %s3176_s13  ;;  %v1522_v35 = vpop.f32.mrb[17].mxu1  ;;  %v2872_v38 = vpack.c.bf16 %v1717_v31, %v1716_v30  ;;  %v1718_v4 = vld [vmem:[%s4343_s9 + $0x30] sm:$0xff] }
 0x500   : > { %v1628_v55 = vrot.slane %v1522_v35, 1  ;;  %1598 = vrot.lane.b32.xlu1 %v1572_v5, %s3176_s13 }
 0x501   : > { %v1571_v57 = vsel %vm646_vm0, %v1563_v41, %v1564_v54 }
 0x502   : > { %v3903_v52 = vpop.f32.mrb[18].mxu1  ;;  %v1635_v6 = vsel %vm685_vm1, %v1627_v2, %v1628_v55  ;;  %v1580_v11 = vsel %vm636_vm2, %v1571_v57, 0.0 }
 0x503   : > { %v1565_v58 = vrot.slane %v3903_v52, 7  ;;  %v1528_v24 = vpop.f32.mrb[19].mxu1  ;;  %v1643_v33 = vsel %vm676_vm3, %v1635_v6, 0.0 }
 0x504   : > { %v1629_v16 = vrot.slane %v1528_v24, 1  ;;  %1662 = vrot.lane.b32.xlu1 %v1643_v33, %s3176_s13 }
 0x505   : > { %v1570_v29 = vsel %vm646_vm0, %v1564_v54, %v1565_v58  ;;  %v1719_v54 = vld [vmem:[%s4343_s9 + $0x38] sm:$0xff] }
 0x506   : > { %v3913_v60 = vpop.f32.mrb[20].mxu1  ;;  %v1634_v61 = vsel %vm685_vm1, %v1628_v55, %v1629_v16  ;;  %v2876_v55 = vpack.c.bf16 %v1719_v54, %v1718_v4 }
 0x507   : > { %v1566_v50 = vrot.slane %v3913_v60, 7  ;;  %v1534_v62 = vpop.f32.mrb[21].mxu1 }
 0x508   : > { %v1630_v63 = vrot.slane %v1534_v62, 1  ;;  %1602 = vrot.lane.b32.xlu1 %v1570_v29, %s3176_s13 }
 0x509   : > { %v1569_v56 = vsel %vm646_vm0, %v1565_v58, %v1566_v50 }
 0x50a   : > { %v3921_v46 = vpop.f32.mrb[22].mxu1  ;;  %v1633_v59 = vsel %vm685_vm1, %v1629_v16, %v1630_v63 }
 0x50b   : > { %v1567_v51 = vrot.slane %v3921_v46, 7  ;;  %v1540_v0 = vpop.f32.mrb[23].mxu1  ;;  %v1645_v40 = vsel %vm676_vm3, %v1633_v59, 0.0 }
 0x50c   : > { %v1631_v47 = vrot.slane %v1540_v0, 1  ;;  %1666 = vrot.lane.b32.xlu1 %v1645_v40, %s3176_s13  ;;  %v1552_v40 = vadd.f32 %v3964_v28, %v3864_v12 }
 0x50d   : > { %v1575_v36 = vsel %vm646_vm0, %v1567_v51, %v1560_v15  ;;  %v1568_v7 = vsel %vm646_vm0, %v1566_v50, %v1567_v51  ;;  %v1582_v15 = vsel %vm636_vm2, %v1569_v56, 0.0  ;;  %v1557_v50 = vadd.f32 %v3964_v28, %v3903_v52 }
 0x50e   : > { %v1576_v8 = vsel %vm636_vm2, %v1575_v36, 0.0  ;;  %v1639_v9 = vsel %vm685_vm1, %v1631_v47, %v1624_v20  ;;  %v1632_v53 = vsel %vm685_vm1, %v1630_v63, %v1631_v47  ;;  %v1714_v20 = vld [vmem:[%s4343_s9 + $0x10] sm:$0xff] }
 0x50f   : > { %1592 = vrot.lane.b32.xlu0 %v1576_v8, %s3176_s13  ;;  %v1647_v13 = vsel %vm676_vm3, %v1639_v9, 0.0  ;;  %v2868_v23 = vpack.c.bf16 %v1715_v22, %v1714_v20 }
 0x510   : > { %1606 = vrot.lane.b32.xlu1 %v1568_v7, %s3176_s13 }
 0x511   : > { %2869 = vmatprep.subr.bf16.mxu1 %v2868_v23 }
 0x512   : > { %2871 = vmatpush3.bf16.msra.mxu1 %v2868_v23 }
 0x513   : > { %1600 = vrot.lane.b32.xlu0 %v1580_v11, %s3176_s13  ;;  %2873 = vmatprep.subr.bf16.mxu1 %v2872_v38 }
 0x514   : > { %1670 = vrot.lane.b32.xlu1 %v1647_v13, %s3176_s13 }
 0x516   : > { %2875 = vmatpush3.bf16.msra.mxu1 %v2872_v38 }
 0x517   : > { %1664 = vrot.lane.b32.xlu0 %v1634_v61, %s3176_s13  ;;  %2877 = vmatprep.subr.bf16.mxu1 %v2876_v55 }
 0x51a   : > { %2879 = vmatpush3.bf16.msra.mxu1 %v2876_v55 }
 0x51b   : > { %1604 = vrot.lane.b32.xlu0 %v1582_v15, %s3176_s13  ;;  %v1556_v15 = vadd.f32 %v3964_v28, %v3894_v1 }
 0x51f   : > { %1668 = vrot.lane.b32.xlu0 %v1632_v53, %s3176_s13 }
 0x568   : > { %v1595_v34 = vpop.permute.xlu1 %1594 }
 0x569   : > { %v1617_v41 = vadd.f32 %v1595_v34, %v1553_v39  ;;  %v1657_v2 = vpop.permute.xlu0 %1656 }
 0x56d   : > { %v1597_v33 = vpop.permute.xlu0 %1596 }
 0x56e   : > { %v1659_v37 = vpop.permute.xlu1 %1658 }
 0x56f   : > { %v1681_v43 = vadd.f32 %v1659_v37, %v1617_v41  ;;  %v1558_v41 = vadd.f32 %v3964_v28, %v3913_v60 }
 0x571   : > { %v1689_v5 = vmax.f32 %v1681_v43, 0.0  ;;  %v1661_v63 = vpop.permute.xlu0 %1660 }
 0x572   : > { %v1599_v35 = vpop.permute.xlu1 %1598 }
 0x573   : > { %v1697_v57 = vadd.f32 %v1689_v5, %v3815_v45  ;;  %v1619_v58 = vadd.f32 %v1599_v35, %v1555_v14  ;;  %v1554_v45 = vadd.f32 %v3964_v28, %v3873_v49 }
 0x575   : > { %v1705_v6 = vmax.f32 %v1697_v57, 0.0  ;;  %v1618_v0 = vadd.f32 %v1597_v33, %v1554_v45 }
 0x576   : > { %v1663_v24 = vpop.permute.xlu1 %1662 }
 0x577   : > { %v1683_v16 = vadd.f32 %v1663_v24, %v1619_v58  ;;  %1730 = vrot.lane.b32.xlu1 %v1705_v6, %s3176_s13  ;;  %v1682_v7 = vadd.f32 %v1661_v63, %v1618_v0 }
 0x579   : > { %v1691_v29 = vmax.f32 %v1683_v16, 0.0  ;;  %v1690_v17 = vmax.f32 %v1682_v7, 0.0 }
 0x57a   : > { %v1603_v61 = vpop.permute.xlu1 %1602 }
 0x57b   : > { %v1699_v62 = vadd.f32 %v1691_v29, %v3825_v10  ;;  %v1621_v56 = vadd.f32 %v1603_v61, %v1557_v50  ;;  %v1559_v10 = vadd.f32 %v3964_v28, %v3921_v46 }
 0x57d   : > { %v1707_v25 = vmax.f32 %v1699_v62, 0.0 }
 0x57e   : > { %v1667_v59 = vpop.permute.xlu1 %1666 }
 0x57f   : > { %v1685_v51 = vadd.f32 %v1667_v59, %v1621_v56  ;;  %1734 = vrot.lane.b32.xlu1 %v1707_v25, %s3176_s13 }
 0x581   : > { %v1693_v47 = vmax.f32 %v1685_v51, 0.0  ;;  %v1593_v36 = vpop.permute.xlu0 %1592 }
 0x582   : > { %v1616_v52 = vadd.f32 %v1593_v36, %v1552_v40  ;;  %v1607_v8 = vpop.permute.xlu1 %1606 }
 0x583   : > { %v1701_v9 = vadd.f32 %v1693_v47, %v3835_v27  ;;  %v1623_v11 = vadd.f32 %v1607_v8, %v1559_v10  ;;  %v1698_v27 = vadd.f32 %v1690_v17, %v3820_v3 }
 0x584   : > { %v1680_v53 = vadd.f32 %v1657_v2, %v1616_v52  ;;  %v2594_v52 = vld [vmem:[%s4344_s10] ss:$0 sm:$0xff] }
 0x585   : > { %v1709_v49 = vmax.f32 %v1701_v9, 0.0  ;;  %v1601_v13 = vpop.permute.xlu0 %1600  ;;  %v1706_v37 = vmax.f32 %v1698_v27, 0.0 }
 0x586   : > { %v1688_v18 = vmax.f32 %v1680_v53, 0.0  ;;  %v1671_v12 = vpop.permute.xlu1 %1670  ;;  %v1620_v21 = vadd.f32 %v1601_v13, %v1556_v15 }
 0x587   : > { %v1687_v20 = vadd.f32 %v1671_v12, %v1623_v11  ;;  %1738 = vrot.lane.b32.xlu1 %v1709_v49, %s3176_s13 }
 0x588   : > { %v1696_v22 = vadd.f32 %v1688_v18, %v3810_v42 }
 0x589   : > { %v1695_v23 = vmax.f32 %v1687_v20, 0.0  ;;  %v1665_v46 = vpop.permute.xlu0 %1664 }
 0x58a   : > { %v1684_v30 = vadd.f32 %v1665_v46, %v1620_v21  ;;  %v1704_v31 = vmax.f32 %v1696_v22, 0.0 }
 0x58b   : > { %v1703_v34 = vadd.f32 %v1695_v23, %v3844_v44 }
 0x58c   : > { %v1692_v38 = vmax.f32 %v1684_v30, 0.0  ;;  %1728 = vrot.lane.b32.xlu0 %v1704_v31, %s3176_s13 }
 0x58d   : > { %v1711_v1 = vmax.f32 %v1703_v34, 0.0  ;;  %v1605_v39 = vpop.permute.xlu0 %1604 }
 0x58e   : > { %v1700_v43 = vadd.f32 %v1692_v38, %v3830_v48  ;;  %v1622_v42 = vadd.f32 %v1605_v39, %v1558_v41 }
 0x58f   : > { %1742 = vrot.lane.b32.xlu1 %v1711_v1, %s3176_s13 }
 0x590   : > { %1732 = vrot.lane.b32.xlu0 %v1706_v37, %s3176_s13  ;;  %v1708_v2 = vmax.f32 %v1700_v43, 0.0 }
 0x591   : > { %v1669_v3 = vpop.permute.xlu0 %1668 }
 0x592   : > { %v1686_v5 = vadd.f32 %v1669_v3, %v1622_v42 }
 0x594   : > { %v1694_v44 = vmax.f32 %v1686_v5, 0.0  ;;  %1736 = vrot.lane.b32.xlu0 %v1708_v2, %s3176_s13 }
 0x596   : > { %v1702_v4 = vadd.f32 %v1694_v44, %v3840_v26 }
 0x598   : > { %v1710_v54 = vmax.f32 %v1702_v4, 0.0  ;;  %v2042_v4 = vld [vmem:[%s4345_s11] sm:$0xff] }
 0x59a   : > { %1740 = vrot.lane.b32.xlu0 %v1710_v54, %s3176_s13  ;;  %v2043_v54 = vld [vmem:[%s4345_s11 + $0x8] sm:$0xff] }
 0x5e9   : > { %v1731_v28 = vpop.permute.xlu1 %1730 }
 0x5f1   : > { %v1735_v35 = vpop.permute.xlu1 %1734 }
 0x5f9   : > { %v1739_v14 = vpop.permute.xlu1 %1738 }
 0x5fe   : > { %v1729_v60 = vpop.permute.xlu0 %1728 }
 0x5ff   : > { %2720 = vmatprep.mubr.msk.f32.mxu1 %vm1413_vm4, %v1729_v60  ;;  %v2880_v60 = vpack.c.bf16 %v2043_v54, %v2042_v4 }
 0x600   : > { %2721 = vmatmul.mubr.msk.f32.vlgmr.msra.gmra.mrb[24].mxu1 %vm1413_vm4, %v1731_v28 }
 0x601   : > { %v1743_v57 = vpop.permute.xlu1 %1742  ;;  %2881 = vmatprep.subr.bf16.mxu0 %v2880_v60  ;;  %2888 = vmatprep.subr.bf16.mxu1 %v2880_v60 }
 0x602   : > { %v1733_v48 = vpop.permute.xlu0 %1732  ;;  %2883 = vmatpush3.bf16.msra.mxu0 %v2880_v60  ;;  %2890 = vmatpush3.bf16.msra.mxu1 %v2880_v60 }
 0x603   : > { %2723 = vmatprep.mubr.msk.f32.mxu1 %vm1413_vm4, %v1733_v48 }
 0x604   : > { %2724 = vmatmul.mubr.msk.f32.gmra.mrb[26].mxu1 %vm1413_vm4, %v1735_v35 }
 0x606   : > { %v1737_v55 = vpop.permute.xlu0 %1736 }
 0x607   : > { %2726 = vmatprep.mubr.msk.f32.mxu1 %vm1413_vm4, %v1737_v55 }
 0x608   : > { %2727 = vmatmul.mubr.msk.f32.gmra.mrb[28].mxu1 %vm1413_vm4, %v1739_v14 }
 0x60c   : > { %v1741_v26 = vpop.permute.xlu0 %1740 }
 0x60d   : > { %2729 = vmatprep.mubr.msk.f32.mxu1 %vm1413_vm4, %v1741_v26 }
 0x60e   : > { %2730 = vmatmul.mubr.msk.f32.gmra.mrb[30].mxu1 %vm1413_vm4, %v1743_v57 }
 0x6d3   : > { %v4018_v6 = vpop.f32.mrb[24].mxu1 }
 0x6d4   : > { %v1883_v58 = vrot.slane %v4018_v6, 7  ;;  %1956 = vrot.lane.b32.xlu1 %v4018_v6, %s3176_s13  ;;  %v4023_v24 = vpop.f32.mrb[25].mxu1 }
 0x6d5   : > { %v1882_v33 = vrot.slane %v4023_v24, 7  ;;  %1954 = vrot.lane.b32.xlu0 %v4023_v24, %s3176_s13 }
 0x6d7   : > { %v4028_v16 = vpop.f32.mrb[26].mxu1  ;;  %v1896_v29 = vsel %vm646_vm0, %v1882_v33, %v1883_v58 }
 0x6d8   : > { %v1885_v61 = vrot.slane %v4028_v16, 7  ;;  %v4033_v50 = vpop.f32.mrb[27].mxu1 }
 0x6d9   : > { %v1884_v62 = vrot.slane %v4033_v50, 7  ;;  %1958 = vrot.lane.b32.xlu0 %v4033_v50, %s3176_s13 }
 0x6db   : > { %v4038_v63 = vpop.f32.mrb[28].mxu1  ;;  %v1895_v25 = vsel %vm646_vm0, %v1883_v58, %v1884_v62  ;;  %v1894_v56 = vsel %vm646_vm0, %v1884_v62, %v1885_v61  ;;  %v2045_v62 = vld [vmem:[%s4345_s11 + $0x18] sm:$0xff] }
 0x6dc   : > { %v1887_v45 = vrot.slane %v4038_v63, 7  ;;  %v4045_v59 = vpop.f32.mrb[29].mxu1  ;;  %v1900_v49 = vsel %vm636_vm2, %v1895_v25, 0.0 }
 0x6dd   : > { %v1886_v51 = vrot.slane %v4045_v59, 7  ;;  %1964 = vrot.lane.b32.xlu0 %v4038_v63, %s3176_s13  ;;  %1962 = vrot.lane.b32.xlu1 %v4045_v59, %s3176_s13 }
 0x6df   : > { %v1892_v0 = vsel %vm646_vm0, %v1886_v51, %v1887_v45  ;;  %v1893_v40 = vsel %vm646_vm0, %v1885_v61, %v1886_v51  ;;  %v2044_v61 = vld [vmem:[%s4345_s11 + $0x10] sm:$0xff] }
 0x6e0   : > { %v1902_v11 = vsel %vm636_vm2, %v1893_v40, 0.0  ;;  %v2884_v25 = vpack.c.bf16 %v2045_v62, %v2044_v61 }
 0x6e1   : > { %1960 = vrot.lane.b32.xlu0 %v4028_v16, %s3176_s13  ;;  %v4058_v47 = vpop.f32.mrb[30].mxu1 }
 0x6e2   : > { %v1889_v36 = vrot.slane %v4058_v47, 7  ;;  %v4061_v7 = vpop.f32.mrb[31].mxu1  ;;  %2885 = vmatprep.subr.bf16.mxu0 %v2884_v25  ;;  %2889 = vmatprep.subr.bf16.mxu1 %v2884_v25 }
 0x6e3   : > { %v1888_v8 = vrot.slane %v4061_v7, 7  ;;  %1966 = vrot.lane.b32.xlu1 %v4061_v7, %s3176_s13  ;;  %2887 = vmatpush3.bf16.msra.mxu0 %v2884_v25 }
 0x6e4   : > { %v1897_v10 = vsel %vm646_vm0, %v1889_v36, %v1882_v33  ;;  %2891 = vmatpush3.bf16.msra.mxu1 %v2884_v25 }
 0x6e5   : > { %1871 = vrot.lane.b32.xlu0 %v2594_v52, %s3177_s20  ;;  %v1890_v9 = vsel %vm646_vm0, %v1888_v8, %v1889_v36  ;;  %v1891_v53 = vsel %vm646_vm0, %v1887_v45, %v1888_v8  ;;  %v1898_v13 = vsel %vm636_vm2, %v1897_v10, 0.0 }
 0x6e6   : > { %v1904_v15 = vsel %vm636_vm2, %v1891_v53, 0.0 }
 0x6e7   : > { %1968 = vrot.lane.b32.xlu1 %v4058_v47, %s3176_s13 }
 0x6e9   : > { %1916 = vrot.lane.b32.xlu0 %v1896_v29, %s3177_s20 }
 0x6eb   : > { %1924 = vrot.lane.b32.xlu1 %v1892_v0, %s3177_s20 }
 0x6ef   : > { %1918 = vrot.lane.b32.xlu1 %v1900_v49, %s3177_s20 }
 0x6f3   : > { %1920 = vrot.lane.b32.xlu1 %v1894_v56, %s3177_s20 }
 0x6f7   : > { %1922 = vrot.lane.b32.xlu1 %v1902_v11, %s3177_s20 }
 0x6fb   : > { %1914 = vrot.lane.b32.xlu1 %v1898_v13, %s3177_s20 }
 0x6ff   : > { %1928 = vrot.lane.b32.xlu1 %v1890_v9, %s3177_s20 }
 0x703   : > { %1926 = vrot.lane.b32.xlu1 %v1904_v15, %s3177_s20 }
 0x746   : > { %v1957_v17 = vpop.permute.xlu1 %1956 }
 0x747   : > { %v1979_v18 = vrot.slane %v1957_v17, 1  ;;  %v1955_v12 = vpop.permute.xlu0 %1954 }
 0x748   : > { %v1978_v20 = vrot.slane %v1955_v12, 1 }
 0x74a   : > { %v1992_v21 = vsel %vm685_vm1, %v1978_v20, %v1979_v18 }
 0x74b   : > { %2010 = vrot.lane.b32.xlu0 %v1992_v21, %s3177_s20  ;;  %v1959_v22 = vpop.permute.xlu0 %1958 }
 0x74c   : > { %v1980_v27 = vrot.slane %v1959_v22, 1 }
 0x74e   : > { %v1991_v1 = vsel %vm685_vm1, %v1979_v18, %v1980_v27 }
 0x74f   : > { %v1965_v23 = vpop.permute.xlu0 %1964  ;;  %v1963_v46 = vpop.permute.xlu1 %1962  ;;  %v1995_v41 = vsel %vm676_vm3, %v1991_v1, 0.0 }
 0x750   : > { %v1982_v37 = vrot.slane %v1963_v46, 1  ;;  %v1983_v43 = vrot.slane %v1965_v23, 1 }
 0x752   : > { %v1988_v5 = vsel %vm685_vm1, %v1982_v37, %v1983_v43 }
 0x753   : > { %v1961_v30 = vpop.permute.xlu0 %1960 }
 0x754   : > { %v1981_v31 = vrot.slane %v1961_v30, 1 }
 0x755   : > { %v1967_v34 = vpop.permute.xlu1 %1966 }
 0x756   : > { %v1990_v38 = vsel %vm685_vm1, %v1980_v27, %v1981_v31  ;;  %v1984_v42 = vrot.slane %v1967_v34, 1  ;;  %v1989_v44 = vsel %vm685_vm1, %v1981_v31, %v1982_v37 }
 0x757   : > { %2014 = vrot.lane.b32.xlu0 %v1990_v38, %s3177_s20  ;;  %v1997_v28 = vsel %vm676_vm3, %v1989_v44, 0.0  ;;  %v1872_v33 = vpop.permute.xlu0 %1871 }
 0x758   : > { %v1987_v48 = vsel %vm685_vm1, %v1983_v43, %v1984_v42  ;;  %v1874_v51 = vadd.f32 %v1872_v33, %v4023_v24  ;;  %v1876_v52 = vadd.f32 %v1872_v33, %v4033_v50  ;;  %v1875_v53 = vadd.f32 %v4018_v6, %v1872_v33 }
 0x759   : > { %v1969_v39 = vpop.permute.xlu1 %1968  ;;  %v1999_v35 = vsel %vm676_vm3, %v1987_v48, 0.0  ;;  %v1878_v13 = vadd.f32 %v1872_v33, %v4045_v59  ;;  %v1877_v12 = vadd.f32 %v4028_v16, %v1872_v33  ;;  %v1880_v6 = vadd.f32 %v1872_v33, %v4061_v7 }
 0x75a   : > { %v1985_v3 = vrot.slane %v1969_v39, 1  ;;  %v1879_v46 = vadd.f32 %v4038_v63, %v1872_v33  ;;  %v1881_v7 = vadd.f32 %v4058_v47, %v1872_v33 }
 0x75b   : > { %2012 = vrot.lane.b32.xlu0 %v1995_v41, %s3177_s20  ;;  %v1917_v56 = vpop.permute.xlu0 %1916 }
 0x75c   : > { %v1986_v2 = vsel %vm685_vm1, %v1984_v42, %v1985_v3  ;;  %v1993_v55 = vsel %vm685_vm1, %v1985_v3, %v1978_v20  ;;  %v1939_v11 = vadd.f32 %v1917_v56, %v1875_v53 }
 0x75d   : > { %2022 = vrot.lane.b32.xlu1 %v1986_v2, %s3177_s20  ;;  %v2001_v14 = vsel %vm676_vm3, %v1993_v55, 0.0  ;;  %v1925_v26 = vpop.permute.xlu1 %1924 }
 0x75e   : > { %v1943_v31 = vadd.f32 %v1925_v26, %v1879_v46 }
 0x75f   : > { %2018 = vrot.lane.b32.xlu0 %v1988_v5, %s3177_s20 }
 0x761   : > { %v1919_v57 = vpop.permute.xlu1 %1918 }
 0x762   : > { %v1940_v8 = vadd.f32 %v1919_v57, %v1876_v52 }
 0x763   : > { %2016 = vrot.lane.b32.xlu0 %v1997_v28, %s3177_s20 }
 0x765   : > { %v1921_v58 = vpop.permute.xlu1 %1920 }
 0x766   : > { %v1941_v22 = vadd.f32 %v1921_v58, %v1877_v12 }
 0x767   : > { %2020 = vrot.lane.b32.xlu0 %v1999_v35, %s3177_s20 }
 0x769   : > { %v1923_v29 = vpop.permute.xlu1 %1922 }
 0x76a   : > { %v1942_v18 = vadd.f32 %v1923_v29, %v1878_v13 }
 0x76b   : > { %2024 = vrot.lane.b32.xlu0 %v2001_v14, %s3177_s20 }
 0x76d   : > { %v1915_v45 = vpop.permute.xlu1 %1914 }
 0x76e   : > { %v1938_v0 = vadd.f32 %v1915_v45, %v1874_v51 }
 0x771   : > { %v1929_v10 = vpop.permute.xlu1 %1928 }
 0x772   : > { %v1945_v38 = vadd.f32 %v1929_v10, %v1881_v7 }
 0x775   : > { %v1927_v17 = vpop.permute.xlu1 %1926 }
 0x776   : > { %v1944_v23 = vadd.f32 %v1927_v17, %v1880_v6 }
 0x7bd   : > { %v2011_v40 = vpop.permute.xlu0 %2010 }
 0x7be   : > { %v4139_v36 = vadd.f32 %v2011_v40, %v1938_v0  ;;  %v2603_v0 = vld [vmem:[%s4363_s29] ss:$0 sm:$0xff] }
 0x7c0   : > { %2054 = vrot.lane.b32.xlu1 %v4139_v36, %s3178_s3 }
 0x7c9   : > { %v2015_v9 = vpop.permute.xlu0 %2014 }
 0x7ca   : > { %v4145_v49 = vadd.f32 %v2015_v9, %v1940_v8 }
 0x7cc   : > { %2058 = vrot.lane.b32.xlu1 %v4145_v49, %s3178_s3 }
 0x7cd   : > { %v2013_v24 = vpop.permute.xlu0 %2012 }
 0x7ce   : > { %v4150_v15 = vadd.f32 %v2013_v24, %v1939_v11 }
 0x7cf   : > { %v2023_v21 = vpop.permute.xlu1 %2022 }
 0x7d0   : > { %2056 = vrot.lane.b32.xlu0 %v4150_v15, %s3178_s3  ;;  %v4161_v27 = vadd.f32 %v2023_v21, %v1944_v23 }
 0x7d1   : > { %v2019_v50 = vpop.permute.xlu0 %2018 }
 0x7d2   : > { %v4156_v20 = vadd.f32 %v2019_v50, %v1942_v18 }
 0x7d4   : > { %2062 = vrot.lane.b32.xlu1 %v4156_v20, %s3178_s3 }
 0x7d5   : > { %v2017_v59 = vpop.permute.xlu0 %2016 }
 0x7d6   : > { %v4163_v30 = vadd.f32 %v2017_v59, %v1941_v22 }
 0x7d8   : > { %2066 = vrot.lane.b32.xlu1 %v4161_v27, %s3178_s3  ;;  %2060 = vrot.lane.b32.xlu0 %v4163_v30, %s3178_s3 }
 0x7d9   : > { %v2021_v16 = vpop.permute.xlu0 %2020 }
 0x7da   : > { %v4170_v34 = vadd.f32 %v2021_v16, %v1943_v31 }
 0x7dc   : > { %2064 = vrot.lane.b32.xlu0 %v4170_v34, %s3178_s3 }
 0x7dd   : > { %v2025_v63 = vpop.permute.xlu0 %2024 }
 0x7de   : > { %v4174_v1 = vadd.f32 %v2025_v63, %v1945_v38 }
 0x7e0   : > { %2068 = vrot.lane.b32.xlu0 %v4174_v1, %s3178_s3 }
 0x832   : > { %v2055_v39 = vpop.permute.xlu1 %2054 }
 0x833   : > { %2740 = vmatprep.mubr.msk.f32.mxu0 %vm2070_vm5, %v2055_v39 }
 0x83e   : > { %v2059_v41 = vpop.permute.xlu1 %2058 }
 0x842   : > { %v2057_v37 = vpop.permute.xlu0 %2056 }
 0x843   : > { %2741 = vmatmul.mubr.msk.f32.vlgmr.msra.gmra.mrb[32].mxu0 %vm2070_vm5, %v2057_v37 }
 0x844   : > { %2743 = vmatprep.mubr.msk.f32.mxu0 %vm2070_vm5, %v2059_v41 }
 0x846   : > { %v2063_v47 = vpop.permute.xlu1 %2062 }
 0x847   : > { %2746 = vmatprep.mubr.msk.f32.mxu1 %vm2070_vm5, %v2063_v47 }
 0x84a   : > { %v2061_v43 = vpop.permute.xlu0 %2060  ;;  %v2067_v3 = vpop.permute.xlu1 %2066 }
 0x84b   : > { %2744 = vmatmul.mubr.msk.f32.gmra.mrb[34].mxu0 %vm2070_vm5, %v2061_v43 }
 0x84e   : > { %v2065_v42 = vpop.permute.xlu0 %2064 }
 0x84f   : > { %2747 = vmatmul.mubr.msk.f32.vlgmr.msra.gmra.mrb[32].mxu1 %vm2070_vm5, %v2065_v42 }
 0x850   : > { %2749 = vmatprep.mubr.msk.f32.mxu1 %vm2070_vm5, %v2067_v3 }
 0x852   : > { %v2069_v2 = vpop.permute.xlu0 %2068 }
 0x853   : > { %2750 = vmatmul.mubr.msk.f32.gmra.mrb[34].mxu1 %vm2070_vm5, %v2069_v2 }
 0x916   : > { %v4186_v5 = vpop.f32.mrb[32].mxu0 }
 0x917   : > { %v2210_v44 = vrot.slane %v4186_v5, 7  ;;  %2283 = vrot.lane.b32.xlu1 %v4186_v5, %s3176_s13  ;;  %v4191_v4 = vpop.f32.mrb[33].mxu0 }
 0x918   : > { %v2209_v54 = vrot.slane %v4191_v4, 7 }
 0x91a   : > { %v2223_v60 = vsel %vm646_vm0, %v2209_v54, %v2210_v44 }
 0x91b   : > { %2281 = vrot.lane.b32.xlu1 %v4191_v4, %s3176_s13 }
 0x91e   : > { %v4198_v28 = vpop.f32.mrb[34].mxu0 }
 0x91f   : > { %v2212_v48 = vrot.slane %v4198_v28, 7  ;;  %2287 = vrot.lane.b32.xlu0 %v4198_v28, %s3176_s13  ;;  %v4203_v35 = vpop.f32.mrb[35].mxu0 }
 0x920   : > { %v2211_v55 = vrot.slane %v4203_v35, 7 }
 0x922   : > { %v4206_v14 = vpop.f32.mrb[32].mxu1  ;;  %v2222_v26 = vsel %vm646_vm0, %v2210_v44, %v2211_v55  ;;  %v2221_v57 = vsel %vm646_vm0, %v2211_v55, %v2212_v48 }
 0x923   : > { %v2214_v58 = vrot.slane %v4206_v14, 7  ;;  %2285 = vrot.lane.b32.xlu0 %v4203_v35, %s3176_s13  ;;  %v4215_v33 = vpop.f32.mrb[33].mxu1  ;;  %v2227_v10 = vsel %vm636_vm2, %v2222_v26, 0.0 }
 0x924   : > { %v2213_v29 = vrot.slane %v4215_v33, 7  ;;  %2289 = vrot.lane.b32.xlu1 %v4215_v33, %s3176_s13 }
 0x926   : > { %v4220_v61 = vpop.f32.mrb[34].mxu1  ;;  %v2220_v62 = vsel %vm646_vm0, %v2212_v48, %v2213_v29  ;;  %v2219_v25 = vsel %vm646_vm0, %v2213_v29, %v2214_v58 }
 0x927   : > { %v2216_v56 = vrot.slane %v4220_v61, 7  ;;  %2291 = vrot.lane.b32.xlu0 %v4206_v14, %s3176_s13  ;;  %v4229_v45 = vpop.f32.mrb[35].mxu1  ;;  %v2229_v9 = vsel %vm636_vm2, %v2220_v62, 0.0 }
 0x928   : > { %v2215_v51 = vrot.slane %v4229_v45, 7  ;;  %2293 = vrot.lane.b32.xlu1 %v4229_v45, %s3176_s13 }
 0x929   : > { %v2224_v40 = vsel %vm646_vm0, %v2216_v56, %v2209_v54 }
 0x92a   : > { %v2218_v52 = vsel %vm646_vm0, %v2214_v58, %v2215_v51  ;;  %v2217_v8 = vsel %vm646_vm0, %v2215_v51, %v2216_v56  ;;  %v2225_v53 = vsel %vm636_vm2, %v2224_v40, 0.0 }
 0x92b   : > { %2295 = vrot.lane.b32.xlu0 %v4220_v61, %s3176_s13  ;;  %v2231_v11 = vsel %vm636_vm2, %v2218_v52, 0.0 }
 0x92c   : > { %2198 = vrot.lane.b32.xlu1 %v2603_v0, %s3177_s20 }
 0x92f   : > { %2245 = vrot.lane.b32.xlu0 %v2227_v10, %s3177_s20 }
 0x930   : > { %2243 = vrot.lane.b32.xlu1 %v2223_v60, %s3177_s20 }
 0x933   : > { %2249 = vrot.lane.b32.xlu0 %v2229_v9, %s3177_s20 }
 0x934   : > { %2247 = vrot.lane.b32.xlu1 %v2221_v57, %s3177_s20 }
 0x937   : > { %2241 = vrot.lane.b32.xlu0 %v2225_v53, %s3177_s20 }
 0x938   : > { %2251 = vrot.lane.b32.xlu1 %v2219_v25, %s3177_s20 }
 0x93b   : > { %2253 = vrot.lane.b32.xlu0 %v2231_v11, %s3177_s20 }
 0x93c   : > { %2255 = vrot.lane.b32.xlu1 %v2217_v8, %s3177_s20 }
 0x989   : > { %v2284_v24 = vpop.permute.xlu1 %2283 }
 0x98a   : > { %v2306_v17 = vrot.slane %v2284_v24, 1 }
 0x98d   : > { %v2282_v13 = vpop.permute.xlu1 %2281 }
 0x98e   : > { %v2305_v18 = vrot.slane %v2282_v13, 1 }
 0x990   : > { %v2319_v50 = vsel %vm685_vm1, %v2305_v18, %v2306_v17 }
 0x991   : > { %2337 = vrot.lane.b32.xlu0 %v2319_v50, %s3177_s20  ;;  %v2288_v12 = vpop.permute.xlu0 %2287 }
 0x992   : > { %v2308_v21 = vrot.slane %v2288_v12, 1 }
 0x995   : > { %v2286_v6 = vpop.permute.xlu0 %2285 }
 0x996   : > { %v2307_v22 = vrot.slane %v2286_v6, 1  ;;  %v2290_v23 = vpop.permute.xlu1 %2289 }
 0x997   : > { %v2309_v59 = vrot.slane %v2290_v23, 1 }
 0x998   : > { %v2317_v46 = vsel %vm685_vm1, %v2307_v22, %v2308_v21  ;;  %v2318_v31 = vsel %vm685_vm1, %v2306_v17, %v2307_v22 }
 0x999   : > { %2341 = vrot.lane.b32.xlu0 %v2317_v46, %s3177_s20  ;;  %v2292_v16 = vpop.permute.xlu0 %2291  ;;  %v2322_v7 = vsel %vm676_vm3, %v2318_v31, 0.0  ;;  %v2316_v39 = vsel %vm685_vm1, %v2308_v21, %v2309_v59 }
 0x99a   : > { %v2310_v38 = vrot.slane %v2292_v16, 1  ;;  %v2294_v63 = vpop.permute.xlu1 %2293  ;;  %2339 = vrot.lane.b32.xlu1 %v2322_v7, %s3177_s20  ;;  %v2324_v43 = vsel %vm676_vm3, %v2316_v39, 0.0 }
 0x99b   : > { %v2311_v41 = vrot.slane %v2294_v63, 1 }
 0x99c   : > { %v2315_v37 = vsel %vm685_vm1, %v2309_v59, %v2310_v38 }
 0x99d   : > { %2345 = vrot.lane.b32.xlu0 %v2315_v37, %s3177_s20  ;;  %v2296_v47 = vpop.permute.xlu0 %2295  ;;  %v2314_v3 = vsel %vm685_vm1, %v2310_v38, %v2311_v41 }
 0x99e   : > { %v2312_v42 = vrot.slane %v2296_v47, 1  ;;  %2343 = vrot.lane.b32.xlu1 %v2324_v43, %s3177_s20  ;;  %v2326_v44 = vsel %vm676_vm3, %v2314_v3, 0.0  ;;  %v2199_v55 = vpop.permute.xlu1 %2198 }
 0x99f   : > { %v2201_v25 = vadd.f32 %v2199_v55, %v4191_v4  ;;  %v2203_v19 = vadd.f32 %v2199_v55, %v4203_v35  ;;  %v2202_v10 = vadd.f32 %v4186_v5, %v2199_v55  ;;  %v2205_v13 = vadd.f32 %v2199_v55, %v4215_v33 }
 0x9a0   : > { %v2313_v2 = vsel %vm685_vm1, %v2311_v41, %v2312_v42  ;;  %v2320_v54 = vsel %vm685_vm1, %v2312_v42, %v2305_v18  ;;  %v2204_v18 = vadd.f32 %v4198_v28, %v2199_v55  ;;  %v2207_v5 = vadd.f32 %v2199_v55, %v4229_v45 }
 0x9a1   : > { %2349 = vrot.lane.b32.xlu0 %v2313_v2, %s3177_s20  ;;  %v2328_v60 = vsel %vm676_vm3, %v2320_v54, 0.0  ;;  %v2246_v48 = vpop.permute.xlu0 %2245  ;;  %v2206_v33 = vadd.f32 %v4206_v14, %v2199_v55 }
 0x9a2   : > { %2347 = vrot.lane.b32.xlu1 %v2326_v44, %s3177_s20  ;;  %v2244_v57 = vpop.permute.xlu1 %2243  ;;  %v2267_v9 = vadd.f32 %v2246_v48, %v2203_v19 }
 0x9a3   : > { %v2266_v11 = vadd.f32 %v2244_v57, %v2202_v10 }
 0x9a5   : > { %v2250_v26 = vpop.permute.xlu0 %2249 }
 0x9a6   : > { %2351 = vrot.lane.b32.xlu1 %v2328_v60, %s3177_s20  ;;  %v2248_v29 = vpop.permute.xlu1 %2247  ;;  %v2269_v35 = vadd.f32 %v2250_v26, %v2205_v13 }
 0x9a7   : > { %v2268_v6 = vadd.f32 %v2248_v29, %v2204_v18 }
 0x9a9   : > { %v2242_v58 = vpop.permute.xlu0 %2241 }
 0x9aa   : > { %v2265_v56 = vadd.f32 %v2242_v58, %v2201_v25  ;;  %v2252_v51 = vpop.permute.xlu1 %2251 }
 0x9ab   : > { %v2270_v38 = vadd.f32 %v2252_v51, %v2206_v33 }
 0x9ad   : > { %v2254_v62 = vpop.permute.xlu0 %2253 }
 0x9ae   : > { %v2256_v32 = vpop.permute.xlu1 %2255  ;;  %v2271_v16 = vadd.f32 %v2254_v62, %v2207_v5 }
 0xa03   : > { %v2338_v0 = vpop.permute.xlu0 %2337 }
 0xa04   : > { %v2361_v40 = vadd.f32 %v2338_v0, %v2265_v56 }
 0xa06   : > { %v2369_v52 = vmax.f32 %v2361_v40, 0.0 }
 0xa08   : > { %v2377_v8 = vadd.f32 %v2369_v52, %v4139_v36 }
 0xa0a   : > { %v2385_v53 = vmax.f32 %v2377_v8, 0.0 }
 0xa0b   : > { %v2342_v24 = vpop.permute.xlu0 %2341 }
 0xa0c   : > { %v2363_v17 = vadd.f32 %v2342_v24, %v2267_v9  ;;  %v2340_v4 = vpop.permute.xlu1 %2339  ;;  %2401 = vrot.lane.b32.xlu0 %v2385_v53, %s3178_s3 }
 0xa0d   : > { %v2362_v50 = vadd.f32 %v2340_v4, %v2266_v11 }
 0xa0e   : > { %v2371_v12 = vmax.f32 %v2363_v17, 0.0 }
 0xa0f   : > { %v2370_v21 = vmax.f32 %v2362_v50, 0.0  ;;  %v2346_v36 = vpop.permute.xlu0 %2345 }
 0xa10   : > { %v2379_v22 = vadd.f32 %v2371_v12, %v4145_v49  ;;  %v2365_v23 = vadd.f32 %v2346_v36, %v2269_v35  ;;  %v2344_v59 = vpop.permute.xlu1 %2343  ;;  %v2208_v49 = vadd.f32 %v4220_v61, %v2199_v55 }
 0xa11   : > { %v2378_v46 = vadd.f32 %v2370_v21, %v4150_v15  ;;  %v2364_v31 = vadd.f32 %v2344_v59, %v2268_v6 }
 0xa12   : > { %v2387_v7 = vmax.f32 %v2379_v22, 0.0  ;;  %v2373_v28 = vmax.f32 %v2365_v23, 0.0  ;;  %v2272_v3 = vadd.f32 %v2256_v32, %v2208_v49 }
 0xa13   : > { %v2386_v63 = vmax.f32 %v2378_v46, 0.0  ;;  %v2372_v39 = vmax.f32 %v2364_v31, 0.0  ;;  %v2350_v41 = vpop.permute.xlu0 %2349 }
 0xa14   : > { %v2381_v37 = vadd.f32 %v2373_v28, %v4156_v20  ;;  %v2367_v47 = vadd.f32 %v2350_v41, %v2271_v16  ;;  %v2348_v45 = vpop.permute.xlu1 %2347  ;;  %2405 = vrot.lane.b32.xlu0 %v2387_v7, %s3178_s3 }
 0xa15   : > { %v2380_v14 = vadd.f32 %v2372_v39, %v4163_v30  ;;  %v2366_v43 = vadd.f32 %v2348_v45, %v2270_v38  ;;  %2403 = vrot.lane.b32.xlu1 %v2386_v63, %s3178_s3 }
 0xa16   : > { %v2389_v15 = vmax.f32 %v2381_v37, 0.0  ;;  %v2375_v42 = vmax.f32 %v2367_v47, 0.0 }
 0xa17   : > { %v2388_v2 = vmax.f32 %v2380_v14, 0.0  ;;  %v2374_v44 = vmax.f32 %v2366_v43, 0.0 }
 0xa18   : > { %v2383_v54 = vadd.f32 %v2375_v42, %v4161_v27  ;;  %v2352_v20 = vpop.permute.xlu1 %2351  ;;  %2409 = vrot.lane.b32.xlu0 %v2389_v15, %s3178_s3 }
 0xa19   : > { %v2382_v60 = vadd.f32 %v2374_v44, %v4170_v34  ;;  %v2368_v48 = vadd.f32 %v2352_v20, %v2272_v3  ;;  %2407 = vrot.lane.b32.xlu1 %v2388_v2, %s3178_s3 }
 0xa1a   : > { %v2391_v30 = vmax.f32 %v2383_v54, 0.0 }
 0xa1b   : > { %v2390_v61 = vmax.f32 %v2382_v60, 0.0  ;;  %v2376_v55 = vmax.f32 %v2368_v48, 0.0 }
 0xa1c   : > { %2413 = vrot.lane.b32.xlu0 %v2391_v30, %s3178_s3 }
 0xa1d   : > { %v2384_v26 = vadd.f32 %v2376_v55, %v4174_v1  ;;  %2411 = vrot.lane.b32.xlu1 %v2390_v61, %s3178_s3 }
 0xa1f   : > { %v2392_v57 = vmax.f32 %v2384_v26, 0.0 }
 0xa21   : > { %2415 = vrot.lane.b32.xlu1 %v2392_v57, %s3178_s3 }
 0xa7e   : > { %v2402_v27 = vpop.permute.xlu0 %2401 }
 0xa7f   : > { %2425 = vst.msk [vmem:[%s527_s19] sm:$0xff] %vm2070_vm5, %v2402_v27 }
 0xa86   : > { %v2406_v34 = vpop.permute.xlu0 %2405 }
 0xa87   : > { %2427 = vst.msk [vmem:[%s527_s19 + $0x10] sm:$0xff] %vm2070_vm5, %v2406_v34  ;;  %v2404_v58 = vpop.permute.xlu1 %2403 }
 0xa88   : > { %2426 = vst.msk [vmem:[%s527_s19 + $0x8] sm:$0xff] %vm2070_vm5, %v2404_v58 }
 0xa8a   : > { %v2410_v1 = vpop.permute.xlu0 %2409 }
 0xa8b   : > { %2429 = vst.msk [vmem:[%s527_s19 + $0x20] sm:$0xff] %vm2070_vm5, %v2410_v1  ;;  %v2408_v29 = vpop.permute.xlu1 %2407 }
 0xa8c   : > { %2428 = vst.msk [vmem:[%s527_s19 + $0x18] sm:$0xff] %vm2070_vm5, %v2408_v29 }
 0xa8e   : > { %v2414_v62 = vpop.permute.xlu0 %2413 }
 0xa8f   : > { %2431 = vst.msk [vmem:[%s527_s19 + $0x30] sm:$0xff] %vm2070_vm5, %v2414_v62  ;;  %v2412_v25 = vpop.permute.xlu1 %2411 }
 0xa90   : > { %2430 = vst.msk [vmem:[%s527_s19 + $0x28] sm:$0xff] %vm2070_vm5, %v2412_v25 }
 0xa93   : > { %v2416_v56 = vpop.permute.xlu1 %2415 }
 0xa94   : > { %2432 = vst.msk [vmem:[%s527_s19 + $0x38] sm:$0xff] %vm2070_vm5, %v2416_v56 }
 0xa95 PF: > { %s27_s25 = sadd.s32 1, %s3162_s25  }
 0xa96   : > { %p24_p7 = scmp.ge.s32.totalorder %s27_s25, 4  }
 0xa98   :  { %26 = sbr.rel (!%p24_p7) target bundleno = 8 (0x8), region = 127 }
 0xa9f   :  { %2457 = vsyncpa [#allocation3], 1 }
 0xaa0   :  { %2459 = vsyncpa [#allocation3 + $0x1], 1 }
 0xaa1   :  { %2460 = vsyncpa [#allocation5], 1 }
 0xaa2   :  { %2461 = vsyncpa [#allocation8], 1 }
 0xaa3   :  { %2462 = vsyncpa [#allocation11], 1 }

// kernel: _lambda_.5
= control target key start
LH: loop header
LB: loop body
LE: loop exit
PB: predicated region body
PF: predicated region fallthrough
CT: control target
= control target key end

     0   :  { %s2656_s19 = smov 0   ;;  %s3664_s0 = inlined_call_operand.vmem [shape: f32[8,16,32], index: 0, kind: input, shape index: {}]   ;;  %s3665_s1 = inlined_call_operand.vmem [shape: f32[32,192], index: 1, kind: input, shape index: {}]   ;;  %s3666_s2 = inlined_call_operand.vmem [shape: f32[1,64], index: 2, kind: input, shape index: {}]   ;;  %s3667_s3 = inlined_call_operand.vmem [shape: f32[64,192], index: 3, kind: input, shape index: {}]   ;;  %s3668_s4 = inlined_call_operand.vmem [shape: f32[1,64], index: 4, kind: input, shape index: {}]   ;;  %s3669_s5 = inlined_call_operand.vmem [shape: f32[64,384], index: 5, kind: input, shape index: {}]   ;;  %s3670_s6 = inlined_call_operand.vmem [shape: f32[1,128], index: 6, kind: input, shape index: {}]   ;;  %s3671_s7 = inlined_call_operand.vmem [shape: f32[128,384], index: 7, kind: input, shape index: {}]   ;;  %s3672_s8 = inlined_call_operand.vmem [shape: f32[1,128], index: 8, kind: input, shape index: {}]   ;;  %s3673_s9 = inlined_call_operand.vmem [shape: f32[128,3], index: 9, kind: input, shape index: {}]   ;;  %s3674_s10 = inlined_call_operand.<no memory space> [shape: f32[1,1], index: 10, kind: input, shape index: {}]   ;;  %s3675_s11 = inlined_call_operand.vmem [shape: f32[8,16,1], index: 11, kind: output, shape index: {}]  }
   0x1   :  { %v16_v0 = vstv %s3674_s10 }
   0x2   :  { %17 = vst [vmem:[#allocation2] sm:$0x1] %v16_v0 }
   0x3 LB: > { %s2179_s20 = sadd.s32 4294967295, %s2586_s19   ;;  %p2183_p0 = scmp.ge.s32.totalorder %s2586_s19, 1  ;;  %s2586_s19 = sphi %s2656_s19, %s23_s19  }
   0x4   : > { %p341_p1 = scmp.lt.s32.totalorder %s2586_s19, 3 }
   0x6   : > { %p342_p2 = pnand %p2183_p0, %p341_p1 }
   0x7   : > { %v409_v1 = vld [vmem:[%s3665_s1 + $0x8] sm:$0xff] (!%p342_p2)  ;;  %v411_v2 = vld [vmem:[%s3665_s1 + $0x18] sm:$0xff] (!%p342_p2)  ;;  %v408_v3 = vld [vmem:[%s3665_s1] sm:$0xff] (!%p342_p2)  ;;  %s2184_s26 = sshll.u32 (!%p342_p2), %s2179_s20, 2  ;;  %v2588_v8 = vmov (!%p342_p2), 0.0   ;;  %s2589_s24 = smov (!%p342_p2), 64   ;;  %v397_v23 = vlaneseq (!%p342_p2) }
   0x8   : > { %345 = sbr.rel (%p342_p2) target bundleno = 2053 (0x805), region = 64  ;;  %v2411_v4 = vpack.c.bf16 (!%p342_p2), %v411_v2, %v409_v1  ;;  %v410_v5 = vld [vmem:[%s3665_s1 + $0x10] sm:$0xff] (!%p342_p2)  ;;  %v413_v6 = vld [vmem:[%s3665_s1 + $0x28] sm:$0xff] (!%p342_p2)  ;;  %v415_v7 = vld [vmem:[%s3665_s1 + $0x38] sm:$0xff] (!%p342_p2)  ;;  %505 = vmatprep.mubr.f32.mxu0 (!%p342_p2), %v2588_v8  ;;  %529 = vmatprep.mubr.f32.mxu1 (!%p342_p2), %v2588_v8  ;;  %p384_p3 = scmp.lt.s32.totalorder (!%p342_p2), %s2184_s26, 7  ;;  %vm416_vm0 = vcmask (!%p342_p2), 261120  }
   0x9   : > { %v2413_v9 = vpack.c.bf16 (!%p342_p2), %v410_v5, %v408_v3  ;;  %v2415_v10 = vpack.c.bf16 (!%p342_p2), %v415_v7, %v413_v6  ;;  %v412_v11 = vld [vmem:[%s3665_s1 + $0x20] sm:$0xff] (!%p342_p2)  ;;  %v414_v12 = vld [vmem:[%s3665_s1 + $0x30] sm:$0xff] (!%p342_p2)  ;;  %v2722_v26 = vshrl.u32 (!%p342_p2), %v397_v23, 7  ;;  %v720_v23 = vld [vmem:[%s3667_s3 + $0x38] sm:$0xff] (!%p342_p2)  ;;  %vm753_vm5 = vcmask (!%p342_p2), 523264   ;;  %s2590_s10 = smov (!%p342_p2), 126  }
   0xa   : > { %2412 = vmatprep.subr.bf16.mxu0 (!%p342_p2), %v2411_v4  ;;  %2563 = vmatprep.subr.bf16.mxu1 (!%p342_p2), %v2411_v4  ;;  %v2198_v13 = vld [vmem:[%s3666_s2] ss:$0 sm:$0xff] (!%p342_p2)  ;;  %v2417_v14 = vpack.c.bf16 (!%p342_p2), %v414_v12, %v412_v11  ;;  %s2592_s25 = smov (!%p342_p2), 127   ;;  %vm2112_vm6 = vcmask (!%p342_p2), 7168  }
   0xb   : > { %2414 = vmatpush1.bf16.msra.mxu0 (!%p342_p2), %v2413_v9  ;;  %2565 = vmatpush1.bf16.msra.mxu1 (!%p342_p2), %v2413_v9  ;;  %vm581_vm1 = vcmp.lt.s32.totalorder (!%p342_p2), %v2722_v26, 1  ;;  %vm652_vm2 = vcmp.lt.s32.totalorder (!%p342_p2), %v2722_v26, 7  ;;  %vm571_vm3 = vcmp.gt.s32.totalorder (!%p342_p2), %v2722_v26, 0  ;;  %v2768_v2 = vadd.s32 (!%p342_p2), 8, %v2722_v26 }
   0xc   : > { %2416 = vmatprep.subr.bf16.mxu0 (!%p342_p2), %v2415_v10  ;;  %2564 = vmatprep.subr.bf16.mxu1 (!%p342_p2), %v2415_v10 }
   0xd   : > { %560 = vrot.lane.b32.xlu0 (!%p342_p2), %v2198_v13, %s2589_s24  ;;  %vm643_vm4 = vcmp.lt.s32.totalorder (!%p342_p2), %v2768_v2, 15 }
   0xf   : > { %s3677_s26 = smov (!%p384_p3, %s2184_s26), 7  ;;  %2418 = vmatpush1.bf16.msra.mxu0 %v2417_v14  ;;  %2566 = vmatpush1.bf16.msra.mxu1 %v2417_v14 }
  0x10   : > { %s2229_s21 = sshll.u32 %s3677_s26, 4 }
  0x11   : > { %s388_s23 = scalar_lea.vmem %s3664_s0, %s2229_s21  ;;  %s395_s28 = scalar_lea.vmem %s3675_s11, %s2229_s21 }
  0x12   : > { %v400_v15 = vld [vmem:[%s388_s23] sm:$0xff]  ;;  %v401_v17 = vld [vmem:[%s388_s23 + $0x8] sm:$0xff]  ;;  %v402_v19 = vld [vmem:[%s388_s23 + $0x10] sm:$0xff] }
  0x13   : > { %v404_v16 = vld [vmem:[%s388_s23 + $0x20] sm:$0xff]  ;;  %2190 = vmatmul.mubr.msk.f32.vlgmr.msra.gmra.mrb[0].mxu0 %vm416_vm0, %v400_v15  ;;  %v405_v18 = vld [vmem:[%s388_s23 + $0x28] sm:$0xff]  ;;  %v406_v20 = vld [vmem:[%s388_s23 + $0x30] sm:$0xff] }
  0x14   : > { %2194 = vmatmul.mubr.msk.f32.vlgmr.msra.gmra.mrb[0].mxu1 %vm416_vm0, %v404_v16  ;;  %511 = vmatprep.mubr.f32.mxu0 %v2588_v8  ;;  %v403_v21 = vld [vmem:[%s388_s23 + $0x18] sm:$0xff] }
  0x15   : > { %535 = vmatprep.mubr.f32.mxu1 %v2588_v8  ;;  %v407_v22 = vld [vmem:[%s388_s23 + $0x38] sm:$0xff]  ;;  %s2591_s23 = smov 1  }
  0x17   : > { %2191 = vmatmul.mubr.msk.f32.gmra.mrb[2].mxu0 %vm416_vm0, %v401_v17  ;;  %v714_v17 = vld [vmem:[%s3667_s3 + $0x8] sm:$0xff] }
  0x18   : > { %2195 = vmatmul.mubr.msk.f32.gmra.mrb[2].mxu1 %vm416_vm0, %v405_v18  ;;  %517 = vmatprep.mubr.f32.mxu0 %v2588_v8  ;;  %v716_v18 = vld [vmem:[%s3667_s3 + $0x18] sm:$0xff] }
  0x19   : > { %541 = vmatprep.mubr.f32.mxu1 %v2588_v8 }
  0x1b   : > { %2192 = vmatmul.mubr.msk.f32.gmra.mrb[4].mxu0 %vm416_vm0, %v402_v19  ;;  %v713_v19 = vld [vmem:[%s3667_s3] sm:$0xff] }
  0x1c   : > { %2196 = vmatmul.mubr.msk.f32.gmra.mrb[4].mxu1 %vm416_vm0, %v406_v20  ;;  %523 = vmatprep.mubr.f32.mxu0 %v2588_v8  ;;  %v2419_v20 = vpack.c.bf16 %v716_v18, %v714_v17 }
  0x1d   : > { %547 = vmatprep.mubr.f32.mxu1 %v2588_v8 }
  0x1e   : > { %2420 = vmatprep.subr.bf16.mxu1 %v2419_v20 }
  0x1f   : > { %2193 = vmatmul.mubr.msk.f32.gmra.mrb[6].mxu0 %vm416_vm0, %v403_v21  ;;  %v715_v21 = vld [vmem:[%s3667_s3 + $0x10] sm:$0xff] }
  0x20   : > { %2197 = vmatmul.mubr.msk.f32.gmra.mrb[6].mxu1 %vm416_vm0, %v407_v22  ;;  %1180 = vmatprep.mubr.f32.mxu0 %v2588_v8  ;;  %v718_v22 = vld [vmem:[%s3667_s3 + $0x28] sm:$0xff] }
  0x21   : > { %834 = vmatprep.mubr.f32.mxu1 %v2588_v8 }
  0xe6   : > { %v2720_v25 = vpop.f32.mrb[0].mxu0 }
  0xe7   : > { %v2718_v24 = vpop.f32.mrb[0].mxu1  ;;  %v509_v28 = vpop.f32.mrb[1].mxu0  ;;  %v573_v29 = vrot.slane %v2720_v25, 7 }
  0xe8   : > { %v533_v27 = vpop.f32.mrb[1].mxu1  ;;  %v644_v30 = vrot.slane %v509_v28, 1  ;;  %v577_v33 = vrot.slane %v2718_v24, 7  ;;  %v2421_v28 = vpack.c.bf16 %v715_v21, %v713_v19 }
  0xe9   : > { %v648_v38 = vrot.slane %v533_v27, 1 }
  0xea   : > { %v2725_v31 = vpop.f32.mrb[2].mxu0  ;;  %2422 = vmatpush1.bf16.msra.mxu1 %v2421_v28 }
  0xeb   : > { %v2727_v32 = vpop.f32.mrb[2].mxu1  ;;  %v574_v34 = vrot.slane %v2725_v31, 7  ;;  %v515_v36 = vpop.f32.mrb[3].mxu0 }
  0xec   : > { %v578_v35 = vrot.slane %v2727_v32, 7  ;;  %v539_v37 = vpop.f32.mrb[3].mxu1  ;;  %v645_v39 = vrot.slane %v515_v36, 1 }
  0xed   : > { %v649_v40 = vrot.slane %v539_v37, 1  ;;  %v588_v41 = vsel %vm581_vm1, %v573_v29, %v574_v34 }
  0xee   : > { %v584_v42 = vsel %vm581_vm1, %v577_v33, %v578_v35  ;;  %v659_v44 = vsel %vm652_vm2, %v644_v30, %v645_v39  ;;  %v2742_v45 = vpop.f32.mrb[4].mxu0 }
  0xef   : > { %v2738_v43 = vpop.f32.mrb[4].mxu1  ;;  %v655_v46 = vsel %vm652_vm2, %v648_v38, %v649_v40  ;;  %681 = vrot.lane.b32.xlu1 %v659_v44, %s2589_s24  ;;  %v575_v49 = vrot.slane %v2742_v45, 7  ;;  %v521_v50 = vpop.f32.mrb[5].mxu0 }
  0xf0   : > { %v579_v47 = vrot.slane %v2738_v43, 7  ;;  %v545_v48 = vpop.f32.mrb[5].mxu1  ;;  %v646_v52 = vrot.slane %v521_v50, 1 }
  0xf1   : > { %v650_v51 = vrot.slane %v545_v48, 1  ;;  %v587_v53 = vsel %vm581_vm1, %v574_v34, %v575_v49  ;;  %v722_v34 = vld [vmem:[%s3667_s3 + $0x48] sm:$0xff]  ;;  %v727_v48 = vld [vmem:[%s3667_s3 + $0x70] sm:$0xff] }
  0xf2   : > { %v583_v54 = vsel %vm581_vm1, %v578_v35, %v579_v47  ;;  %v2753_v55 = vpop.f32.mrb[6].mxu0  ;;  %v658_v57 = vsel %vm652_vm2, %v645_v39, %v646_v52  ;;  %v596_v1 = vsel %vm571_vm3, %v587_v53, 0.0  ;;  %v724_v35 = vld [vmem:[%s3667_s3 + $0x58] sm:$0xff]  ;;  %v723_v39 = vld [vmem:[%s3667_s3 + $0x50] sm:$0xff] }
  0xf3   : > { %v2755_v56 = vpop.f32.mrb[6].mxu1  ;;  %v654_v58 = vsel %vm652_vm2, %v649_v40, %v650_v51  ;;  %v576_v59 = vrot.slane %v2753_v55, 7  ;;  %612 = vrot.lane.b32.xlu1 %v588_v41, %s2589_s24  ;;  %v527_v62 = vpop.f32.mrb[7].mxu0  ;;  %v666_v13 = vsel %vm643_vm4, %v658_v57, 0.0  ;;  %v600_v16 = vsel %vm571_vm3, %v583_v54, 0.0  ;;  %v726_v40 = vld [vmem:[%s3667_s3 + $0x68] sm:$0xff] }
  0xf4   : > { %v580_v60 = vrot.slane %v2755_v56, 7  ;;  %v551_v61 = vpop.f32.mrb[7].mxu1  ;;  %v647_v0 = vrot.slane %v527_v62, 1  ;;  %v670_v27 = vsel %vm643_vm4, %v654_v58, 0.0  ;;  %v2427_v37 = vpack.c.bf16 %v724_v35, %v722_v34  ;;  %v728_v41 = vld [vmem:[%s3667_s3 + $0x78] sm:$0xff] }
  0xf5   : > { %v651_v63 = vrot.slane %v551_v61, 1  ;;  %v586_v4 = vsel %vm581_vm1, %v575_v49, %v576_v59  ;;  %v585_v5 = vsel %vm581_vm1, %v576_v59, %v577_v33  ;;  %v719_v33 = vld [vmem:[%s3667_s3 + $0x30] sm:$0xff] }
  0xf6   : > { %v589_v3 = vsel %vm581_vm1, %v580_v60, %v573_v29  ;;  %v582_v6 = vsel %vm581_vm1, %v579_v47, %v580_v60  ;;  %v657_v9 = vsel %vm652_vm2, %v646_v52, %v647_v0  ;;  %v656_v10 = vsel %vm652_vm2, %v647_v0, %v648_v38  ;;  %v721_v38 = vld [vmem:[%s3667_s3 + $0x40] sm:$0xff] }
  0xf7   : > { %v594_v7 = vsel %vm571_vm3, %v589_v3, 0.0  ;;  %614 = vrot.lane.b32.xlu1 %v596_v1, %s2589_s24  ;;  %v653_v11 = vsel %vm652_vm2, %v650_v51, %v651_v63  ;;  %v660_v12 = vsel %vm652_vm2, %v651_v63, %v644_v30  ;;  %v598_v14 = vsel %vm571_vm3, %v585_v5, 0.0  ;;  %v717_v30 = vld [vmem:[%s3667_s3 + $0x20] sm:$0xff]  ;;  %v561_v51 = vpop.permute.xlu0 %560 }
  0xf8   : > { %610 = vrot.lane.b32.xlu0 %v594_v7, %s2589_s24  ;;  %v668_v15 = vsel %vm643_vm4, %v656_v10, 0.0  ;;  %v2423_v29 = vpack.c.bf16 %v720_v23, %v718_v22  ;;  %v2425_v36 = vpack.c.bf16 %v719_v33, %v717_v30  ;;  %v672_v44 = vsel %vm643_vm4, %v660_v12, 0.0  ;;  %v725_v47 = vld [vmem:[%s3667_s3 + $0x60] sm:$0xff] }
  0xf9   : > { %v2433_v49 = vpack.c.bf16 %v727_v48, %v725_v47  ;;  %v563_v53 = vadd.f32 %v561_v51, %v2720_v25  ;;  %v564_v58 = vadd.f32 %v561_v51, %v2725_v31  ;;  %v565_v0 = vadd.f32 %v561_v51, %v2742_v45 }
  0xfa   : > { %2424 = vmatprep.subr.bf16.mxu1 %v2423_v29  ;;  %v566_v31 = vadd.f32 %v561_v51, %v2753_v55  ;;  %v569_v17 = vadd.f32 %v561_v51, %v2738_v43  ;;  %v2207_v43 = vld [vmem:[%s3668_s4] ss:$0 sm:$0xff] }
  0xfb   : > { %616 = vrot.lane.b32.xlu1 %v586_v4, %s2589_s24  ;;  %2426 = vmatpush1.bf16.msra.mxu1 %v2425_v36 }
  0xfc   : > { %683 = vrot.lane.b32.xlu0 %v666_v13, %s2589_s24  ;;  %2428 = vmatprep.subr.bf16.mxu1 %v2427_v37  ;;  %v568_v13 = vadd.f32 %v561_v51, %v2727_v32  ;;  %v570_v32 = vadd.f32 %v561_v51, %v2755_v56 }
  0xff   : > { %618 = vrot.lane.b32.xlu1 %v598_v14, %s2589_s24 }
 0x100   : > { %685 = vrot.lane.b32.xlu0 %v657_v9, %s2589_s24  ;;  %v567_v9 = vadd.f32 %v561_v51, %v2718_v24 }
 0x103   : > { %620 = vrot.lane.b32.xlu1 %v584_v42, %s2589_s24  ;;  %v2429_v42 = vpack.c.bf16 %v723_v39, %v721_v38 }
 0x104   : > { %687 = vrot.lane.b32.xlu0 %v668_v15, %s2589_s24 }
 0x105   : > { %2430 = vmatpush1.bf16.msra.mxu1 %v2429_v42 }
 0x107   : > { %622 = vrot.lane.b32.xlu1 %v600_v16, %s2589_s24 }
 0x108   : > { %689 = vrot.lane.b32.xlu0 %v655_v46, %s2589_s24  ;;  %v2431_v46 = vpack.c.bf16 %v728_v41, %v726_v40 }
 0x10a   : > { %2432 = vmatprep.subr.bf16.mxu1 %v2431_v46 }
 0x10b   : > { %624 = vrot.lane.b32.xlu1 %v582_v6, %s2589_s24  ;;  %2434 = vmatpush1.bf16.msra.mxu1 %v2433_v49 }
 0x10c   : > { %691 = vrot.lane.b32.xlu0 %v670_v27, %s2589_s24 }
 0x110   : > { %693 = vrot.lane.b32.xlu0 %v653_v11, %s2589_s24 }
 0x114   : > { %695 = vrot.lane.b32.xlu0 %v672_v44, %s2589_s24 }
 0x161   : > { %v682_v50 = vpop.permute.xlu1 %681 }
 0x165   : > { %v613_v52 = vpop.permute.xlu1 %612 }
 0x166   : > { %v635_v60 = vadd.f32 %v613_v52, %v564_v58 }
 0x169   : > { %v615_v57 = vpop.permute.xlu1 %614 }
 0x16a   : > { %v611_v54 = vpop.permute.xlu0 %610  ;;  %v636_v3 = vadd.f32 %v615_v57, %v565_v0 }
 0x16b   : > { %v634_v59 = vadd.f32 %v611_v54, %v563_v53 }
 0x16d   : > { %v2865_v61 = vadd.f32 %v682_v50, %v634_v59  ;;  %v617_v63 = vpop.permute.xlu1 %616 }
 0x16e   : > { %v684_v62 = vpop.permute.xlu0 %683  ;;  %v637_v6 = vadd.f32 %v617_v63, %v566_v31 }
 0x16f   : > { %v2868_v1 = vadd.f32 %v684_v62, %v635_v60  ;;  %737 = vrot.lane.b32.xlu1 %v2865_v61, %s2589_s24 }
 0x171   : > { %739 = vrot.lane.b32.xlu0 %v2868_v1, %s2589_s24  ;;  %v619_v25 = vpop.permute.xlu1 %618 }
 0x172   : > { %v686_v4 = vpop.permute.xlu0 %685  ;;  %v638_v11 = vadd.f32 %v619_v25, %v567_v9 }
 0x173   : > { %v2875_v5 = vadd.f32 %v686_v4, %v636_v3 }
 0x175   : > { %741 = vrot.lane.b32.xlu1 %v2875_v5, %s2589_s24  ;;  %v621_v45 = vpop.permute.xlu1 %620 }
 0x176   : > { %v688_v7 = vpop.permute.xlu0 %687  ;;  %v639_v15 = vadd.f32 %v621_v45, %v568_v13 }
 0x177   : > { %v2880_v10 = vadd.f32 %v688_v7, %v637_v6 }
 0x179   : > { %743 = vrot.lane.b32.xlu0 %v2880_v10, %s2589_s24  ;;  %v623_v14 = vpop.permute.xlu1 %622 }
 0x17a   : > { %v690_v12 = vpop.permute.xlu0 %689  ;;  %v640_v18 = vadd.f32 %v623_v14, %v569_v17 }
 0x17b   : > { %v2885_v55 = vadd.f32 %v690_v12, %v638_v11 }
 0x17d   : > { %745 = vrot.lane.b32.xlu1 %v2885_v55, %s2589_s24  ;;  %v625_v19 = vpop.permute.xlu1 %624 }
 0x17e   : > { %v692_v16 = vpop.permute.xlu0 %691  ;;  %v641_v22 = vadd.f32 %v625_v19, %v570_v32 }
 0x17f   : > { %v2890_v24 = vadd.f32 %v692_v16, %v639_v15 }
 0x181   : > { %747 = vrot.lane.b32.xlu0 %v2890_v24, %s2589_s24 }
 0x182   : > { %v694_v20 = vpop.permute.xlu0 %693 }
 0x183   : > { %v2895_v21 = vadd.f32 %v694_v20, %v640_v18 }
 0x185   : > { %749 = vrot.lane.b32.xlu1 %v2895_v21, %s2589_s24 }
 0x186   : > { %v696_v23 = vpop.permute.xlu0 %695 }
 0x187   : > { %v2902_v27 = vadd.f32 %v696_v23, %v641_v22 }
 0x189   : > { %751 = vrot.lane.b32.xlu0 %v2902_v27, %s2589_s24  ;;  %889 = vrot.lane.b32.xlu1 %v2207_v43, %s2589_s24 }
 0x1e1   : > { %v738_v56 = vpop.permute.xlu1 %737 }
 0x1e2   : > { %2199 = vmatmul.mubr.msk.f32.vlgmr.msra.gmra.mrb[8].mxu1 %vm753_vm5, %v738_v56 }
 0x1e3   : > { %840 = vmatprep.mubr.f32.mxu1 %v2588_v8  ;;  %v740_v28 = vpop.permute.xlu0 %739 }
 0x1e6   : > { %2200 = vmatmul.mubr.msk.f32.gmra.mrb[10].mxu1 %vm753_vm5, %v740_v28 }
 0x1e7   : > { %846 = vmatprep.mubr.f32.mxu1 %v2588_v8  ;;  %v742_v29 = vpop.permute.xlu1 %741 }
 0x1ea   : > { %2201 = vmatmul.mubr.msk.f32.gmra.mrb[12].mxu1 %vm753_vm5, %v742_v29 }
 0x1eb   : > { %852 = vmatprep.mubr.f32.mxu1 %v2588_v8  ;;  %v744_v30 = vpop.permute.xlu0 %743 }
 0x1ee   : > { %2202 = vmatmul.mubr.msk.f32.gmra.mrb[14].mxu1 %vm753_vm5, %v744_v30 }
 0x1ef   : > { %858 = vmatprep.mubr.f32.mxu1 %v2588_v8  ;;  %v746_v33 = vpop.permute.xlu1 %745 }
 0x1f2   : > { %2203 = vmatmul.mubr.msk.f32.gmra.mrb[16].mxu1 %vm753_vm5, %v746_v33 }
 0x1f3   : > { %864 = vmatprep.mubr.f32.mxu1 %v2588_v8  ;;  %v748_v34 = vpop.permute.xlu0 %747 }
 0x1f6   : > { %2204 = vmatmul.mubr.msk.f32.gmra.mrb[18].mxu1 %vm753_vm5, %v748_v34 }
 0x1f7   : > { %870 = vmatprep.mubr.f32.mxu1 %v2588_v8  ;;  %v750_v35 = vpop.permute.xlu1 %749 }
 0x1fa   : > { %2205 = vmatmul.mubr.msk.f32.gmra.mrb[20].mxu1 %vm753_vm5, %v750_v35 }
 0x1fb   : > { %876 = vmatprep.mubr.f32.mxu1 %v2588_v8  ;;  %v752_v36 = vpop.permute.xlu0 %751 }
 0x1fe   : > { %2206 = vmatmul.mubr.msk.f32.gmra.mrb[22].mxu1 %vm753_vm5, %v752_v36 }
 0x2b5   : > { %v2922_v37 = vpop.f32.mrb[8].mxu1 }
 0x2b6   : > { %v838_v38 = vpop.f32.mrb[9].mxu1  ;;  %v900_v40 = vrot.slane %v2922_v37, 7 }
 0x2b7   : > { %v964_v44 = vrot.slane %v838_v38, 1 }
 0x2b9   : > { %v2924_v39 = vpop.f32.mrb[10].mxu1 }
 0x2ba   : > { %v901_v41 = vrot.slane %v2924_v39, 7  ;;  %v844_v42 = vpop.f32.mrb[11].mxu1 }
 0x2bb   : > { %v965_v46 = vrot.slane %v844_v42, 1  ;;  %v1053_v42 = vld [vmem:[%s3669_s5 + $0x8] sm:$0xff] }
 0x2bc   : > { %v914_v47 = vsel %vm581_vm1, %v900_v40, %v901_v41 }
 0x2bd   : > { %v2930_v48 = vpop.f32.mrb[12].mxu1  ;;  %v978_v49 = vsel %vm652_vm2, %v964_v44, %v965_v46 }
 0x2be   : > { %v902_v50 = vrot.slane %v2930_v48, 7  ;;  %996 = vrot.lane.b32.xlu1 %v978_v49, %s2589_s24  ;;  %v850_v51 = vpop.f32.mrb[13].mxu1  ;;  %v1055_v49 = vld [vmem:[%s3669_s5 + $0x18] sm:$0xff] }
 0x2bf   : > { %v966_v52 = vrot.slane %v850_v51, 1  ;;  %v1062_v51 = vld [vmem:[%s3669_s5 + $0x50] sm:$0xff] }
 0x2c0   : > { %v913_v53 = vsel %vm581_vm1, %v901_v41, %v902_v50 }
 0x2c1   : > { %v2938_v54 = vpop.f32.mrb[14].mxu1  ;;  %v977_v57 = vsel %vm652_vm2, %v965_v46, %v966_v52  ;;  %v918_v38 = vsel %vm571_vm3, %v913_v53, 0.0  ;;  %v1052_v46 = vld [vmem:[%s3669_s5] sm:$0xff] }
 0x2c2   : > { %v903_v58 = vrot.slane %v2938_v54, 7  ;;  %v856_v59 = vpop.f32.mrb[15].mxu1  ;;  %v981_v60 = vsel %vm643_vm4, %v977_v57, 0.0  ;;  %v1058_v57 = vld [vmem:[%s3669_s5 + $0x30] sm:$0xff] }
 0x2c3   : > { %v967_v62 = vrot.slane %v856_v59, 1  ;;  %998 = vrot.lane.b32.xlu1 %v981_v60, %s2589_s24  ;;  %v1054_v59 = vld [vmem:[%s3669_s5 + $0x10] sm:$0xff]  ;;  %v1057_v60 = vld [vmem:[%s3669_s5 + $0x28] sm:$0xff] }
 0x2c4   : > { %v912_v63 = vsel %vm581_vm1, %v902_v50, %v903_v58  ;;  %v1059_v50 = vld [vmem:[%s3669_s5 + $0x38] sm:$0xff] }
 0x2c5   : > { %v2948_v0 = vpop.f32.mrb[16].mxu1  ;;  %v976_v3 = vsel %vm652_vm2, %v966_v52, %v967_v62  ;;  %v2437_v52 = vpack.c.bf16 %v1055_v49, %v1052_v46  ;;  %v2439_v53 = vpack.c.bf16 %v1062_v51, %v1059_v50 }
 0x2c6   : > { %v904_v25 = vrot.slane %v2948_v0, 7  ;;  %v862_v4 = vpop.f32.mrb[17].mxu1 }
 0x2c7   : > { %v968_v31 = vrot.slane %v862_v4, 1  ;;  %1000 = vrot.lane.b32.xlu1 %v976_v3, %s2589_s24  ;;  %v1060_v4 = vld [vmem:[%s3669_s5 + $0x40] sm:$0xff] }
 0x2c8   : > { %v911_v6 = vsel %vm581_vm1, %v903_v58, %v904_v25  ;;  %v1061_v58 = vld [vmem:[%s3669_s5 + $0x48] sm:$0xff] }
 0x2c9   : > { %v2956_v45 = vpop.f32.mrb[18].mxu1  ;;  %v975_v7 = vsel %vm652_vm2, %v967_v62, %v968_v31  ;;  %v1065_v62 = vld [vmem:[%s3669_s5 + $0x68] sm:$0xff]  ;;  %v2441_v3 = vpack.c.bf16 %v1061_v58, %v1058_v57 }
 0x2ca   : > { %v905_v9 = vrot.slane %v2956_v45, 7  ;;  %v868_v11 = vpop.f32.mrb[19].mxu1  ;;  %v983_v12 = vsel %vm643_vm4, %v975_v7, 0.0  ;;  %v1067_v7 = vld [vmem:[%s3669_s5 + $0x78] sm:$0xff] }
 0x2cb   : > { %v969_v13 = vrot.slane %v868_v11, 1  ;;  %1002 = vrot.lane.b32.xlu1 %v983_v12, %s2589_s24  ;;  %v1071_v12 = vld [vmem:[%s3669_s5 + $0x98] sm:$0xff] }
 0x2cc   : > { %v910_v14 = vsel %vm581_vm1, %v904_v25, %v905_v9  ;;  %v2451_v25 = vpack.c.bf16 %v1057_v60, %v1054_v59 }
 0x2cd   : > { %v2966_v15 = vpop.f32.mrb[20].mxu1  ;;  %v974_v16 = vsel %vm652_vm2, %v968_v31, %v969_v13 }
 0x2ce   : > { %v906_v17 = vrot.slane %v2966_v15, 7  ;;  %v874_v18 = vpop.f32.mrb[21].mxu1  ;;  %2452 = vmatprep.subr.bf16.mxu1 %v2451_v25 }
 0x2cf   : > { %v970_v19 = vrot.slane %v874_v18, 1  ;;  %1004 = vrot.lane.b32.xlu1 %v974_v16, %s2589_s24  ;;  %2454 = vmatpush3.bf16.msra.mxu1 %v2451_v25  ;;  %v1069_v16 = vld [vmem:[%s3669_s5 + $0x88] sm:$0xff] }
 0x2d0   : > { %v909_v20 = vsel %vm581_vm1, %v905_v9, %v906_v17  ;;  %v1063_v9 = vld [vmem:[%s3669_s5 + $0x58] sm:$0xff] }
 0x2d1   : > { %v2974_v32 = vpop.f32.mrb[22].mxu1  ;;  %v973_v22 = vsel %vm652_vm2, %v969_v13, %v970_v19  ;;  %v922_v41 = vsel %vm571_vm3, %v909_v20, 0.0  ;;  %v2455_v11 = vpack.c.bf16 %v1063_v9, %v1060_v4  ;;  %v1074_v13 = vld [vmem:[%s3669_s5 + $0xb0] sm:$0xff] }
 0x2d2   : > { %v907_v23 = vrot.slane %v2974_v32, 7  ;;  %v880_v43 = vpop.f32.mrb[23].mxu1  ;;  %v985_v56 = vsel %vm643_vm4, %v973_v22, 0.0  ;;  %v1070_v20 = vld [vmem:[%s3669_s5 + $0x90] sm:$0xff]  ;;  %v1073_v22 = vld [vmem:[%s3669_s5 + $0xa8] sm:$0xff] }
 0x2d3   : > { %v971_v28 = vrot.slane %v880_v43, 1  ;;  %1006 = vrot.lane.b32.xlu1 %v985_v56, %s2589_s24  ;;  %2456 = vmatprep.subr.bf16.mxu1 %v2455_v11  ;;  %v890_v43 = vpop.permute.xlu1 %889 }
 0x2d4   : > { %v915_v29 = vsel %vm581_vm1, %v907_v23, %v900_v40  ;;  %v908_v30 = vsel %vm581_vm1, %v906_v17, %v907_v23  ;;  %v920_v40 = vsel %vm571_vm3, %v911_v6, 0.0  ;;  %v1064_v6 = vld [vmem:[%s3669_s5 + $0x60] sm:$0xff]  ;;  %2458 = vmatpush3.bf16.msra.mxu1 %v2455_v11  ;;  %v2449_v23 = vpack.c.bf16 %v1073_v22, %v1070_v20 }
 0x2d5   : > { %v916_v33 = vsel %vm571_vm3, %v915_v29, 0.0  ;;  %v972_v34 = vsel %vm652_vm2, %v970_v19, %v971_v28  ;;  %v979_v35 = vsel %vm652_vm2, %v971_v28, %v964_v44  ;;  %v1056_v44 = vld [vmem:[%s3669_s5 + $0x20] sm:$0xff]  ;;  %v2445_v17 = vpack.c.bf16 %v1067_v7, %v1064_v6 }
 0x2d6   : > { %932 = vrot.lane.b32.xlu0 %v916_v33, %s2589_s24  ;;  %v987_v36 = vsel %vm643_vm4, %v979_v35, 0.0  ;;  %v2447_v19 = vpack.c.bf16 %v1074_v13, %v1071_v12  ;;  %v1072_v29 = vld [vmem:[%s3669_s5 + $0xa0] sm:$0xff]  ;;  %v894_v49 = vadd.f32 %v890_v43, %v2930_v48  ;;  %v895_v58 = vadd.f32 %v890_v43, %v2938_v54 }
 0x2d7   : > { %1008 = vrot.lane.b32.xlu1 %v972_v34, %s2589_s24  ;;  %v892_v34 = vadd.f32 %v890_v43, %v2922_v37  ;;  %v896_v48 = vadd.f32 %v890_v43, %v2948_v0  ;;  %v897_v11 = vadd.f32 %v890_v43, %v2956_v45 }
 0x2da   : > { %934 = vrot.lane.b32.xlu0 %v914_v47, %s2589_s24  ;;  %v2435_v47 = vpack.c.bf16 %v1056_v44, %v1053_v42 }
 0x2db   : > { %1010 = vrot.lane.b32.xlu1 %v987_v36, %s2589_s24 }
 0x2dc   : > { %2436 = vmatprep.subr.bf16.mxu0 %v2435_v47 }
 0x2dd   : > { %2438 = vmatpush1.bf16.msra.mxu0 %v2437_v52 }
 0x2de   : > { %936 = vrot.lane.b32.xlu0 %v918_v38, %s2589_s24  ;;  %2440 = vmatprep.subr.bf16.mxu0 %v2439_v53 }
 0x2e1   : > { %2442 = vmatpush1.bf16.msra.mxu0 %v2441_v3 }
 0x2e2   : > { %938 = vrot.lane.b32.xlu0 %v912_v63, %s2589_s24  ;;  %v1068_v63 = vld [vmem:[%s3669_s5 + $0x80] sm:$0xff] }
 0x2e3   : > { %v2443_v31 = vpack.c.bf16 %v1068_v63, %v1065_v62 }
 0x2e5   : > { %2444 = vmatprep.subr.bf16.mxu0 %v2443_v31 }
 0x2e6   : > { %940 = vrot.lane.b32.xlu0 %v920_v40, %s2589_s24  ;;  %2446 = vmatpush1.bf16.msra.mxu0 %v2445_v17  ;;  %v893_v40 = vadd.f32 %v890_v43, %v2924_v39  ;;  %v898_v17 = vadd.f32 %v890_v43, %v2966_v15 }
 0x2e7   : > { %2448 = vmatprep.subr.bf16.mxu0 %v2447_v19 }
 0x2ea   : > { %942 = vrot.lane.b32.xlu0 %v910_v14, %s2589_s24  ;;  %v1066_v14 = vld [vmem:[%s3669_s5 + $0x70] sm:$0xff]  ;;  %2450 = vmatpush1.bf16.msra.mxu0 %v2449_v23 }
 0x2eb   : > { %v2459_v18 = vpack.c.bf16 %v1069_v16, %v1066_v14 }
 0x2ed   : > { %2460 = vmatprep.subr.bf16.mxu1 %v2459_v18 }
 0x2ee   : > { %944 = vrot.lane.b32.xlu0 %v922_v41, %s2589_s24  ;;  %2462 = vmatpush3.bf16.msra.mxu1 %v2459_v18 }
 0x2f2   : > { %946 = vrot.lane.b32.xlu0 %v908_v30, %s2589_s24  ;;  %v1075_v30 = vld [vmem:[%s3669_s5 + $0xb8] sm:$0xff] }
 0x2f3   : > { %v2463_v33 = vpack.c.bf16 %v1075_v30, %v1072_v29 }
 0x2f5   : > { %2464 = vmatprep.subr.bf16.mxu1 %v2463_v33 }
 0x2f6   : > { %2466 = vmatpush3.bf16.msra.mxu1 %v2463_v33 }
 0x330   : > { %v997_v56 = vpop.permute.xlu1 %996 }
 0x335   : > { %v999_v28 = vpop.permute.xlu1 %998 }
 0x339   : > { %v1001_v35 = vpop.permute.xlu1 %1000 }
 0x33d   : > { %v1003_v47 = vpop.permute.xlu1 %1002 }
 0x341   : > { %v1005_v60 = vpop.permute.xlu1 %1004 }
 0x345   : > { %v1007_v9 = vpop.permute.xlu1 %1006 }
 0x348   : > { %v933_v36 = vpop.permute.xlu0 %932 }
 0x349   : > { %v956_v38 = vadd.f32 %v933_v36, %v892_v34  ;;  %v1009_v19 = vpop.permute.xlu1 %1008 }
 0x34b   : > { %v1020_v41 = vadd.f32 %v997_v56, %v956_v38  ;;  %v899_v56 = vadd.f32 %v890_v43, %v2974_v32 }
 0x34c   : > { %v935_v42 = vpop.permute.xlu0 %934 }
 0x34d   : > { %v1028_v44 = vmax.f32 %v1020_v41, 0.0  ;;  %v957_v46 = vadd.f32 %v935_v42, %v893_v40  ;;  %v1011_v34 = vpop.permute.xlu1 %1010 }
 0x34f   : > { %v1021_v50 = vadd.f32 %v999_v28, %v957_v46  ;;  %v1036_v51 = vadd.f32 %v1028_v44, %v2865_v61 }
 0x350   : > { %v937_v52 = vpop.permute.xlu0 %936 }
 0x351   : > { %v1029_v53 = vmax.f32 %v1021_v50, 0.0  ;;  %v958_v37 = vadd.f32 %v937_v52, %v894_v49  ;;  %v1044_v57 = vmax.f32 %v1036_v51, 0.0  ;;  %v1417_v49 = vld [vmem:[%s3671_s7 + $0x20] sm:$0xff]  ;;  %v1416_v52 = vld [vmem:[%s3671_s7 + $0x18] sm:$0xff] }
 0x352   : > { %v1413_v51 = vld [vmem:[%s3671_s7] sm:$0xff] }
 0x353   : > { %v1022_v59 = vadd.f32 %v1001_v35, %v958_v37  ;;  %1084 = vrot.lane.b32.xlu0 %v1044_v57, %s2589_s24  ;;  %v1037_v39 = vadd.f32 %v1029_v53, %v2868_v1  ;;  %v1415_v53 = vld [vmem:[%s3671_s7 + $0x10] sm:$0xff]  ;;  %v2469_v37 = vpack.c.bf16 %v1416_v52, %v1413_v51  ;;  %v1418_v57 = vld [vmem:[%s3671_s7 + $0x28] sm:$0xff] }
 0x354   : > { %v939_v62 = vpop.permute.xlu0 %938  ;;  %v1459_v51 = vld [vmem:[%s3671_s7 + $0x170] sm:$0xff] }
 0x355   : > { %v1030_v63 = vmax.f32 %v1022_v59, 0.0  ;;  %v959_v3 = vadd.f32 %v939_v62, %v895_v58  ;;  %v1045_v25 = vmax.f32 %v1037_v39, 0.0  ;;  %v2499_v58 = vpack.c.bf16 %v1418_v57, %v1415_v53  ;;  %v1420_v59 = vld [vmem:[%s3671_s7 + $0x38] sm:$0xff]  ;;  %v1423_v39 = vld [vmem:[%s3671_s7 + $0x50] sm:$0xff]  ;;  %v1457_v57 = vld [vmem:[%s3671_s7 + $0x160] sm:$0xff] }
 0x356   : > { %v1419_v62 = vld [vmem:[%s3671_s7 + $0x30] sm:$0xff] }
 0x357   : > { %v1023_v4 = vadd.f32 %v1003_v47, %v959_v3  ;;  %1086 = vrot.lane.b32.xlu1 %v1045_v25, %s2589_s24  ;;  %v1038_v61 = vadd.f32 %v1030_v63, %v2875_v5  ;;  %v1414_v47 = vld [vmem:[%s3671_s7 + $0x8] sm:$0xff]  ;;  %2500 = vmatprep.subr.bf16.mxu1 %v2499_v58  ;;  %v1421_v3 = vld [vmem:[%s3671_s7 + $0x40] sm:$0xff]  ;;  %v1455_v53 = vld [vmem:[%s3671_s7 + $0x150] sm:$0xff] }
 0x358   : > { %v941_v31 = vpop.permute.xlu0 %940  ;;  %v2467_v50 = vpack.c.bf16 %v1417_v49, %v1414_v47  ;;  %v1422_v63 = vld [vmem:[%s3671_s7 + $0x48] sm:$0xff] }
 0x359   : > { %v1031_v6 = vmax.f32 %v1023_v4, 0.0  ;;  %v960_v54 = vadd.f32 %v941_v31, %v896_v48  ;;  %v1046_v7 = vmax.f32 %v1038_v61, 0.0  ;;  %v2473_v25 = vpack.c.bf16 %v1422_v63, %v1419_v62  ;;  %v1424_v48 = vld [vmem:[%s3671_s7 + $0x58] sm:$0xff]  ;;  %v1426_v61 = vld [vmem:[%s3671_s7 + $0x68] sm:$0xff]  ;;  %v1429_v31 = vld [vmem:[%s3671_s7 + $0x80] sm:$0xff] }
 0x35a   : > { %2468 = vmatprep.subr.bf16.mxu0 %v2467_v50  ;;  %v2503_v4 = vpack.c.bf16 %v1424_v48, %v1421_v3  ;;  %v1454_v47 = vld [vmem:[%s3671_s7 + $0x148] sm:$0xff]  ;;  %v1456_v50 = vld [vmem:[%s3671_s7 + $0x158] sm:$0xff]  ;;  %v3281_v63 = vld [vmem:[%s3670_s6] ss:$0 sm:$0xff] }
 0x35b   : > { %v1024_v1 = vadd.f32 %v1005_v60, %v960_v54  ;;  %1088 = vrot.lane.b32.xlu0 %v1046_v7, %s2589_s24  ;;  %v1039_v12 = vadd.f32 %v1031_v6, %v2880_v10  ;;  %v2471_v60 = vpack.c.bf16 %v1423_v39, %v1420_v59  ;;  %v2475_v6 = vpack.c.bf16 %v1429_v31, %v1426_v61  ;;  %v1425_v54 = vld [vmem:[%s3671_s7 + $0x60] sm:$0xff]  ;;  %v1428_v7 = vld [vmem:[%s3671_s7 + $0x78] sm:$0xff] }
 0x35c   : > { %v943_v13 = vpop.permute.xlu0 %942  ;;  %v2495_v52 = vpack.c.bf16 %v1459_v51, %v1456_v50  ;;  %v1460_v59 = vld [vmem:[%s3671_s7 + $0x178] sm:$0xff] }
 0x35d   : > { %v1032_v14 = vmax.f32 %v1024_v1, 0.0  ;;  %v961_v0 = vadd.f32 %v943_v13, %v897_v11  ;;  %v1047_v16 = vmax.f32 %v1039_v12, 0.0  ;;  %v2477_v11 = vpack.c.bf16 %v1428_v7, %v1425_v54  ;;  %v1430_v1 = vld [vmem:[%s3671_s7 + $0x88] sm:$0xff]  ;;  %v1432_v13 = vld [vmem:[%s3671_s7 + $0x98] sm:$0xff] }
 0x35e   : > { %v2527_v39 = vpack.c.bf16 %v1460_v59, %v1457_v57 }
 0x35f   : > { %v1025_v18 = vadd.f32 %v1007_v9, %v961_v0  ;;  %1090 = vrot.lane.b32.xlu1 %v1047_v16, %s2589_s24  ;;  %v1040_v5 = vadd.f32 %v1032_v14, %v2885_v55  ;;  %v1427_v9 = vld [vmem:[%s3671_s7 + $0x70] sm:$0xff] }
 0x360   : > { %v945_v20 = vpop.permute.xlu0 %944  ;;  %v2507_v12 = vpack.c.bf16 %v1430_v1, %v1427_v9  ;;  %v1435_v14 = vld [vmem:[%s3671_s7 + $0xb0] sm:$0xff] }
 0x361   : > { %v1033_v22 = vmax.f32 %v1025_v18, 0.0  ;;  %v962_v45 = vadd.f32 %v945_v20, %v898_v17  ;;  %v1048_v23 = vmax.f32 %v1040_v5, 0.0  ;;  %v2479_v0 = vpack.c.bf16 %v1435_v14, %v1432_v13  ;;  %v1431_v16 = vld [vmem:[%s3671_s7 + $0x90] sm:$0xff]  ;;  %v1434_v17 = vld [vmem:[%s3671_s7 + $0xa8] sm:$0xff]  ;;  %v1433_v18 = vld [vmem:[%s3671_s7 + $0xa0] sm:$0xff] }
 0x362   : > { %v2481_v5 = vpack.c.bf16 %v1434_v17, %v1431_v16 }
 0x363   : > { %v1026_v28 = vadd.f32 %v1009_v19, %v962_v45  ;;  %1092 = vrot.lane.b32.xlu0 %v1048_v23, %s2589_s24  ;;  %v1041_v10 = vadd.f32 %v1033_v22, %v2890_v24  ;;  %v1436_v19 = vld [vmem:[%s3671_s7 + $0xb8] sm:$0xff]  ;;  %v1438_v22 = vld [vmem:[%s3671_s7 + $0xc8] sm:$0xff]  ;;  %v1441_v45 = vld [vmem:[%s3671_s7 + $0xe0] sm:$0xff] }
 0x364   : > { %v947_v29 = vpop.permute.xlu0 %946  ;;  %v2511_v20 = vpack.c.bf16 %v1436_v19, %v1433_v18  ;;  %v2483_v23 = vpack.c.bf16 %v1441_v45, %v1438_v22 }
 0x365   : > { %v1034_v30 = vmax.f32 %v1026_v28, 0.0  ;;  %v963_v15 = vadd.f32 %v947_v29, %v899_v56  ;;  %v1049_v33 = vmax.f32 %v1041_v10, 0.0  ;;  %v1437_v56 = vld [vmem:[%s3671_s7 + $0xc0] sm:$0xff]  ;;  %v1440_v28 = vld [vmem:[%s3671_s7 + $0xd8] sm:$0xff]  ;;  %v1439_v10 = vld [vmem:[%s3671_s7 + $0xd0] sm:$0xff] }
 0x366   : > { %v2485_v29 = vpack.c.bf16 %v1440_v28, %v1437_v56 }
 0x367   : > { %v1027_v35 = vadd.f32 %v1011_v34, %v963_v15  ;;  %1094 = vrot.lane.b32.xlu1 %v1049_v33, %s2589_s24  ;;  %v1042_v55 = vadd.f32 %v1034_v30, %v2895_v21  ;;  %v1442_v30 = vld [vmem:[%s3671_s7 + $0xe8] sm:$0xff]  ;;  %v1444_v33 = vld [vmem:[%s3671_s7 + $0xf8] sm:$0xff]  ;;  %v1447_v34 = vld [vmem:[%s3671_s7 + $0x110] sm:$0xff] }
 0x368   : > { %v2515_v15 = vpack.c.bf16 %v1442_v30, %v1439_v10 }
 0x369   : > { %v1035_v36 = vmax.f32 %v1027_v35, 0.0  ;;  %v1050_v38 = vmax.f32 %v1042_v55, 0.0  ;;  %v2487_v35 = vpack.c.bf16 %v1447_v34, %v1444_v33  ;;  %v1443_v55 = vld [vmem:[%s3671_s7 + $0xf0] sm:$0xff] }
 0x36b   : > { %1096 = vrot.lane.b32.xlu0 %v1050_v38, %s2589_s24  ;;  %v1043_v32 = vadd.f32 %v1035_v36, %v2902_v27  ;;  %v1446_v36 = vld [vmem:[%s3671_s7 + $0x108] sm:$0xff]  ;;  %v1445_v38 = vld [vmem:[%s3671_s7 + $0x100] sm:$0xff] }
 0x36d   : > { %v1051_v43 = vmax.f32 %v1043_v32, 0.0  ;;  %v2489_v32 = vpack.c.bf16 %v1446_v36, %v1443_v55 }
 0x36f   : > { %1098 = vrot.lane.b32.xlu1 %v1051_v43, %s2589_s24  ;;  %v1448_v43 = vld [vmem:[%s3671_s7 + $0x118] sm:$0xff] }
 0x3c5   : > { %v1085_v24 = vpop.permute.xlu0 %1084 }
 0x3c6   : > { %2208 = vmatmul.mubr.msk.f32.vlgmr.msra.gmra.mrb[8].mxu0 %vm753_vm5, %v1085_v24  ;;  %2311 = vmatprep.mubr.msk.f32.mxu1 %vm753_vm5, %v1085_v24  ;;  %v2519_v24 = vpack.c.bf16 %v1448_v43, %v1445_v38 }
 0x3c7   : > { %1186 = vmatprep.mubr.f32.mxu0 %v2588_v8  ;;  %2470 = vmatpush1.bf16.msra.mxu0 %v2469_v37  ;;  %v1458_v37 = vld [vmem:[%s3671_s7 + $0x168] sm:$0xff] }
 0x3c8   : > { %2472 = vmatprep.subr.bf16.mxu0 %v2471_v60 }
 0x3c9   : > { %v1087_v40 = vpop.permute.xlu1 %1086 }
 0x3ca   : > { %2209 = vmatmul.mubr.msk.f32.gmra.mrb[10].mxu0 %vm753_vm5, %v1087_v40  ;;  %2312 = vmatmul.mubr.msk.f32.vlgmr.msra.gmra.mrb[24].mxu1 %vm753_vm5, %v1087_v40  ;;  %v1450_v40 = vld [vmem:[%s3671_s7 + $0x128] sm:$0xff] }
 0x3cb   : > { %1192 = vmatprep.mubr.f32.mxu0 %v2588_v8  ;;  %2502 = vmatpush3.bf16.msra.mxu1 %v2499_v58  ;;  %v2497_v58 = vpack.c.bf16 %v1458_v37, %v1455_v53 }
 0x3cc   : > { %2474 = vmatpush1.bf16.msra.mxu0 %v2473_v25  ;;  %2504 = vmatprep.subr.bf16.mxu1 %v2503_v4 }
 0x3cd   : > { %v1089_v21 = vpop.permute.xlu0 %1088  ;;  %2476 = vmatprep.subr.bf16.mxu0 %v2475_v6 }
 0x3ce   : > { %2210 = vmatmul.mubr.msk.f32.gmra.mrb[12].mxu0 %vm753_vm5, %v1089_v21  ;;  %2314 = vmatprep.mubr.msk.f32.mxu1 %vm753_vm5, %v1089_v21  ;;  %v1453_v21 = vld [vmem:[%s3671_s7 + $0x140] sm:$0xff] }
 0x3cf   : > { %1198 = vmatprep.mubr.f32.mxu0 %v2588_v8  ;;  %2506 = vmatpush3.bf16.msra.mxu1 %v2503_v4 }
 0x3d0   : > { %2478 = vmatpush1.bf16.msra.mxu0 %v2477_v11  ;;  %2508 = vmatprep.subr.bf16.mxu1 %v2507_v12 }
 0x3d1   : > { %v1091_v27 = vpop.permute.xlu1 %1090  ;;  %2480 = vmatprep.subr.bf16.mxu0 %v2479_v0 }
 0x3d2   : > { %2211 = vmatmul.mubr.msk.f32.gmra.mrb[14].mxu0 %vm753_vm5, %v1091_v27  ;;  %2315 = vmatmul.mubr.msk.f32.gmra.mrb[26].mxu1 %vm753_vm5, %v1091_v27  ;;  %v2491_v27 = vpack.c.bf16 %v1453_v21, %v1450_v40 }
 0x3d3   : > { %1204 = vmatprep.mubr.f32.mxu0 %v2588_v8  ;;  %2510 = vmatpush3.bf16.msra.mxu1 %v2507_v12 }
 0x3d4   : > { %2482 = vmatpush1.bf16.msra.mxu0 %v2481_v5  ;;  %2512 = vmatprep.subr.bf16.mxu1 %v2511_v20 }
 0x3d5   : > { %v1093_v41 = vpop.permute.xlu0 %1092  ;;  %2484 = vmatprep.subr.bf16.mxu0 %v2483_v23 }
 0x3d6   : > { %2212 = vmatmul.mubr.msk.f32.gmra.mrb[16].mxu0 %vm753_vm5, %v1093_v41  ;;  %2317 = vmatprep.mubr.msk.f32.mxu1 %vm753_vm5, %v1093_v41  ;;  %v1449_v41 = vld [vmem:[%s3671_s7 + $0x120] sm:$0xff] }
 0x3d7   : > { %1210 = vmatprep.mubr.f32.mxu0 %v2588_v8  ;;  %2514 = vmatpush3.bf16.msra.mxu1 %v2511_v20 }
 0x3d8   : > { %2486 = vmatpush1.bf16.msra.mxu0 %v2485_v29  ;;  %2516 = vmatprep.subr.bf16.mxu1 %v2515_v15 }
 0x3d9   : > { %v1095_v42 = vpop.permute.xlu1 %1094  ;;  %2488 = vmatprep.subr.bf16.mxu0 %v2487_v35 }
 0x3da   : > { %2213 = vmatmul.mubr.msk.f32.gmra.mrb[18].mxu0 %vm753_vm5, %v1095_v42  ;;  %2318 = vmatmul.mubr.msk.f32.gmra.mrb[28].mxu1 %vm753_vm5, %v1095_v42  ;;  %v1452_v42 = vld [vmem:[%s3671_s7 + $0x138] sm:$0xff] }
 0x3db   : > { %1216 = vmatprep.mubr.f32.mxu0 %v2588_v8  ;;  %2518 = vmatpush3.bf16.msra.mxu1 %v2515_v15 }
 0x3dc   : > { %2490 = vmatpush1.bf16.msra.mxu0 %v2489_v32  ;;  %2520 = vmatprep.subr.bf16.mxu1 %v2519_v24 }
 0x3dd   : > { %v1097_v44 = vpop.permute.xlu0 %1096  ;;  %2492 = vmatprep.subr.bf16.mxu0 %v2491_v27 }
 0x3de   : > { %2214 = vmatmul.mubr.msk.f32.gmra.mrb[20].mxu0 %vm753_vm5, %v1097_v44  ;;  %2320 = vmatprep.mubr.msk.f32.mxu1 %vm753_vm5, %v1097_v44  ;;  %v1451_v44 = vld [vmem:[%s3671_s7 + $0x130] sm:$0xff] }
 0x3df   : > { %1222 = vmatprep.mubr.f32.mxu0 %v2588_v8  ;;  %2522 = vmatpush3.bf16.msra.mxu1 %v2519_v24  ;;  %v2523_v49 = vpack.c.bf16 %v1454_v47, %v1451_v44 }
 0x3e1   : > { %v1099_v46 = vpop.permute.xlu1 %1098  ;;  %2524 = vmatprep.subr.bf16.mxu1 %v2523_v49 }
 0x3e2   : > { %2215 = vmatmul.mubr.msk.f32.gmra.mrb[22].mxu0 %vm753_vm5, %v1099_v46  ;;  %2321 = vmatmul.mubr.msk.f32.gmra.mrb[30].mxu1 %vm753_vm5, %v1099_v46  ;;  %v2493_v46 = vpack.c.bf16 %v1452_v42, %v1449_v41 }
 0x3e3   : > { %1525 = vmatprep.mubr.f32.mxu0 %v2588_v8  ;;  %2526 = vmatpush3.bf16.msra.mxu1 %v2523_v49 }
 0x3e4   : > { %2494 = vmatpush1.bf16.msra.mxu0 %v2493_v46  ;;  %2528 = vmatprep.subr.bf16.mxu1 %v2527_v39 }
 0x3e5   : > { %2496 = vmatprep.subr.bf16.mxu0 %v2495_v52 }
 0x3e7   : > { %2530 = vmatpush3.bf16.msra.mxu1 %v2527_v39 }
 0x3e8   : > { %2498 = vmatpush1.bf16.msra.mxu0 %v2497_v58 }
 0x499   : > { %v3274_v60 = vpop.f32.mrb[8].mxu0 }
 0x49a   : > { %v3276_v62 = vpop.f32.mrb[9].mxu0  ;;  %v1349_v48 = vrot.slane %v3274_v60, 7 }
 0x49d   : > { %v1188_v3 = vpop.f32.mrb[10].mxu0  ;;  %v2313_v25 = vpop.f32.mrb[24].mxu1 }
 0x49e   : > { %v1350_v4 = vrot.slane %v1188_v3, 7  ;;  %v1382_v61 = vrot.slane %v2313_v25, 1  ;;  %v1190_v31 = vpop.f32.mrb[11].mxu0  ;;  %v3284_v6 = vpop.f32.mrb[25].mxu1 }
 0x49f   : > { %v1342_v54 = vadd.f32 %v3281_v63, %v1190_v31  ;;  %v1381_v7 = vrot.slane %v3284_v6, 1 }
 0x4a0   : > { %v1363_v9 = vsel %vm581_vm1, %v1349_v48, %v1350_v4 }
 0x4a1   : > { %v1374_v11 = vadd.f32 %v1363_v9, %v1342_v54  ;;  %v3296_v1 = vsel %vm652_vm2, %v1381_v7, %v1382_v61  ;;  %v1194_v12 = vpop.f32.mrb[12].mxu0 }
 0x4a2   : > { %v1351_v13 = vrot.slane %v1194_v12, 7  ;;  %v1196_v14 = vpop.f32.mrb[13].mxu0 }
 0x4a3   : > { %v1343_v0 = vadd.f32 %v3281_v63, %v1196_v14 }
 0x4a4   : > { %v1362_v16 = vsel %vm581_vm1, %v1350_v4, %v1351_v13 }
 0x4a5   : > { %v1367_v17 = vsel %vm571_vm3, %v1362_v16, 0.0  ;;  %v1200_v18 = vpop.f32.mrb[14].mxu0  ;;  %v2316_v5 = vpop.f32.mrb[26].mxu1 }
 0x4a6   : > { %v1375_v19 = vadd.f32 %v1367_v17, %v1343_v0  ;;  %v1352_v20 = vrot.slane %v1200_v18, 7  ;;  %v1384_v22 = vrot.slane %v2316_v5, 1  ;;  %v1202_v45 = vpop.f32.mrb[15].mxu0  ;;  %v1305_v23 = vpop.f32.mrb[27].mxu1  ;;  %v1341_v17 = vadd.f32 %v3281_v63, %v3276_v62 }
 0x4a7   : > { %v1344_v56 = vadd.f32 %v3281_v63, %v1202_v45  ;;  %v1383_v28 = vrot.slane %v1305_v23, 1 }
 0x4a8   : > { %v1361_v10 = vsel %vm581_vm1, %v1351_v13, %v1352_v20 }
 0x4a9   : > { %v1376_v29 = vadd.f32 %v1361_v10, %v1344_v56  ;;  %v1394_v30 = vsel %vm652_vm2, %v1382_v61, %v1383_v28  ;;  %v1206_v15 = vpop.f32.mrb[16].mxu0  ;;  %v1393_v33 = vsel %vm652_vm2, %v1383_v28, %v1384_v22  ;;  %v1783_v28 = vld [vmem:[%s3673_s9 + $0x8] sm:$0xff] }
 0x4aa   : > { %v1398_v34 = vsel %vm643_vm4, %v1394_v30, 0.0  ;;  %v1353_v35 = vrot.slane %v1206_v15, 7  ;;  %v1208_v55 = vpop.f32.mrb[17].mxu0  ;;  %v3312_v36 = vadd.f32 %v1393_v33, %v1375_v19  ;;  %v1786_v15 = vld [vmem:[%s3673_s9 + $0x20] sm:$0xff]  ;;  %v1787_v33 = vld [vmem:[%s3673_s9 + $0x28] sm:$0xff] }
 0x4ab   : > { %v3314_v38 = vadd.f32 %v1398_v34, %v1374_v11  ;;  %v1345_v32 = vadd.f32 %v3281_v63, %v1208_v55  ;;  %v2539_v34 = vpack.c.bf16 %v1787_v33, %v1786_v15  ;;  %v1789_v55 = vld [vmem:[%s3673_s9 + $0x38] sm:$0xff] }
 0x4ac   : > { %v1360_v43 = vsel %vm581_vm1, %v1352_v20, %v1353_v35 }
 0x4ad   : > { %v1369_v24 = vsel %vm571_vm3, %v1360_v43, 0.0  ;;  %v1212_v40 = vpop.f32.mrb[18].mxu0  ;;  %v2319_v21 = vpop.f32.mrb[28].mxu1  ;;  %v1790_v43 = vld [vmem:[%s3673_s9 + $0x40] sm:$0xff] }
 0x4ae   : > { %v1377_v27 = vadd.f32 %v1369_v24, %v1345_v32  ;;  %v1354_v41 = vrot.slane %v1212_v40, 7  ;;  %v1386_v42 = vrot.slane %v2319_v21, 1  ;;  %v1214_v44 = vpop.f32.mrb[19].mxu0  ;;  %v1315_v46 = vpop.f32.mrb[29].mxu1  ;;  %v1791_v24 = vld [vmem:[%s3673_s9 + $0x48] sm:$0xff]  ;;  %v1792_v21 = vld [vmem:[%s3673_s9 + $0x50] sm:$0xff] }
 0x4af   : > { %v1346_v47 = vadd.f32 %v3281_v63, %v1214_v44  ;;  %v1385_v49 = vrot.slane %v1315_v46, 1  ;;  %v2547_v40 = vpack.c.bf16 %v1791_v24, %v1790_v43  ;;  %v1795_v44 = vld [vmem:[%s3673_s9 + $0x68] sm:$0xff] }
 0x4b0   : > { %v1359_v50 = vsel %vm581_vm1, %v1353_v35, %v1354_v41  ;;  %v1788_v35 = vld [vmem:[%s3673_s9 + $0x30] sm:$0xff] }
 0x4b1   : > { %v1378_v51 = vadd.f32 %v1359_v50, %v1346_v47  ;;  %v1392_v52 = vsel %vm652_vm2, %v1384_v22, %v1385_v49  ;;  %v1218_v53 = vpop.f32.mrb[20].mxu0  ;;  %v1391_v37 = vsel %vm652_vm2, %v1385_v49, %v1386_v42  ;;  %v2543_v32 = vpack.c.bf16 %v1789_v55, %v1788_v35  ;;  %v1796_v47 = vld [vmem:[%s3673_s9 + $0x70] sm:$0xff]  ;;  %v1797_v49 = vld [vmem:[%s3673_s9 + $0x78] sm:$0xff] }
 0x4b2   : > { %v1355_v57 = vrot.slane %v1218_v53, 7  ;;  %v1220_v58 = vpop.f32.mrb[21].mxu0  ;;  %v1400_v59 = vsel %vm643_vm4, %v1392_v52, 0.0  ;;  %v3330_v39 = vadd.f32 %v1391_v37, %v1377_v27  ;;  %v1793_v27 = vld [vmem:[%s3673_s9 + $0x58] sm:$0xff]  ;;  %v2559_v50 = vpack.c.bf16 %v1797_v49, %v1796_v47 }
 0x4b3   : > { %v1347_v3 = vadd.f32 %v3281_v63, %v1220_v58  ;;  %v3333_v25 = vadd.f32 %v1400_v59, %v1376_v29  ;;  %v1784_v29 = vld [vmem:[%s3673_s9 + $0x10] sm:$0xff] }
 0x4b4   : > { %v1358_v4 = vsel %vm581_vm1, %v1354_v41, %v1355_v57  ;;  %v2551_v41 = vpack.c.bf16 %v1793_v27, %v1792_v21 }
 0x4b5   : > { %v1371_v61 = vsel %vm571_vm3, %v1358_v4, 0.0  ;;  %v1224_v31 = vpop.f32.mrb[22].mxu0  ;;  %v2322_v54 = vpop.f32.mrb[30].mxu1  ;;  %v3450_v4 = vld [vmem:[%s3672_s8] ss:$0 sm:$0xff] }
 0x4b6   : > { %v1379_v9 = vadd.f32 %v1371_v61, %v1347_v3  ;;  %v1356_v11 = vrot.slane %v1224_v31, 7  ;;  %v1388_v12 = vrot.slane %v2322_v54, 1  ;;  %v1226_v13 = vpop.f32.mrb[23].mxu0  ;;  %v1325_v14 = vpop.f32.mrb[31].mxu1 }
 0x4b7   : > { %v1348_v0 = vadd.f32 %v3281_v63, %v1226_v13  ;;  %v1387_v16 = vrot.slane %v1325_v14, 1 }
 0x4b8   : > { %v1364_v18 = vsel %vm581_vm1, %v1356_v11, %v1349_v48  ;;  %v1396_v5 = vsel %vm652_vm2, %v1388_v12, %v1381_v7  ;;  %v1357_v19 = vsel %vm581_vm1, %v1355_v57, %v1356_v11 }
 0x4b9   : > { %v1365_v20 = vsel %vm571_vm3, %v1364_v18, 0.0  ;;  %v1380_v22 = vadd.f32 %v1357_v19, %v1348_v0  ;;  %v1390_v62 = vsel %vm652_vm2, %v1386_v42, %v1387_v16  ;;  %v1389_v60 = vsel %vm652_vm2, %v1387_v16, %v1388_v12  ;;  %v1794_v42 = vld [vmem:[%s3673_s9 + $0x60] sm:$0xff] }
 0x4ba   : > { %v1373_v63 = vadd.f32 %v1365_v20, %v1341_v17  ;;  %v1402_v48 = vsel %vm643_vm4, %v1390_v62, 0.0  ;;  %v3360_v6 = vadd.f32 %v1389_v60, %v1379_v9  ;;  %v1404_v7 = vsel %vm643_vm4, %v1396_v5, 0.0 }
 0x4bb   : > { %v3364_v45 = vadd.f32 %v1402_v48, %v1378_v51  ;;  %v3366_v23 = vadd.f32 %v1404_v7, %v1380_v22  ;;  %v2555_v46 = vpack.c.bf16 %v1795_v44, %v1794_v42 }
 0x4bc   : > { %v3369_v56 = vadd.f32 %v3296_v1, %v1373_v63  ;;  %v1782_v1 = vld [vmem:[%s3673_s9] sm:$0xff] }
 0x4bd   : > { %v2531_v10 = vpack.c.bf16 %v1783_v28, %v1782_v1 }
 0x4be   : > { %1526 = vmatmul.mubr.f32.vlgmr.msra.gmra.mrb[24].mxu0 %v3369_v56  ;;  %2355 = vmatprep.mubr.f32.mxu1 %v3369_v56 }
 0x4bf   : > { %2356 = vmatmul.mubr.f32.vlgmr.msra.gmra.mrb[32].mxu1 %v3314_v38  ;;  %1531 = vmatprep.mubr.f32.mxu0 %v2588_v8 }
 0x4c0   : > { %2358 = vmatprep.mubr.f32.mxu1 %v3312_v36  ;;  %2532 = vmatprep.subr.bf16.mxu0 %v2531_v10 }
 0x4c1   : > { %2534 = vmatpush3.bf16.msra.mxu0 %v2531_v10 }
 0x4c2   : > { %1532 = vmatmul.mubr.f32.gmra.mrb[26].mxu0 %v3314_v38 }
 0x4c3   : > { %2359 = vmatmul.mubr.f32.gmra.mrb[34].mxu1 %v3333_v25  ;;  %1537 = vmatprep.mubr.f32.mxu0 %v2588_v8 }
 0x4c4   : > { %2361 = vmatprep.mubr.f32.mxu1 %v3330_v39 }
 0x4c6   : > { %1538 = vmatmul.mubr.f32.gmra.mrb[28].mxu0 %v3312_v36 }
 0x4c7   : > { %2362 = vmatmul.mubr.f32.gmra.mrb[36].mxu1 %v3364_v45  ;;  %1543 = vmatprep.mubr.f32.mxu0 %v2588_v8 }
 0x4c8   : > { %2364 = vmatprep.mubr.f32.mxu1 %v3360_v6 }
 0x4ca   : > { %1544 = vmatmul.mubr.f32.gmra.mrb[30].mxu0 %v3333_v25 }
 0x4cb   : > { %2365 = vmatmul.mubr.f32.gmra.mrb[38].mxu1 %v3366_v23  ;;  %1549 = vmatprep.mubr.f32.mxu0 %v2588_v8 }
 0x4ce   : > { %1550 = vmatmul.mubr.f32.gmra.mrb[32].mxu0 %v3330_v39 }
 0x4cf   : > { %1555 = vmatprep.mubr.f32.mxu0 %v2588_v8 }
 0x4d2   : > { %1556 = vmatmul.mubr.f32.gmra.mrb[34].mxu0 %v3364_v45 }
 0x4d3   : > { %1561 = vmatprep.mubr.f32.mxu0 %v2588_v8 }
 0x4d6   : > { %1562 = vmatmul.mubr.f32.gmra.mrb[36].mxu0 %v3360_v6 }
 0x4d7   : > { %1567 = vmatprep.mubr.f32.mxu0 %v2588_v8  ;;  %v1785_v8 = vld [vmem:[%s3673_s9 + $0x18] sm:$0xff] }
 0x4d8   : > { %v2535_v30 = vpack.c.bf16 %v1785_v8, %v1784_v29 }
 0x4da   : > { %1568 = vmatmul.mubr.f32.gmra.mrb[38].mxu0 %v3366_v23  ;;  %2536 = vmatprep.subr.bf16.mxu0 %v2535_v30 }
 0x4db   : > { %2538 = vmatpush3.bf16.msra.mxu0 %v2535_v30 }
 0x4dc   : > { %2540 = vmatprep.subr.bf16.mxu0 %v2539_v34 }
 0x4df   : > { %2542 = vmatpush3.bf16.msra.mxu0 %v2539_v34 }
 0x4e0   : > { %2544 = vmatprep.subr.bf16.mxu0 %v2543_v32 }
 0x4e3   : > { %2546 = vmatpush3.bf16.msra.mxu0 %v2543_v32 }
 0x4e4   : > { %2548 = vmatprep.subr.bf16.mxu0 %v2547_v40 }
 0x4e7   : > { %2550 = vmatpush3.bf16.msra.mxu0 %v2547_v40 }
 0x4e8   : > { %2552 = vmatprep.subr.bf16.mxu0 %v2551_v41 }
 0x4eb   : > { %2554 = vmatpush3.bf16.msra.mxu0 %v2551_v41 }
 0x4ec   : > { %2556 = vmatprep.subr.bf16.mxu0 %v2555_v46 }
 0x4ef   : > { %2558 = vmatpush3.bf16.msra.mxu0 %v2555_v46 }
 0x4f0   : > { %2560 = vmatprep.subr.bf16.mxu0 %v2559_v50 }
 0x4f3   : > { %2562 = vmatpush3.bf16.msra.mxu0 %v2559_v50 }
 0x591   : > { %v3442_v51 = vpop.f32.mrb[24].mxu0 }
 0x592   : > { %v3444_v52 = vpop.f32.mrb[25].mxu0  ;;  %v2357_v53 = vpop.f32.mrb[32].mxu1  ;;  %v1694_v3 = vrot.slane %v3442_v51, 7 }
 0x593   : > { %v1727_v37 = vrot.slane %v2357_v53, 1  ;;  %v1640_v57 = vpop.f32.mrb[33].mxu1 }
 0x594   : > { %v1726_v58 = vrot.slane %v1640_v57, 1 }
 0x595   : > { %v1533_v59 = vpop.f32.mrb[26].mxu0 }
 0x596   : > { %v3454_v61 = vsel %vm652_vm2, %v1726_v58, %v1727_v37  ;;  %v1695_v31 = vrot.slane %v1533_v59, 7  ;;  %v1535_v54 = vpop.f32.mrb[27].mxu0  ;;  %v2360_v9 = vpop.f32.mrb[34].mxu1 }
 0x597   : > { %v1687_v11 = vadd.f32 %v3450_v4, %v1535_v54  ;;  %v1729_v12 = vrot.slane %v2360_v9, 1  ;;  %v1650_v13 = vpop.f32.mrb[35].mxu1 }
 0x598   : > { %v1708_v14 = vsel %vm581_vm1, %v1694_v3, %v1695_v31  ;;  %v1728_v0 = vrot.slane %v1650_v13, 1 }
 0x599   : > { %v1719_v16 = vadd.f32 %v1708_v14, %v1687_v11  ;;  %v1539_v17 = vpop.f32.mrb[28].mxu0 }
 0x59a   : > { %v1738_v18 = vsel %vm652_vm2, %v1728_v0, %v1729_v12  ;;  %v1739_v5 = vsel %vm652_vm2, %v1727_v37, %v1728_v0  ;;  %v1696_v19 = vrot.slane %v1539_v17, 7  ;;  %v1541_v20 = vpop.f32.mrb[29].mxu0  ;;  %v2363_v22 = vpop.f32.mrb[36].mxu1 }
 0x59b   : > { %v1743_v62 = vsel %vm643_vm4, %v1739_v5, 0.0  ;;  %v1688_v60 = vadd.f32 %v3450_v4, %v1541_v20  ;;  %v1731_v63 = vrot.slane %v2363_v22, 1  ;;  %v1660_v48 = vpop.f32.mrb[37].mxu1 }
 0x59c   : > { %v3468_v7 = vadd.f32 %v1743_v62, %v1719_v16  ;;  %v1707_v1 = vsel %vm581_vm1, %v1695_v31, %v1696_v19  ;;  %v1730_v28 = vrot.slane %v1660_v48, 1 }
 0x59d   : > { %v1712_v10 = vsel %vm571_vm3, %v1707_v1, 0.0  ;;  %v1545_v29 = vpop.f32.mrb[30].mxu0 }
 0x59e   : > { %v1720_v8 = vadd.f32 %v1712_v10, %v1688_v60  ;;  %v1736_v30 = vsel %vm652_vm2, %v1730_v28, %v1731_v63  ;;  %v1737_v15 = vsel %vm652_vm2, %v1729_v12, %v1730_v28  ;;  %v1547_v33 = vpop.f32.mrb[31].mxu0  ;;  %v2366_v34 = vpop.f32.mrb[38].mxu1  ;;  %v1697_v35 = vrot.slane %v1545_v29, 7 }
 0x59f   : > { %v1689_v55 = vadd.f32 %v3450_v4, %v1547_v33  ;;  %v1733_v32 = vrot.slane %v2366_v34, 1  ;;  %v1670_v43 = vpop.f32.mrb[39].mxu1  ;;  %v1745_v47 = vsel %vm643_vm4, %v1737_v15, 0.0  ;;  %v1686_v28 = vadd.f32 %v3450_v4, %v3444_v52 }
 0x5a0   : > { %v1752_v24 = vadd.f32 %v1738_v18, %v1720_v8  ;;  %v1732_v40 = vrot.slane %v1670_v43, 1  ;;  %v1706_v21 = vsel %vm581_vm1, %v1696_v19, %v1697_v35 }
 0x5a1   : > { %v1741_v27 = vsel %vm652_vm2, %v1733_v32, %v1726_v58  ;;  %v1551_v41 = vpop.f32.mrb[32].mxu0  ;;  %v1721_v42 = vadd.f32 %v1706_v21, %v1689_v55 }
 0x5a2   : > { %v1734_v44 = vsel %vm652_vm2, %v1732_v40, %v1733_v32  ;;  %v1553_v46 = vpop.f32.mrb[33].mxu0  ;;  %v1735_v49 = vsel %vm652_vm2, %v1731_v63, %v1732_v40  ;;  %v1698_v50 = vrot.slane %v1551_v41, 7  ;;  %v1749_v34 = vsel %vm643_vm4, %v1741_v27, 0.0 }
 0x5a3   : > { %v1690_v53 = vadd.f32 %v3450_v4, %v1553_v46  ;;  %v1753_v37 = vadd.f32 %v1745_v47, %v1721_v42  ;;  %v1747_v16 = vsel %vm643_vm4, %v1735_v49, 0.0 }
 0x5a4   : > { %v1705_v57 = vsel %vm581_vm1, %v1697_v35, %v1698_v50  ;;  %v1759_v35 = vmax.f32 %v3468_v7, 0.0 }
 0x5a5   : > { %v1557_v58 = vpop.f32.mrb[34].mxu0  ;;  %v1714_v59 = vsel %vm571_vm3, %v1705_v57, 0.0  ;;  %v1761_v32 = vmax.f32 %v1753_v37, 0.0 }
 0x5a6   : > { %v1699_v31 = vrot.slane %v1557_v58, 7  ;;  %v1559_v54 = vpop.f32.mrb[35].mxu0  ;;  %v1722_v9 = vadd.f32 %v1714_v59, %v1690_v53 }
 0x5a7   : > { %v1691_v11 = vadd.f32 %v3450_v4, %v1559_v54  ;;  %v1769_v27 = vadd.f32 %v1761_v32, %v3333_v25 }
 0x5a8   : > { %v1704_v12 = vsel %vm581_vm1, %v1698_v50, %v1699_v31  ;;  %v1754_v13 = vadd.f32 %v1736_v30, %v1722_v9 }
 0x5a9   : > { %v1723_v14 = vadd.f32 %v1704_v12, %v1691_v11  ;;  %v1563_v0 = vpop.f32.mrb[36].mxu0 }
 0x5aa   : > { %v1700_v17 = vrot.slane %v1563_v0, 7  ;;  %v1565_v18 = vpop.f32.mrb[37].mxu0  ;;  %v1762_v43 = vmax.f32 %v1754_v13, 0.0 }
 0x5ab   : > { %v1755_v5 = vadd.f32 %v1747_v16, %v1723_v14  ;;  %v1692_v19 = vadd.f32 %v3450_v4, %v1565_v18 }
 0x5ac   : > { %v1703_v20 = vsel %vm581_vm1, %v1699_v31, %v1700_v17 }
 0x5ad   : > { %v1716_v22 = vsel %vm571_vm3, %v1703_v20, 0.0  ;;  %v1569_v62 = vpop.f32.mrb[38].mxu0  ;;  %v2226_v20 = vld [vmem:[#allocation2] ss:$0 sm:$0xff] }
 0x5ae   : > { %v1724_v60 = vadd.f32 %v1716_v22, %v1692_v19  ;;  %v1701_v63 = vrot.slane %v1569_v62, 7  ;;  %v1571_v48 = vpop.f32.mrb[39].mxu0 }
 0x5af   : > { %v1693_v1 = vadd.f32 %v3450_v4, %v1571_v48  ;;  %v1760_v4 = vmax.f32 %v1752_v24, 0.0  ;;  %v1770_v24 = vadd.f32 %v1762_v43, %v3330_v39 }
 0x5b0   : > { %v1756_v10 = vadd.f32 %v1734_v44, %v1724_v60  ;;  %v1709_v29 = vsel %vm581_vm1, %v1701_v63, %v1694_v3  ;;  %v1702_v8 = vsel %vm581_vm1, %v1700_v17, %v1701_v63  ;;  %v1767_v3 = vadd.f32 %v1759_v35, %v3314_v38 }
 0x5b1   : > { %v1710_v30 = vsel %vm571_vm3, %v1709_v29, 0.0  ;;  %v1725_v15 = vadd.f32 %v1702_v8, %v1693_v1  ;;  %v1768_v21 = vadd.f32 %v1760_v4, %v3312_v36  ;;  %v1763_v44 = vmax.f32 %v1755_v5, 0.0 }
 0x5b2   : > { %v1718_v33 = vadd.f32 %v1710_v30, %v1686_v28  ;;  %v1775_v42 = vmax.f32 %v1767_v3, 0.0  ;;  %v1764_v46 = vmax.f32 %v1756_v10, 0.0  ;;  %v1777_v38 = vmax.f32 %v1769_v27, 0.0 }
 0x5b3   : > { %v1757_v52 = vadd.f32 %v1749_v34, %v1725_v15  ;;  %v1776_v7 = vmax.f32 %v1768_v21, 0.0  ;;  %v1771_v47 = vadd.f32 %v1763_v44, %v3364_v45  ;;  %v1778_v49 = vmax.f32 %v1770_v24, 0.0 }
 0x5b4   : > { %v1750_v51 = vadd.f32 %v3454_v61, %v1718_v33 }
 0x5b5   : > { %v1765_v61 = vmax.f32 %v1757_v52, 0.0  ;;  %v1779_v36 = vmax.f32 %v1771_v47, 0.0 }
 0x5b6   : > { %v1758_v55 = vmax.f32 %v1750_v51, 0.0 }
 0x5b7   : > { %v1773_v50 = vadd.f32 %v1765_v61, %v3366_v23 }
 0x5b8   : > { %v1766_v40 = vadd.f32 %v1758_v55, %v3369_v56  ;;  %v1772_v56 = vadd.f32 %v1764_v46, %v3360_v6 }
 0x5b9   : > { %v1781_v53 = vmax.f32 %v1773_v50, 0.0 }
 0x5ba   : > { %v1774_v41 = vmax.f32 %v1766_v40, 0.0  ;;  %v1780_v25 = vmax.f32 %v1772_v56, 0.0 }
 0x5bc   : > { %2399 = vmatprep.mubr.f32.mxu0 %v1774_v41 }
 0x5bd   : > { %2400 = vmatmul.mubr.f32.vlgmr.msra.gmra.mrb[40].mxu0 %v1775_v42 }
 0x5be   : > { %2402 = vmatprep.mubr.f32.mxu0 %v1776_v7 }
 0x5c1   : > { %2403 = vmatmul.mubr.f32.gmra.mrb[42].mxu0 %v1777_v38 }
 0x5c2   : > { %2405 = vmatprep.mubr.f32.mxu0 %v1778_v49 }
 0x5c5   : > { %2406 = vmatmul.mubr.f32.gmra.mrb[44].mxu0 %v1779_v36 }
 0x5c6   : > { %2408 = vmatprep.mubr.f32.mxu0 %v1780_v25 }
 0x5c9   : > { %2409 = vmatmul.mubr.f32.gmra.mrb[46].mxu0 %v1781_v53 }
 0x690   : > { %v3527_v39 = vpop.f32.mrb[40].mxu0 }
 0x691   : > { %v1921_v37 = vrot.slane %v3527_v39, 7  ;;  %1994 = vrot.lane.b32.xlu0 %v3527_v39, %s2590_s10  ;;  %v3532_v45 = vpop.f32.mrb[41].mxu0 }
 0x692   : > { %v1920_v6 = vrot.slane %v3532_v45, 7 }
 0x694   : > { %v3535_v57 = vpop.f32.mrb[42].mxu0  ;;  %v1934_v23 = vsel %vm581_vm1, %v1920_v6, %v1921_v37 }
 0x695   : > { %v1923_v58 = vrot.slane %v3535_v57, 7  ;;  %1992 = vrot.lane.b32.xlu0 %v3532_v45, %s2590_s10  ;;  %1998 = vrot.lane.b32.xlu1 %v3535_v57, %s2590_s10  ;;  %v3544_v59 = vpop.f32.mrb[43].mxu0 }
 0x696   : > { %v1922_v31 = vrot.slane %v3544_v59, 7 }
 0x698   : > { %v3547_v54 = vpop.f32.mrb[44].mxu0  ;;  %v1933_v9 = vsel %vm581_vm1, %v1921_v37, %v1922_v31  ;;  %v1932_v11 = vsel %vm581_vm1, %v1922_v31, %v1923_v58 }
 0x699   : > { %v1925_v12 = vrot.slane %v3547_v54, 7  ;;  %1996 = vrot.lane.b32.xlu1 %v3544_v59, %s2590_s10  ;;  %v3556_v13 = vpop.f32.mrb[45].mxu0  ;;  %v1938_v63 = vsel %vm571_vm3, %v1933_v9, 0.0 }
 0x69a   : > { %v1924_v14 = vrot.slane %v3556_v13, 7  ;;  %2000 = vrot.lane.b32.xlu0 %v3556_v13, %s2590_s10 }
 0x69c   : > { %v3561_v0 = vpop.f32.mrb[46].mxu0  ;;  %v1931_v16 = vsel %vm581_vm1, %v1923_v58, %v1924_v14  ;;  %v1930_v17 = vsel %vm581_vm1, %v1924_v14, %v1925_v12 }
 0x69d   : > { %v1927_v18 = vrot.slane %v3561_v0, 7  ;;  %2002 = vrot.lane.b32.xlu1 %v3547_v54, %s2590_s10  ;;  %v3570_v5 = vpop.f32.mrb[47].mxu0  ;;  %v1940_v48 = vsel %vm571_vm3, %v1931_v16, 0.0 }
 0x69e   : > { %v1926_v19 = vrot.slane %v3570_v5, 7  ;;  %2004 = vrot.lane.b32.xlu0 %v3570_v5, %s2590_s10 }
 0x69f   : > { %v1935_v22 = vsel %vm581_vm1, %v1927_v18, %v1920_v6 }
 0x6a0   : > { %v1929_v62 = vsel %vm581_vm1, %v1925_v12, %v1926_v19  ;;  %v1928_v60 = vsel %vm581_vm1, %v1926_v19, %v1927_v18  ;;  %v1936_v1 = vsel %vm571_vm3, %v1935_v22, 0.0 }
 0x6a1   : > { %2006 = vrot.lane.b32.xlu1 %v3561_v0, %s2590_s10  ;;  %v1942_v28 = vsel %vm571_vm3, %v1929_v62, 0.0 }
 0x6a2   : > { %1909 = vrot.lane.b32.xlu0 %v2226_v20, %s2591_s23 }
 0x6a5   : > { %1956 = vrot.lane.b32.xlu1 %v1938_v63, %s2591_s23 }
 0x6a6   : > { %1954 = vrot.lane.b32.xlu0 %v1934_v23, %s2591_s23 }
 0x6a9   : > { %1960 = vrot.lane.b32.xlu1 %v1940_v48, %s2591_s23 }
 0x6aa   : > { %1958 = vrot.lane.b32.xlu0 %v1932_v11, %s2591_s23 }
 0x6ad   : > { %1952 = vrot.lane.b32.xlu1 %v1936_v1, %s2591_s23 }
 0x6ae   : > { %1962 = vrot.lane.b32.xlu0 %v1930_v17, %s2591_s23 }
 0x6b1   : > { %1964 = vrot.lane.b32.xlu1 %v1942_v28, %s2591_s23 }
 0x6b2   : > { %1966 = vrot.lane.b32.xlu0 %v1928_v60, %s2591_s23 }
 0x703   : > { %v1995_v10 = vpop.permute.xlu0 %1994 }
 0x704   : > { %v2017_v30 = vrot.slane %v1995_v10, 1 }
 0x707   : > { %v1993_v29 = vpop.permute.xlu0 %1992  ;;  %v1999_v8 = vpop.permute.xlu1 %1998 }
 0x708   : > { %v2016_v15 = vrot.slane %v1993_v29, 1  ;;  %v2019_v35 = vrot.slane %v1999_v8, 1 }
 0x70a   : > { %v2030_v33 = vsel %vm652_vm2, %v2016_v15, %v2017_v30 }
 0x70b   : > { %v1997_v34 = vpop.permute.xlu1 %1996  ;;  %2048 = vrot.lane.b32.xlu1 %v2030_v33, %s2591_s23 }
 0x70c   : > { %v2018_v52 = vrot.slane %v1997_v34, 1  ;;  %v2001_v4 = vpop.permute.xlu0 %2000 }
 0x70d   : > { %v2020_v51 = vrot.slane %v2001_v4, 1 }
 0x70e   : > { %v2028_v55 = vsel %vm652_vm2, %v2018_v52, %v2019_v35  ;;  %v2029_v3 = vsel %vm652_vm2, %v2017_v30, %v2018_v52 }
 0x70f   : > { %v2003_v32 = vpop.permute.xlu1 %2002  ;;  %2052 = vrot.lane.b32.xlu1 %v2028_v55, %s2591_s23  ;;  %v2033_v43 = vsel %vm643_vm4, %v2029_v3, 0.0  ;;  %v2027_v41 = vsel %vm652_vm2, %v2019_v35, %v2020_v51 }
 0x710   : > { %v2021_v40 = vrot.slane %v2003_v32, 1  ;;  %v2005_v21 = vpop.permute.xlu0 %2004  ;;  %2050 = vrot.lane.b32.xlu0 %v2033_v43, %s2591_s23  ;;  %v2035_v46 = vsel %vm643_vm4, %v2027_v41, 0.0 }
 0x711   : > { %v2022_v42 = vrot.slane %v2005_v21, 1 }
 0x712   : > { %v2026_v44 = vsel %vm652_vm2, %v2020_v51, %v2021_v40 }
 0x713   : > { %v2007_v27 = vpop.permute.xlu1 %2006  ;;  %2056 = vrot.lane.b32.xlu1 %v2026_v44, %s2591_s23  ;;  %v2025_v24 = vsel %vm652_vm2, %v2021_v40, %v2022_v42 }
 0x714   : > { %v2023_v7 = vrot.slane %v2007_v27, 1  ;;  %2054 = vrot.lane.b32.xlu0 %v2035_v46, %s2591_s23  ;;  %v2037_v38 = vsel %vm643_vm4, %v2025_v24, 0.0  ;;  %v1910_v56 = vpop.permute.xlu0 %1909 }
 0x715   : > { %v1912_v58 = vadd.f32 %v1910_v56, %v3532_v45  ;;  %v1914_v31 = vadd.f32 %v1910_v56, %v3544_v59  ;;  %v1913_v2 = vadd.f32 %v3527_v39, %v1910_v56  ;;  %v1916_v18 = vadd.f32 %v1910_v56, %v3556_v13 }
 0x716   : > { %v2024_v61 = vsel %vm652_vm2, %v2022_v42, %v2023_v7  ;;  %v2031_v47 = vsel %vm652_vm2, %v2023_v7, %v2016_v15  ;;  %v1915_v45 = vadd.f32 %v3535_v57, %v1910_v56  ;;  %v1918_v39 = vadd.f32 %v1910_v56, %v3570_v5 }
 0x717   : > { %2060 = vrot.lane.b32.xlu1 %v2024_v61, %s2591_s23  ;;  %v2039_v49 = vsel %vm643_vm4, %v2031_v47, 0.0  ;;  %v1957_v36 = vpop.permute.xlu1 %1956  ;;  %v1917_v1 = vadd.f32 %v3547_v54, %v1910_v56  ;;  %v1919_v30 = vadd.f32 %v3561_v0, %v1910_v56 }
 0x718   : > { %2058 = vrot.lane.b32.xlu0 %v2037_v38, %s2591_s23  ;;  %v1955_v50 = vpop.permute.xlu0 %1954  ;;  %v1978_v14 = vadd.f32 %v1957_v36, %v1914_v31 }
 0x719   : > { %v1977_v16 = vadd.f32 %v1955_v50, %v1913_v2 }
 0x71b   : > { %v1961_v25 = vpop.permute.xlu1 %1960 }
 0x71c   : > { %2062 = vrot.lane.b32.xlu0 %v2039_v49, %s2591_s23  ;;  %v1959_v53 = vpop.permute.xlu0 %1958  ;;  %v1980_v59 = vadd.f32 %v1961_v25, %v1916_v18 }
 0x71d   : > { %v1979_v62 = vadd.f32 %v1959_v53, %v1915_v45 }
 0x71f   : > { %v1953_v37 = vpop.permute.xlu1 %1952 }
 0x720   : > { %v1963_v6 = vpop.permute.xlu0 %1962  ;;  %v1976_v9 = vadd.f32 %v1953_v37, %v1912_v58 }
 0x721   : > { %v1981_v57 = vadd.f32 %v1963_v6, %v1917_v1 }
 0x723   : > { %v1965_v23 = vpop.permute.xlu1 %1964 }
 0x724   : > { %v1967_v11 = vpop.permute.xlu0 %1966  ;;  %v1982_v13 = vadd.f32 %v1965_v23, %v1918_v39 }
 0x725   : > { %v1983_v5 = vadd.f32 %v1967_v11, %v1919_v30 }
 0x77d   : > { %v2049_v26 = vpop.permute.xlu1 %2048 }
 0x77e   : > { %v2072_v12 = vadd.f32 %v2049_v26, %v1976_v9 }
 0x780   : > { %2088 = vrot.lane.b32.xlu1 %v2072_v12, %s2592_s25 }
 0x781   : > { %v2053_v17 = vpop.permute.xlu1 %2052 }
 0x782   : > { %v2074_v19 = vadd.f32 %v2053_v17, %v1978_v14  ;;  %v2051_v20 = vpop.permute.xlu0 %2050 }
 0x783   : > { %v2073_v22 = vadd.f32 %v2051_v20, %v1977_v16 }
 0x784   : > { %2092 = vrot.lane.b32.xlu1 %v2074_v19, %s2592_s25 }
 0x785   : > { %v2057_v60 = vpop.permute.xlu1 %2056  ;;  %2090 = vrot.lane.b32.xlu0 %v2073_v22, %s2592_s25 }
 0x786   : > { %v2076_v63 = vadd.f32 %v2057_v60, %v1980_v59  ;;  %v2055_v48 = vpop.permute.xlu0 %2054 }
 0x787   : > { %v2075_v28 = vadd.f32 %v2055_v48, %v1979_v62 }
 0x788   : > { %2096 = vrot.lane.b32.xlu1 %v2076_v63, %s2592_s25 }
 0x789   : > { %v2061_v10 = vpop.permute.xlu1 %2060  ;;  %2094 = vrot.lane.b32.xlu0 %v2075_v28, %s2592_s25 }
 0x78a   : > { %v2078_v29 = vadd.f32 %v2061_v10, %v1982_v13  ;;  %v2059_v8 = vpop.permute.xlu0 %2058 }
 0x78b   : > { %v2077_v15 = vadd.f32 %v2059_v8, %v1981_v57 }
 0x78c   : > { %2100 = vrot.lane.b32.xlu1 %v2078_v29, %s2592_s25 }
 0x78d   : > { %2098 = vrot.lane.b32.xlu0 %v2077_v15, %s2592_s25 }
 0x78e   : > { %v2063_v54 = vpop.permute.xlu0 %2062 }
 0x78f   : > { %v2079_v33 = vadd.f32 %v2063_v54, %v1983_v5 }
 0x791   : > { %2102 = vrot.lane.b32.xlu0 %v2079_v33, %s2592_s25 }
 0x7f2   : > { %v2089_v34 = vpop.permute.xlu1 %2088 }
 0x7f3   : > { %2113 = vst.msk [vmem:[%s395_s28] sm:$0xff] %vm2112_vm6, %v2089_v34 }
 0x7f6   : > { %v2093_v0 = vpop.permute.xlu1 %2092 }
 0x7f7   : > { %2115 = vst.msk [vmem:[%s395_s28 + $0x10] sm:$0xff] %vm2112_vm6, %v2093_v0  ;;  %v2091_v35 = vpop.permute.xlu0 %2090 }
 0x7f8   : > { %2114 = vst.msk [vmem:[%s395_s28 + $0x8] sm:$0xff] %vm2112_vm6, %v2091_v35 }
 0x7fa   : > { %v2097_v52 = vpop.permute.xlu1 %2096 }
 0x7fb   : > { %2117 = vst.msk [vmem:[%s395_s28 + $0x20] sm:$0xff] %vm2112_vm6, %v2097_v52  ;;  %v2095_v4 = vpop.permute.xlu0 %2094 }
 0x7fc   : > { %2116 = vst.msk [vmem:[%s395_s28 + $0x18] sm:$0xff] %vm2112_vm6, %v2095_v4 }
 0x7fe   : > { %v2101_v51 = vpop.permute.xlu1 %2100 }
 0x7ff   : > { %2119 = vst.msk [vmem:[%s395_s28 + $0x30] sm:$0xff] %vm2112_vm6, %v2101_v51  ;;  %v2099_v55 = vpop.permute.xlu0 %2098 }
 0x800   : > { %2118 = vst.msk [vmem:[%s395_s28 + $0x28] sm:$0xff] %vm2112_vm6, %v2099_v55 }
 0x803   : > { %v2103_v3 = vpop.permute.xlu0 %2102 }
 0x804   : > { %2120 = vst.msk [vmem:[%s395_s28 + $0x38] sm:$0xff] %vm2112_vm6, %v2103_v3 }
 0x805 PF: > { %s23_s19 = sadd.s32 1, %s2586_s19  }
 0x806   : > { %p20_p4 = scmp.ge.s32.totalorder %s23_s19, 4  }
 0x808   :  { %22 = sbr.rel (!%p20_p4) target bundleno = 3 (0x3), region = 94 }

// kernel: _lambda_.4
= control target key start
LH: loop header
LB: loop body
LE: loop exit
PB: predicated region body
PF: predicated region fallthrough
CT: control target
= control target key end

     0   :  { %v25_v0 = vlaneseq  ;;  %v3314_v4 = vmov 1966171168   ;;  %vm135_vm0 = vcmask 253952   ;;  %vm1128_vm1 = vcmask 261120   ;;  %s4133_s12 = smov 0   ;;  %s4465_s1 = inlined_call_operand.vmem [shape: f32[3,32,128], index: 1, kind: input, shape index: {}]   ;;  %s4466_s2 = inlined_call_operand.vmem [shape: f32[3,32,128], index: 2, kind: input, shape index: {}]   ;;  %s4467_s4 = inlined_call_operand.vmem [shape: f32[8,16,32], index: 4, kind: output, shape index: {}]   ;;  %s4468_s0 = inlined_call_operand.vmem [shape: f32[8,16,32], index: 0, kind: input, shape index: {}]   ;;  %s4469_s3 = inlined_call_operand.vmem [shape: f32[3,1,128], index: 3, kind: input, shape index: {}]  }
   0x1   :  { %v3358_v1 = vld [vmem:[%s4466_s2] sm:$0xff]  ;;  %v3363_v2 = vld [vmem:[%s4466_s2 + $0x8] sm:$0xff]  ;;  %v3368_v3 = vld [vmem:[%s4466_s2 + $0x10] sm:$0xff]  ;;  %v23_v5 = vunpack.c.l.s4 %v3314_v4 }
   0x2   :  { %v3373_v6 = vld [vmem:[%s4466_s2 + $0x18] sm:$0xff]  ;;  %v1117_v7 = vld [vmem:[%s4465_s1] sm:$0xff]  ;;  %v1118_v8 = vld [vmem:[%s4465_s1 + $0x8] sm:$0xff]  ;;  %v26_v9 = vshrl.u32 %v25_v0, 7 }
   0x3   :  { %v3060_v10 = vpack.c.bf16 %v1118_v8, %v1117_v7  ;;  %v1119_v11 = vld [vmem:[%s4465_s1 + $0x10] sm:$0xff]  ;;  %v1120_v12 = vld [vmem:[%s4465_s1 + $0x18] sm:$0xff]  ;;  %v3390_v13 = vld [vmem:[%s4468_s0] sm:$0xff]  ;;  %v24_v14 = vunpack.c.0.s8 %v23_v5 }
   0x4   :  { %v3064_v15 = vpack.c.bf16 %v1120_v12, %v1119_v11  ;;  %v21_v16 = vcombine.high %v3390_v13, %v3390_v13  ;;  %v3397_v17 = vld [vmem:[%s4468_s0 + $0x10] sm:$0xff]  ;;  %v3402_v18 = vld [vmem:[%s4468_s0 + $0x20] sm:$0xff]  ;;  %v3490_v48 = vld [vmem:[%s4468_s0 + $0x8] sm:$0xff] }
   0x5   :  { %3061 = vmatprep.subr.bf16.mxu0 %v3060_v10  ;;  %3102 = vmatprep.subr.bf16.mxu1 %v3060_v10  ;;  %v3404_v19 = vsub.s32 %v24_v14, %v26_v9  ;;  %v157_v20 = vcombine.high %v3397_v17, %v3397_v17  ;;  %v292_v21 = vcombine.high %v3402_v18, %v3402_v18  ;;  %v3413_v22 = vld [vmem:[%s4468_s0 + $0x30] sm:$0xff]  ;;  %v3418_v23 = vld [vmem:[%s4468_s0 + $0x40] sm:$0xff]  ;;  %v3515_v57 = vld [vmem:[%s4468_s0 + $0x18] sm:$0xff] }
   0x6   :  { %v3423_v24 = vld [vmem:[%s4468_s0 + $0x50] sm:$0xff]  ;;  %3063 = vmatpush3.bf16.msra.mxu0 %v3060_v10  ;;  %3104 = vmatpush3.bf16.msra.mxu1 %v3060_v10  ;;  %v427_v25 = vcombine.high %v3413_v22, %v3413_v22  ;;  %v562_v26 = vcombine.high %v3418_v23, %v3418_v23  ;;  %v3446_v31 = vld [vmem:[%s4468_s0 + $0x60] sm:$0xff]  ;;  %v3529_v62 = vld [vmem:[%s4468_s0 + $0x28] sm:$0xff] }
   0x7   :  { %v697_v27 = vcombine.high %v3423_v24, %v3423_v24  ;;  %3065 = vmatprep.subr.bf16.mxu0 %v3064_v15  ;;  %3103 = vmatprep.subr.bf16.mxu1 %v3064_v15  ;;  %v3433_v28 = vrot.slane %v3390_v13, %v3404_v19  ;;  %v3437_v29 = vrot.slane %v3397_v17, %v3404_v19  ;;  %v3479_v43 = vld [vmem:[%s4468_s0 + $0x70] sm:$0xff]  ;;  %v3555_v11 = vld [vmem:[%s4468_s0 + $0x38] sm:$0xff] }
   0x8   :  { %v3441_v30 = vrot.slane %v3402_v18, %v3404_v19  ;;  %v3450_v32 = vrot.slane %v3413_v22, %v3404_v19  ;;  %v3454_v33 = vrot.slane %v3418_v23, %v3404_v19  ;;  %v3458_v34 = vrot.slane %v3423_v24, %v3404_v19 }
   0x9   :  { %v36_v36 = vcombine.high %v3433_v28, %v3433_v28  ;;  %v44_v37 = vrot.slane %v3433_v28, %v3404_v19  ;;  %v172_v38 = vcombine.high %v3437_v29, %v3437_v29  ;;  %v180_v39 = vrot.slane %v3437_v29, %v3404_v19 }
   0xa   :  { %3067 = vmatpush3.bf16.msra.mxu0 %v3064_v15  ;;  %3105 = vmatpush3.bf16.msra.mxu1 %v3064_v15  ;;  %v307_v40 = vcombine.high %v3441_v30, %v3441_v30  ;;  %v315_v41 = vrot.slane %v3441_v30, %v3404_v19  ;;  %v442_v42 = vcombine.high %v3450_v32, %v3450_v32 }
   0xb   :  { %v66_v44 = vcombine.high %v44_v37, %v44_v37  ;;  %136 = vst.msk [vmem:[#allocation2] sm:$0x1] %vm135_vm0, %v44_v37  ;;  %v202_v45 = vcombine.high %v180_v39, %v180_v39  ;;  %271 = vst.msk [vmem:[#allocation2 + $0x1] sm:$0x1] %vm135_vm0, %v180_v39  ;;  %v450_v46 = vrot.slane %v3450_v32, %v3404_v19  ;;  %v3568_v39 = vld [vmem:[%s4468_s0 + $0x48] sm:$0xff] }
   0xc   :  { %v577_v47 = vcombine.high %v3454_v33, %v3454_v33  ;;  %v337_v49 = vcombine.high %v315_v41, %v315_v41  ;;  %406 = vst.msk [vmem:[#allocation2 + $0x2] sm:$0x1] %vm135_vm0, %v315_v41  ;;  %v585_v50 = vrot.slane %v3454_v33, %v3404_v19  ;;  %v712_v51 = vcombine.high %v3458_v34, %v3458_v34  ;;  %v3573_v41 = vld [vmem:[%s4468_s0 + $0x58] sm:$0xff] }
   0xd   :  { %v720_v52 = vrot.slane %v3458_v34, %v3404_v19  ;;  %v472_v53 = vcombine.high %v450_v46, %v450_v46  ;;  %541 = vst.msk [vmem:[#allocation2 + $0x3] sm:$0x1] %vm135_vm0, %v450_v46  ;;  %v3502_v54 = vrot.slane %v3446_v31, %v3404_v19  ;;  %v3508_v56 = vrot.slane %v3479_v43, %v3404_v19 }
   0xe   :  { %138 = vst.msk [vmem:[#allocation2 + $0x10] sm:$0x1] %vm135_vm0, %v66_v44  ;;  %273 = vst.msk [vmem:[#allocation2 + $0x11] sm:$0x1] %vm135_vm0, %v202_v45  ;;  %v607_v58 = vcombine.high %v585_v50, %v585_v50  ;;  %v3524_v61 = vrot.slane %v3490_v48, %v3404_v19  ;;  %v3550_v10 = vrot.slane %v3515_v57, %v3404_v19 }
   0xf   :  { %676 = vst.msk [vmem:[#allocation2 + $0x4] sm:$0x1] %vm135_vm0, %v585_v50  ;;  %v742_v59 = vcombine.high %v720_v52, %v720_v52  ;;  %811 = vst.msk [vmem:[#allocation2 + $0x5] sm:$0x1] %vm135_vm0, %v720_v52  ;;  %v847_v63 = vcombine.high %v3502_v54, %v3502_v54  ;;  %v855_v0 = vrot.slane %v3502_v54, %v3404_v19 }
  0x10   :  { %408 = vst.msk [vmem:[#allocation2 + $0x12] sm:$0x1] %vm135_vm0, %v337_v49  ;;  %v982_v4 = vcombine.high %v3508_v56, %v3508_v56  ;;  %v990_v5 = vrot.slane %v3508_v56, %v3404_v19  ;;  %543 = vst.msk [vmem:[#allocation2 + $0x13] sm:$0x1] %vm135_vm0, %v472_v53  ;;  %v85_v7 = vcombine.high %v3524_v61, %v3524_v61 }
  0x11   :  { %678 = vst.msk [vmem:[#allocation2 + $0x14] sm:$0x1] %vm135_vm0, %v607_v58  ;;  %813 = vst.msk [vmem:[#allocation2 + $0x15] sm:$0x1] %vm135_vm0, %v742_v59  ;;  %v93_v8 = vrot.slane %v3524_v61, %v3404_v19  ;;  %v877_v12 = vcombine.high %v855_v0, %v855_v0  ;;  %v3563_v37 = vrot.slane %v3529_v62, %v3404_v19 }
  0x12   :  { %946 = vst.msk [vmem:[#allocation2 + $0x6] sm:$0x1] %vm135_vm0, %v855_v0  ;;  %v1012_v14 = vcombine.high %v990_v5, %v990_v5  ;;  %1081 = vst.msk [vmem:[#allocation2 + $0x7] sm:$0x1] %vm135_vm0, %v990_v5  ;;  %v221_v45 = vcombine.high %v3550_v10, %v3550_v10  ;;  %v229_v46 = vrot.slane %v3550_v10, %v3404_v19 }
  0x13   :  { %v115_v44 = vcombine.high %v93_v8, %v93_v8  ;;  %144 = vst.msk [vmem:[#allocation2 + $0x40] sm:$0x1] %vm135_vm0, %v93_v8  ;;  %948 = vst.msk [vmem:[#allocation2 + $0x16] sm:$0x1] %vm135_vm0, %v877_v12  ;;  %v356_v50 = vcombine.high %v3563_v37, %v3563_v37  ;;  %v364_v52 = vrot.slane %v3563_v37, %v3404_v19  ;;  %v3602_v12 = vld [vmem:[%s4468_s0 + $0x68] sm:$0xff] }
  0x14   :  { %1083 = vst.msk [vmem:[#allocation2 + $0x17] sm:$0x1] %vm135_vm0, %v1012_v14  ;;  %v483_v53 = vrot.slane %v3555_v11, %v3404_v19  ;;  %v251_v59 = vcombine.high %v229_v46, %v229_v46  ;;  %279 = vst.msk [vmem:[#allocation2 + $0x41] sm:$0x1] %vm135_vm0, %v229_v46  ;;  %v618_v0 = vrot.slane %v3568_v39, %v3404_v19  ;;  %v3607_v14 = vld [vmem:[%s4468_s0 + $0x78] sm:$0xff] }
  0x15   :  { %v753_v8 = vrot.slane %v3573_v41, %v3404_v19  ;;  %146 = vst.msk [vmem:[#allocation2 + $0x50] sm:$0x1] %vm135_vm0, %v115_v44  ;;  %v386_v37 = vcombine.high %v364_v52, %v364_v52  ;;  %414 = vst.msk [vmem:[#allocation2 + $0x42] sm:$0x1] %vm135_vm0, %v364_v52  ;;  %v888_v44 = vrot.slane %v3602_v12, %v3404_v19 }
  0x16   :  { %v491_v46 = vcombine.high %v483_v53, %v483_v53  ;;  %v499_v5 = vrot.slane %v483_v53, %v3404_v19  ;;  %v626_v49 = vcombine.high %v618_v0, %v618_v0  ;;  %v634_v15 = vrot.slane %v618_v0, %v3404_v19  ;;  %281 = vst.msk [vmem:[#allocation2 + $0x51] sm:$0x1] %vm135_vm0, %v251_v59 }
  0x17   :  { %v761_v9 = vcombine.high %v753_v8, %v753_v8  ;;  %v769_v60 = vrot.slane %v753_v8, %v3404_v19  ;;  %v1023_v53 = vrot.slane %v3607_v14, %v3404_v19  ;;  %416 = vst.msk [vmem:[#allocation2 + $0x52] sm:$0x1] %vm135_vm0, %v386_v37  ;;  %v58_v59 = vrot.slane %v36_v36, %v3404_v19 }
  0x18   :  { %v521_v55 = vcombine.high %v499_v5, %v499_v5  ;;  %549 = vst.msk [vmem:[#allocation2 + $0x43] sm:$0x1] %vm135_vm0, %v499_v5  ;;  %v656_v58 = vcombine.high %v634_v15, %v634_v15  ;;  %684 = vst.msk [vmem:[#allocation2 + $0x44] sm:$0x1] %vm135_vm0, %v634_v15  ;;  %v194_v5 = vrot.slane %v172_v38, %v3404_v19 }
  0x19   :  { %v1101_v0 = vld [vmem:[#allocation2] sm:$0xff]  ;;  %v791_v8 = vcombine.high %v769_v60, %v769_v60  ;;  %819 = vst.msk [vmem:[#allocation2 + $0x45] sm:$0x1] %vm135_vm0, %v769_v60  ;;  %v896_v37 = vcombine.high %v888_v44, %v888_v44  ;;  %v904_v52 = vrot.slane %v888_v44, %v3404_v19  ;;  %v1031_v35 = vcombine.high %v1023_v53, %v1023_v53 }
  0x1a   :  { %2939 = vmatprep.mubr.msk.f32.mxu0 %vm1128_vm1, %v1101_v0  ;;  %v1039_v15 = vrot.slane %v1023_v53, %v3404_v19  ;;  %551 = vst.msk [vmem:[#allocation2 + $0x53] sm:$0x1] %vm135_vm0, %v521_v55  ;;  %686 = vst.msk [vmem:[#allocation2 + $0x54] sm:$0x1] %vm135_vm0, %v656_v58  ;;  %v329_v28 = vrot.slane %v307_v40, %v3404_v19  ;;  %v464_v29 = vrot.slane %v442_v42, %v3404_v19 }
  0x1b   :  { %821 = vst.msk [vmem:[#allocation2 + $0x55] sm:$0x1] %vm135_vm0, %v791_v8  ;;  %137 = vst.msk [vmem:[#allocation2 + $0x8] sm:$0x1] %vm135_vm0, %v58_v59  ;;  %v599_v36 = vrot.slane %v577_v47, %v3404_v19  ;;  %v734_v38 = vrot.slane %v712_v51, %v3404_v19  ;;  %v926_v55 = vcombine.high %v904_v52, %v904_v52  ;;  %v1103_v13 = vld [vmem:[#allocation2 + $0x10] sm:$0xff] }
  0x1c   :  { %272 = vst.msk [vmem:[#allocation2 + $0x9] sm:$0x1] %vm135_vm0, %v194_v5  ;;  %954 = vst.msk [vmem:[#allocation2 + $0x46] sm:$0x1] %vm135_vm0, %v904_v52  ;;  %v1061_v30 = vcombine.high %v1039_v15, %v1039_v15  ;;  %v869_v32 = vrot.slane %v847_v63, %v3404_v19  ;;  %v1004_v33 = vrot.slane %v982_v4, %v3404_v19 }
  0x1d   :  { %1089 = vst.msk [vmem:[#allocation2 + $0x47] sm:$0x1] %vm135_vm0, %v1039_v15  ;;  %407 = vst.msk [vmem:[#allocation2 + $0xa] sm:$0x1] %vm135_vm0, %v329_v28  ;;  %v107_v34 = vrot.slane %v85_v7, %v3404_v19  ;;  %v243_v40 = vrot.slane %v221_v45, %v3404_v19  ;;  %v378_v42 = vrot.slane %v356_v50, %v3404_v19 }
  0x1e   :  { %542 = vst.msk [vmem:[#allocation2 + $0xb] sm:$0x1] %vm135_vm0, %v464_v29  ;;  %677 = vst.msk [vmem:[#allocation2 + $0xc] sm:$0x1] %vm135_vm0, %v599_v36  ;;  %v513_v47 = vrot.slane %v491_v46, %v3404_v19  ;;  %v648_v51 = vrot.slane %v626_v49, %v3404_v19  ;;  %v783_v54 = vrot.slane %v761_v9, %v3404_v19 }
  0x1f   :  { %812 = vst.msk [vmem:[#allocation2 + $0xd] sm:$0x1] %vm135_vm0, %v734_v38  ;;  %956 = vst.msk [vmem:[#allocation2 + $0x56] sm:$0x1] %vm135_vm0, %v926_v55  ;;  %v918_v56 = vrot.slane %v896_v37, %v3404_v19  ;;  %v1053_v60 = vrot.slane %v1031_v35, %v3404_v19  ;;  %v68_v61 = vcombine.high %v58_v59, %v58_v59 }
  0x20   :  { %1091 = vst.msk [vmem:[#allocation2 + $0x57] sm:$0x1] %vm135_vm0, %v1061_v30  ;;  %947 = vst.msk [vmem:[#allocation2 + $0xe] sm:$0x1] %vm135_vm0, %v869_v32  ;;  %v204_v63 = vcombine.high %v194_v5, %v194_v5  ;;  %v339_v4 = vcombine.high %v329_v28, %v329_v28  ;;  %v474_v7 = vcombine.high %v464_v29, %v464_v29 }
  0x21   :  { %1082 = vst.msk [vmem:[#allocation2 + $0xf] sm:$0x1] %vm135_vm0, %v1004_v33  ;;  %145 = vst.msk [vmem:[#allocation2 + $0x48] sm:$0x1] %vm135_vm0, %v107_v34  ;;  %v609_v35 = vcombine.high %v599_v36, %v599_v36  ;;  %v744_v9 = vcombine.high %v734_v38, %v734_v38  ;;  %v879_v10 = vcombine.high %v869_v32, %v869_v32 }
  0x22   :  { %280 = vst.msk [vmem:[#allocation2 + $0x49] sm:$0x1] %vm135_vm0, %v243_v40  ;;  %415 = vst.msk [vmem:[#allocation2 + $0x4a] sm:$0x1] %vm135_vm0, %v378_v42  ;;  %v1014_v45 = vcombine.high %v1004_v33, %v1004_v33  ;;  %v117_v49 = vcombine.high %v107_v34, %v107_v34  ;;  %v253_v50 = vcombine.high %v243_v40, %v243_v40 }
  0x23   :  { %550 = vst.msk [vmem:[#allocation2 + $0x4b] sm:$0x1] %vm135_vm0, %v513_v47  ;;  %685 = vst.msk [vmem:[#allocation2 + $0x4c] sm:$0x1] %vm135_vm0, %v648_v51  ;;  %v388_v58 = vcombine.high %v378_v42, %v378_v42  ;;  %v523_v46 = vcombine.high %v513_v47, %v513_v47  ;;  %v658_v44 = vcombine.high %v648_v51, %v648_v51 }
  0x24   :  { %820 = vst.msk [vmem:[#allocation2 + $0x4d] sm:$0x1] %vm135_vm0, %v783_v54  ;;  %955 = vst.msk [vmem:[#allocation2 + $0x4e] sm:$0x1] %vm135_vm0, %v918_v56  ;;  %v793_v52 = vcombine.high %v783_v54, %v783_v54  ;;  %v928_v53 = vcombine.high %v918_v56, %v918_v56  ;;  %v1063_v0 = vcombine.high %v1053_v60, %v1053_v60  ;;  %v1109_v8 = vld [vmem:[#allocation2 + $0x40] sm:$0xff] }
  0x25   :  { %1090 = vst.msk [vmem:[#allocation2 + $0x4f] sm:$0x1] %vm135_vm0, %v1053_v60  ;;  %139 = vst.msk [vmem:[#allocation2 + $0x18] sm:$0x1] %vm135_vm0, %v68_v61  ;;  %v3715_v59 = vrot.slane %v21_v16, %v3404_v19  ;;  %v3721_v5 = vrot.slane %v157_v20, %v3404_v19  ;;  %v3727_v37 = vrot.slane %v292_v21, %v3404_v19  ;;  %2951 = vmatprep.mubr.msk.f32.mxu1 %vm1128_vm1, %v1109_v8 }
  0x26   :  { %274 = vst.msk [vmem:[#allocation2 + $0x19] sm:$0x1] %vm135_vm0, %v204_v63  ;;  %409 = vst.msk [vmem:[#allocation2 + $0x1a] sm:$0x1] %vm135_vm0, %v339_v4  ;;  %v3733_v15 = vrot.slane %v427_v25, %v3404_v19  ;;  %v3744_v16 = vrot.slane %v562_v26, %v3404_v19  ;;  %v3750_v17 = vrot.slane %v697_v27, %v3404_v19 }
  0x27   :  { %544 = vst.msk [vmem:[#allocation2 + $0x1b] sm:$0x1] %vm135_vm0, %v474_v7  ;;  %679 = vst.msk [vmem:[#allocation2 + $0x1c] sm:$0x1] %vm135_vm0, %v609_v35  ;;  %v4470_v18 = vcombine.high %v3446_v31, %v3446_v31  ;;  %v4471_v21 = vcombine.high %v3479_v43, %v3479_v43  ;;  %v3766_v25 = vrot.slane %v3715_v59, %v3404_v19  ;;  %v1111_v31 = vld [vmem:[#allocation2 + $0x50] sm:$0xff] }
  0x28   :  { %814 = vst.msk [vmem:[#allocation2 + $0x1d] sm:$0x1] %vm135_vm0, %v744_v9  ;;  %949 = vst.msk [vmem:[#allocation2 + $0x1e] sm:$0x1] %vm135_vm0, %v879_v10  ;;  %v1102_v23 = vld [vmem:[#allocation2 + $0x8] sm:$0xff]  ;;  %v3770_v24 = vrot.slane %v3721_v5, %v3404_v19  ;;  %v3774_v26 = vrot.slane %v3727_v37, %v3404_v19  ;;  %v3778_v27 = vrot.slane %v3733_v15, %v3404_v19 }
  0x29   :  { %1084 = vst.msk [vmem:[#allocation2 + $0x1f] sm:$0x1] %vm135_vm0, %v1014_v45  ;;  %147 = vst.msk [vmem:[#allocation2 + $0x58] sm:$0x1] %vm135_vm0, %v117_v49  ;;  %v3756_v20 = vrot.slane %v4470_v18, %v3404_v19  ;;  %v3762_v22 = vrot.slane %v4471_v21, %v3404_v19  ;;  %2940 = vmatmul.mubr.msk.f32.vlgmr.msra.gmra.mrb[0].mxu0 %vm1128_vm1, %v1102_v23  ;;  %v3783_v43 = vrot.slane %v3744_v16, %v3404_v19 }
  0x2a   :  { %282 = vst.msk [vmem:[#allocation2 + $0x59] sm:$0x1] %vm135_vm0, %v253_v50  ;;  %417 = vst.msk [vmem:[#allocation2 + $0x5a] sm:$0x1] %vm135_vm0, %v388_v58  ;;  %v3787_v28 = vrot.slane %v3750_v17, %v3404_v19  ;;  %2942 = vmatprep.mubr.msk.f32.mxu0 %vm1128_vm1, %v1103_v13  ;;  %v4472_v55 = vcombine.high %v3490_v48, %v3490_v48  ;;  %v4473_v32 = vcombine.high %v3515_v57, %v3515_v57 }
  0x2b   :  { %552 = vst.msk [vmem:[#allocation2 + $0x5b] sm:$0x1] %vm135_vm0, %v523_v46  ;;  %687 = vst.msk [vmem:[#allocation2 + $0x5c] sm:$0x1] %vm135_vm0, %v658_v44  ;;  %v3791_v29 = vrot.slane %v3756_v20, %v3404_v19  ;;  %v3795_v36 = vrot.slane %v3762_v22, %v3404_v19  ;;  %v4474_v34 = vcombine.high %v3529_v62, %v3529_v62 }
  0x2c   :  { %822 = vst.msk [vmem:[#allocation2 + $0x5d] sm:$0x1] %vm135_vm0, %v793_v52  ;;  %957 = vst.msk [vmem:[#allocation2 + $0x5e] sm:$0x1] %vm135_vm0, %v928_v53  ;;  %v1110_v38 = vld [vmem:[#allocation2 + $0x48] sm:$0xff]  ;;  %v3810_v30 = vrot.slane %v4472_v55, %v3404_v19  ;;  %v3816_v33 = vrot.slane %v4473_v32, %v3404_v19  ;;  %v4475_v42 = vcombine.high %v3555_v11, %v3555_v11 }
  0x2d   :  { %1092 = vst.msk [vmem:[#allocation2 + $0x5f] sm:$0x1] %vm135_vm0, %v1063_v0  ;;  %140 = vst.msk [vmem:[#allocation2 + $0x20] sm:$0x1] %vm135_vm0, %v3766_v25  ;;  %v3822_v40 = vrot.slane %v4474_v34, %v3404_v19  ;;  %2952 = vmatmul.mubr.msk.f32.vlgmr.msra.gmra.mrb[0].mxu1 %vm1128_vm1, %v1110_v38  ;;  %v4476_v48 = vcombine.high %v3568_v39, %v3568_v39  ;;  %v4477_v62 = vcombine.high %v3573_v41, %v3573_v41 }
  0x2e   :  { %275 = vst.msk [vmem:[#allocation2 + $0x21] sm:$0x1] %vm135_vm0, %v3770_v24  ;;  %410 = vst.msk [vmem:[#allocation2 + $0x22] sm:$0x1] %vm135_vm0, %v3774_v26  ;;  %v3828_v47 = vrot.slane %v4475_v42, %v3404_v19  ;;  %v4478_v51 = vcombine.high %v3602_v12, %v3602_v12  ;;  %v4479_v56 = vcombine.high %v3607_v14, %v3607_v14  ;;  %2954 = vmatprep.mubr.msk.f32.mxu1 %vm1128_vm1, %v1111_v31 }
  0x2f   :  { %545 = vst.msk [vmem:[#allocation2 + $0x23] sm:$0x1] %vm135_vm0, %v3778_v27  ;;  %680 = vst.msk [vmem:[#allocation2 + $0x24] sm:$0x1] %vm135_vm0, %v3783_v43  ;;  %v3843_v57 = vrot.slane %v4476_v48, %v3404_v19  ;;  %v3849_v11 = vrot.slane %v4477_v62, %v3404_v19  ;;  %v3866_v41 = vrot.slane %v3810_v30, %v3404_v19 }
  0x30   :  { %815 = vst.msk [vmem:[#allocation2 + $0x25] sm:$0x1] %vm135_vm0, %v3787_v28  ;;  %950 = vst.msk [vmem:[#allocation2 + $0x26] sm:$0x1] %vm135_vm0, %v3791_v29  ;;  %v3855_v54 = vrot.slane %v4478_v51, %v3404_v19  ;;  %v3861_v60 = vrot.slane %v4479_v56, %v3404_v19  ;;  %v1104_v39 = vld [vmem:[#allocation2 + $0x18] sm:$0xff]  ;;  %v3870_v61 = vrot.slane %v3816_v33, %v3404_v19 }
  0x31   :  { %1085 = vst.msk [vmem:[#allocation2 + $0x27] sm:$0x1] %vm135_vm0, %v3795_v36  ;;  %v3874_v12 = vrot.slane %v3822_v40, %v3404_v19  ;;  %v3878_v14 = vrot.slane %v3828_v47, %v3404_v19  ;;  %2943 = vmatmul.mubr.msk.f32.gmra.mrb[2].mxu0 %vm1128_vm1, %v1104_v39  ;;  %v3883_v63 = vrot.slane %v3843_v57, %v3404_v19  ;;  %148 = vst.msk [vmem:[#allocation2 + $0x60] sm:$0x1] %vm135_vm0, %v3866_v41 }
  0x32   :  { %v3887_v4 = vrot.slane %v3849_v11, %v3404_v19  ;;  %v3891_v7 = vrot.slane %v3855_v54, %v3404_v19  ;;  %v3895_v35 = vrot.slane %v3861_v60, %v3404_v19  ;;  %283 = vst.msk [vmem:[#allocation2 + $0x61] sm:$0x1] %vm135_vm0, %v3870_v61  ;;  %v37_v10 = vcombine.high %v3715_v59, %v3715_v59 }
  0x33   :  { %418 = vst.msk [vmem:[#allocation2 + $0x62] sm:$0x1] %vm135_vm0, %v3874_v12  ;;  %553 = vst.msk [vmem:[#allocation2 + $0x63] sm:$0x1] %vm135_vm0, %v3878_v14  ;;  %v173_v45 = vcombine.high %v3721_v5, %v3721_v5  ;;  %v308_v49 = vcombine.high %v3727_v37, %v3727_v37  ;;  %v443_v50 = vcombine.high %v3733_v15, %v3733_v15 }
  0x34   :  { %v1112_v9 = vld [vmem:[#allocation2 + $0x58] sm:$0xff]  ;;  %688 = vst.msk [vmem:[#allocation2 + $0x64] sm:$0x1] %vm135_vm0, %v3883_v63  ;;  %823 = vst.msk [vmem:[#allocation2 + $0x65] sm:$0x1] %vm135_vm0, %v3887_v4  ;;  %v578_v58 = vcombine.high %v3744_v16, %v3744_v16  ;;  %v713_v46 = vcombine.high %v3750_v17, %v3750_v17  ;;  %v848_v44 = vcombine.high %v3756_v20, %v3756_v20 }
  0x35   :  { %2955 = vmatmul.mubr.msk.f32.gmra.mrb[2].mxu1 %vm1128_vm1, %v1112_v9  ;;  %958 = vst.msk [vmem:[#allocation2 + $0x66] sm:$0x1] %vm135_vm0, %v3891_v7  ;;  %1093 = vst.msk [vmem:[#allocation2 + $0x67] sm:$0x1] %vm135_vm0, %v3895_v35  ;;  %v983_v52 = vcombine.high %v3762_v22, %v3762_v22  ;;  %v3931_v53 = vrot.slane %v37_v10, %v3404_v19  ;;  %v3934_v0 = vrot.slane %v173_v45, %v3404_v19 }
  0x36   :  { %v3937_v8 = vrot.slane %v308_v49, %v3404_v19  ;;  %v3940_v59 = vrot.slane %v443_v50, %v3404_v19  ;;  %v3943_v5 = vrot.slane %v578_v58, %v3404_v19  ;;  %v3946_v37 = vrot.slane %v713_v46, %v3404_v19 }
  0x37   :  { %v3949_v15 = vrot.slane %v848_v44, %v3404_v19  ;;  %v3952_v13 = vrot.slane %v983_v52, %v3404_v19  ;;  %141 = vst.msk [vmem:[#allocation2 + $0x28] sm:$0x1] %vm135_vm0, %v3931_v53  ;;  %276 = vst.msk [vmem:[#allocation2 + $0x29] sm:$0x1] %vm135_vm0, %v3934_v0  ;;  %v86_v17 = vcombine.high %v3810_v30, %v3810_v30 }
  0x38   :  { %v1105_v16 = vld [vmem:[#allocation2 + $0x20] sm:$0xff]  ;;  %411 = vst.msk [vmem:[#allocation2 + $0x2a] sm:$0x1] %vm135_vm0, %v3937_v8  ;;  %546 = vst.msk [vmem:[#allocation2 + $0x2b] sm:$0x1] %vm135_vm0, %v3940_v59  ;;  %v222_v18 = vcombine.high %v3816_v33, %v3816_v33  ;;  %v357_v20 = vcombine.high %v3822_v40, %v3822_v40  ;;  %v492_v21 = vcombine.high %v3828_v47, %v3828_v47 }
  0x39   :  { %2945 = vmatprep.mubr.msk.f32.mxu0 %vm1128_vm1, %v1105_v16  ;;  %681 = vst.msk [vmem:[#allocation2 + $0x2c] sm:$0x1] %vm135_vm0, %v3943_v5  ;;  %816 = vst.msk [vmem:[#allocation2 + $0x2d] sm:$0x1] %vm135_vm0, %v3946_v37  ;;  %v627_v22 = vcombine.high %v3843_v57, %v3843_v57  ;;  %v762_v23 = vcombine.high %v3849_v11, %v3849_v11  ;;  %v897_v31 = vcombine.high %v3855_v54, %v3855_v54 }
  0x3a   :  { %951 = vst.msk [vmem:[#allocation2 + $0x2e] sm:$0x1] %vm135_vm0, %v3949_v15  ;;  %1086 = vst.msk [vmem:[#allocation2 + $0x2f] sm:$0x1] %vm135_vm0, %v3952_v13  ;;  %v1032_v38 = vcombine.high %v3861_v60, %v3861_v60  ;;  %v3988_v55 = vrot.slane %v86_v17, %v3404_v19  ;;  %v3991_v30 = vrot.slane %v222_v18, %v3404_v19 }
  0x3b   :  { %v3994_v32 = vrot.slane %v357_v20, %v3404_v19  ;;  %v3997_v33 = vrot.slane %v492_v21, %v3404_v19  ;;  %v4000_v34 = vrot.slane %v627_v22, %v3404_v19  ;;  %v4003_v40 = vrot.slane %v762_v23, %v3404_v19 }
  0x3c   :  { %v4006_v42 = vrot.slane %v897_v31, %v3404_v19  ;;  %v4009_v47 = vrot.slane %v1032_v38, %v3404_v19  ;;  %v1113_v48 = vld [vmem:[#allocation2 + $0x60] sm:$0xff]  ;;  %149 = vst.msk [vmem:[#allocation2 + $0x68] sm:$0x1] %vm135_vm0, %v3988_v55  ;;  %284 = vst.msk [vmem:[#allocation2 + $0x69] sm:$0x1] %vm135_vm0, %v3991_v30  ;;  %v67_v57 = vcombine.high %v3766_v25, %v3766_v25 }
  0x3d   :  { %419 = vst.msk [vmem:[#allocation2 + $0x6a] sm:$0x1] %vm135_vm0, %v3994_v32  ;;  %554 = vst.msk [vmem:[#allocation2 + $0x6b] sm:$0x1] %vm135_vm0, %v3997_v33  ;;  %v203_v19 = vcombine.high %v3770_v24, %v3770_v24  ;;  %v338_v62 = vcombine.high %v3774_v26, %v3774_v26  ;;  %v473_v11 = vcombine.high %v3778_v27, %v3778_v27  ;;  %2957 = vmatprep.mubr.msk.f32.mxu1 %vm1128_vm1, %v1113_v48 }
  0x3e   :  { %689 = vst.msk [vmem:[#allocation2 + $0x6c] sm:$0x1] %vm135_vm0, %v4000_v34  ;;  %824 = vst.msk [vmem:[#allocation2 + $0x6d] sm:$0x1] %vm135_vm0, %v4003_v40  ;;  %v608_v25 = vcombine.high %v3783_v43, %v3783_v43  ;;  %v743_v24 = vcombine.high %v3787_v28, %v3787_v28  ;;  %v878_v26 = vcombine.high %v3791_v29, %v3791_v29 }
  0x3f   :  { %959 = vst.msk [vmem:[#allocation2 + $0x6e] sm:$0x1] %vm135_vm0, %v4006_v42  ;;  %1094 = vst.msk [vmem:[#allocation2 + $0x6f] sm:$0x1] %vm135_vm0, %v4009_v47  ;;  %v1013_v27 = vcombine.high %v3795_v36, %v3795_v36  ;;  %v116_v43 = vcombine.high %v3866_v41, %v3866_v41  ;;  %v252_v28 = vcombine.high %v3870_v61, %v3870_v61 }
  0x40   :  { %142 = vst.msk [vmem:[#allocation2 + $0x30] sm:$0x1] %vm135_vm0, %v67_v57  ;;  %277 = vst.msk [vmem:[#allocation2 + $0x31] sm:$0x1] %vm135_vm0, %v203_v19  ;;  %v387_v29 = vcombine.high %v3874_v12, %v3874_v12  ;;  %v522_v36 = vcombine.high %v3878_v14, %v3878_v14  ;;  %v657_v51 = vcombine.high %v3883_v63, %v3883_v63 }
  0x41   :  { %412 = vst.msk [vmem:[#allocation2 + $0x32] sm:$0x1] %vm135_vm0, %v338_v62  ;;  %547 = vst.msk [vmem:[#allocation2 + $0x33] sm:$0x1] %vm135_vm0, %v473_v11  ;;  %v792_v54 = vcombine.high %v3887_v4, %v3887_v4  ;;  %v927_v56 = vcombine.high %v3891_v7, %v3891_v7  ;;  %v1062_v60 = vcombine.high %v3895_v35, %v3895_v35  ;;  %v1106_v39 = vld [vmem:[#allocation2 + $0x28] sm:$0xff] }
  0x42   :  { %682 = vst.msk [vmem:[#allocation2 + $0x34] sm:$0x1] %vm135_vm0, %v608_v25  ;;  %817 = vst.msk [vmem:[#allocation2 + $0x35] sm:$0x1] %vm135_vm0, %v743_v24  ;;  %v69_v41 = vcombine.high %v3931_v53, %v3931_v53  ;;  %v205_v61 = vcombine.high %v3934_v0, %v3934_v0  ;;  %v340_v12 = vcombine.high %v3937_v8, %v3937_v8  ;;  %2946 = vmatmul.mubr.msk.f32.gmra.mrb[4].mxu0 %vm1128_vm1, %v1106_v39 }
  0x43   :  { %952 = vst.msk [vmem:[#allocation2 + $0x36] sm:$0x1] %vm135_vm0, %v878_v26  ;;  %1087 = vst.msk [vmem:[#allocation2 + $0x37] sm:$0x1] %vm135_vm0, %v1013_v27  ;;  %v475_v14 = vcombine.high %v3940_v59, %v3940_v59  ;;  %v610_v63 = vcombine.high %v3943_v5, %v3943_v5  ;;  %v745_v4 = vcombine.high %v3946_v37, %v3946_v37  ;;  %v2764_v5 = vld [vmem:[%s4469_s3] ss:$0 sm:$0xff] }
  0x44   :  { %150 = vst.msk [vmem:[#allocation2 + $0x70] sm:$0x1] %vm135_vm0, %v116_v43  ;;  %285 = vst.msk [vmem:[#allocation2 + $0x71] sm:$0x1] %vm135_vm0, %v252_v28  ;;  %v880_v7 = vcombine.high %v3949_v15, %v3949_v15  ;;  %v1015_v35 = vcombine.high %v3952_v13, %v3952_v13  ;;  %v118_v9 = vcombine.high %v3988_v55, %v3988_v55 }
  0x45   :  { %420 = vst.msk [vmem:[#allocation2 + $0x72] sm:$0x1] %vm135_vm0, %v387_v29  ;;  %555 = vst.msk [vmem:[#allocation2 + $0x73] sm:$0x1] %vm135_vm0, %v522_v36  ;;  %v254_v10 = vcombine.high %v3991_v30, %v3991_v30  ;;  %v389_v45 = vcombine.high %v3994_v32, %v3994_v32  ;;  %v524_v49 = vcombine.high %v3997_v33, %v3997_v33  ;;  %v3278_v36 = vmov 0.0  }
  0x46   :  { %690 = vst.msk [vmem:[#allocation2 + $0x74] sm:$0x1] %vm135_vm0, %v657_v51  ;;  %825 = vst.msk [vmem:[#allocation2 + $0x75] sm:$0x1] %vm135_vm0, %v792_v54  ;;  %v659_v50 = vcombine.high %v4000_v34, %v4000_v34  ;;  %v794_v58 = vcombine.high %v4003_v40, %v4003_v40  ;;  %v929_v46 = vcombine.high %v4006_v42, %v4006_v42  ;;  %v1114_v52 = vld [vmem:[#allocation2 + $0x68] sm:$0xff]  ;;  %v3282_v51 = vmov 0.0  }
  0x47   :  { %960 = vst.msk [vmem:[#allocation2 + $0x76] sm:$0x1] %vm135_vm0, %v927_v56  ;;  %1095 = vst.msk [vmem:[#allocation2 + $0x77] sm:$0x1] %vm135_vm0, %v1062_v60  ;;  %v1064_v44 = vcombine.high %v4009_v47, %v4009_v47  ;;  %2958 = vmatmul.mubr.msk.f32.gmra.mrb[4].mxu1 %vm1128_vm1, %v1114_v52 }
  0x48   :  { %143 = vst.msk [vmem:[#allocation2 + $0x38] sm:$0x1] %vm135_vm0, %v69_v41  ;;  %278 = vst.msk [vmem:[#allocation2 + $0x39] sm:$0x1] %vm135_vm0, %v205_v61 }
  0x49   :  { %413 = vst.msk [vmem:[#allocation2 + $0x3a] sm:$0x1] %vm135_vm0, %v340_v12  ;;  %548 = vst.msk [vmem:[#allocation2 + $0x3b] sm:$0x1] %vm135_vm0, %v475_v14 }
  0x4a   :  { %683 = vst.msk [vmem:[#allocation2 + $0x3c] sm:$0x1] %vm135_vm0, %v610_v63  ;;  %818 = vst.msk [vmem:[#allocation2 + $0x3d] sm:$0x1] %vm135_vm0, %v745_v4  ;;  %v1107_v53 = vld [vmem:[#allocation2 + $0x30] sm:$0xff] }
  0x4b   :  { %953 = vst.msk [vmem:[#allocation2 + $0x3e] sm:$0x1] %vm135_vm0, %v880_v7  ;;  %1088 = vst.msk [vmem:[#allocation2 + $0x3f] sm:$0x1] %vm135_vm0, %v1015_v35  ;;  %2948 = vmatprep.mubr.msk.f32.mxu0 %vm1128_vm1, %v1107_v53 }
  0x4c   :  { %151 = vst.msk [vmem:[#allocation2 + $0x78] sm:$0x1] %vm135_vm0, %v118_v9  ;;  %286 = vst.msk [vmem:[#allocation2 + $0x79] sm:$0x1] %vm135_vm0, %v254_v10 }
  0x4d   :  { %421 = vst.msk [vmem:[#allocation2 + $0x7a] sm:$0x1] %vm135_vm0, %v389_v45  ;;  %556 = vst.msk [vmem:[#allocation2 + $0x7b] sm:$0x1] %vm135_vm0, %v524_v49 }
  0x4e   :  { %691 = vst.msk [vmem:[#allocation2 + $0x7c] sm:$0x1] %vm135_vm0, %v659_v50  ;;  %826 = vst.msk [vmem:[#allocation2 + $0x7d] sm:$0x1] %vm135_vm0, %v794_v58  ;;  %v1115_v0 = vld [vmem:[#allocation2 + $0x70] sm:$0xff] }
  0x4f   :  { %961 = vst.msk [vmem:[#allocation2 + $0x7e] sm:$0x1] %vm135_vm0, %v929_v46  ;;  %1096 = vst.msk [vmem:[#allocation2 + $0x7f] sm:$0x1] %vm135_vm0, %v1064_v44  ;;  %2960 = vmatprep.mubr.msk.f32.mxu1 %vm1128_vm1, %v1115_v0 }
  0x52   :  { %v1108_v8 = vld [vmem:[#allocation2 + $0x38] sm:$0xff] }
  0x53   :  { %2949 = vmatmul.mubr.msk.f32.gmra.mrb[6].mxu0 %vm1128_vm1, %v1108_v8 }
  0x56   :  { %v1116_v59 = vld [vmem:[#allocation2 + $0x78] sm:$0xff] }
  0x57   :  { %2961 = vmatmul.mubr.msk.f32.gmra.mrb[6].mxu1 %vm1128_vm1, %v1116_v59 }
  0xfc   :  { %v2941_v37 = vpop.f32.mrb[0].mxu0 }
  0xfd   :  { %v1249_v15 = vadd.f32 %v2941_v37, %v2764_v5  ;;  %v1243_v13 = vpop.f32.mrb[1].mxu0 }
  0xfe   :  { %v1244_v17 = vadd.f32 %v2764_v5, %v1243_v13 }
  0xff   :  { %1323 = vst [vmem:[#allocation3 + $0x8] sm:$0xff] %v1249_v15 }
 0x100   :  { %v2953_v16 = vpop.f32.mrb[0].mxu1  ;;  %1322 = vst [vmem:[#allocation3] sm:$0xff] %v1244_v17 }
 0x101   :  { %v1289_v18 = vadd.f32 %v2953_v16, %v2764_v5  ;;  %v1283_v20 = vpop.f32.mrb[1].mxu1 }
 0x102   :  { %v1284_v21 = vadd.f32 %v2764_v5, %v1283_v20 }
 0x103   :  { %1331 = vst [vmem:[#allocation3 + $0x48] sm:$0xff] %v1289_v18 }
 0x104   :  { %v2944_v22 = vpop.f32.mrb[2].mxu0  ;;  %1330 = vst [vmem:[#allocation3 + $0x40] sm:$0xff] %v1284_v21 }
 0x105   :  { %v1259_v23 = vadd.f32 %v2944_v22, %v2764_v5  ;;  %v1253_v31 = vpop.f32.mrb[3].mxu0 }
 0x106   :  { %v1254_v55 = vadd.f32 %v2764_v5, %v1253_v31 }
 0x107   :  { %1325 = vst [vmem:[#allocation3 + $0x18] sm:$0xff] %v1259_v23 }
 0x108   :  { %v2956_v38 = vpop.f32.mrb[2].mxu1  ;;  %1324 = vst [vmem:[#allocation3 + $0x10] sm:$0xff] %v1254_v55 }
 0x109   :  { %v1299_v30 = vadd.f32 %v2956_v38, %v2764_v5  ;;  %v1293_v32 = vpop.f32.mrb[3].mxu1 }
 0x10a   :  { %v1294_v33 = vadd.f32 %v2764_v5, %v1293_v32 }
 0x10b   :  { %1333 = vst [vmem:[#allocation3 + $0x58] sm:$0xff] %v1299_v30 }
 0x10c   :  { %1332 = vst [vmem:[#allocation3 + $0x50] sm:$0xff] %v1294_v33 }
 0x115   :  { %v2947_v34 = vpop.f32.mrb[4].mxu0 }
 0x116   :  { %v1269_v40 = vadd.f32 %v2947_v34, %v2764_v5  ;;  %v1263_v42 = vpop.f32.mrb[5].mxu0 }
 0x117   :  { %v1264_v47 = vadd.f32 %v2764_v5, %v1263_v42 }
 0x118   :  { %1327 = vst [vmem:[#allocation3 + $0x28] sm:$0xff] %v1269_v40 }
 0x119   :  { %1326 = vst [vmem:[#allocation3 + $0x20] sm:$0xff] %v1264_v47 }
 0x11a   :  { %v2959_v48 = vpop.f32.mrb[4].mxu1 }
 0x11b   :  { %v1309_v57 = vadd.f32 %v2959_v48, %v2764_v5  ;;  %v1303_v19 = vpop.f32.mrb[5].mxu1 }
 0x11c   :  { %v1304_v62 = vadd.f32 %v2764_v5, %v1303_v19 }
 0x11d   :  { %1335 = vst [vmem:[#allocation3 + $0x68] sm:$0xff] %v1309_v57 }
 0x11e   :  { %1334 = vst [vmem:[#allocation3 + $0x60] sm:$0xff] %v1304_v62 }
 0x126   :  { %v2950_v11 = vpop.f32.mrb[6].mxu0 }
 0x127   :  { %v1279_v25 = vadd.f32 %v2950_v11, %v2764_v5  ;;  %v1273_v24 = vpop.f32.mrb[7].mxu0 }
 0x128   :  { %v1274_v27 = vadd.f32 %v2764_v5, %v1273_v24 }
 0x129   :  { %1329 = vst [vmem:[#allocation3 + $0x38] sm:$0xff] %v1279_v25 }
 0x12a   :  { %v2962_v26 = vpop.f32.mrb[6].mxu1  ;;  %1328 = vst [vmem:[#allocation3 + $0x30] sm:$0xff] %v1274_v27 }
 0x12b   :  { %v1319_v43 = vadd.f32 %v2962_v26, %v2764_v5  ;;  %v1313_v28 = vpop.f32.mrb[7].mxu1 }
 0x12c   :  { %v1314_v29 = vadd.f32 %v2764_v5, %v1313_v28 }
 0x12d   :  { %1337 = vst [vmem:[#allocation3 + $0x78] sm:$0xff] %v1319_v43 }
 0x12e   :  { %1336 = vst [vmem:[#allocation3 + $0x70] sm:$0xff] %v1314_v29 }
 0x12f LB: > { %v3069_v54 = vpack.c.bf16 %v3363_v2, %v3358_v1  ;;  %v3315_v56 = vmov 0.0|0.0   ;;  %s3316_s13 = smov 32   ;;  %v3072_v60 = vpack.c.bf16 %v3373_v6, %v3368_v3  ;;  %vm3317_vm2 = vmmov 0   ;;  %s2781_s14 = sshll.u32 %s3288_s12, 3  ;;  %s3288_s12 = sphi %s4133_s12, %s1343_s12   ;;  %v3284_v51 = vphi %v3282_v51, %v1448_v51   ;;  %v3280_v36 = vphi %v3278_v36, %v1442_v36  }
 0x130   : > { %3068 = vmatprep.subr.bf16.mxu0 %v3315_v56  ;;  %1350 = vrot.lane.b32.xlu0 %v3284_v51, %s3316_s13  ;;  %v3318_v39 = vmov 0.0   ;;  %s1347_s15 = scalar_lea.vmem [#allocation3], %s2781_s14  ;;  %s3319_s16 = smov 64  }
 0x131   : > { %3070 = vmatpush3.bf16.msra.mxu0 %v3069_v54  ;;  %2971 = vmatprep.mubr.msk.f32.mxu0 %vm3317_vm2, %v3318_v39  ;;  %s1453_s17 = scalar_lea.vmem [#allocation2], %s2781_s14  ;;  %s1343_s12 = sadd.s32 1, %s3288_s12  }
 0x132   : > { %3071 = vmatprep.subr.bf16.mxu0 %v3315_v56  ;;  %p1340_p0 = scmp.ge.s32.totalorder %s1343_s12, 16  }
 0x133   :  { %v4154_v53 = vld [vmem:[%s4466_s2 + $0x20] sm:$0xff] (%p1340_p0)  ;;  %v4159_v0 = vld [vmem:[%s4466_s2 + $0x28] sm:$0xff] (%p1340_p0)  ;;  %v4164_v8 = vld [vmem:[%s4466_s2 + $0x30] sm:$0xff] (%p1340_p0)  ;;  %s4202_s10 = smov (%p1340_p0), 0  }
 0x134   :  { %v4169_v59 = vld [vmem:[%s4466_s2 + $0x38] sm:$0xff] (%p1340_p0)  ;;  %v2788_v1 = vld [vmem:[%s4465_s1 + $0x20] sm:$0xff] (%p1340_p0)  ;;  %v2789_v2 = vld [vmem:[%s4465_s1 + $0x28] sm:$0xff] (%p1340_p0) }
 0x135   : > { %3073 = vmatpush3.bf16.msra.mxu0 %v3072_v60  ;;  %v1348_v61 = vld [vmem:[%s1347_s15] sm:$0xff]  ;;  %v3074_v3 = vpack.c.bf16 (%p1340_p0), %v2789_v2, %v2788_v1  ;;  %v2790_v6 = vld [vmem:[%s4465_s1 + $0x30] sm:$0xff] (%p1340_p0)  ;;  %v2791_v5 = vld [vmem:[%s4465_s1 + $0x38] sm:$0xff] (%p1340_p0) }
 0x136   :  { %v3078_v15 = vpack.c.bf16 (%p1340_p0), %v2791_v5, %v2790_v6  ;;  %v2793_v40 = vld [vmem:[%s4469_s3 + $0x1] ss:$0 sm:$0xff] (%p1340_p0) }
 0x137   :  { %3075 = vmatprep.subr.bf16.mxu0 (%p1340_p0), %v3074_v3  ;;  %3106 = vmatprep.subr.bf16.mxu1 (%p1340_p0), %v3074_v3 }
 0x138   :  { %3108 = vmatpush3.bf16.msra.mxu1 (%p1340_p0), %v3074_v3 }
 0x139   :  { %3107 = vmatprep.subr.bf16.mxu1 (%p1340_p0), %v3078_v15 }
 0x13c   :  { %3109 = vmatpush3.bf16.msra.mxu1 (%p1340_p0), %v3078_v15 }
 0x1a2   : > { %v1351_v41 = vpop.permute.xlu0 %1350 }
 0x1a3   : > { %2972 = vmatmul.mubr.msk.f32.vlgmr.msra.gmra.mrb[0].mxu0 %vm1128_vm1, %v1351_v41 }
 0x1a4   :  { %3077 = vmatpush3.bf16.msra.mxu0 (%p1340_p0), %v3074_v3 }
 0x1a5   :  { %3079 = vmatprep.subr.bf16.mxu0 (%p1340_p0), %v3078_v15 }
 0x1a8   :  { %3081 = vmatpush3.bf16.msra.mxu0 (%p1340_p0), %v3078_v15 }
 0x276   : > { %v1420_v12 = vpop.f32.mrb[0].mxu0 }
 0x277   : > { %v1424_v14 = vadd.f32 %v1420_v12, %v1348_v61  ;;  %v2973_v63 = vpop.f32.mrb[1].mxu0 }
 0x279   : > { %3218 = vtanh.f32 %v1424_v14  ;;  %v2783_v7 = vmul.f32 -1.442695, %v1424_v14 }
 0x27b   : > { %3220 = vpow2.f32 %v2783_v7 }
 0x283   : > { %v3219_v4 = vpop.eup %3218 }
 0x284   : > { %1434 = vrot.lane.b32.xlu0 %v3219_v4, %s3319_s16 }
 0x285   : > { %v3221_v35 = vpop.eup %3220 }
 0x286   : > { %v1428_v9 = vadd.f32 1.0, %v3221_v35 }
 0x288   : > { %3222 = vrcp.f32 %v1428_v9 }
 0x292   : > { %v3223_v10 = vpop.eup %3222 }
 0x293   : > { %v1432_v50 = vmul.f32 %v3280_v36, %v3223_v10 }
 0x2f6   : > { %v1435_v45 = vpop.permute.xlu0 %1434 }
 0x2f7   : > { %v1437_v49 = vmul.f32 %v3223_v10, %v1435_v45 }
 0x2f9   : > { %1439 = vrot.lane.b32.xlu1 %v1437_v49, %s3316_s13 }
 0x36b   : > { %v1440_v58 = vpop.permute.xlu1 %1439 }
 0x36c   : > { %v1442_v36 = vadd.f32 %v1440_v58, %v1432_v50   ;;  %v3290_v50 = vmov (%p1340_p0), 0.0   ;;  %v3294_v58 = vmov (%p1340_p0), 0.0  }
 0x36e   : > { %3224 = vtanh.f32 %v1442_v36 }
 0x378   : > { %v3225_v46 = vpop.eup %3224 }
 0x379   : > { %1445 = vrot.lane.b32.xlu1 %v3225_v46, %s3319_s16 }
 0x3eb   : > { %v1446_v44 = vpop.permute.xlu1 %1445 }
 0x3ec   : > { %v1448_v51 = vmul.f32 %v3223_v10, %v1446_v44  }
 0x3ee   : > { %1450 = vrot.lane.b32.xlu0 %v1448_v51, %s3316_s13 }
 0x45b   :  { %1342 = sbr.rel (!%p1340_p0) target bundleno = 303 (0x12f), region = 83 }
 0x460   : > { %v1451_v52 = vpop.permute.xlu0 %1450 }
 0x461   : > { %1454 = vst.msk [vmem:[%s1453_s17] sm:$0xff] %vm1128_vm1, %v1451_v52 }
 0x468   :  { %v1460_v37 = vld [vmem:[#allocation2] sm:$0xff]  ;;  %v1461_v16 = vld [vmem:[#allocation2 + $0x8] sm:$0xff]  ;;  %v1462_v18 = vld [vmem:[#allocation2 + $0x10] sm:$0xff] }
 0x469   :  { %2982 = vmatprep.mubr.msk.f32.mxu0 %vm1128_vm1, %v1460_v37  ;;  %v1468_v13 = vld [vmem:[#allocation2 + $0x40] sm:$0xff]  ;;  %v1469_v17 = vld [vmem:[#allocation2 + $0x48] sm:$0xff]  ;;  %v1470_v20 = vld [vmem:[#allocation2 + $0x50] sm:$0xff] }
 0x46a   :  { %2994 = vmatprep.mubr.msk.f32.mxu1 %vm1128_vm1, %v1468_v13  ;;  %2983 = vmatmul.mubr.msk.f32.vlgmr.msra.gmra.mrb[0].mxu0 %vm1128_vm1, %v1461_v16  ;;  %v1463_v21 = vld [vmem:[#allocation2 + $0x18] sm:$0xff]  ;;  %v1464_v23 = vld [vmem:[#allocation2 + $0x20] sm:$0xff]  ;;  %v1465_v38 = vld [vmem:[#allocation2 + $0x28] sm:$0xff] }
 0x46b   :  { %2995 = vmatmul.mubr.msk.f32.vlgmr.msra.gmra.mrb[0].mxu1 %vm1128_vm1, %v1469_v17  ;;  %2985 = vmatprep.mubr.msk.f32.mxu0 %vm1128_vm1, %v1462_v18  ;;  %v1471_v22 = vld [vmem:[#allocation2 + $0x58] sm:$0xff]  ;;  %v1472_v31 = vld [vmem:[#allocation2 + $0x60] sm:$0xff]  ;;  %v1473_v55 = vld [vmem:[#allocation2 + $0x68] sm:$0xff] }
 0x46c   :  { %2997 = vmatprep.mubr.msk.f32.mxu1 %vm1128_vm1, %v1470_v20  ;;  %v1466_v30 = vld [vmem:[#allocation2 + $0x30] sm:$0xff]  ;;  %v1467_v33 = vld [vmem:[#allocation2 + $0x38] sm:$0xff] }
 0x46d   :  { %v1474_v32 = vld [vmem:[#allocation2 + $0x70] sm:$0xff]  ;;  %v1475_v34 = vld [vmem:[#allocation2 + $0x78] sm:$0xff] }
 0x46e   :  { %2986 = vmatmul.mubr.msk.f32.gmra.mrb[2].mxu0 %vm1128_vm1, %v1463_v21 }
 0x46f   :  { %2998 = vmatmul.mubr.msk.f32.gmra.mrb[2].mxu1 %vm1128_vm1, %v1471_v22  ;;  %2988 = vmatprep.mubr.msk.f32.mxu0 %vm1128_vm1, %v1464_v23 }
 0x470   :  { %3000 = vmatprep.mubr.msk.f32.mxu1 %vm1128_vm1, %v1472_v31 }
 0x472   :  { %2989 = vmatmul.mubr.msk.f32.gmra.mrb[4].mxu0 %vm1128_vm1, %v1465_v38 }
 0x473   :  { %3001 = vmatmul.mubr.msk.f32.gmra.mrb[4].mxu1 %vm1128_vm1, %v1473_v55  ;;  %2991 = vmatprep.mubr.msk.f32.mxu0 %vm1128_vm1, %v1466_v30 }
 0x474   :  { %3003 = vmatprep.mubr.msk.f32.mxu1 %vm1128_vm1, %v1474_v32 }
 0x476   :  { %2992 = vmatmul.mubr.msk.f32.gmra.mrb[6].mxu0 %vm1128_vm1, %v1467_v33 }
 0x477   :  { %3004 = vmatmul.mubr.msk.f32.gmra.mrb[6].mxu1 %vm1128_vm1, %v1475_v34 }
 0x53d   :  { %v2984_v42 = vpop.f32.mrb[0].mxu0 }
 0x53e   :  { %v2996_v47 = vpop.f32.mrb[0].mxu1  ;;  %v1609_v48 = vadd.f32 %v2984_v42, %v2793_v40  ;;  %v1603_v19 = vpop.f32.mrb[1].mxu0 }
 0x53f   :  { %v1649_v57 = vadd.f32 %v2996_v47, %v2793_v40  ;;  %v1643_v62 = vpop.f32.mrb[1].mxu1  ;;  %v1604_v11 = vadd.f32 %v2793_v40, %v1603_v19 }
 0x540   :  { %v1644_v25 = vadd.f32 %v2793_v40, %v1643_v62  ;;  %1683 = vst [vmem:[#allocation3 + $0x8] sm:$0xff] %v1609_v48 }
 0x541   :  { %1691 = vst [vmem:[#allocation3 + $0x48] sm:$0xff] %v1649_v57  ;;  %1682 = vst [vmem:[#allocation3] sm:$0xff] %v1604_v11  ;;  %v2987_v24 = vpop.f32.mrb[2].mxu0 }
 0x542   :  { %1690 = vst [vmem:[#allocation3 + $0x40] sm:$0xff] %v1644_v25  ;;  %v2999_v26 = vpop.f32.mrb[2].mxu1  ;;  %v1619_v27 = vadd.f32 %v2987_v24, %v2793_v40  ;;  %v1613_v28 = vpop.f32.mrb[3].mxu0 }
 0x543   :  { %v1659_v43 = vadd.f32 %v2999_v26, %v2793_v40  ;;  %v1653_v29 = vpop.f32.mrb[3].mxu1  ;;  %v1614_v36 = vadd.f32 %v2793_v40, %v1613_v28 }
 0x544   :  { %v1654_v51 = vadd.f32 %v2793_v40, %v1653_v29  ;;  %1685 = vst [vmem:[#allocation3 + $0x18] sm:$0xff] %v1619_v27 }
 0x545   :  { %1693 = vst [vmem:[#allocation3 + $0x58] sm:$0xff] %v1659_v43  ;;  %1684 = vst [vmem:[#allocation3 + $0x10] sm:$0xff] %v1614_v36  ;;  %v2990_v54 = vpop.f32.mrb[4].mxu0 }
 0x546   :  { %1692 = vst [vmem:[#allocation3 + $0x50] sm:$0xff] %v1654_v51  ;;  %v3002_v56 = vpop.f32.mrb[4].mxu1  ;;  %v1629_v60 = vadd.f32 %v2990_v54, %v2793_v40  ;;  %v1623_v41 = vpop.f32.mrb[5].mxu0 }
 0x547   :  { %v1669_v39 = vadd.f32 %v3002_v56, %v2793_v40  ;;  %v1663_v61 = vpop.f32.mrb[5].mxu1  ;;  %v1624_v12 = vadd.f32 %v2793_v40, %v1623_v41 }
 0x548   :  { %v1664_v14 = vadd.f32 %v2793_v40, %v1663_v61  ;;  %1687 = vst [vmem:[#allocation3 + $0x28] sm:$0xff] %v1629_v60 }
 0x549   :  { %1695 = vst [vmem:[#allocation3 + $0x68] sm:$0xff] %v1669_v39  ;;  %1686 = vst [vmem:[#allocation3 + $0x20] sm:$0xff] %v1624_v12  ;;  %v2993_v63 = vpop.f32.mrb[6].mxu0 }
 0x54a   :  { %1694 = vst [vmem:[#allocation3 + $0x60] sm:$0xff] %v1664_v14  ;;  %v3005_v4 = vpop.f32.mrb[6].mxu1  ;;  %v1639_v7 = vadd.f32 %v2993_v63, %v2793_v40  ;;  %v1633_v9 = vpop.f32.mrb[7].mxu0 }
 0x54b   :  { %v1679_v35 = vadd.f32 %v3005_v4, %v2793_v40  ;;  %v1673_v10 = vpop.f32.mrb[7].mxu1  ;;  %v1634_v45 = vadd.f32 %v2793_v40, %v1633_v9 }
 0x54c   :  { %v1674_v49 = vadd.f32 %v2793_v40, %v1673_v10  ;;  %1689 = vst [vmem:[#allocation3 + $0x38] sm:$0xff] %v1639_v7 }
 0x54d   :  { %1697 = vst [vmem:[#allocation3 + $0x78] sm:$0xff] %v1679_v35  ;;  %1688 = vst [vmem:[#allocation3 + $0x30] sm:$0xff] %v1634_v45 }
 0x54e   :  { %1696 = vst [vmem:[#allocation3 + $0x70] sm:$0xff] %v1674_v49 }
 0x54f LB: > { %v3083_v46 = vpack.c.bf16 %v4159_v0, %v4154_v53  ;;  %v3320_v44 = vmov 0.0|0.0   ;;  %s3321_s0 = smov 32   ;;  %v3086_v52 = vpack.c.bf16 %v4169_v59, %v4164_v8  ;;  %vm3322_vm3 = vmmov 0   ;;  %s2810_s11 = sshll.u32 %s3300_s10, 3  ;;  %s3300_s10 = sphi %s4202_s10, %s1703_s10   ;;  %v3296_v58 = vphi %v3294_v58, %v1808_v58   ;;  %v3292_v50 = vphi %v3290_v50, %v1802_v50  }
 0x550   : > { %3082 = vmatprep.subr.bf16.mxu0 %v3320_v44  ;;  %1710 = vrot.lane.b32.xlu0 %v3296_v58, %s3321_s0  ;;  %v3323_v1 = vmov 0.0   ;;  %s1707_s12 = scalar_lea.vmem [#allocation3], %s2810_s11  ;;  %s3324_s13 = smov 64  }
 0x551   : > { %3084 = vmatpush3.bf16.msra.mxu0 %v3083_v46  ;;  %3014 = vmatprep.mubr.msk.f32.mxu0 %vm3322_vm3, %v3323_v1  ;;  %s1813_s14 = scalar_lea.vmem [#allocation2], %s2810_s11  ;;  %s1703_s10 = sadd.s32 1, %s3300_s10  }
 0x552   : > { %3085 = vmatprep.subr.bf16.mxu0 %v3320_v44  ;;  %p1700_p1 = scmp.ge.s32.totalorder %s1703_s10, 16  }
 0x553   :  { %v4223_v30 = vld [vmem:[%s4466_s2 + $0x40] sm:$0xff] (%p1700_p1)  ;;  %v4228_v32 = vld [vmem:[%s4466_s2 + $0x48] sm:$0xff] (%p1700_p1)  ;;  %v4233_v33 = vld [vmem:[%s4466_s2 + $0x50] sm:$0xff] (%p1700_p1) }
 0x554   :  { %v4238_v34 = vld [vmem:[%s4466_s2 + $0x58] sm:$0xff] (%p1700_p1)  ;;  %v2817_v53 = vld [vmem:[%s4465_s1 + $0x40] sm:$0xff] (%p1700_p1)  ;;  %v2818_v0 = vld [vmem:[%s4465_s1 + $0x48] sm:$0xff] (%p1700_p1) }
 0x555   : > { %3087 = vmatpush3.bf16.msra.mxu0 %v3086_v52  ;;  %v1708_v3 = vld [vmem:[%s1707_s12] sm:$0xff]  ;;  %v3088_v8 = vpack.c.bf16 (%p1700_p1), %v2818_v0, %v2817_v53  ;;  %v2819_v59 = vld [vmem:[%s4465_s1 + $0x50] sm:$0xff] (%p1700_p1)  ;;  %v2820_v40 = vld [vmem:[%s4465_s1 + $0x58] sm:$0xff] (%p1700_p1) }
 0x556   :  { %v3092_v47 = vpack.c.bf16 (%p1700_p1), %v2820_v40, %v2819_v59  ;;  %v2822_v56 = vld [vmem:[%s4469_s3 + $0x2] ss:$0 sm:$0xff] (%p1700_p1)  ;;  %s4271_s3 = smov (%p1700_p1), 0  }
 0x557   :  { %3089 = vmatprep.subr.bf16.mxu0 (%p1700_p1), %v3088_v8  ;;  %3110 = vmatprep.subr.bf16.mxu1 (%p1700_p1), %v3088_v8 }
 0x558   :  { %3112 = vmatpush3.bf16.msra.mxu1 (%p1700_p1), %v3088_v8 }
 0x559   :  { %3111 = vmatprep.subr.bf16.mxu1 (%p1700_p1), %v3092_v47 }
 0x55c   :  { %3113 = vmatpush3.bf16.msra.mxu1 (%p1700_p1), %v3092_v47 }
 0x5c2   : > { %v1711_v2 = vpop.permute.xlu0 %1710 }
 0x5c3   : > { %3015 = vmatmul.mubr.msk.f32.vlgmr.msra.gmra.mrb[0].mxu0 %vm1128_vm1, %v1711_v2 }
 0x5c4   :  { %3091 = vmatpush3.bf16.msra.mxu0 (%p1700_p1), %v3088_v8 }
 0x5c5   :  { %3093 = vmatprep.subr.bf16.mxu0 (%p1700_p1), %v3092_v47 }
 0x5c8   :  { %3095 = vmatpush3.bf16.msra.mxu0 (%p1700_p1), %v3092_v47 }
 0x696   : > { %v1780_v6 = vpop.f32.mrb[0].mxu0 }
 0x697   : > { %v1784_v5 = vadd.f32 %v1780_v6, %v1708_v3  ;;  %v3016_v37 = vpop.f32.mrb[1].mxu0 }
 0x699   : > { %3226 = vtanh.f32 %v1784_v5  ;;  %v2812_v13 = vmul.f32 -1.442695, %v1784_v5 }
 0x69b   : > { %3228 = vpow2.f32 %v2812_v13 }
 0x6a3   : > { %v3227_v15 = vpop.eup %3226 }
 0x6a4   : > { %1794 = vrot.lane.b32.xlu0 %v3227_v15, %s3324_s13 }
 0x6a5   : > { %v3229_v16 = vpop.eup %3228 }
 0x6a6   : > { %v1788_v17 = vadd.f32 1.0, %v3229_v16 }
 0x6a8   : > { %3230 = vrcp.f32 %v1788_v17 }
 0x6b2   : > { %v3231_v18 = vpop.eup %3230 }
 0x6b3   : > { %v1792_v22 = vmul.f32 %v3292_v50, %v3231_v18 }
 0x716   : > { %v1795_v20 = vpop.permute.xlu0 %1794 }
 0x717   : > { %v1797_v21 = vmul.f32 %v3231_v18, %v1795_v20 }
 0x719   : > { %1799 = vrot.lane.b32.xlu1 %v1797_v21, %s3321_s0 }
 0x78b   : > { %v1800_v23 = vpop.permute.xlu1 %1799 }
 0x78c   : > { %v1802_v50 = vadd.f32 %v1800_v23, %v1792_v22   ;;  %v3302_v22 = vmov (%p1700_p1), 0.0   ;;  %v3306_v23 = vmov (%p1700_p1), 0.0  }
 0x78e   : > { %3232 = vtanh.f32 %v1802_v50 }
 0x798   : > { %v3233_v31 = vpop.eup %3232 }
 0x799   : > { %1805 = vrot.lane.b32.xlu1 %v3233_v31, %s3324_s13 }
 0x80b   : > { %v1806_v38 = vpop.permute.xlu1 %1805 }
 0x80c   : > { %v1808_v58 = vmul.f32 %v3231_v18, %v1806_v38  }
 0x80e   : > { %1810 = vrot.lane.b32.xlu0 %v1808_v58, %s3321_s0 }
 0x87b   :  { %1702 = sbr.rel (!%p1700_p1) target bundleno = 1359 (0x54f), region = 94 }
 0x880   : > { %v1811_v55 = vpop.permute.xlu0 %1810 }
 0x881   : > { %1814 = vst.msk [vmem:[%s1813_s14] sm:$0xff] %vm1128_vm1, %v1811_v55 }
 0x888   :  { %v1820_v42 = vld [vmem:[#allocation2] sm:$0xff]  ;;  %v1821_v57 = vld [vmem:[#allocation2 + $0x8] sm:$0xff]  ;;  %v1822_v62 = vld [vmem:[#allocation2 + $0x10] sm:$0xff] }
 0x889   :  { %3025 = vmatprep.mubr.msk.f32.mxu0 %vm1128_vm1, %v1820_v42  ;;  %v1828_v48 = vld [vmem:[#allocation2 + $0x40] sm:$0xff]  ;;  %v1829_v19 = vld [vmem:[#allocation2 + $0x48] sm:$0xff]  ;;  %v1830_v11 = vld [vmem:[#allocation2 + $0x50] sm:$0xff] }
 0x88a   :  { %3037 = vmatprep.mubr.msk.f32.mxu1 %vm1128_vm1, %v1828_v48  ;;  %3026 = vmatmul.mubr.msk.f32.vlgmr.msra.gmra.mrb[0].mxu0 %vm1128_vm1, %v1821_v57  ;;  %v1823_v25 = vld [vmem:[#allocation2 + $0x18] sm:$0xff]  ;;  %v1824_v26 = vld [vmem:[#allocation2 + $0x20] sm:$0xff]  ;;  %v1825_v43 = vld [vmem:[#allocation2 + $0x28] sm:$0xff] }
 0x88b   :  { %3038 = vmatmul.mubr.msk.f32.vlgmr.msra.gmra.mrb[0].mxu1 %vm1128_vm1, %v1829_v19  ;;  %3028 = vmatprep.mubr.msk.f32.mxu0 %vm1128_vm1, %v1822_v62  ;;  %v1831_v24 = vld [vmem:[#allocation2 + $0x58] sm:$0xff]  ;;  %v1832_v27 = vld [vmem:[#allocation2 + $0x60] sm:$0xff]  ;;  %v1833_v28 = vld [vmem:[#allocation2 + $0x68] sm:$0xff] }
 0x88c   :  { %3040 = vmatprep.mubr.msk.f32.mxu1 %vm1128_vm1, %v1830_v11  ;;  %v1826_v29 = vld [vmem:[#allocation2 + $0x30] sm:$0xff]  ;;  %v1827_v51 = vld [vmem:[#allocation2 + $0x38] sm:$0xff] }
 0x88d   :  { %v1834_v36 = vld [vmem:[#allocation2 + $0x70] sm:$0xff]  ;;  %v1835_v54 = vld [vmem:[#allocation2 + $0x78] sm:$0xff] }
 0x88e   :  { %3029 = vmatmul.mubr.msk.f32.gmra.mrb[2].mxu0 %vm1128_vm1, %v1823_v25 }
 0x88f   :  { %3041 = vmatmul.mubr.msk.f32.gmra.mrb[2].mxu1 %vm1128_vm1, %v1831_v24  ;;  %3031 = vmatprep.mubr.msk.f32.mxu0 %vm1128_vm1, %v1824_v26 }
 0x890   :  { %3043 = vmatprep.mubr.msk.f32.mxu1 %vm1128_vm1, %v1832_v27 }
 0x892   :  { %3032 = vmatmul.mubr.msk.f32.gmra.mrb[4].mxu0 %vm1128_vm1, %v1825_v43 }
 0x893   :  { %3044 = vmatmul.mubr.msk.f32.gmra.mrb[4].mxu1 %vm1128_vm1, %v1833_v28  ;;  %3034 = vmatprep.mubr.msk.f32.mxu0 %vm1128_vm1, %v1826_v29 }
 0x894   :  { %3046 = vmatprep.mubr.msk.f32.mxu1 %vm1128_vm1, %v1834_v36 }
 0x896   :  { %3035 = vmatmul.mubr.msk.f32.gmra.mrb[6].mxu0 %vm1128_vm1, %v1827_v51 }
 0x897   :  { %3047 = vmatmul.mubr.msk.f32.gmra.mrb[6].mxu1 %vm1128_vm1, %v1835_v54 }
 0x95d   :  { %v3027_v60 = vpop.f32.mrb[0].mxu0 }
 0x95e   :  { %v3039_v39 = vpop.f32.mrb[0].mxu1  ;;  %v1969_v41 = vadd.f32 %v3027_v60, %v2822_v56  ;;  %v1963_v12 = vpop.f32.mrb[1].mxu0 }
 0x95f   :  { %v2009_v61 = vadd.f32 %v3039_v39, %v2822_v56  ;;  %v2003_v14 = vpop.f32.mrb[1].mxu1  ;;  %v1964_v63 = vadd.f32 %v2822_v56, %v1963_v12 }
 0x960   :  { %v2004_v4 = vadd.f32 %v2822_v56, %v2003_v14  ;;  %2043 = vst [vmem:[#allocation3 + $0x8] sm:$0xff] %v1969_v41 }
 0x961   :  { %2051 = vst [vmem:[#allocation3 + $0x48] sm:$0xff] %v2009_v61  ;;  %2042 = vst [vmem:[#allocation3] sm:$0xff] %v1964_v63  ;;  %v3030_v7 = vpop.f32.mrb[2].mxu0 }
 0x962   :  { %2050 = vst [vmem:[#allocation3 + $0x40] sm:$0xff] %v2004_v4  ;;  %v3042_v35 = vpop.f32.mrb[2].mxu1  ;;  %v1979_v9 = vadd.f32 %v3030_v7, %v2822_v56  ;;  %v1973_v45 = vpop.f32.mrb[3].mxu0 }
 0x963   :  { %v2019_v10 = vadd.f32 %v3042_v35, %v2822_v56  ;;  %v2013_v49 = vpop.f32.mrb[3].mxu1  ;;  %v1974_v50 = vadd.f32 %v2822_v56, %v1973_v45 }
 0x964   :  { %v2014_v58 = vadd.f32 %v2822_v56, %v2013_v49  ;;  %2045 = vst [vmem:[#allocation3 + $0x18] sm:$0xff] %v1979_v9 }
 0x965   :  { %2053 = vst [vmem:[#allocation3 + $0x58] sm:$0xff] %v2019_v10  ;;  %2044 = vst [vmem:[#allocation3 + $0x10] sm:$0xff] %v1974_v50  ;;  %v3033_v46 = vpop.f32.mrb[4].mxu0 }
 0x966   :  { %2052 = vst [vmem:[#allocation3 + $0x50] sm:$0xff] %v2014_v58  ;;  %v3045_v44 = vpop.f32.mrb[4].mxu1  ;;  %v1989_v52 = vadd.f32 %v3033_v46, %v2822_v56  ;;  %v1983_v2 = vpop.f32.mrb[5].mxu0 }
 0x967   :  { %v2029_v1 = vadd.f32 %v3045_v44, %v2822_v56  ;;  %v2023_v3 = vpop.f32.mrb[5].mxu1  ;;  %v1984_v6 = vadd.f32 %v2822_v56, %v1983_v2 }
 0x968   :  { %v2024_v5 = vadd.f32 %v2822_v56, %v2023_v3  ;;  %2047 = vst [vmem:[#allocation3 + $0x28] sm:$0xff] %v1989_v52 }
 0x969   :  { %2055 = vst [vmem:[#allocation3 + $0x68] sm:$0xff] %v2029_v1  ;;  %2046 = vst [vmem:[#allocation3 + $0x20] sm:$0xff] %v1984_v6  ;;  %v3036_v37 = vpop.f32.mrb[6].mxu0 }
 0x96a   :  { %2054 = vst [vmem:[#allocation3 + $0x60] sm:$0xff] %v2024_v5  ;;  %v3048_v15 = vpop.f32.mrb[6].mxu1  ;;  %v1999_v13 = vadd.f32 %v3036_v37, %v2822_v56  ;;  %v1993_v17 = vpop.f32.mrb[7].mxu0 }
 0x96b   :  { %v2039_v16 = vadd.f32 %v3048_v15, %v2822_v56  ;;  %v2033_v18 = vpop.f32.mrb[7].mxu1  ;;  %v1994_v20 = vadd.f32 %v2822_v56, %v1993_v17 }
 0x96c   :  { %v2034_v21 = vadd.f32 %v2822_v56, %v2033_v18  ;;  %2049 = vst [vmem:[#allocation3 + $0x38] sm:$0xff] %v1999_v13 }
 0x96d   :  { %2057 = vst [vmem:[#allocation3 + $0x78] sm:$0xff] %v2039_v16  ;;  %2048 = vst [vmem:[#allocation3 + $0x30] sm:$0xff] %v1994_v20 }
 0x96e   :  { %2056 = vst [vmem:[#allocation3 + $0x70] sm:$0xff] %v2034_v21 }
 0x96f LB: > { %v3097_v31 = vpack.c.bf16 %v4228_v32, %v4223_v30  ;;  %v3325_v38 = vmov 0.0|0.0   ;;  %s3326_s5 = smov 32   ;;  %v3100_v55 = vpack.c.bf16 %v4238_v34, %v4233_v33  ;;  %vm3327_vm4 = vmmov 0   ;;  %s2839_s6 = sshll.u32 %s3312_s3, 3  ;;  %s3312_s3 = sphi %s4271_s3, %s2063_s3   ;;  %v3308_v23 = vphi %v3306_v23, %v2168_v23   ;;  %v3304_v22 = vphi %v3302_v22, %v2162_v22  }
 0x970   : > { %3096 = vmatprep.subr.bf16.mxu0 %v3325_v38  ;;  %2070 = vrot.lane.b32.xlu0 %v3308_v23, %s3326_s5  ;;  %v3328_v53 = vmov 0.0   ;;  %s2067_s7 = scalar_lea.vmem [#allocation3], %s2839_s6  ;;  %s3329_s8 = smov 64  }
 0x971   : > { %3098 = vmatpush3.bf16.msra.mxu0 %v3097_v31  ;;  %3057 = vmatprep.mubr.msk.f32.mxu0 %vm3327_vm4, %v3328_v53  ;;  %s2173_s9 = scalar_lea.vmem [#allocation2], %s2839_s6  ;;  %s2063_s3 = sadd.s32 1, %s3312_s3  }
 0x972   : > { %3099 = vmatprep.subr.bf16.mxu0 %v3325_v38  ;;  %p2060_p2 = scmp.ge.s32.totalorder %s2063_s3, 16  }
 0x973   :  { %vm2208_vm5 = vcmask (%p2060_p2), 1041409   ;;  %vm2211_vm6 = vcmask (%p2060_p2), 1042434   ;;  %vm2214_vm7 = vcmask (%p2060_p2), 1043459   ;;  %vm2217_vm8 = vcmask (%p2060_p2), 1044484  }
 0x974   :  { %vm2220_vm9 = vcmask (%p2060_p2), 1045509   ;;  %vm2223_vm10 = vcmask (%p2060_p2), 1046534   ;;  %vm2226_vm11 = vcmask (%p2060_p2), 1047559  }
 0x975   : > { %3101 = vmatpush3.bf16.msra.mxu0 %v3100_v55  ;;  %v2068_v8 = vld [vmem:[%s2067_s7] sm:$0xff] }
 0x9e2   : > { %v2071_v0 = vpop.permute.xlu0 %2070 }
 0x9e3   : > { %3058 = vmatmul.mubr.msk.f32.vlgmr.msra.gmra.mrb[0].mxu0 %vm1128_vm1, %v2071_v0 }
 0xab6   : > { %v2140_v59 = vpop.f32.mrb[0].mxu0 }
 0xab7   : > { %v2144_v40 = vadd.f32 %v2140_v59, %v2068_v8  ;;  %v3059_v42 = vpop.f32.mrb[1].mxu0 }
 0xab9   : > { %3234 = vtanh.f32 %v2144_v40  ;;  %v2841_v48 = vmul.f32 -1.442695, %v2144_v40 }
 0xabb   : > { %3236 = vpow2.f32 %v2841_v48 }
 0xac3   : > { %v3235_v47 = vpop.eup %3234 }
 0xac4   : > { %2154 = vrot.lane.b32.xlu0 %v3235_v47, %s3329_s8 }
 0xac5   : > { %v3237_v57 = vpop.eup %3236 }
 0xac6   : > { %v2148_v19 = vadd.f32 1.0, %v3237_v57 }
 0xac8   : > { %3238 = vrcp.f32 %v2148_v19 }
 0xad2   : > { %v3239_v62 = vpop.eup %3238 }
 0xad3   : > { %v2152_v24 = vmul.f32 %v3304_v22, %v3239_v62 }
 0xb36   : > { %v2155_v11 = vpop.permute.xlu0 %2154 }
 0xb37   : > { %v2157_v25 = vmul.f32 %v3239_v62, %v2155_v11 }
 0xb39   : > { %2159 = vrot.lane.b32.xlu1 %v2157_v25, %s3326_s5 }
 0xbab   : > { %v2160_v26 = vpop.permute.xlu1 %2159 }
 0xbac   : > { %v2162_v22 = vadd.f32 %v2160_v26, %v2152_v24  }
 0xbae   : > { %3240 = vtanh.f32 %v2162_v22 }
 0xbb8   : > { %v3241_v27 = vpop.eup %3240 }
 0xbb9   : > { %2165 = vrot.lane.b32.xlu1 %v3241_v27, %s3329_s8 }
 0xc2b   : > { %v2166_v43 = vpop.permute.xlu1 %2165 }
 0xc2c   : > { %v2168_v23 = vmul.f32 %v3239_v62, %v2166_v43  }
 0xc2e   : > { %2170 = vrot.lane.b32.xlu0 %v2168_v23, %s3326_s5 }
 0xc9b   :  { %2062 = sbr.rel (!%p2060_p2) target bundleno = 2415 (0x96f), region = 105 }
 0xca0   : > { %v2171_v28 = vpop.permute.xlu0 %2170 }
 0xca1   : > { %2174 = vst.msk [vmem:[%s2173_s9] sm:$0xff] %vm1128_vm1, %v2171_v28 }
 0xca8   :  { %v2175_v29 = vld [vmem:[#allocation2] sm:$0x1]  ;;  %v2176_v36 = vld [vmem:[#allocation2 + $0x8] sm:$0x1]  ;;  %v2177_v51 = vld [vmem:[#allocation2 + $0x10] sm:$0x1] }
 0xca9   :  { %v2178_v54 = vld [vmem:[#allocation2 + $0x18] sm:$0x1]  ;;  %v2179_v56 = vld [vmem:[#allocation2 + $0x20] sm:$0x1]  ;;  %v2180_v60 = vld [vmem:[#allocation2 + $0x28] sm:$0x1] }
 0xcaa   :  { %v2181_v39 = vld [vmem:[#allocation2 + $0x30] sm:$0x1]  ;;  %v2207_v41 = vrot.slane %v2176_v36, 7  ;;  %v2182_v61 = vld [vmem:[#allocation2 + $0x38] sm:$0x1]  ;;  %v2210_v12 = vrot.slane %v2177_v51, 6 }
 0xcab   :  { %v2213_v14 = vrot.slane %v2178_v54, 5  ;;  %v2216_v4 = vrot.slane %v2179_v56, 4  ;;  %v2219_v7 = vrot.slane %v2180_v60, 3  ;;  %v2184_v35 = vld [vmem:[#allocation2 + $0x48] sm:$0x1]  ;;  %v2222_v32 = vrot.slane %v2181_v39, 2 }
 0xcac   :  { %v2209_v63 = vsel %vm2208_vm5, %v2207_v41, %v2175_v29  ;;  %v2183_v33 = vld [vmem:[#allocation2 + $0x40] sm:$0x1]  ;;  %v2185_v34 = vld [vmem:[#allocation2 + $0x50] sm:$0x1]  ;;  %v2225_v10 = vrot.slane %v2182_v61, 1  ;;  %v2228_v1 = vrot.slane %v2184_v35, 7 }
 0xcad   :  { %v2212_v30 = vsel %vm2211_vm6, %v2210_v12, %v2209_v63  ;;  %v2186_v45 = vld [vmem:[#allocation2 + $0x58] sm:$0x1]  ;;  %v2187_v49 = vld [vmem:[#allocation2 + $0x60] sm:$0x1]  ;;  %v2188_v58 = vld [vmem:[#allocation2 + $0x68] sm:$0x1] }
 0xcae   :  { %v2215_v9 = vsel %vm2214_vm7, %v2213_v14, %v2212_v30  ;;  %v2189_v46 = vld [vmem:[#allocation2 + $0x70] sm:$0x1]  ;;  %v2190_v44 = vld [vmem:[#allocation2 + $0x78] sm:$0x1]  ;;  %v2230_v2 = vrot.slane %v2185_v34, 6  ;;  %v2232_v3 = vrot.slane %v2186_v45, 5  ;;  %v2229_v18 = vsel %vm2208_vm5, %v2228_v1, %v2183_v33 }
 0xcaf   :  { %v2218_v50 = vsel %vm2217_vm8, %v2216_v4, %v2215_v9  ;;  %v2246_v6 = vld [vmem:[#allocation2 + $0x1] sm:$0x1]  ;;  %v2234_v37 = vrot.slane %v2187_v49, 4  ;;  %v2236_v15 = vrot.slane %v2188_v58, 3  ;;  %v2238_v13 = vrot.slane %v2189_v46, 2 }
 0xcb0   :  { %v2221_v52 = vsel %vm2220_vm9, %v2219_v7, %v2218_v50  ;;  %v2247_v16 = vld [vmem:[#allocation2 + $0x9] sm:$0x1]  ;;  %v2240_v20 = vrot.slane %v2190_v44, 1  ;;  %v2248_v21 = vld [vmem:[#allocation2 + $0x11] sm:$0x1]  ;;  %v2231_v31 = vsel %vm2211_vm6, %v2230_v2, %v2229_v18 }
 0xcb1   :  { %v2224_v5 = vsel %vm2223_vm10, %v2222_v32, %v2221_v52  ;;  %v2249_v22 = vld [vmem:[#allocation2 + $0x19] sm:$0x1]  ;;  %v2278_v23 = vrot.slane %v2247_v16, 7  ;;  %v2250_v38 = vld [vmem:[#allocation2 + $0x21] sm:$0x1]  ;;  %v2233_v0 = vsel %vm2214_vm7, %v2232_v3, %v2231_v31  ;;  %v2280_v40 = vrot.slane %v2248_v21, 6 }
 0xcb2   :  { %v2227_v17 = vsel %vm2226_vm11, %v2225_v10, %v2224_v5  ;;  %v2251_v55 = vld [vmem:[#allocation2 + $0x29] sm:$0x1]  ;;  %v2252_v53 = vld [vmem:[#allocation2 + $0x31] sm:$0x1]  ;;  %v2253_v8 = vld [vmem:[#allocation2 + $0x39] sm:$0x1]  ;;  %v2235_v48 = vsel %vm2217_vm8, %v2234_v37, %v2233_v0 }
 0xcb3   :  { %2244 = vst.msk [vmem:[%s4467_s4] sm:$0xff] %vm1128_vm1, %v2227_v17  ;;  %v2279_v59 = vsel %vm2208_vm5, %v2278_v23, %v2246_v6  ;;  %v2282_v42 = vrot.slane %v2249_v22, 5  ;;  %v2254_v47 = vld [vmem:[#allocation2 + $0x41] sm:$0x1]  ;;  %v2284_v57 = vrot.slane %v2250_v38, 4  ;;  %v2286_v19 = vrot.slane %v2251_v55, 3 }
 0xcb4   :  { %v2288_v62 = vrot.slane %v2252_v53, 2  ;;  %v2255_v11 = vld [vmem:[#allocation2 + $0x49] sm:$0x1]  ;;  %v2237_v25 = vsel %vm2220_vm9, %v2236_v15, %v2235_v48  ;;  %v2281_v24 = vsel %vm2211_vm6, %v2280_v40, %v2279_v59  ;;  %v2290_v26 = vrot.slane %v2253_v8, 1  ;;  %v2256_v27 = vld [vmem:[#allocation2 + $0x51] sm:$0x1] }
 0xcb5   :  { %v2257_v43 = vld [vmem:[#allocation2 + $0x59] sm:$0x1]  ;;  %v2292_v28 = vrot.slane %v2255_v11, 7  ;;  %v2239_v29 = vsel %vm2223_vm10, %v2238_v13, %v2237_v25  ;;  %v2283_v36 = vsel %vm2214_vm7, %v2282_v42, %v2281_v24  ;;  %v2258_v51 = vld [vmem:[#allocation2 + $0x61] sm:$0x1]  ;;  %v2294_v12 = vrot.slane %v2256_v27, 6 }
 0xcb6   :  { %v2259_v54 = vld [vmem:[#allocation2 + $0x69] sm:$0x1]  ;;  %v2260_v56 = vld [vmem:[#allocation2 + $0x71] sm:$0x1]  ;;  %v2241_v60 = vsel %vm2226_vm11, %v2240_v20, %v2239_v29  ;;  %v2285_v39 = vsel %vm2217_vm8, %v2284_v57, %v2283_v36  ;;  %v2261_v41 = vld [vmem:[#allocation2 + $0x79] sm:$0x1] }
 0xcb7   :  { %v2293_v61 = vsel %vm2208_vm5, %v2292_v28, %v2254_v47  ;;  %2245 = vst.msk [vmem:[%s4467_s4 + $0x8] sm:$0xff] %vm1128_vm1, %v2241_v60  ;;  %v2287_v14 = vsel %vm2220_vm9, %v2286_v19, %v2285_v39  ;;  %v2296_v63 = vrot.slane %v2257_v43, 5  ;;  %v2298_v4 = vrot.slane %v2258_v51, 4  ;;  %v2311_v35 = vld [vmem:[#allocation2 + $0x2] sm:$0x1] }
 0xcb8   :  { %v2300_v7 = vrot.slane %v2259_v54, 3  ;;  %v2312_v30 = vld [vmem:[#allocation2 + $0xa] sm:$0x1]  ;;  %v2289_v32 = vsel %vm2223_vm10, %v2288_v62, %v2287_v14  ;;  %v2295_v33 = vsel %vm2211_vm6, %v2294_v12, %v2293_v61  ;;  %v2302_v34 = vrot.slane %v2260_v56, 2  ;;  %v2313_v10 = vld [vmem:[#allocation2 + $0x12] sm:$0x1] }
 0xcb9   :  { %v2304_v9 = vrot.slane %v2261_v41, 1  ;;  %v2314_v45 = vld [vmem:[#allocation2 + $0x1a] sm:$0x1]  ;;  %v2291_v49 = vsel %vm2226_vm11, %v2290_v26, %v2289_v32  ;;  %v2297_v50 = vsel %vm2214_vm7, %v2296_v63, %v2295_v33  ;;  %v2315_v58 = vld [vmem:[#allocation2 + $0x22] sm:$0x1]  ;;  %v2343_v2 = vrot.slane %v2312_v30, 7 }
 0xcba   :  { %v2316_v46 = vld [vmem:[#allocation2 + $0x2a] sm:$0x1]  ;;  %v2317_v44 = vld [vmem:[#allocation2 + $0x32] sm:$0x1]  ;;  %2842 = vst.msk [vmem:[%s4467_s4 + $0x10] sm:$0xff] %vm1128_vm1, %v2291_v49  ;;  %v2299_v52 = vsel %vm2217_vm8, %v2298_v4, %v2297_v50  ;;  %v2345_v3 = vrot.slane %v2313_v10, 6 }
 0xcbb   :  { %v2318_v1 = vld [vmem:[#allocation2 + $0x3a] sm:$0x1]  ;;  %v2347_v6 = vrot.slane %v2314_v45, 5  ;;  %v2301_v5 = vsel %vm2220_vm9, %v2300_v7, %v2299_v52  ;;  %v2349_v37 = vrot.slane %v2315_v58, 4  ;;  %v2351_v15 = vrot.slane %v2316_v46, 3 }
 0xcbc   :  { %v2319_v13 = vld [vmem:[#allocation2 + $0x42] sm:$0x1]  ;;  %v2303_v16 = vsel %vm2223_vm10, %v2302_v34, %v2301_v5  ;;  %v2344_v17 = vsel %vm2208_vm5, %v2343_v2, %v2311_v35  ;;  %v2353_v18 = vrot.slane %v2317_v44, 2  ;;  %v2355_v20 = vrot.slane %v2318_v1, 1  ;;  %v2320_v21 = vld [vmem:[#allocation2 + $0x4a] sm:$0x1] }
 0xcbd   :  { %v2321_v22 = vld [vmem:[#allocation2 + $0x52] sm:$0x1]  ;;  %v2305_v23 = vsel %vm2226_vm11, %v2304_v9, %v2303_v16  ;;  %v2346_v31 = vsel %vm2211_vm6, %v2345_v3, %v2344_v17  ;;  %v2322_v38 = vld [vmem:[#allocation2 + $0x5a] sm:$0x1]  ;;  %v2323_v55 = vld [vmem:[#allocation2 + $0x62] sm:$0x1] }
 0xcbe   :  { %v2324_v53 = vld [vmem:[#allocation2 + $0x6a] sm:$0x1]  ;;  %2843 = vst.msk [vmem:[%s4467_s4 + $0x18] sm:$0xff] %vm1128_vm1, %v2305_v23  ;;  %v2348_v0 = vsel %vm2214_vm7, %v2347_v6, %v2346_v31  ;;  %v2325_v8 = vld [vmem:[#allocation2 + $0x72] sm:$0x1]  ;;  %v2357_v40 = vrot.slane %v2320_v21, 7 }
 0xcbf   :  { %v2326_v59 = vld [vmem:[#allocation2 + $0x7a] sm:$0x1]  ;;  %v2359_v42 = vrot.slane %v2321_v22, 6  ;;  %v2350_v47 = vsel %vm2217_vm8, %v2349_v37, %v2348_v0  ;;  %v2361_v48 = vrot.slane %v2322_v38, 5  ;;  %v2363_v57 = vrot.slane %v2323_v55, 4 }
 0xcc0   :  { %v2365_v19 = vrot.slane %v2324_v53, 3  ;;  %v2376_v62 = vld [vmem:[#allocation2 + $0x3] sm:$0x1]  ;;  %v2352_v11 = vsel %vm2220_vm9, %v2351_v15, %v2350_v47  ;;  %v2358_v25 = vsel %vm2208_vm5, %v2357_v40, %v2319_v13  ;;  %v2367_v24 = vrot.slane %v2325_v8, 2  ;;  %v2377_v27 = vld [vmem:[#allocation2 + $0xb] sm:$0x1] }
 0xcc1   :  { %v2369_v26 = vrot.slane %v2326_v59, 1  ;;  %v2378_v43 = vld [vmem:[#allocation2 + $0x13] sm:$0x1]  ;;  %v2354_v28 = vsel %vm2223_vm10, %v2353_v18, %v2352_v11  ;;  %v2360_v29 = vsel %vm2211_vm6, %v2359_v42, %v2358_v25  ;;  %v2379_v36 = vld [vmem:[#allocation2 + $0x1b] sm:$0x1]  ;;  %v2408_v61 = vrot.slane %v2377_v27, 7 }
 0xcc2   :  { %v2380_v51 = vld [vmem:[#allocation2 + $0x23] sm:$0x1]  ;;  %v2381_v54 = vld [vmem:[#allocation2 + $0x2b] sm:$0x1]  ;;  %v2356_v56 = vsel %vm2226_vm11, %v2355_v20, %v2354_v28  ;;  %v2362_v60 = vsel %vm2214_vm7, %v2361_v48, %v2360_v29  ;;  %v2382_v39 = vld [vmem:[#allocation2 + $0x33] sm:$0x1] }
 0xcc3   :  { %v2383_v41 = vld [vmem:[#allocation2 + $0x3b] sm:$0x1]  ;;  %v2410_v12 = vrot.slane %v2378_v43, 6  ;;  %2844 = vst.msk [vmem:[%s4467_s4 + $0x20] sm:$0xff] %vm1128_vm1, %v2356_v56  ;;  %v2364_v14 = vsel %vm2217_vm8, %v2363_v57, %v2362_v60  ;;  %v2412_v63 = vrot.slane %v2379_v36, 5  ;;  %v2414_v4 = vrot.slane %v2380_v51, 4 }
 0xcc4   :  { %v2416_v7 = vrot.slane %v2381_v54, 3  ;;  %v2384_v35 = vld [vmem:[#allocation2 + $0x43] sm:$0x1]  ;;  %v2366_v30 = vsel %vm2220_vm9, %v2365_v19, %v2364_v14  ;;  %v2409_v32 = vsel %vm2208_vm5, %v2408_v61, %v2376_v62  ;;  %v2418_v33 = vrot.slane %v2382_v39, 2  ;;  %v2385_v9 = vld [vmem:[#allocation2 + $0x4b] sm:$0x1] }
 0xcc5   :  { %v2420_v34 = vrot.slane %v2383_v41, 1  ;;  %v2386_v10 = vld [vmem:[#allocation2 + $0x53] sm:$0x1]  ;;  %v2368_v45 = vsel %vm2223_vm10, %v2367_v24, %v2366_v30  ;;  %v2411_v49 = vsel %vm2211_vm6, %v2410_v12, %v2409_v32  ;;  %v2387_v50 = vld [vmem:[#allocation2 + $0x5b] sm:$0x1]  ;;  %v2422_v3 = vrot.slane %v2385_v9, 7 }
 0xcc6   :  { %v2388_v58 = vld [vmem:[#allocation2 + $0x63] sm:$0x1]  ;;  %v2389_v46 = vld [vmem:[#allocation2 + $0x6b] sm:$0x1]  ;;  %v2370_v44 = vsel %vm2226_vm11, %v2369_v26, %v2368_v45  ;;  %v2413_v52 = vsel %vm2214_vm7, %v2412_v63, %v2411_v49  ;;  %v2390_v1 = vld [vmem:[#allocation2 + $0x73] sm:$0x1] }
 0xcc7   :  { %v2391_v2 = vld [vmem:[#allocation2 + $0x7b] sm:$0x1]  ;;  %v2424_v6 = vrot.slane %v2386_v10, 6  ;;  %2845 = vst.msk [vmem:[%s4467_s4 + $0x28] sm:$0xff] %vm1128_vm1, %v2370_v44  ;;  %v2415_v5 = vsel %vm2217_vm8, %v2414_v4, %v2413_v52  ;;  %v2426_v37 = vrot.slane %v2387_v50, 5  ;;  %v2428_v15 = vrot.slane %v2388_v58, 4 }
 0xcc8   :  { %v2430_v13 = vrot.slane %v2389_v46, 3  ;;  %v2441_v16 = vld [vmem:[#allocation2 + $0x4] sm:$0x1]  ;;  %v2417_v17 = vsel %vm2220_vm9, %v2416_v7, %v2415_v5  ;;  %v2423_v18 = vsel %vm2208_vm5, %v2422_v3, %v2384_v35  ;;  %v2432_v20 = vrot.slane %v2390_v1, 2  ;;  %v2442_v22 = vld [vmem:[#allocation2 + $0xc] sm:$0x1] }
 0xcc9   :  { %v2434_v21 = vrot.slane %v2391_v2, 1  ;;  %v2443_v23 = vld [vmem:[#allocation2 + $0x14] sm:$0x1]  ;;  %v2419_v31 = vsel %vm2223_vm10, %v2418_v33, %v2417_v17  ;;  %v2425_v38 = vsel %vm2211_vm6, %v2424_v6, %v2423_v18  ;;  %v2444_v55 = vld [vmem:[#allocation2 + $0x1c] sm:$0x1]  ;;  %v2473_v47 = vrot.slane %v2442_v22, 7 }
 0xcca   :  { %v2445_v53 = vld [vmem:[#allocation2 + $0x24] sm:$0x1]  ;;  %v2446_v0 = vld [vmem:[#allocation2 + $0x2c] sm:$0x1]  ;;  %v2421_v8 = vsel %vm2226_vm11, %v2420_v34, %v2419_v31  ;;  %v2427_v59 = vsel %vm2214_vm7, %v2426_v37, %v2425_v38  ;;  %v2447_v40 = vld [vmem:[#allocation2 + $0x34] sm:$0x1] }
 0xccb   :  { %v2448_v42 = vld [vmem:[#allocation2 + $0x3c] sm:$0x1]  ;;  %v2475_v48 = vrot.slane %v2443_v23, 6  ;;  %2846 = vst.msk [vmem:[%s4467_s4 + $0x30] sm:$0xff] %vm1128_vm1, %v2421_v8  ;;  %v2429_v57 = vsel %vm2217_vm8, %v2428_v15, %v2427_v59  ;;  %v2477_v19 = vrot.slane %v2444_v55, 5  ;;  %v2479_v62 = vrot.slane %v2445_v53, 4 }
 0xccc   :  { %v2481_v11 = vrot.slane %v2446_v0, 3  ;;  %v2449_v25 = vld [vmem:[#allocation2 + $0x44] sm:$0x1]  ;;  %v2431_v24 = vsel %vm2220_vm9, %v2430_v13, %v2429_v57  ;;  %v2474_v26 = vsel %vm2208_vm5, %v2473_v47, %v2441_v16  ;;  %v2483_v27 = vrot.slane %v2447_v40, 2  ;;  %v2450_v28 = vld [vmem:[#allocation2 + $0x4c] sm:$0x1] }
 0xccd   :  { %v2485_v43 = vrot.slane %v2448_v42, 1  ;;  %v2451_v29 = vld [vmem:[#allocation2 + $0x54] sm:$0x1]  ;;  %v2433_v36 = vsel %vm2223_vm10, %v2432_v20, %v2431_v24  ;;  %v2476_v51 = vsel %vm2211_vm6, %v2475_v48, %v2474_v26  ;;  %v2452_v54 = vld [vmem:[#allocation2 + $0x5c] sm:$0x1]  ;;  %v2487_v14 = vrot.slane %v2450_v28, 7 }
 0xcce   :  { %v2453_v56 = vld [vmem:[#allocation2 + $0x64] sm:$0x1]  ;;  %v2454_v60 = vld [vmem:[#allocation2 + $0x6c] sm:$0x1]  ;;  %v2435_v39 = vsel %vm2226_vm11, %v2434_v21, %v2433_v36  ;;  %v2478_v41 = vsel %vm2214_vm7, %v2477_v19, %v2476_v51  ;;  %v2455_v61 = vld [vmem:[#allocation2 + $0x74] sm:$0x1] }
 0xccf   :  { %v2456_v12 = vld [vmem:[#allocation2 + $0x7c] sm:$0x1]  ;;  %v2489_v63 = vrot.slane %v2451_v29, 6  ;;  %2847 = vst.msk [vmem:[%s4467_s4 + $0x38] sm:$0xff] %vm1128_vm1, %v2435_v39  ;;  %v2480_v4 = vsel %vm2217_vm8, %v2479_v62, %v2478_v41  ;;  %v2491_v7 = vrot.slane %v2452_v54, 5  ;;  %v2493_v35 = vrot.slane %v2453_v56, 4 }
 0xcd0   :  { %v2495_v30 = vrot.slane %v2454_v60, 3  ;;  %v2506_v32 = vld [vmem:[#allocation2 + $0x5] sm:$0x1]  ;;  %v2482_v33 = vsel %vm2220_vm9, %v2481_v11, %v2480_v4  ;;  %v2488_v34 = vsel %vm2208_vm5, %v2487_v14, %v2449_v25  ;;  %v2497_v9 = vrot.slane %v2455_v61, 2  ;;  %v2507_v45 = vld [vmem:[#allocation2 + $0xd] sm:$0x1] }
 0xcd1   :  { %v2499_v10 = vrot.slane %v2456_v12, 1  ;;  %v2508_v49 = vld [vmem:[#allocation2 + $0x15] sm:$0x1]  ;;  %v2484_v50 = vsel %vm2223_vm10, %v2483_v27, %v2482_v33  ;;  %v2490_v58 = vsel %vm2211_vm6, %v2489_v63, %v2488_v34  ;;  %v2509_v46 = vld [vmem:[#allocation2 + $0x1d] sm:$0x1]  ;;  %v2538_v5 = vrot.slane %v2507_v45, 7 }
 0xcd2   :  { %v2510_v44 = vld [vmem:[#allocation2 + $0x25] sm:$0x1]  ;;  %v2511_v52 = vld [vmem:[#allocation2 + $0x2d] sm:$0x1]  ;;  %v2486_v1 = vsel %vm2226_vm11, %v2485_v43, %v2484_v50  ;;  %v2492_v2 = vsel %vm2214_vm7, %v2491_v7, %v2490_v58  ;;  %v2512_v3 = vld [vmem:[#allocation2 + $0x35] sm:$0x1] }
 0xcd3   :  { %v2513_v6 = vld [vmem:[#allocation2 + $0x3d] sm:$0x1]  ;;  %v2540_v37 = vrot.slane %v2508_v49, 6  ;;  %2848 = vst.msk [vmem:[%s4467_s4 + $0x40] sm:$0xff] %vm1128_vm1, %v2486_v1  ;;  %v2494_v15 = vsel %vm2217_vm8, %v2493_v35, %v2492_v2  ;;  %v2542_v13 = vrot.slane %v2509_v46, 5  ;;  %v2544_v16 = vrot.slane %v2510_v44, 4 }
 0xcd4   :  { %v2546_v17 = vrot.slane %v2511_v52, 3  ;;  %v2514_v18 = vld [vmem:[#allocation2 + $0x45] sm:$0x1]  ;;  %v2496_v20 = vsel %vm2220_vm9, %v2495_v30, %v2494_v15  ;;  %v2539_v21 = vsel %vm2208_vm5, %v2538_v5, %v2506_v32  ;;  %v2548_v22 = vrot.slane %v2512_v3, 2  ;;  %v2515_v31 = vld [vmem:[#allocation2 + $0x4d] sm:$0x1] }
 0xcd5   :  { %v2550_v23 = vrot.slane %v2513_v6, 1  ;;  %v2516_v38 = vld [vmem:[#allocation2 + $0x55] sm:$0x1]  ;;  %v2498_v55 = vsel %vm2223_vm10, %v2497_v9, %v2496_v20  ;;  %v2541_v53 = vsel %vm2211_vm6, %v2540_v37, %v2539_v21  ;;  %v2517_v0 = vld [vmem:[#allocation2 + $0x5d] sm:$0x1]  ;;  %v2552_v57 = vrot.slane %v2515_v31, 7 }
 0xcd6   :  { %v2518_v8 = vld [vmem:[#allocation2 + $0x65] sm:$0x1]  ;;  %v2519_v59 = vld [vmem:[#allocation2 + $0x6d] sm:$0x1]  ;;  %v2500_v40 = vsel %vm2226_vm11, %v2499_v10, %v2498_v55  ;;  %v2543_v42 = vsel %vm2214_vm7, %v2542_v13, %v2541_v53  ;;  %v2520_v47 = vld [vmem:[#allocation2 + $0x75] sm:$0x1] }
 0xcd7   :  { %v2521_v48 = vld [vmem:[#allocation2 + $0x7d] sm:$0x1]  ;;  %v2554_v19 = vrot.slane %v2516_v38, 6  ;;  %2849 = vst.msk [vmem:[%s4467_s4 + $0x48] sm:$0xff] %vm1128_vm1, %v2500_v40  ;;  %v2545_v62 = vsel %vm2217_vm8, %v2544_v16, %v2543_v42  ;;  %v2556_v11 = vrot.slane %v2517_v0, 5  ;;  %v2558_v25 = vrot.slane %v2518_v8, 4 }
 0xcd8   :  { %v2560_v24 = vrot.slane %v2519_v59, 3  ;;  %v2571_v26 = vld [vmem:[#allocation2 + $0x6] sm:$0x1]  ;;  %v2547_v27 = vsel %vm2220_vm9, %v2546_v17, %v2545_v62  ;;  %v2553_v43 = vsel %vm2208_vm5, %v2552_v57, %v2514_v18  ;;  %v2562_v28 = vrot.slane %v2520_v47, 2  ;;  %v2572_v36 = vld [vmem:[#allocation2 + $0xe] sm:$0x1] }
 0xcd9   :  { %v2564_v29 = vrot.slane %v2521_v48, 1  ;;  %v2573_v51 = vld [vmem:[#allocation2 + $0x16] sm:$0x1]  ;;  %v2549_v54 = vsel %vm2223_vm10, %v2548_v22, %v2547_v27  ;;  %v2555_v56 = vsel %vm2211_vm6, %v2554_v19, %v2553_v43  ;;  %v2574_v60 = vld [vmem:[#allocation2 + $0x1e] sm:$0x1]  ;;  %v2603_v4 = vrot.slane %v2572_v36, 7 }
 0xcda   :  { %v2575_v39 = vld [vmem:[#allocation2 + $0x26] sm:$0x1]  ;;  %v2576_v41 = vld [vmem:[#allocation2 + $0x2e] sm:$0x1]  ;;  %v2551_v61 = vsel %vm2226_vm11, %v2550_v23, %v2549_v54  ;;  %v2557_v12 = vsel %vm2214_vm7, %v2556_v11, %v2555_v56  ;;  %v2577_v14 = vld [vmem:[#allocation2 + $0x36] sm:$0x1] }
 0xcdb   :  { %v2578_v63 = vld [vmem:[#allocation2 + $0x3e] sm:$0x1]  ;;  %v2605_v7 = vrot.slane %v2573_v51, 6  ;;  %2850 = vst.msk [vmem:[%s4467_s4 + $0x50] sm:$0xff] %vm1128_vm1, %v2551_v61  ;;  %v2559_v35 = vsel %vm2217_vm8, %v2558_v25, %v2557_v12  ;;  %v2607_v30 = vrot.slane %v2574_v60, 5  ;;  %v2609_v32 = vrot.slane %v2575_v39, 4 }
 0xcdc   :  { %v2611_v33 = vrot.slane %v2576_v41, 3  ;;  %v2579_v34 = vld [vmem:[#allocation2 + $0x46] sm:$0x1]  ;;  %v2561_v9 = vsel %vm2220_vm9, %v2560_v24, %v2559_v35  ;;  %v2604_v10 = vsel %vm2208_vm5, %v2603_v4, %v2571_v26  ;;  %v2613_v45 = vrot.slane %v2577_v14, 2  ;;  %v2580_v50 = vld [vmem:[#allocation2 + $0x4e] sm:$0x1] }
 0xcdd   :  { %v2615_v49 = vrot.slane %v2578_v63, 1  ;;  %v2581_v58 = vld [vmem:[#allocation2 + $0x56] sm:$0x1]  ;;  %v2563_v46 = vsel %vm2223_vm10, %v2562_v28, %v2561_v9  ;;  %v2606_v44 = vsel %vm2211_vm6, %v2605_v7, %v2604_v10  ;;  %v2582_v52 = vld [vmem:[#allocation2 + $0x5e] sm:$0x1]  ;;  %v2617_v15 = vrot.slane %v2580_v50, 7 }
 0xcde   :  { %v2583_v1 = vld [vmem:[#allocation2 + $0x66] sm:$0x1]  ;;  %v2584_v2 = vld [vmem:[#allocation2 + $0x6e] sm:$0x1]  ;;  %v2565_v3 = vsel %vm2226_vm11, %v2564_v29, %v2563_v46  ;;  %v2608_v6 = vsel %vm2214_vm7, %v2607_v30, %v2606_v44  ;;  %v2585_v5 = vld [vmem:[#allocation2 + $0x76] sm:$0x1] }
 0xcdf   :  { %v2586_v37 = vld [vmem:[#allocation2 + $0x7e] sm:$0x1]  ;;  %v2619_v13 = vrot.slane %v2581_v58, 6  ;;  %2851 = vst.msk [vmem:[%s4467_s4 + $0x58] sm:$0xff] %vm1128_vm1, %v2565_v3  ;;  %v2610_v16 = vsel %vm2217_vm8, %v2609_v32, %v2608_v6  ;;  %v2621_v17 = vrot.slane %v2582_v52, 5  ;;  %v2623_v18 = vrot.slane %v2583_v1, 4 }
 0xce0   :  { %v2625_v20 = vrot.slane %v2584_v2, 3  ;;  %v2636_v21 = vld [vmem:[#allocation2 + $0x7] sm:$0x1]  ;;  %v2612_v22 = vsel %vm2220_vm9, %v2611_v33, %v2610_v16  ;;  %v2618_v23 = vsel %vm2208_vm5, %v2617_v15, %v2579_v34  ;;  %v2627_v31 = vrot.slane %v2585_v5, 2  ;;  %v2637_v55 = vld [vmem:[#allocation2 + $0xf] sm:$0x1] }
 0xce1   :  { %v2629_v38 = vrot.slane %v2586_v37, 1  ;;  %v2638_v53 = vld [vmem:[#allocation2 + $0x17] sm:$0x1]  ;;  %v2614_v0 = vsel %vm2223_vm10, %v2613_v45, %v2612_v22  ;;  %v2620_v8 = vsel %vm2211_vm6, %v2619_v13, %v2618_v23  ;;  %v2639_v59 = vld [vmem:[#allocation2 + $0x1f] sm:$0x1]  ;;  %v2668_v62 = vrot.slane %v2637_v55, 7 }
 0xce2   :  { %v2640_v40 = vld [vmem:[#allocation2 + $0x27] sm:$0x1]  ;;  %v2641_v42 = vld [vmem:[#allocation2 + $0x2f] sm:$0x1]  ;;  %v2616_v47 = vsel %vm2226_vm11, %v2615_v49, %v2614_v0  ;;  %v2622_v48 = vsel %vm2214_vm7, %v2621_v17, %v2620_v8  ;;  %v2642_v57 = vld [vmem:[#allocation2 + $0x37] sm:$0x1] }
 0xce3   :  { %v2643_v19 = vld [vmem:[#allocation2 + $0x3f] sm:$0x1]  ;;  %v2670_v11 = vrot.slane %v2638_v53, 6  ;;  %2852 = vst.msk [vmem:[%s4467_s4 + $0x60] sm:$0xff] %vm1128_vm1, %v2616_v47  ;;  %v2624_v25 = vsel %vm2217_vm8, %v2623_v18, %v2622_v48  ;;  %v2672_v24 = vrot.slane %v2639_v59, 5  ;;  %v2674_v26 = vrot.slane %v2640_v40, 4 }
 0xce4   :  { %v2676_v27 = vrot.slane %v2641_v42, 3  ;;  %v2644_v43 = vld [vmem:[#allocation2 + $0x47] sm:$0x1]  ;;  %v2626_v28 = vsel %vm2220_vm9, %v2625_v20, %v2624_v25  ;;  %v2669_v29 = vsel %vm2208_vm5, %v2668_v62, %v2636_v21  ;;  %v2678_v36 = vrot.slane %v2642_v57, 2  ;;  %v2645_v54 = vld [vmem:[#allocation2 + $0x4f] sm:$0x1] }
 0xce5   :  { %v2680_v51 = vrot.slane %v2643_v19, 1  ;;  %v2646_v56 = vld [vmem:[#allocation2 + $0x57] sm:$0x1]  ;;  %v2628_v60 = vsel %vm2223_vm10, %v2627_v31, %v2626_v28  ;;  %v2671_v39 = vsel %vm2211_vm6, %v2670_v11, %v2669_v29  ;;  %v2647_v41 = vld [vmem:[#allocation2 + $0x5f] sm:$0x1]  ;;  %v2682_v7 = vrot.slane %v2645_v54, 7 }
 0xce6   :  { %v2648_v61 = vld [vmem:[#allocation2 + $0x67] sm:$0x1]  ;;  %v2649_v12 = vld [vmem:[#allocation2 + $0x6f] sm:$0x1]  ;;  %v2630_v14 = vsel %vm2226_vm11, %v2629_v38, %v2628_v60  ;;  %v2673_v63 = vsel %vm2214_vm7, %v2672_v24, %v2671_v39  ;;  %v2650_v4 = vld [vmem:[#allocation2 + $0x77] sm:$0x1] }
 0xce7   :  { %v2684_v35 = vrot.slane %v2646_v56, 6  ;;  %2853 = vst.msk [vmem:[%s4467_s4 + $0x68] sm:$0xff] %vm1128_vm1, %v2630_v14  ;;  %v2675_v30 = vsel %vm2217_vm8, %v2674_v26, %v2673_v63  ;;  %v2651_v32 = vld [vmem:[#allocation2 + $0x7f] sm:$0x1]  ;;  %v2686_v33 = vrot.slane %v2647_v41, 5  ;;  %v2688_v34 = vrot.slane %v2648_v61, 4 }
 0xce8   :  { %v2677_v9 = vsel %vm2220_vm9, %v2676_v27, %v2675_v30  ;;  %v2683_v10 = vsel %vm2208_vm5, %v2682_v7, %v2644_v43  ;;  %v2690_v45 = vrot.slane %v2649_v12, 3  ;;  %v2692_v58 = vrot.slane %v2650_v4, 2 }
 0xce9   :  { %v2679_v49 = vsel %vm2223_vm10, %v2678_v36, %v2677_v9  ;;  %v2685_v50 = vsel %vm2211_vm6, %v2684_v35, %v2683_v10  ;;  %v2694_v52 = vrot.slane %v2651_v32, 1 }
 0xcea   :  { %v2681_v46 = vsel %vm2226_vm11, %v2680_v51, %v2679_v49  ;;  %v2687_v44 = vsel %vm2214_vm7, %v2686_v33, %v2685_v50 }
 0xceb   :  { %2854 = vst.msk [vmem:[%s4467_s4 + $0x70] sm:$0xff] %vm1128_vm1, %v2681_v46  ;;  %v2689_v1 = vsel %vm2217_vm8, %v2688_v34, %v2687_v44 }
 0xcec   :  { %v2691_v2 = vsel %vm2220_vm9, %v2690_v45, %v2689_v1 }
 0xced   :  { %v2693_v3 = vsel %vm2223_vm10, %v2692_v58, %v2691_v2 }
 0xcee   :  { %v2695_v6 = vsel %vm2226_vm11, %v2694_v52, %v2693_v3 }
 0xcef   :  { %2855 = vst.msk [vmem:[%s4467_s4 + $0x78] sm:$0xff] %vm1128_vm1, %v2695_v6 }

</bundles_post_ra>
